<compile_context>
chip_gen: v7x
topology: tpu7x:2x2x1
jax: 0.10.0
libtpu: 0.0.40
codegen_flags: <defaults>
</compile_context>

<pallas_src>
import functools
import math

import jax
import jax.numpy as jnp
from jax import lax
from jax.experimental import pallas as pl
from jax.experimental.pallas import tpu as pltpu

LANE = 128


# ----------------------------------------------------------------------------
# Kernel 1: fused inference BatchNorm + LIF neuron (lane-dense layout)
# ----------------------------------------------------------------------------

def bn_lif_kernel(x_ref, scale_ref, bias_ref, o_ref, *, timesteps, decay, vth):
    """x_ref:(NB,T,R,128) f32  scale/bias:(R,128) f32  o_ref:(NB,T,R,128) bf16."""
    scale = scale_ref[...]
    bias = bias_ref[...]
    nb = x_ref.shape[0]

    for b in range(nb):                                  # static, small
        def step(t, u, b=b):
            # BatchNorm applied per timestep (keeps the live set to one timestep)
            y = x_ref[b, t, :, :] * scale + bias
            u = u * decay + y                            # LIF: leak then integrate
            spk = jnp.where(u >= vth, vth, 0.0)          # Vth-weighted spike
            o_ref[b, t, :, :] = spk.astype(o_ref.dtype)
            return u - spk                               # soft reset

        lax.fori_loop(0, timesteps, step, jnp.zeros_like(scale), unroll=True)


def bn_lif(x_nhwc, bn_params, *, timesteps, tau, delta_t, vth, eps=1e-5):
    """sn(bn(x)) for NHWC input with leading dim B*T; returns bf16 spikes (NHWC)."""
    gamma, beta, mean, var = bn_params
    N, H, W, C = x_nhwc.shape
    assert N % timesteps == 0
    B, T = N // timesteps, timesteps
    hwc = H * W * C
    assert hwc % LANE == 0, "demo shapes chosen so H*W*C is a multiple of 128"
    R = hwc // LANE

    inv_std = 1.0 / jnp.sqrt(var.astype(jnp.float32) + eps)
    scale_c = gamma.astype(jnp.float32) * inv_std
    bias_c = beta.astype(jnp.float32) - mean.astype(jnp.float32) * scale_c
    # NHWC flattening repeats the per-channel vector H*W times -> lane-dense (R,128)
    scale = jnp.tile(scale_c, H * W).reshape(R, LANE)
    bias = jnp.tile(bias_c, H * W).reshape(R, LANE)

    x4 = x_nhwc.astype(jnp.float32).reshape(B, T, R, LANE)   # free reshape

    # Whole batch per grid step when it fits (~4 MiB cap) to amortize step overhead.
    nb = B
    while nb > 1 and (B % nb or nb * T * hwc * 4 > (4 << 20)):
        nb -= 1

    kernel = functools.partial(bn_lif_kernel, timesteps=T,
                               decay=math.exp(-delta_t / tau), vth=vth)
    out = pl.pallas_call(
        kernel,
        out_shape=jax.ShapeDtypeStruct((B, T, R, LANE), jnp.bfloat16),
        grid=(B // nb,),
        in_specs=[
            pl.BlockSpec((nb, T, R, LANE), lambda i: (i, 0, 0, 0)),
            pl.BlockSpec((R, LANE), lambda i: (0, 0)),   # constant index: resident
            pl.BlockSpec((R, LANE), lambda i: (0, 0)),
        ],
        out_specs=pl.BlockSpec((nb, T, R, LANE), lambda i: (i, 0, 0, 0)),
        compiler_params=pltpu.CompilerParams(
            dimension_semantics=("parallel",),
            vmem_limit_bytes=32 << 20,
        ),
    )(x4, scale, bias)
    return out.reshape(N, H, W, C)                        # free reshape back to NHWC


# ----------------------------------------------------------------------------
# Kernel 2: stride-1 convolution as K*K shifted MXU matmuls (NHWC, no im2col)
# ----------------------------------------------------------------------------

def conv_kernel(x_ref, w_ref, b_ref, *rest, ksize, has_residual):
    """x_ref:(NB,Hp,Wp,Cin) bf16 (pre-padded)  w_ref:(K,K,Cin,Cout) bf16
       b_ref:(1,Cout) f32  [r_ref:(NB*Ho*Wo,Cout) f32]  o_ref:(NB*Ho*Wo,Cout) f32."""
    if has_residual:
        r_ref, o_ref = rest
    else:
        (o_ref,) = rest
    nb, hp, wp, cin = x_ref.shape
    m, cout = o_ref.shape
    ho = hp - ksize + 1
    wo = wp - ksize + 1

    acc = jnp.zeros((m, cout), jnp.float32)
    for kh in range(ksize):                               # static K*K tap loop
        for kw in range(ksize):
            patch = x_ref[:, kh:kh + ho, kw:kw + wo, :]   # (NB,Ho,Wo,Cin) bf16
            patch = patch.reshape(nb * ho * wo, cin)
            acc = acc + jnp.dot(patch, w_ref[kh, kw, :, :],
                                preferred_element_type=jnp.float32)
    acc = acc + b_ref[...]                                # f32 epilogue
    if has_residual:
        acc = acc + r_ref[...]
    o_ref[...] = acc.astype(o_ref.dtype)


def conv2d_nhwc(x, weight_hwio, *, stride=1, padding=0, bias=None, residual=None):
    """Conv2d (NHWC activations, HWIO weights), optional bias / fused residual.

    stride > 1 is lowered to a stride-1 conv over a space-to-depth view of the
    (zero-padded) input with correspondingly rearranged weights, so the Pallas
    kernel only ever does contiguous shifted slices.
    """
    N, H, W, Cin = x.shape
    K, K2, Cin_w, Cout = weight_hwio.shape
    assert K == K2 and Cin_w == Cin
    s = stride
    Ho = (H + 2 * padding - K) // s + 1
    Wo = (W + 2 * padding - K) // s + 1

    if s > 1 and K == 1:
        # 1x1 strided conv == spatial subsample + 1x1 stride-1 conv
        xk = x[:, ::s, ::s, :][:, :Ho, :Wo, :]
        wk, Kk = weight_hwio, 1
    elif s > 1:
        Kk = (K - 1) // s + 1                             # equivalent s=1 kernel size
        Hp2, Wp2 = s * (Ho + Kk - 1), s * (Wo + Kk - 1)
        xp = jnp.pad(x, ((0, 0),
                         (padding, Hp2 - H - padding),
                         (padding, Wp2 - W - padding),
                         (0, 0)))
        # space-to-depth by factor s (one ~1x relayout instead of a 9x im2col)
        xk = xp.reshape(N, Hp2 // s, s, Wp2 // s, s, Cin)
        xk = xk.transpose(0, 1, 3, 2, 4, 5).reshape(N, Hp2 // s, Wp2 // s, s * s * Cin)
        # W'[R,C,(r,c,ci),co] = W[s*R+r, s*C+c, ci, co]  (zero outside the K x K taps)
        w_ext = jnp.zeros((Kk * s, Kk * s, Cin, Cout), weight_hwio.dtype)
        w_ext = w_ext.at[:K, :K].set(weight_hwio)
        wk = w_ext.reshape(Kk, s, Kk, s, Cin, Cout)
        wk = wk.transpose(0, 2, 1, 3, 4, 5).reshape(Kk, Kk, s * s * Cin, Cout)
    else:
        Kk = K
        xk = (jnp.pad(x, ((0, 0), (padding, padding), (padding, padding), (0, 0)))
              if padding else x)
        wk = weight_hwio

    Nk, Hk, Wk, Ck = xk.shape
    assert Hk - Kk + 1 == Ho and Wk - Kk + 1 == Wo

    # Images per grid step: >=2 M tiles when possible (megacore), ~2 MiB bf16 cap.
    nb = Nk // 2 if (Nk % 2 == 0 and Nk >= 2) else Nk
    while nb > 1 and (Nk % nb or nb * Hk * Wk * Ck * 2 > (2 << 20)):
        nb -= 1

    M, mb = Nk * Ho * Wo, nb * Ho * Wo

    xk = xk.astype(jnp.bfloat16)                          # spikes {0,Vth}: exact in bf16
    wk = wk.astype(jnp.bfloat16)
    b2 = (jnp.zeros((1, Cout), jnp.float32) if bias is None
          else bias.reshape(1, Cout).astype(jnp.float32))

    in_specs = [
        pl.BlockSpec((nb, Hk, Wk, Ck), lambda i: (i, 0, 0, 0)),
        pl.BlockSpec((Kk, Kk, Ck, Cout), lambda i: (0, 0, 0, 0)),  # constant: resident
        pl.BlockSpec((1, Cout), lambda i: (0, 0)),
    ]
    args = [xk, wk, b2]
    if residual is not None:
        in_specs.append(pl.BlockSpec((mb, Cout), lambda i: (i, 0)))
        args.append(residual.reshape(M, Cout).astype(jnp.float32))

    kernel = functools.partial(conv_kernel, ksize=Kk,
                               has_residual=residual is not None)
    out = pl.pallas_call(
        kernel,
        out_shape=jax.ShapeDtypeStruct((M, Cout), jnp.float32),
        grid=(Nk // nb,),
        in_specs=in_specs,
        out_specs=pl.BlockSpec((mb, Cout), lambda i: (i, 0)),
        compiler_params=pltpu.CompilerParams(
            dimension_semantics=("parallel",),
            vmem_limit_bytes=32 << 20,
        ),
    )(*args)
    return out.reshape(N, Ho, Wo, Cout)                   # free reshape


# ----------------------------------------------------------------------------
# BasicBlock forward (projection=False, update_hlop=False), NHWC layout
# ----------------------------------------------------------------------------

def basic_block_forward(x, params, *, stride, timesteps, tau, delta_t, vth):
    in_ch = x.shape[-1]
    out_ch = params["conv1_w"].shape[-1]
    has_downsample = (stride != 1) or (in_ch != out_ch)

    # out = sn1(bn1(x))  -> Vth-weighted spikes (bf16)
    out = bn_lif(x, params["bn1"], timesteps=timesteps, tau=tau,
                 delta_t=delta_t, vth=vth)

    if has_downsample:
        identity = conv2d_nhwc(out, params["ds_w"], stride=stride, padding=0,
                               bias=params["ds_b"])
    else:
        identity = x

    # conv1: 3x3, stride, no bias
    out = conv2d_nhwc(out, params["conv1_w"], stride=stride, padding=1)

    # out = sn2(bn2(out))
    out = bn_lif(out, params["bn2"], timesteps=timesteps, tau=tau,
                 delta_t=delta_t, vth=vth)

    # conv2: 3x3, stride 1, no bias; residual add fused into the matmul epilogue
    out = conv2d_nhwc(out, params["conv2_w"], stride=1, padding=1,
                      residual=identity)
    return out


# ----------------------------------------------------------------------------
# Main
# ----------------------------------------------------------------------------

if __name__ == "__main__":
    in_channels, out_channels, stride = 4, 8, 2
    B, T, H, W = 2, 4, 16, 16            # leading activation dim is B*T = 8
    tau, delta_t, vth = 2.0, 0.05, 0.25

    key = jax.random.PRNGKey(0)
    ks = jax.random.split(key, 8)

    def conv_init(k, ksz, cin, cout):    # matches module init: normal(0, sqrt(2/(k*k*cout)))
        n = ksz * ksz * cout
        return jax.random.normal(k, (ksz, ksz, cin, cout), jnp.float32) * math.sqrt(2.0 / n)

    def bn_init(k, c):
        k1, k2, k3, k4 = jax.random.split(k, 4)
        gamma = 1.0 + 0.3 * jax.random.normal(k1, (c,), jnp.float32)
        beta = 0.1 * jax.random.normal(k2, (c,), jnp.float32)
        mean = 0.1 * jax.random.normal(k3, (c,), jnp.float32)
        var = 0.5 + jax.random.uniform(k4, (c,), jnp.float32)
        return (gamma, beta, mean, var)

    params = {
        "bn1": bn_init(ks[0], in_channels),
        "bn2": bn_init(ks[1], out_channels),
        "conv1_w": conv_init(ks[2], 3, in_channels, out_channels),
        "conv2_w": conv_init(ks[3], 3, out_channels, out_channels),
        "ds_w": conv_init(ks[4], 1, in_channels, out_channels),
        "ds_b": 0.1 * jax.random.normal(ks[5], (out_channels,), jnp.float32),
    }

    # NHWC activations (B*T, H, W, C)
    x = jax.random.normal(ks[6], (B * T, H, W, in_channels), jnp.float32)

    fwd = jax.jit(functools.partial(basic_block_forward, stride=stride,
                                    timesteps=T, tau=tau, delta_t=delta_t, vth=vth))
    y = jax.block_until_ready(fwd(x, params))

    expected_shape = (B * T, H // stride, W // stride, out_channels)
    assert y.shape == expected_shape, (y.shape, expected_shape)
    assert bool(jnp.all(jnp.isfinite(y)))
    print("KERNEL_OK")
</pallas_src>

<mosaic_0001>
module attributes {stable_mosaic.version = 11 : i64} {
  func.func @bn_lif_kernel(%arg0: i32, %arg1: memref<2x4x8x128xf32, #tpu.memory_space<vmem>>, %arg2: memref<8x128xf32, #tpu.memory_space<vmem>>, %arg3: memref<8x128xf32, #tpu.memory_space<vmem>>, %arg4: memref<2x4x8x128xbf16, #tpu.memory_space<vmem>>) attributes {dimension_semantics = [#tpu.dimension_semantics<parallel>], iteration_bounds = array<i64: 1>, scalar_prefetch = 0 : i64, scratch_operands = 0 : i64, tpu.core_type = #tpu.core_type<tc>, window_params = [{transform_indices = @transform_0, window_bounds = array<i64: 2, 4, 8, 128>}, {pipeline_mode = #tpu.pipeline_mode<synchronous>, transform_indices = @transform_1, window_bounds = array<i64: 8, 128>}, {pipeline_mode = #tpu.pipeline_mode<synchronous>, transform_indices = @transform_2, window_bounds = array<i64: 8, 128>}, {transform_indices = @transform_3, window_bounds = array<i64: 2, 4, 8, 128>}]} {
    %c0 = arith.constant 0 : index
    %c0_0 = arith.constant 0 : index
    %0 = vector.load %arg2[%c0, %c0_0] : memref<8x128xf32, #tpu.memory_space<vmem>>, vector<8x128xf32>
    %c0_1 = arith.constant 0 : index
    %c0_2 = arith.constant 0 : index
    %1 = vector.load %arg3[%c0_1, %c0_2] : memref<8x128xf32, #tpu.memory_space<vmem>>, vector<8x128xf32>
    %cst = arith.constant 0.000000e+00 : f32
    %2 = vector.broadcast %cst : f32 to vector<8x128xf32>
    %c0_i32 = arith.constant 0 : i32
    %c0_3 = arith.constant 0 : index
    %3 = arith.index_cast %c0_i32 : i32 to index
    %c0_4 = arith.constant 0 : index
    %c0_5 = arith.constant 0 : index
    %4 = vector.load %arg1[%c0_3, %3, %c0_4, %c0_5] : memref<2x4x8x128xf32, #tpu.memory_space<vmem>>, vector<1x1x8x128xf32>
    %5 = vector.shape_cast %4 : vector<1x1x8x128xf32> to vector<8x128xf32>
    %6 = arith.mulf %5, %0 : vector<8x128xf32>
    %7 = arith.addf %6, %1 : vector<8x128xf32>
    %cst_6 = arith.constant 0.975309908 : f32
    %8 = vector.broadcast %cst_6 : f32 to vector<8x128xf32>
    %9 = arith.mulf %2, %8 : vector<8x128xf32>
    %10 = arith.addf %9, %7 : vector<8x128xf32>
    %cst_7 = arith.constant 2.500000e-01 : f32
    %11 = vector.broadcast %cst_7 : f32 to vector<8x128xf32>
    %12 = arith.cmpf oge, %10, %11 : vector<8x128xf32>
    %cst_8 = arith.constant 2.500000e-01 : f32
    %cst_9 = arith.constant 0.000000e+00 : f32
    %13 = vector.broadcast %cst_8 : f32 to vector<8x128xf32>
    %14 = vector.broadcast %cst_9 : f32 to vector<8x128xf32>
    %15 = arith.select %12, %13, %14 : vector<8x128xi1>, vector<8x128xf32>
    %16 = arith.truncf %15 : vector<8x128xf32> to vector<8x128xbf16>
    %c0_10 = arith.constant 0 : index
    %17 = arith.index_cast %c0_i32 : i32 to index
    %c0_11 = arith.constant 0 : index
    %c0_12 = arith.constant 0 : index
    %18 = vector.load %arg4[%c0_10, %17, %c0_11, %c0_12] : memref<2x4x8x128xbf16, #tpu.memory_space<vmem>>, vector<1x1x8x128xbf16>
    %19 = vector.shape_cast %18 : vector<1x1x8x128xbf16> to vector<8x128xbf16>
    %20 = vector.shape_cast %16 : vector<8x128xbf16> to vector<1x1x8x128xbf16>
    tpu.vector_store %arg4[%c0_10, %17, %c0_11, %c0_12], %20 {strides = array<i32>} : memref<2x4x8x128xbf16, #tpu.memory_space<vmem>>, vector<1x1x8x128xbf16>,
    %21 = arith.subf %10, %15 : vector<8x128xf32>
    %c1_i32 = arith.constant 1 : i32
    %c0_13 = arith.constant 0 : index
    %22 = arith.index_cast %c1_i32 : i32 to index
    %c0_14 = arith.constant 0 : index
    %c0_15 = arith.constant 0 : index
    %23 = vector.load %arg1[%c0_13, %22, %c0_14, %c0_15] : memref<2x4x8x128xf32, #tpu.memory_space<vmem>>, vector<1x1x8x128xf32>
    %24 = vector.shape_cast %23 : vector<1x1x8x128xf32> to vector<8x128xf32>
    %25 = arith.mulf %24, %0 : vector<8x128xf32>
    %26 = arith.addf %25, %1 : vector<8x128xf32>
    %cst_16 = arith.constant 0.975309908 : f32
    %27 = vector.broadcast %cst_16 : f32 to vector<8x128xf32>
    %28 = arith.mulf %21, %27 : vector<8x128xf32>
    %29 = arith.addf %28, %26 : vector<8x128xf32>
    %cst_17 = arith.constant 2.500000e-01 : f32
    %30 = vector.broadcast %cst_17 : f32 to vector<8x128xf32>
    %31 = arith.cmpf oge, %29, %30 : vector<8x128xf32>
    %cst_18 = arith.constant 2.500000e-01 : f32
    %cst_19 = arith.constant 0.000000e+00 : f32
    %32 = vector.broadcast %cst_18 : f32 to vector<8x128xf32>
    %33 = vector.broadcast %cst_19 : f32 to vector<8x128xf32>
    %34 = arith.select %31, %32, %33 : vector<8x128xi1>, vector<8x128xf32>
    %35 = arith.truncf %34 : vector<8x128xf32> to vector<8x128xbf16>
    %c0_20 = arith.constant 0 : index
    %36 = arith.index_cast %c1_i32 : i32 to index
    %c0_21 = arith.constant 0 : index
    %c0_22 = arith.constant 0 : index
    %37 = vector.load %arg4[%c0_20, %36, %c0_21, %c0_22] : memref<2x4x8x128xbf16, #tpu.memory_space<vmem>>, vector<1x1x8x128xbf16>
    %38 = vector.shape_cast %37 : vector<1x1x8x128xbf16> to vector<8x128xbf16>
    %39 = vector.shape_cast %35 : vector<8x128xbf16> to vector<1x1x8x128xbf16>
    tpu.vector_store %arg4[%c0_20, %36, %c0_21, %c0_22], %39 {strides = array<i32>} : memref<2x4x8x128xbf16, #tpu.memory_space<vmem>>, vector<1x1x8x128xbf16>,
    %40 = arith.subf %29, %34 : vector<8x128xf32>
    %c2_i32 = arith.constant 2 : i32
    %c0_23 = arith.constant 0 : index
    %41 = arith.index_cast %c2_i32 : i32 to index
    %c0_24 = arith.constant 0 : index
    %c0_25 = arith.constant 0 : index
    %42 = vector.load %arg1[%c0_23, %41, %c0_24, %c0_25] : memref<2x4x8x128xf32, #tpu.memory_space<vmem>>, vector<1x1x8x128xf32>
    %43 = vector.shape_cast %42 : vector<1x1x8x128xf32> to vector<8x128xf32>
    %44 = arith.mulf %43, %0 : vector<8x128xf32>
    %45 = arith.addf %44, %1 : vector<8x128xf32>
    %cst_26 = arith.constant 0.975309908 : f32
    %46 = vector.broadcast %cst_26 : f32 to vector<8x128xf32>
    %47 = arith.mulf %40, %46 : vector<8x128xf32>
    %48 = arith.addf %47, %45 : vector<8x128xf32>
    %cst_27 = arith.constant 2.500000e-01 : f32
    %49 = vector.broadcast %cst_27 : f32 to vector<8x128xf32>
    %50 = arith.cmpf oge, %48, %49 : vector<8x128xf32>
    %cst_28 = arith.constant 2.500000e-01 : f32
    %cst_29 = arith.constant 0.000000e+00 : f32
    %51 = vector.broadcast %cst_28 : f32 to vector<8x128xf32>
    %52 = vector.broadcast %cst_29 : f32 to vector<8x128xf32>
    %53 = arith.select %50, %51, %52 : vector<8x128xi1>, vector<8x128xf32>
    %54 = arith.truncf %53 : vector<8x128xf32> to vector<8x128xbf16>
    %c0_30 = arith.constant 0 : index
    %55 = arith.index_cast %c2_i32 : i32 to index
    %c0_31 = arith.constant 0 : index
    %c0_32 = arith.constant 0 : index
    %56 = vector.load %arg4[%c0_30, %55, %c0_31, %c0_32] : memref<2x4x8x128xbf16, #tpu.memory_space<vmem>>, vector<1x1x8x128xbf16>
    %57 = vector.shape_cast %56 : vector<1x1x8x128xbf16> to vector<8x128xbf16>
    %58 = vector.shape_cast %54 : vector<8x128xbf16> to vector<1x1x8x128xbf16>
    tpu.vector_store %arg4[%c0_30, %55, %c0_31, %c0_32], %58 {strides = array<i32>} : memref<2x4x8x128xbf16, #tpu.memory_space<vmem>>, vector<1x1x8x128xbf16>,
    %59 = arith.subf %48, %53 : vector<8x128xf32>
    %c3_i32 = arith.constant 3 : i32
    %c0_33 = arith.constant 0 : index
    %60 = arith.index_cast %c3_i32 : i32 to index
    %c0_34 = arith.constant 0 : index
    %c0_35 = arith.constant 0 : index
    %61 = vector.load %arg1[%c0_33, %60, %c0_34, %c0_35] : memref<2x4x8x128xf32, #tpu.memory_space<vmem>>, vector<1x1x8x128xf32>
    %62 = vector.shape_cast %61 : vector<1x1x8x128xf32> to vector<8x128xf32>
    %63 = arith.mulf %62, %0 : vector<8x128xf32>
    %64 = arith.addf %63, %1 : vector<8x128xf32>
    %cst_36 = arith.constant 0.975309908 : f32
    %65 = vector.broadcast %cst_36 : f32 to vector<8x128xf32>
    %66 = arith.mulf %59, %65 : vector<8x128xf32>
    %67 = arith.addf %66, %64 : vector<8x128xf32>
    %cst_37 = arith.constant 2.500000e-01 : f32
    %68 = vector.broadcast %cst_37 : f32 to vector<8x128xf32>
    %69 = arith.cmpf oge, %67, %68 : vector<8x128xf32>
    %cst_38 = arith.constant 2.500000e-01 : f32
    %cst_39 = arith.constant 0.000000e+00 : f32
    %70 = vector.broadcast %cst_38 : f32 to vector<8x128xf32>
    %71 = vector.broadcast %cst_39 : f32 to vector<8x128xf32>
    %72 = arith.select %69, %70, %71 : vector<8x128xi1>, vector<8x128xf32>
    %73 = arith.truncf %72 : vector<8x128xf32> to vector<8x128xbf16>
    %c0_40 = arith.constant 0 : index
    %74 = arith.index_cast %c3_i32 : i32 to index
    %c0_41 = arith.constant 0 : index
    %c0_42 = arith.constant 0 : index
    %75 = vector.load %arg4[%c0_40, %74, %c0_41, %c0_42] : memref<2x4x8x128xbf16, #tpu.memory_space<vmem>>, vector<1x1x8x128xbf16>
    %76 = vector.shape_cast %75 : vector<1x1x8x128xbf16> to vector<8x128xbf16>
    %77 = vector.shape_cast %73 : vector<8x128xbf16> to vector<1x1x8x128xbf16>
    tpu.vector_store %arg4[%c0_40, %74, %c0_41, %c0_42], %77 {strides = array<i32>} : memref<2x4x8x128xbf16, #tpu.memory_space<vmem>>, vector<1x1x8x128xbf16>,
    %78 = arith.subf %67, %72 : vector<8x128xf32>
    %c4_i32 = arith.constant 4 : i32
    %cst_43 = arith.constant 0.000000e+00 : f32
    %79 = vector.broadcast %cst_43 : f32 to vector<8x128xf32>
    %c0_i32_44 = arith.constant 0 : i32
    %c1 = arith.constant 1 : index
    %80 = arith.index_cast %c0_i32_44 : i32 to index
    %c0_45 = arith.constant 0 : index
    %c0_46 = arith.constant 0 : index
    %81 = vector.load %arg1[%c1, %80, %c0_45, %c0_46] : memref<2x4x8x128xf32, #tpu.memory_space<vmem>>, vector<1x1x8x128xf32>
    %82 = vector.shape_cast %81 : vector<1x1x8x128xf32> to vector<8x128xf32>
    %83 = arith.mulf %82, %0 : vector<8x128xf32>
    %84 = arith.addf %83, %1 : vector<8x128xf32>
    %cst_47 = arith.constant 0.975309908 : f32
    %85 = vector.broadcast %cst_47 : f32 to vector<8x128xf32>
    %86 = arith.mulf %79, %85 : vector<8x128xf32>
    %87 = arith.addf %86, %84 : vector<8x128xf32>
    %cst_48 = arith.constant 2.500000e-01 : f32
    %88 = vector.broadcast %cst_48 : f32 to vector<8x128xf32>
    %89 = arith.cmpf oge, %87, %88 : vector<8x128xf32>
    %cst_49 = arith.constant 2.500000e-01 : f32
    %cst_50 = arith.constant 0.000000e+00 : f32
    %90 = vector.broadcast %cst_49 : f32 to vector<8x128xf32>
    %91 = vector.broadcast %cst_50 : f32 to vector<8x128xf32>
    %92 = arith.select %89, %90, %91 : vector<8x128xi1>, vector<8x128xf32>
    %93 = arith.truncf %92 : vector<8x128xf32> to vector<8x128xbf16>
    %c1_51 = arith.constant 1 : index
    %94 = arith.index_cast %c0_i32_44 : i32 to index
    %c0_52 = arith.constant 0 : index
    %c0_53 = arith.constant 0 : index
    %95 = vector.load %arg4[%c1_51, %94, %c0_52, %c0_53] : memref<2x4x8x128xbf16, #tpu.memory_space<vmem>>, vector<1x1x8x128xbf16>
    %96 = vector.shape_cast %95 : vector<1x1x8x128xbf16> to vector<8x128xbf16>
    %97 = vector.shape_cast %93 : vector<8x128xbf16> to vector<1x1x8x128xbf16>
    tpu.vector_store %arg4[%c1_51, %94, %c0_52, %c0_53], %97 {strides = array<i32>} : memref<2x4x8x128xbf16, #tpu.memory_space<vmem>>, vector<1x1x8x128xbf16>,
    %98 = arith.subf %87, %92 : vector<8x128xf32>
    %c1_i32_54 = arith.constant 1 : i32
    %c1_55 = arith.constant 1 : index
    %99 = arith.index_cast %c1_i32_54 : i32 to index
    %c0_56 = arith.constant 0 : index
    %c0_57 = arith.constant 0 : index
    %100 = vector.load %arg1[%c1_55, %99, %c0_56, %c0_57] : memref<2x4x8x128xf32, #tpu.memory_space<vmem>>, vector<1x1x8x128xf32>
    %101 = vector.shape_cast %100 : vector<1x1x8x128xf32> to vector<8x128xf32>
    %102 = arith.mulf %101, %0 : vector<8x128xf32>
    %103 = arith.addf %102, %1 : vector<8x128xf32>
    %cst_58 = arith.constant 0.975309908 : f32
    %104 = vector.broadcast %cst_58 : f32 to vector<8x128xf32>
    %105 = arith.mulf %98, %104 : vector<8x128xf32>
    %106 = arith.addf %105, %103 : vector<8x128xf32>
    %cst_59 = arith.constant 2.500000e-01 : f32
    %107 = vector.broadcast %cst_59 : f32 to vector<8x128xf32>
    %108 = arith.cmpf oge, %106, %107 : vector<8x128xf32>
    %cst_60 = arith.constant 2.500000e-01 : f32
    %cst_61 = arith.constant 0.000000e+00 : f32
    %109 = vector.broadcast %cst_60 : f32 to vector<8x128xf32>
    %110 = vector.broadcast %cst_61 : f32 to vector<8x128xf32>
    %111 = arith.select %108, %109, %110 : vector<8x128xi1>, vector<8x128xf32>
    %112 = arith.truncf %111 : vector<8x128xf32> to vector<8x128xbf16>
    %c1_62 = arith.constant 1 : index
    %113 = arith.index_cast %c1_i32_54 : i32 to index
    %c0_63 = arith.constant 0 : index
    %c0_64 = arith.constant 0 : index
    %114 = vector.load %arg4[%c1_62, %113, %c0_63, %c0_64] : memref<2x4x8x128xbf16, #tpu.memory_space<vmem>>, vector<1x1x8x128xbf16>
    %115 = vector.shape_cast %114 : vector<1x1x8x128xbf16> to vector<8x128xbf16>
    %116 = vector.shape_cast %112 : vector<8x128xbf16> to vector<1x1x8x128xbf16>
    tpu.vector_store %arg4[%c1_62, %113, %c0_63, %c0_64], %116 {strides = array<i32>} : memref<2x4x8x128xbf16, #tpu.memory_space<vmem>>, vector<1x1x8x128xbf16>,
    %117 = arith.subf %106, %111 : vector<8x128xf32>
    %c2_i32_65 = arith.constant 2 : i32
    %c1_66 = arith.constant 1 : index
    %118 = arith.index_cast %c2_i32_65 : i32 to index
    %c0_67 = arith.constant 0 : index
    %c0_68 = arith.constant 0 : index
    %119 = vector.load %arg1[%c1_66, %118, %c0_67, %c0_68] : memref<2x4x8x128xf32, #tpu.memory_space<vmem>>, vector<1x1x8x128xf32>
    %120 = vector.shape_cast %119 : vector<1x1x8x128xf32> to vector<8x128xf32>
    %121 = arith.mulf %120, %0 : vector<8x128xf32>
    %122 = arith.addf %121, %1 : vector<8x128xf32>
    %cst_69 = arith.constant 0.975309908 : f32
    %123 = vector.broadcast %cst_69 : f32 to vector<8x128xf32>
    %124 = arith.mulf %117, %123 : vector<8x128xf32>
    %125 = arith.addf %124, %122 : vector<8x128xf32>
    %cst_70 = arith.constant 2.500000e-01 : f32
    %126 = vector.broadcast %cst_70 : f32 to vector<8x128xf32>
    %127 = arith.cmpf oge, %125, %126 : vector<8x128xf32>
    %cst_71 = arith.constant 2.500000e-01 : f32
    %cst_72 = arith.constant 0.000000e+00 : f32
    %128 = vector.broadcast %cst_71 : f32 to vector<8x128xf32>
    %129 = vector.broadcast %cst_72 : f32 to vector<8x128xf32>
    %130 = arith.select %127, %128, %129 : vector<8x128xi1>, vector<8x128xf32>
    %131 = arith.truncf %130 : vector<8x128xf32> to vector<8x128xbf16>
    %c1_73 = arith.constant 1 : index
    %132 = arith.index_cast %c2_i32_65 : i32 to index
    %c0_74 = arith.constant 0 : index
    %c0_75 = arith.constant 0 : index
    %133 = vector.load %arg4[%c1_73, %132, %c0_74, %c0_75] : memref<2x4x8x128xbf16, #tpu.memory_space<vmem>>, vector<1x1x8x128xbf16>
    %134 = vector.shape_cast %133 : vector<1x1x8x128xbf16> to vector<8x128xbf16>
    %135 = vector.shape_cast %131 : vector<8x128xbf16> to vector<1x1x8x128xbf16>
    tpu.vector_store %arg4[%c1_73, %132, %c0_74, %c0_75], %135 {strides = array<i32>} : memref<2x4x8x128xbf16, #tpu.memory_space<vmem>>, vector<1x1x8x128xbf16>,
    %136 = arith.subf %125, %130 : vector<8x128xf32>
    %c3_i32_76 = arith.constant 3 : i32
    %c1_77 = arith.constant 1 : index
    %137 = arith.index_cast %c3_i32_76 : i32 to index
    %c0_78 = arith.constant 0 : index
    %c0_79 = arith.constant 0 : index
    %138 = vector.load %arg1[%c1_77, %137, %c0_78, %c0_79] : memref<2x4x8x128xf32, #tpu.memory_space<vmem>>, vector<1x1x8x128xf32>
    %139 = vector.shape_cast %138 : vector<1x1x8x128xf32> to vector<8x128xf32>
    %140 = arith.mulf %139, %0 : vector<8x128xf32>
    %141 = arith.addf %140, %1 : vector<8x128xf32>
    %cst_80 = arith.constant 0.975309908 : f32
    %142 = vector.broadcast %cst_80 : f32 to vector<8x128xf32>
    %143 = arith.mulf %136, %142 : vector<8x128xf32>
    %144 = arith.addf %143, %141 : vector<8x128xf32>
    %cst_81 = arith.constant 2.500000e-01 : f32
    %145 = vector.broadcast %cst_81 : f32 to vector<8x128xf32>
    %146 = arith.cmpf oge, %144, %145 : vector<8x128xf32>
    %cst_82 = arith.constant 2.500000e-01 : f32
    %cst_83 = arith.constant 0.000000e+00 : f32
    %147 = vector.broadcast %cst_82 : f32 to vector<8x128xf32>
    %148 = vector.broadcast %cst_83 : f32 to vector<8x128xf32>
    %149 = arith.select %146, %147, %148 : vector<8x128xi1>, vector<8x128xf32>
    %150 = arith.truncf %149 : vector<8x128xf32> to vector<8x128xbf16>
    %c1_84 = arith.constant 1 : index
    %151 = arith.index_cast %c3_i32_76 : i32 to index
    %c0_85 = arith.constant 0 : index
    %c0_86 = arith.constant 0 : index
    %152 = vector.load %arg4[%c1_84, %151, %c0_85, %c0_86] : memref<2x4x8x128xbf16, #tpu.memory_space<vmem>>, vector<1x1x8x128xbf16>
    %153 = vector.shape_cast %152 : vector<1x1x8x128xbf16> to vector<8x128xbf16>
    %154 = vector.shape_cast %150 : vector<8x128xbf16> to vector<1x1x8x128xbf16>
    tpu.vector_store %arg4[%c1_84, %151, %c0_85, %c0_86], %154 {strides = array<i32>} : memref<2x4x8x128xbf16, #tpu.memory_space<vmem>>, vector<1x1x8x128xbf16>,
    %155 = arith.subf %144, %149 : vector<8x128xf32>
    %c4_i32_87 = arith.constant 4 : i32
    return
  }
  func.func @transform_0(%arg0: i32) -> (i32, i32, i32, i32) {
    %c0_i32 = arith.constant 0 : i32
    %c0_i32_0 = arith.constant 0 : i32
    %c0_i32_1 = arith.constant 0 : i32
    %c0_i32_2 = arith.constant 0 : i32
    return %arg0, %c0_i32, %c0_i32_0, %c0_i32_1 : i32, i32, i32, i32
  }
  func.func @transform_1(%arg0: i32) -> (i32, i32) {
    %c0_i32 = arith.constant 0 : i32
    %c0_i32_0 = arith.constant 0 : i32
    %c0_i32_1 = arith.constant 0 : i32
    return %c0_i32, %c0_i32_0 : i32, i32
  }
  func.func @transform_2(%arg0: i32) -> (i32, i32) {
    %c0_i32 = arith.constant 0 : i32
    %c0_i32_0 = arith.constant 0 : i32
    %c0_i32_1 = arith.constant 0 : i32
    return %c0_i32, %c0_i32_0 : i32, i32
  }
  func.func @transform_3(%arg0: i32) -> (i32, i32, i32, i32) {
    %c0_i32 = arith.constant 0 : i32
    %c0_i32_0 = arith.constant 0 : i32
    %c0_i32_1 = arith.constant 0 : i32
    %c0_i32_2 = arith.constant 0 : i32
    return %arg0, %c0_i32, %c0_i32_0, %c0_i32_1 : i32, i32, i32, i32
  }
}

module attributes {stable_mosaic.version = 11 : i64} {
  func.func @conv_kernel(%arg0: i32, %arg1: memref<4x9x9x16xbf16, #tpu.memory_space<vmem>>, %arg2: memref<2x2x16x8xbf16, #tpu.memory_space<vmem>>, %arg3: memref<1x8xf32, #tpu.memory_space<vmem>>, %arg4: memref<256x8xf32, #tpu.memory_space<vmem>>) attributes {dimension_semantics = [#tpu.dimension_semantics<parallel>], iteration_bounds = array<i64: 2>, scalar_prefetch = 0 : i64, scratch_operands = 0 : i64, tpu.core_type = #tpu.core_type<tc>, window_params = [{transform_indices = @transform_0, window_bounds = array<i64: 4, 9, 9, 16>}, {pipeline_mode = #tpu.pipeline_mode<synchronous>, transform_indices = @transform_1, window_bounds = array<i64: 2, 2, 16, 8>}, {pipeline_mode = #tpu.pipeline_mode<synchronous>, transform_indices = @transform_2, window_bounds = array<i64: 1, 8>}, {transform_indices = @transform_3, window_bounds = array<i64: 256, 8>}]} {
    %cst = arith.constant 0.000000e+00 : f32
    %0 = vector.broadcast %cst : f32 to vector<256x8xf32>
    %c0 = arith.constant 0 : index
    %c0_0 = arith.constant 0 : index
    %c0_1 = arith.constant 0 : index
    %c0_2 = arith.constant 0 : index
    %1 = vector.load %arg1[%c0, %c0_0, %c0_1, %c0_2] : memref<4x9x9x16xbf16, #tpu.memory_space<vmem>>, vector<4x8x8x16xbf16>
    %2 = vector.shape_cast %1 : vector<4x8x8x16xbf16> to vector<256x16xbf16>
    %c0_3 = arith.constant 0 : index
    %c0_4 = arith.constant 0 : index
    %c0_5 = arith.constant 0 : index
    %c0_6 = arith.constant 0 : index
    %3 = vector.load %arg2[%c0_3, %c0_4, %c0_5, %c0_6] : memref<2x2x16x8xbf16, #tpu.memory_space<vmem>>, vector<1x1x16x8xbf16>
    %4 = vector.shape_cast %3 : vector<1x1x16x8xbf16> to vector<16x8xbf16>
    %cst_7 = arith.constant dense<0.000000e+00> : vector<256x8xf32>
    %5 = tpu.matmul %2, %4, %cst_7 {dimension_numbers = #tpu.dot_dimension_numbers<[1], [0], [0], [1], [0, 0, 1, 1], [], []>} : vector<256x16xbf16>, vector<16x8xbf16>, vector<256x8xf32> -> vector<256x8xf32>
    %6 = arith.addf %0, %5 : vector<256x8xf32>
    %c0_8 = arith.constant 0 : index
    %c0_9 = arith.constant 0 : index
    %c1 = arith.constant 1 : index
    %c0_10 = arith.constant 0 : index
    %7 = vector.load %arg1[%c0_8, %c0_9, %c1, %c0_10] : memref<4x9x9x16xbf16, #tpu.memory_space<vmem>>, vector<4x8x8x16xbf16>
    %8 = vector.shape_cast %7 : vector<4x8x8x16xbf16> to vector<256x16xbf16>
    %c0_11 = arith.constant 0 : index
    %c1_12 = arith.constant 1 : index
    %c0_13 = arith.constant 0 : index
    %c0_14 = arith.constant 0 : index
    %9 = vector.load %arg2[%c0_11, %c1_12, %c0_13, %c0_14] : memref<2x2x16x8xbf16, #tpu.memory_space<vmem>>, vector<1x1x16x8xbf16>
    %10 = vector.shape_cast %9 : vector<1x1x16x8xbf16> to vector<16x8xbf16>
    %cst_15 = arith.constant dense<0.000000e+00> : vector<256x8xf32>
    %11 = tpu.matmul %8, %10, %cst_15 {dimension_numbers = #tpu.dot_dimension_numbers<[1], [0], [0], [1], [0, 0, 1, 1], [], []>} : vector<256x16xbf16>, vector<16x8xbf16>, vector<256x8xf32> -> vector<256x8xf32>
    %12 = arith.addf %6, %11 : vector<256x8xf32>
    %c0_16 = arith.constant 0 : index
    %c1_17 = arith.constant 1 : index
    %c0_18 = arith.constant 0 : index
    %c0_19 = arith.constant 0 : index
    %13 = vector.load %arg1[%c0_16, %c1_17, %c0_18, %c0_19] : memref<4x9x9x16xbf16, #tpu.memory_space<vmem>>, vector<4x8x8x16xbf16>
    %14 = vector.shape_cast %13 : vector<4x8x8x16xbf16> to vector<256x16xbf16>
    %c1_20 = arith.constant 1 : index
    %c0_21 = arith.constant 0 : index
    %c0_22 = arith.constant 0 : index
    %c0_23 = arith.constant 0 : index
    %15 = vector.load %arg2[%c1_20, %c0_21, %c0_22, %c0_23] : memref<2x2x16x8xbf16, #tpu.memory_space<vmem>>, vector<1x1x16x8xbf16>
    %16 = vector.shape_cast %15 : vector<1x1x16x8xbf16> to vector<16x8xbf16>
    %cst_24 = arith.constant dense<0.000000e+00> : vector<256x8xf32>
    %17 = tpu.matmul %14, %16, %cst_24 {dimension_numbers = #tpu.dot_dimension_numbers<[1], [0], [0], [1], [0, 0, 1, 1], [], []>} : vector<256x16xbf16>, vector<16x8xbf16>, vector<256x8xf32> -> vector<256x8xf32>
    %18 = arith.addf %12, %17 : vector<256x8xf32>
    %c0_25 = arith.constant 0 : index
    %c1_26 = arith.constant 1 : index
    %c1_27 = arith.constant 1 : index
    %c0_28 = arith.constant 0 : index
    %19 = vector.load %arg1[%c0_25, %c1_26, %c1_27, %c0_28] : memref<4x9x9x16xbf16, #tpu.memory_space<vmem>>, vector<4x8x8x16xbf16>
    %20 = vector.shape_cast %19 : vector<4x8x8x16xbf16> to vector<256x16xbf16>
    %c1_29 = arith.constant 1 : index
    %c1_30 = arith.constant 1 : index
    %c0_31 = arith.constant 0 : index
    %c0_32 = arith.constant 0 : index
    %21 = vector.load %arg2[%c1_29, %c1_30, %c0_31, %c0_32] : memref<2x2x16x8xbf16, #tpu.memory_space<vmem>>, vector<1x1x16x8xbf16>
    %22 = vector.shape_cast %21 : vector<1x1x16x8xbf16> to vector<16x8xbf16>
    %cst_33 = arith.constant dense<0.000000e+00> : vector<256x8xf32>
    %23 = tpu.matmul %20, %22, %cst_33 {dimension_numbers = #tpu.dot_dimension_numbers<[1], [0], [0], [1], [0, 0, 1, 1], [], []>} : vector<256x16xbf16>, vector<16x8xbf16>, vector<256x8xf32> -> vector<256x8xf32>
    %24 = arith.addf %18, %23 : vector<256x8xf32>
    %c0_34 = arith.constant 0 : index
    %c0_35 = arith.constant 0 : index
    %25 = vector.load %arg3[%c0_34, %c0_35] : memref<1x8xf32, #tpu.memory_space<vmem>>, vector<1x8xf32>
    %26 = vector.broadcast %25 : vector<1x8xf32> to vector<256x8xf32>
    %27 = arith.addf %24, %26 : vector<256x8xf32>
    %c0_36 = arith.constant 0 : index
    %c0_37 = arith.constant 0 : index
    %28 = vector.load %arg4[%c0_36, %c0_37] : memref<256x8xf32, #tpu.memory_space<vmem>>, vector<256x8xf32>
    tpu.vector_store %arg4[%c0_36, %c0_37], %27 {strides = array<i32>} : memref<256x8xf32, #tpu.memory_space<vmem>>, vector<256x8xf32>,
    return
  }
  func.func @transform_0(%arg0: i32) -> (i32, i32, i32, i32) {
    %c0_i32 = arith.constant 0 : i32
    %c0_i32_0 = arith.constant 0 : i32
    %c0_i32_1 = arith.constant 0 : i32
    %c0_i32_2 = arith.constant 0 : i32
    return %arg0, %c0_i32, %c0_i32_0, %c0_i32_1 : i32, i32, i32, i32
  }
  func.func @transform_1(%arg0: i32) -> (i32, i32, i32, i32) {
    %c0_i32 = arith.constant 0 : i32
    %c0_i32_0 = arith.constant 0 : i32
    %c0_i32_1 = arith.constant 0 : i32
    %c0_i32_2 = arith.constant 0 : i32
    %c0_i32_3 = arith.constant 0 : i32
    return %c0_i32, %c0_i32_0, %c0_i32_1, %c0_i32_2 : i32, i32, i32, i32
  }
  func.func @transform_2(%arg0: i32) -> (i32, i32) {
    %c0_i32 = arith.constant 0 : i32
    %c0_i32_0 = arith.constant 0 : i32
    %c0_i32_1 = arith.constant 0 : i32
    return %c0_i32, %c0_i32_0 : i32, i32
  }
  func.func @transform_3(%arg0: i32) -> (i32, i32) {
    %c0_i32 = arith.constant 0 : i32
    %c0_i32_0 = arith.constant 0 : i32
    return %arg0, %c0_i32 : i32, i32
  }
}

module attributes {stable_mosaic.version = 11 : i64} {
  func.func @conv_kernel(%arg0: i32, %arg1: memref<4x8x8x4xbf16, #tpu.memory_space<vmem>>, %arg2: memref<1x1x4x8xbf16, #tpu.memory_space<vmem>>, %arg3: memref<1x8xf32, #tpu.memory_space<vmem>>, %arg4: memref<256x8xf32, #tpu.memory_space<vmem>>) attributes {dimension_semantics = [#tpu.dimension_semantics<parallel>], iteration_bounds = array<i64: 2>, scalar_prefetch = 0 : i64, scratch_operands = 0 : i64, tpu.core_type = #tpu.core_type<tc>, window_params = [{transform_indices = @transform_0, window_bounds = array<i64: 4, 8, 8, 4>}, {pipeline_mode = #tpu.pipeline_mode<synchronous>, transform_indices = @transform_1, window_bounds = array<i64: 1, 1, 4, 8>}, {pipeline_mode = #tpu.pipeline_mode<synchronous>, transform_indices = @transform_2, window_bounds = array<i64: 1, 8>}, {transform_indices = @transform_3, window_bounds = array<i64: 256, 8>}]} {
    %cst = arith.constant 0.000000e+00 : f32
    %0 = vector.broadcast %cst : f32 to vector<256x8xf32>
    %c0 = arith.constant 0 : index
    %c0_0 = arith.constant 0 : index
    %c0_1 = arith.constant 0 : index
    %c0_2 = arith.constant 0 : index
    %1 = vector.load %arg1[%c0, %c0_0, %c0_1, %c0_2] : memref<4x8x8x4xbf16, #tpu.memory_space<vmem>>, vector<4x8x8x4xbf16>
    %2 = vector.shape_cast %1 : vector<4x8x8x4xbf16> to vector<256x4xbf16>
    %c0_3 = arith.constant 0 : index
    %c0_4 = arith.constant 0 : index
    %c0_5 = arith.constant 0 : index
    %c0_6 = arith.constant 0 : index
    %3 = vector.load %arg2[%c0_3, %c0_4, %c0_5, %c0_6] : memref<1x1x4x8xbf16, #tpu.memory_space<vmem>>, vector<1x1x4x8xbf16>
    %4 = vector.shape_cast %3 : vector<1x1x4x8xbf16> to vector<4x8xbf16>
    %cst_7 = arith.constant dense<0.000000e+00> : vector<256x8xf32>
    %5 = tpu.matmul %2, %4, %cst_7 {dimension_numbers = #tpu.dot_dimension_numbers<[1], [0], [0], [1], [0, 0, 1, 1], [], []>} : vector<256x4xbf16>, vector<4x8xbf16>, vector<256x8xf32> -> vector<256x8xf32>
    %6 = arith.addf %0, %5 : vector<256x8xf32>
    %c0_8 = arith.constant 0 : index
    %c0_9 = arith.constant 0 : index
    %7 = vector.load %arg3[%c0_8, %c0_9] : memref<1x8xf32, #tpu.memory_space<vmem>>, vector<1x8xf32>
    %8 = vector.broadcast %7 : vector<1x8xf32> to vector<256x8xf32>
    %9 = arith.addf %6, %8 : vector<256x8xf32>
    %c0_10 = arith.constant 0 : index
    %c0_11 = arith.constant 0 : index
    %10 = vector.load %arg4[%c0_10, %c0_11] : memref<256x8xf32, #tpu.memory_space<vmem>>, vector<256x8xf32>
    tpu.vector_store %arg4[%c0_10, %c0_11], %9 {strides = array<i32>} : memref<256x8xf32, #tpu.memory_space<vmem>>, vector<256x8xf32>,
    return
  }
  func.func @transform_0(%arg0: i32) -> (i32, i32, i32, i32) {
    %c0_i32 = arith.constant 0 : i32
    %c0_i32_0 = arith.constant 0 : i32
    %c0_i32_1 = arith.constant 0 : i32
    %c0_i32_2 = arith.constant 0 : i32
    return %arg0, %c0_i32, %c0_i32_0, %c0_i32_1 : i32, i32, i32, i32
  }
  func.func @transform_1(%arg0: i32) -> (i32, i32, i32, i32) {
    %c0_i32 = arith.constant 0 : i32
    %c0_i32_0 = arith.constant 0 : i32
    %c0_i32_1 = arith.constant 0 : i32
    %c0_i32_2 = arith.constant 0 : i32
    %c0_i32_3 = arith.constant 0 : i32
    return %c0_i32, %c0_i32_0, %c0_i32_1, %c0_i32_2 : i32, i32, i32, i32
  }
  func.func @transform_2(%arg0: i32) -> (i32, i32) {
    %c0_i32 = arith.constant 0 : i32
    %c0_i32_0 = arith.constant 0 : i32
    %c0_i32_1 = arith.constant 0 : i32
    return %c0_i32, %c0_i32_0 : i32, i32
  }
  func.func @transform_3(%arg0: i32) -> (i32, i32) {
    %c0_i32 = arith.constant 0 : i32
    %c0_i32_0 = arith.constant 0 : i32
    return %arg0, %c0_i32 : i32, i32
  }
}

module attributes {stable_mosaic.version = 11 : i64} {
  func.func @bn_lif_kernel(%arg0: i32, %arg1: memref<2x4x4x128xf32, #tpu.memory_space<vmem>>, %arg2: memref<4x128xf32, #tpu.memory_space<vmem>>, %arg3: memref<4x128xf32, #tpu.memory_space<vmem>>, %arg4: memref<2x4x4x128xbf16, #tpu.memory_space<vmem>>) attributes {dimension_semantics = [#tpu.dimension_semantics<parallel>], iteration_bounds = array<i64: 1>, scalar_prefetch = 0 : i64, scratch_operands = 0 : i64, tpu.core_type = #tpu.core_type<tc>, window_params = [{transform_indices = @transform_0, window_bounds = array<i64: 2, 4, 4, 128>}, {pipeline_mode = #tpu.pipeline_mode<synchronous>, transform_indices = @transform_1, window_bounds = array<i64: 4, 128>}, {pipeline_mode = #tpu.pipeline_mode<synchronous>, transform_indices = @transform_2, window_bounds = array<i64: 4, 128>}, {transform_indices = @transform_3, window_bounds = array<i64: 2, 4, 4, 128>}]} {
    %c0 = arith.constant 0 : index
    %c0_0 = arith.constant 0 : index
    %0 = vector.load %arg2[%c0, %c0_0] : memref<4x128xf32, #tpu.memory_space<vmem>>, vector<4x128xf32>
    %c0_1 = arith.constant 0 : index
    %c0_2 = arith.constant 0 : index
    %1 = vector.load %arg3[%c0_1, %c0_2] : memref<4x128xf32, #tpu.memory_space<vmem>>, vector<4x128xf32>
    %cst = arith.constant 0.000000e+00 : f32
    %2 = vector.broadcast %cst : f32 to vector<4x128xf32>
    %c0_i32 = arith.constant 0 : i32
    %c0_3 = arith.constant 0 : index
    %3 = arith.index_cast %c0_i32 : i32 to index
    %c0_4 = arith.constant 0 : index
    %c0_5 = arith.constant 0 : index
    %4 = vector.load %arg1[%c0_3, %3, %c0_4, %c0_5] : memref<2x4x4x128xf32, #tpu.memory_space<vmem>>, vector<1x1x4x128xf32>
    %5 = vector.shape_cast %4 : vector<1x1x4x128xf32> to vector<4x128xf32>
    %6 = arith.mulf %5, %0 : vector<4x128xf32>
    %7 = arith.addf %6, %1 : vector<4x128xf32>
    %cst_6 = arith.constant 0.975309908 : f32
    %8 = vector.broadcast %cst_6 : f32 to vector<4x128xf32>
    %9 = arith.mulf %2, %8 : vector<4x128xf32>
    %10 = arith.addf %9, %7 : vector<4x128xf32>
    %cst_7 = arith.constant 2.500000e-01 : f32
    %11 = vector.broadcast %cst_7 : f32 to vector<4x128xf32>
    %12 = arith.cmpf oge, %10, %11 : vector<4x128xf32>
    %cst_8 = arith.constant 2.500000e-01 : f32
    %cst_9 = arith.constant 0.000000e+00 : f32
    %13 = vector.broadcast %cst_8 : f32 to vector<4x128xf32>
    %14 = vector.broadcast %cst_9 : f32 to vector<4x128xf32>
    %15 = arith.select %12, %13, %14 : vector<4x128xi1>, vector<4x128xf32>
    %16 = arith.truncf %15 : vector<4x128xf32> to vector<4x128xbf16>
    %c0_10 = arith.constant 0 : index
    %17 = arith.index_cast %c0_i32 : i32 to index
    %c0_11 = arith.constant 0 : index
    %c0_12 = arith.constant 0 : index
    %18 = vector.load %arg4[%c0_10, %17, %c0_11, %c0_12] : memref<2x4x4x128xbf16, #tpu.memory_space<vmem>>, vector<1x1x4x128xbf16>
    %19 = vector.shape_cast %18 : vector<1x1x4x128xbf16> to vector<4x128xbf16>
    %20 = vector.shape_cast %16 : vector<4x128xbf16> to vector<1x1x4x128xbf16>
    tpu.vector_store %arg4[%c0_10, %17, %c0_11, %c0_12], %20 {strides = array<i32>} : memref<2x4x4x128xbf16, #tpu.memory_space<vmem>>, vector<1x1x4x128xbf16>,
    %21 = arith.subf %10, %15 : vector<4x128xf32>
    %c1_i32 = arith.constant 1 : i32
    %c0_13 = arith.constant 0 : index
    %22 = arith.index_cast %c1_i32 : i32 to index
    %c0_14 = arith.constant 0 : index
    %c0_15 = arith.constant 0 : index
    %23 = vector.load %arg1[%c0_13, %22, %c0_14, %c0_15] : memref<2x4x4x128xf32, #tpu.memory_space<vmem>>, vector<1x1x4x128xf32>
    %24 = vector.shape_cast %23 : vector<1x1x4x128xf32> to vector<4x128xf32>
    %25 = arith.mulf %24, %0 : vector<4x128xf32>
    %26 = arith.addf %25, %1 : vector<4x128xf32>
    %cst_16 = arith.constant 0.975309908 : f32
    %27 = vector.broadcast %cst_16 : f32 to vector<4x128xf32>
    %28 = arith.mulf %21, %27 : vector<4x128xf32>
    %29 = arith.addf %28, %26 : vector<4x128xf32>
    %cst_17 = arith.constant 2.500000e-01 : f32
    %30 = vector.broadcast %cst_17 : f32 to vector<4x128xf32>
    %31 = arith.cmpf oge, %29, %30 : vector<4x128xf32>
    %cst_18 = arith.constant 2.500000e-01 : f32
    %cst_19 = arith.constant 0.000000e+00 : f32
    %32 = vector.broadcast %cst_18 : f32 to vector<4x128xf32>
    %33 = vector.broadcast %cst_19 : f32 to vector<4x128xf32>
    %34 = arith.select %31, %32, %33 : vector<4x128xi1>, vector<4x128xf32>
    %35 = arith.truncf %34 : vector<4x128xf32> to vector<4x128xbf16>
    %c0_20 = arith.constant 0 : index
    %36 = arith.index_cast %c1_i32 : i32 to index
    %c0_21 = arith.constant 0 : index
    %c0_22 = arith.constant 0 : index
    %37 = vector.load %arg4[%c0_20, %36, %c0_21, %c0_22] : memref<2x4x4x128xbf16, #tpu.memory_space<vmem>>, vector<1x1x4x128xbf16>
    %38 = vector.shape_cast %37 : vector<1x1x4x128xbf16> to vector<4x128xbf16>
    %39 = vector.shape_cast %35 : vector<4x128xbf16> to vector<1x1x4x128xbf16>
    tpu.vector_store %arg4[%c0_20, %36, %c0_21, %c0_22], %39 {strides = array<i32>} : memref<2x4x4x128xbf16, #tpu.memory_space<vmem>>, vector<1x1x4x128xbf16>,
    %40 = arith.subf %29, %34 : vector<4x128xf32>
    %c2_i32 = arith.constant 2 : i32
    %c0_23 = arith.constant 0 : index
    %41 = arith.index_cast %c2_i32 : i32 to index
    %c0_24 = arith.constant 0 : index
    %c0_25 = arith.constant 0 : index
    %42 = vector.load %arg1[%c0_23, %41, %c0_24, %c0_25] : memref<2x4x4x128xf32, #tpu.memory_space<vmem>>, vector<1x1x4x128xf32>
    %43 = vector.shape_cast %42 : vector<1x1x4x128xf32> to vector<4x128xf32>
    %44 = arith.mulf %43, %0 : vector<4x128xf32>
    %45 = arith.addf %44, %1 : vector<4x128xf32>
    %cst_26 = arith.constant 0.975309908 : f32
    %46 = vector.broadcast %cst_26 : f32 to vector<4x128xf32>
    %47 = arith.mulf %40, %46 : vector<4x128xf32>
    %48 = arith.addf %47, %45 : vector<4x128xf32>
    %cst_27 = arith.constant 2.500000e-01 : f32
    %49 = vector.broadcast %cst_27 : f32 to vector<4x128xf32>
    %50 = arith.cmpf oge, %48, %49 : vector<4x128xf32>
    %cst_28 = arith.constant 2.500000e-01 : f32
    %cst_29 = arith.constant 0.000000e+00 : f32
    %51 = vector.broadcast %cst_28 : f32 to vector<4x128xf32>
    %52 = vector.broadcast %cst_29 : f32 to vector<4x128xf32>
    %53 = arith.select %50, %51, %52 : vector<4x128xi1>, vector<4x128xf32>
    %54 = arith.truncf %53 : vector<4x128xf32> to vector<4x128xbf16>
    %c0_30 = arith.constant 0 : index
    %55 = arith.index_cast %c2_i32 : i32 to index
    %c0_31 = arith.constant 0 : index
    %c0_32 = arith.constant 0 : index
    %56 = vector.load %arg4[%c0_30, %55, %c0_31, %c0_32] : memref<2x4x4x128xbf16, #tpu.memory_space<vmem>>, vector<1x1x4x128xbf16>
    %57 = vector.shape_cast %56 : vector<1x1x4x128xbf16> to vector<4x128xbf16>
    %58 = vector.shape_cast %54 : vector<4x128xbf16> to vector<1x1x4x128xbf16>
    tpu.vector_store %arg4[%c0_30, %55, %c0_31, %c0_32], %58 {strides = array<i32>} : memref<2x4x4x128xbf16, #tpu.memory_space<vmem>>, vector<1x1x4x128xbf16>,
    %59 = arith.subf %48, %53 : vector<4x128xf32>
    %c3_i32 = arith.constant 3 : i32
    %c0_33 = arith.constant 0 : index
    %60 = arith.index_cast %c3_i32 : i32 to index
    %c0_34 = arith.constant 0 : index
    %c0_35 = arith.constant 0 : index
    %61 = vector.load %arg1[%c0_33, %60, %c0_34, %c0_35] : memref<2x4x4x128xf32, #tpu.memory_space<vmem>>, vector<1x1x4x128xf32>
    %62 = vector.shape_cast %61 : vector<1x1x4x128xf32> to vector<4x128xf32>
    %63 = arith.mulf %62, %0 : vector<4x128xf32>
    %64 = arith.addf %63, %1 : vector<4x128xf32>
    %cst_36 = arith.constant 0.975309908 : f32
    %65 = vector.broadcast %cst_36 : f32 to vector<4x128xf32>
    %66 = arith.mulf %59, %65 : vector<4x128xf32>
    %67 = arith.addf %66, %64 : vector<4x128xf32>
    %cst_37 = arith.constant 2.500000e-01 : f32
    %68 = vector.broadcast %cst_37 : f32 to vector<4x128xf32>
    %69 = arith.cmpf oge, %67, %68 : vector<4x128xf32>
    %cst_38 = arith.constant 2.500000e-01 : f32
    %cst_39 = arith.constant 0.000000e+00 : f32
    %70 = vector.broadcast %cst_38 : f32 to vector<4x128xf32>
    %71 = vector.broadcast %cst_39 : f32 to vector<4x128xf32>
    %72 = arith.select %69, %70, %71 : vector<4x128xi1>, vector<4x128xf32>
    %73 = arith.truncf %72 : vector<4x128xf32> to vector<4x128xbf16>
    %c0_40 = arith.constant 0 : index
    %74 = arith.index_cast %c3_i32 : i32 to index
    %c0_41 = arith.constant 0 : index
    %c0_42 = arith.constant 0 : index
    %75 = vector.load %arg4[%c0_40, %74, %c0_41, %c0_42] : memref<2x4x4x128xbf16, #tpu.memory_space<vmem>>, vector<1x1x4x128xbf16>
    %76 = vector.shape_cast %75 : vector<1x1x4x128xbf16> to vector<4x128xbf16>
    %77 = vector.shape_cast %73 : vector<4x128xbf16> to vector<1x1x4x128xbf16>
    tpu.vector_store %arg4[%c0_40, %74, %c0_41, %c0_42], %77 {strides = array<i32>} : memref<2x4x4x128xbf16, #tpu.memory_space<vmem>>, vector<1x1x4x128xbf16>,
    %78 = arith.subf %67, %72 : vector<4x128xf32>
    %c4_i32 = arith.constant 4 : i32
    %cst_43 = arith.constant 0.000000e+00 : f32
    %79 = vector.broadcast %cst_43 : f32 to vector<4x128xf32>
    %c0_i32_44 = arith.constant 0 : i32
    %c1 = arith.constant 1 : index
    %80 = arith.index_cast %c0_i32_44 : i32 to index
    %c0_45 = arith.constant 0 : index
    %c0_46 = arith.constant 0 : index
    %81 = vector.load %arg1[%c1, %80, %c0_45, %c0_46] : memref<2x4x4x128xf32, #tpu.memory_space<vmem>>, vector<1x1x4x128xf32>
    %82 = vector.shape_cast %81 : vector<1x1x4x128xf32> to vector<4x128xf32>
    %83 = arith.mulf %82, %0 : vector<4x128xf32>
    %84 = arith.addf %83, %1 : vector<4x128xf32>
    %cst_47 = arith.constant 0.975309908 : f32
    %85 = vector.broadcast %cst_47 : f32 to vector<4x128xf32>
    %86 = arith.mulf %79, %85 : vector<4x128xf32>
    %87 = arith.addf %86, %84 : vector<4x128xf32>
    %cst_48 = arith.constant 2.500000e-01 : f32
    %88 = vector.broadcast %cst_48 : f32 to vector<4x128xf32>
    %89 = arith.cmpf oge, %87, %88 : vector<4x128xf32>
    %cst_49 = arith.constant 2.500000e-01 : f32
    %cst_50 = arith.constant 0.000000e+00 : f32
    %90 = vector.broadcast %cst_49 : f32 to vector<4x128xf32>
    %91 = vector.broadcast %cst_50 : f32 to vector<4x128xf32>
    %92 = arith.select %89, %90, %91 : vector<4x128xi1>, vector<4x128xf32>
    %93 = arith.truncf %92 : vector<4x128xf32> to vector<4x128xbf16>
    %c1_51 = arith.constant 1 : index
    %94 = arith.index_cast %c0_i32_44 : i32 to index
    %c0_52 = arith.constant 0 : index
    %c0_53 = arith.constant 0 : index
    %95 = vector.load %arg4[%c1_51, %94, %c0_52, %c0_53] : memref<2x4x4x128xbf16, #tpu.memory_space<vmem>>, vector<1x1x4x128xbf16>
    %96 = vector.shape_cast %95 : vector<1x1x4x128xbf16> to vector<4x128xbf16>
    %97 = vector.shape_cast %93 : vector<4x128xbf16> to vector<1x1x4x128xbf16>
    tpu.vector_store %arg4[%c1_51, %94, %c0_52, %c0_53], %97 {strides = array<i32>} : memref<2x4x4x128xbf16, #tpu.memory_space<vmem>>, vector<1x1x4x128xbf16>,
    %98 = arith.subf %87, %92 : vector<4x128xf32>
    %c1_i32_54 = arith.constant 1 : i32
    %c1_55 = arith.constant 1 : index
    %99 = arith.index_cast %c1_i32_54 : i32 to index
    %c0_56 = arith.constant 0 : index
    %c0_57 = arith.constant 0 : index
    %100 = vector.load %arg1[%c1_55, %99, %c0_56, %c0_57] : memref<2x4x4x128xf32, #tpu.memory_space<vmem>>, vector<1x1x4x128xf32>
    %101 = vector.shape_cast %100 : vector<1x1x4x128xf32> to vector<4x128xf32>
    %102 = arith.mulf %101, %0 : vector<4x128xf32>
    %103 = arith.addf %102, %1 : vector<4x128xf32>
    %cst_58 = arith.constant 0.975309908 : f32
    %104 = vector.broadcast %cst_58 : f32 to vector<4x128xf32>
    %105 = arith.mulf %98, %104 : vector<4x128xf32>
    %106 = arith.addf %105, %103 : vector<4x128xf32>
    %cst_59 = arith.constant 2.500000e-01 : f32
    %107 = vector.broadcast %cst_59 : f32 to vector<4x128xf32>
    %108 = arith.cmpf oge, %106, %107 : vector<4x128xf32>
    %cst_60 = arith.constant 2.500000e-01 : f32
    %cst_61 = arith.constant 0.000000e+00 : f32
    %109 = vector.broadcast %cst_60 : f32 to vector<4x128xf32>
    %110 = vector.broadcast %cst_61 : f32 to vector<4x128xf32>
    %111 = arith.select %108, %109, %110 : vector<4x128xi1>, vector<4x128xf32>
    %112 = arith.truncf %111 : vector<4x128xf32> to vector<4x128xbf16>
    %c1_62 = arith.constant 1 : index
    %113 = arith.index_cast %c1_i32_54 : i32 to index
    %c0_63 = arith.constant 0 : index
    %c0_64 = arith.constant 0 : index
    %114 = vector.load %arg4[%c1_62, %113, %c0_63, %c0_64] : memref<2x4x4x128xbf16, #tpu.memory_space<vmem>>, vector<1x1x4x128xbf16>
    %115 = vector.shape_cast %114 : vector<1x1x4x128xbf16> to vector<4x128xbf16>
    %116 = vector.shape_cast %112 : vector<4x128xbf16> to vector<1x1x4x128xbf16>
    tpu.vector_store %arg4[%c1_62, %113, %c0_63, %c0_64], %116 {strides = array<i32>} : memref<2x4x4x128xbf16, #tpu.memory_space<vmem>>, vector<1x1x4x128xbf16>,
    %117 = arith.subf %106, %111 : vector<4x128xf32>
    %c2_i32_65 = arith.constant 2 : i32
    %c1_66 = arith.constant 1 : index
    %118 = arith.index_cast %c2_i32_65 : i32 to index
    %c0_67 = arith.constant 0 : index
    %c0_68 = arith.constant 0 : index
    %119 = vector.load %arg1[%c1_66, %118, %c0_67, %c0_68] : memref<2x4x4x128xf32, #tpu.memory_space<vmem>>, vector<1x1x4x128xf32>
    %120 = vector.shape_cast %119 : vector<1x1x4x128xf32> to vector<4x128xf32>
    %121 = arith.mulf %120, %0 : vector<4x128xf32>
    %122 = arith.addf %121, %1 : vector<4x128xf32>
    %cst_69 = arith.constant 0.975309908 : f32
    %123 = vector.broadcast %cst_69 : f32 to vector<4x128xf32>
    %124 = arith.mulf %117, %123 : vector<4x128xf32>
    %125 = arith.addf %124, %122 : vector<4x128xf32>
    %cst_70 = arith.constant 2.500000e-01 : f32
    %126 = vector.broadcast %cst_70 : f32 to vector<4x128xf32>
    %127 = arith.cmpf oge, %125, %126 : vector<4x128xf32>
    %cst_71 = arith.constant 2.500000e-01 : f32
    %cst_72 = arith.constant 0.000000e+00 : f32
    %128 = vector.broadcast %cst_71 : f32 to vector<4x128xf32>
    %129 = vector.broadcast %cst_72 : f32 to vector<4x128xf32>
    %130 = arith.select %127, %128, %129 : vector<4x128xi1>, vector<4x128xf32>
    %131 = arith.truncf %130 : vector<4x128xf32> to vector<4x128xbf16>
    %c1_73 = arith.constant 1 : index
    %132 = arith.index_cast %c2_i32_65 : i32 to index
    %c0_74 = arith.constant 0 : index
    %c0_75 = arith.constant 0 : index
    %133 = vector.load %arg4[%c1_73, %132, %c0_74, %c0_75] : memref<2x4x4x128xbf16, #tpu.memory_space<vmem>>, vector<1x1x4x128xbf16>
    %134 = vector.shape_cast %133 : vector<1x1x4x128xbf16> to vector<4x128xbf16>
    %135 = vector.shape_cast %131 : vector<4x128xbf16> to vector<1x1x4x128xbf16>
    tpu.vector_store %arg4[%c1_73, %132, %c0_74, %c0_75], %135 {strides = array<i32>} : memref<2x4x4x128xbf16, #tpu.memory_space<vmem>>, vector<1x1x4x128xbf16>,
    %136 = arith.subf %125, %130 : vector<4x128xf32>
    %c3_i32_76 = arith.constant 3 : i32
    %c1_77 = arith.constant 1 : index
    %137 = arith.index_cast %c3_i32_76 : i32 to index
    %c0_78 = arith.constant 0 : index
    %c0_79 = arith.constant 0 : index
    %138 = vector.load %arg1[%c1_77, %137, %c0_78, %c0_79] : memref<2x4x4x128xf32, #tpu.memory_space<vmem>>, vector<1x1x4x128xf32>
    %139 = vector.shape_cast %138 : vector<1x1x4x128xf32> to vector<4x128xf32>
    %140 = arith.mulf %139, %0 : vector<4x128xf32>
    %141 = arith.addf %140, %1 : vector<4x128xf32>
    %cst_80 = arith.constant 0.975309908 : f32
    %142 = vector.broadcast %cst_80 : f32 to vector<4x128xf32>
    %143 = arith.mulf %136, %142 : vector<4x128xf32>
    %144 = arith.addf %143, %141 : vector<4x128xf32>
    %cst_81 = arith.constant 2.500000e-01 : f32
    %145 = vector.broadcast %cst_81 : f32 to vector<4x128xf32>
    %146 = arith.cmpf oge, %144, %145 : vector<4x128xf32>
    %cst_82 = arith.constant 2.500000e-01 : f32
    %cst_83 = arith.constant 0.000000e+00 : f32
    %147 = vector.broadcast %cst_82 : f32 to vector<4x128xf32>
    %148 = vector.broadcast %cst_83 : f32 to vector<4x128xf32>
    %149 = arith.select %146, %147, %148 : vector<4x128xi1>, vector<4x128xf32>
    %150 = arith.truncf %149 : vector<4x128xf32> to vector<4x128xbf16>
    %c1_84 = arith.constant 1 : index
    %151 = arith.index_cast %c3_i32_76 : i32 to index
    %c0_85 = arith.constant 0 : index
    %c0_86 = arith.constant 0 : index
    %152 = vector.load %arg4[%c1_84, %151, %c0_85, %c0_86] : memref<2x4x4x128xbf16, #tpu.memory_space<vmem>>, vector<1x1x4x128xbf16>
    %153 = vector.shape_cast %152 : vector<1x1x4x128xbf16> to vector<4x128xbf16>
    %154 = vector.shape_cast %150 : vector<4x128xbf16> to vector<1x1x4x128xbf16>
    tpu.vector_store %arg4[%c1_84, %151, %c0_85, %c0_86], %154 {strides = array<i32>} : memref<2x4x4x128xbf16, #tpu.memory_space<vmem>>, vector<1x1x4x128xbf16>,
    %155 = arith.subf %144, %149 : vector<4x128xf32>
    %c4_i32_87 = arith.constant 4 : i32
    return
  }
  func.func @transform_0(%arg0: i32) -> (i32, i32, i32, i32) {
    %c0_i32 = arith.constant 0 : i32
    %c0_i32_0 = arith.constant 0 : i32
    %c0_i32_1 = arith.constant 0 : i32
    %c0_i32_2 = arith.constant 0 : i32
    return %arg0, %c0_i32, %c0_i32_0, %c0_i32_1 : i32, i32, i32, i32
  }
  func.func @transform_1(%arg0: i32) -> (i32, i32) {
    %c0_i32 = arith.constant 0 : i32
    %c0_i32_0 = arith.constant 0 : i32
    %c0_i32_1 = arith.constant 0 : i32
    return %c0_i32, %c0_i32_0 : i32, i32
  }
  func.func @transform_2(%arg0: i32) -> (i32, i32) {
    %c0_i32 = arith.constant 0 : i32
    %c0_i32_0 = arith.constant 0 : i32
    %c0_i32_1 = arith.constant 0 : i32
    return %c0_i32, %c0_i32_0 : i32, i32
  }
  func.func @transform_3(%arg0: i32) -> (i32, i32, i32, i32) {
    %c0_i32 = arith.constant 0 : i32
    %c0_i32_0 = arith.constant 0 : i32
    %c0_i32_1 = arith.constant 0 : i32
    %c0_i32_2 = arith.constant 0 : i32
    return %arg0, %c0_i32, %c0_i32_0, %c0_i32_1 : i32, i32, i32, i32
  }
}

module attributes {stable_mosaic.version = 11 : i64} {
  func.func @conv_kernel(%arg0: i32, %arg1: memref<4x10x10x8xbf16, #tpu.memory_space<vmem>>, %arg2: memref<3x3x8x8xbf16, #tpu.memory_space<vmem>>, %arg3: memref<1x8xf32, #tpu.memory_space<vmem>>, %arg4: memref<256x8xf32, #tpu.memory_space<vmem>>, %arg5: memref<256x8xf32, #tpu.memory_space<vmem>>) attributes {dimension_semantics = [#tpu.dimension_semantics<parallel>], iteration_bounds = array<i64: 2>, scalar_prefetch = 0 : i64, scratch_operands = 0 : i64, tpu.core_type = #tpu.core_type<tc>, window_params = [{transform_indices = @transform_0, window_bounds = array<i64: 4, 10, 10, 8>}, {pipeline_mode = #tpu.pipeline_mode<synchronous>, transform_indices = @transform_1, window_bounds = array<i64: 3, 3, 8, 8>}, {pipeline_mode = #tpu.pipeline_mode<synchronous>, transform_indices = @transform_2, window_bounds = array<i64: 1, 8>}, {transform_indices = @transform_3, window_bounds = array<i64: 256, 8>}, {transform_indices = @transform_4, window_bounds = array<i64: 256, 8>}]} {
    %cst = arith.constant 0.000000e+00 : f32
    %0 = vector.broadcast %cst : f32 to vector<256x8xf32>
    %c0 = arith.constant 0 : index
    %c0_0 = arith.constant 0 : index
    %c0_1 = arith.constant 0 : index
    %c0_2 = arith.constant 0 : index
    %1 = vector.load %arg1[%c0, %c0_0, %c0_1, %c0_2] : memref<4x10x10x8xbf16, #tpu.memory_space<vmem>>, vector<4x8x8x8xbf16>
    %2 = vector.shape_cast %1 : vector<4x8x8x8xbf16> to vector<256x8xbf16>
    %c0_3 = arith.constant 0 : index
    %c0_4 = arith.constant 0 : index
    %c0_5 = arith.constant 0 : index
    %c0_6 = arith.constant 0 : index
    %3 = vector.load %arg2[%c0_3, %c0_4, %c0_5, %c0_6] : memref<3x3x8x8xbf16, #tpu.memory_space<vmem>>, vector<1x1x8x8xbf16>
    %4 = vector.shape_cast %3 : vector<1x1x8x8xbf16> to vector<8x8xbf16>
    %cst_7 = arith.constant dense<0.000000e+00> : vector<256x8xf32>
    %5 = tpu.matmul %2, %4, %cst_7 {dimension_numbers = #tpu.dot_dimension_numbers<[1], [0], [0], [1], [0, 0, 1, 1], [], []>} : vector<256x8xbf16>, vector<8x8xbf16>, vector<256x8xf32> -> vector<256x8xf32>
    %6 = arith.addf %0, %5 : vector<256x8xf32>
    %c0_8 = arith.constant 0 : index
    %c0_9 = arith.constant 0 : index
    %c1 = arith.constant 1 : index
    %c0_10 = arith.constant 0 : index
    %7 = vector.load %arg1[%c0_8, %c0_9, %c1, %c0_10] : memref<4x10x10x8xbf16, #tpu.memory_space<vmem>>, vector<4x8x8x8xbf16>
    %8 = vector.shape_cast %7 : vector<4x8x8x8xbf16> to vector<256x8xbf16>
    %c0_11 = arith.constant 0 : index
    %c1_12 = arith.constant 1 : index
    %c0_13 = arith.constant 0 : index
    %c0_14 = arith.constant 0 : index
    %9 = vector.load %arg2[%c0_11, %c1_12, %c0_13, %c0_14] : memref<3x3x8x8xbf16, #tpu.memory_space<vmem>>, vector<1x1x8x8xbf16>
    %10 = vector.shape_cast %9 : vector<1x1x8x8xbf16> to vector<8x8xbf16>
    %cst_15 = arith.constant dense<0.000000e+00> : vector<256x8xf32>
    %11 = tpu.matmul %8, %10, %cst_15 {dimension_numbers = #tpu.dot_dimension_numbers<[1], [0], [0], [1], [0, 0, 1, 1], [], []>} : vector<256x8xbf16>, vector<8x8xbf16>, vector<256x8xf32> -> vector<256x8xf32>
    %12 = arith.addf %6, %11 : vector<256x8xf32>
    %c0_16 = arith.constant 0 : index
    %c0_17 = arith.constant 0 : index
    %c2 = arith.constant 2 : index
    %c0_18 = arith.constant 0 : index
    %13 = vector.load %arg1[%c0_16, %c0_17, %c2, %c0_18] : memref<4x10x10x8xbf16, #tpu.memory_space<vmem>>, vector<4x8x8x8xbf16>
    %14 = vector.shape_cast %13 : vector<4x8x8x8xbf16> to vector<256x8xbf16>
    %c0_19 = arith.constant 0 : index
    %c2_20 = arith.constant 2 : index
    %c0_21 = arith.constant 0 : index
    %c0_22 = arith.constant 0 : index
    %15 = vector.load %arg2[%c0_19, %c2_20, %c0_21, %c0_22] : memref<3x3x8x8xbf16, #tpu.memory_space<vmem>>, vector<1x1x8x8xbf16>
    %16 = vector.shape_cast %15 : vector<1x1x8x8xbf16> to vector<8x8xbf16>
    %cst_23 = arith.constant dense<0.000000e+00> : vector<256x8xf32>
    %17 = tpu.matmul %14, %16, %cst_23 {dimension_numbers = #tpu.dot_dimension_numbers<[1], [0], [0], [1], [0, 0, 1, 1], [], []>} : vector<256x8xbf16>, vector<8x8xbf16>, vector<256x8xf32> -> vector<256x8xf32>
    %18 = arith.addf %12, %17 : vector<256x8xf32>
    %c0_24 = arith.constant 0 : index
    %c1_25 = arith.constant 1 : index
    %c0_26 = arith.constant 0 : index
    %c0_27 = arith.constant 0 : index
    %19 = vector.load %arg1[%c0_24, %c1_25, %c0_26, %c0_27] : memref<4x10x10x8xbf16, #tpu.memory_space<vmem>>, vector<4x8x8x8xbf16>
    %20 = vector.shape_cast %19 : vector<4x8x8x8xbf16> to vector<256x8xbf16>
    %c1_28 = arith.constant 1 : index
    %c0_29 = arith.constant 0 : index
    %c0_30 = arith.constant 0 : index
    %c0_31 = arith.constant 0 : index
    %21 = vector.load %arg2[%c1_28, %c0_29, %c0_30, %c0_31] : memref<3x3x8x8xbf16, #tpu.memory_space<vmem>>, vector<1x1x8x8xbf16>
    %22 = vector.shape_cast %21 : vector<1x1x8x8xbf16> to vector<8x8xbf16>
    %cst_32 = arith.constant dense<0.000000e+00> : vector<256x8xf32>
    %23 = tpu.matmul %20, %22, %cst_32 {dimension_numbers = #tpu.dot_dimension_numbers<[1], [0], [0], [1], [0, 0, 1, 1], [], []>} : vector<256x8xbf16>, vector<8x8xbf16>, vector<256x8xf32> -> vector<256x8xf32>
    %24 = arith.addf %18, %23 : vector<256x8xf32>
    %c0_33 = arith.constant 0 : index
    %c1_34 = arith.constant 1 : index
    %c1_35 = arith.constant 1 : index
    %c0_36 = arith.constant 0 : index
    %25 = vector.load %arg1[%c0_33, %c1_34, %c1_35, %c0_36] : memref<4x10x10x8xbf16, #tpu.memory_space<vmem>>, vector<4x8x8x8xbf16>
    %26 = vector.shape_cast %25 : vector<4x8x8x8xbf16> to vector<256x8xbf16>
    %c1_37 = arith.constant 1 : index
    %c1_38 = arith.constant 1 : index
    %c0_39 = arith.constant 0 : index
    %c0_40 = arith.constant 0 : index
    %27 = vector.load %arg2[%c1_37, %c1_38, %c0_39, %c0_40] : memref<3x3x8x8xbf16, #tpu.memory_space<vmem>>, vector<1x1x8x8xbf16>
    %28 = vector.shape_cast %27 : vector<1x1x8x8xbf16> to vector<8x8xbf16>
    %cst_41 = arith.constant dense<0.000000e+00> : vector<256x8xf32>
    %29 = tpu.matmul %26, %28, %cst_41 {dimension_numbers = #tpu.dot_dimension_numbers<[1], [0], [0], [1], [0, 0, 1, 1], [], []>} : vector<256x8xbf16>, vector<8x8xbf16>, vector<256x8xf32> -> vector<256x8xf32>
    %30 = arith.addf %24, %29 : vector<256x8xf32>
    %c0_42 = arith.constant 0 : index
    %c1_43 = arith.constant 1 : index
    %c2_44 = arith.constant 2 : index
    %c0_45 = arith.constant 0 : index
    %31 = vector.load %arg1[%c0_42, %c1_43, %c2_44, %c0_45] : memref<4x10x10x8xbf16, #tpu.memory_space<vmem>>, vector<4x8x8x8xbf16>
    %32 = vector.shape_cast %31 : vector<4x8x8x8xbf16> to vector<256x8xbf16>
    %c1_46 = arith.constant 1 : index
    %c2_47 = arith.constant 2 : index
    %c0_48 = arith.constant 0 : index
    %c0_49 = arith.constant 0 : index
    %33 = vector.load %arg2[%c1_46, %c2_47, %c0_48, %c0_49] : memref<3x3x8x8xbf16, #tpu.memory_space<vmem>>, vector<1x1x8x8xbf16>
    %34 = vector.shape_cast %33 : vector<1x1x8x8xbf16> to vector<8x8xbf16>
    %cst_50 = arith.constant dense<0.000000e+00> : vector<256x8xf32>
    %35 = tpu.matmul %32, %34, %cst_50 {dimension_numbers = #tpu.dot_dimension_numbers<[1], [0], [0], [1], [0, 0, 1, 1], [], []>} : vector<256x8xbf16>, vector<8x8xbf16>, vector<256x8xf32> -> vector<256x8xf32>
    %36 = arith.addf %30, %35 : vector<256x8xf32>
    %c0_51 = arith.constant 0 : index
    %c2_52 = arith.constant 2 : index
    %c0_53 = arith.constant 0 : index
    %c0_54 = arith.constant 0 : index
    %37 = vector.load %arg1[%c0_51, %c2_52, %c0_53, %c0_54] : memref<4x10x10x8xbf16, #tpu.memory_space<vmem>>, vector<4x8x8x8xbf16>
    %38 = vector.shape_cast %37 : vector<4x8x8x8xbf16> to vector<256x8xbf16>
    %c2_55 = arith.constant 2 : index
    %c0_56 = arith.constant 0 : index
    %c0_57 = arith.constant 0 : index
    %c0_58 = arith.constant 0 : index
    %39 = vector.load %arg2[%c2_55, %c0_56, %c0_57, %c0_58] : memref<3x3x8x8xbf16, #tpu.memory_space<vmem>>, vector<1x1x8x8xbf16>
    %40 = vector.shape_cast %39 : vector<1x1x8x8xbf16> to vector<8x8xbf16>
    %cst_59 = arith.constant dense<0.000000e+00> : vector<256x8xf32>
    %41 = tpu.matmul %38, %40, %cst_59 {dimension_numbers = #tpu.dot_dimension_numbers<[1], [0], [0], [1], [0, 0, 1, 1], [], []>} : vector<256x8xbf16>, vector<8x8xbf16>, vector<256x8xf32> -> vector<256x8xf32>
    %42 = arith.addf %36, %41 : vector<256x8xf32>
    %c0_60 = arith.constant 0 : index
    %c2_61 = arith.constant 2 : index
    %c1_62 = arith.constant 1 : index
    %c0_63 = arith.constant 0 : index
    %43 = vector.load %arg1[%c0_60, %c2_61, %c1_62, %c0_63] : memref<4x10x10x8xbf16, #tpu.memory_space<vmem>>, vector<4x8x8x8xbf16>
    %44 = vector.shape_cast %43 : vector<4x8x8x8xbf16> to vector<256x8xbf16>
    %c2_64 = arith.constant 2 : index
    %c1_65 = arith.constant 1 : index
    %c0_66 = arith.constant 0 : index
    %c0_67 = arith.constant 0 : index
    %45 = vector.load %arg2[%c2_64, %c1_65, %c0_66, %c0_67] : memref<3x3x8x8xbf16, #tpu.memory_space<vmem>>, vector<1x1x8x8xbf16>
    %46 = vector.shape_cast %45 : vector<1x1x8x8xbf16> to vector<8x8xbf16>
    %cst_68 = arith.constant dense<0.000000e+00> : vector<256x8xf32>
    %47 = tpu.matmul %44, %46, %cst_68 {dimension_numbers = #tpu.dot_dimension_numbers<[1], [0], [0], [1], [0, 0, 1, 1], [], []>} : vector<256x8xbf16>, vector<8x8xbf16>, vector<256x8xf32> -> vector<256x8xf32>
    %48 = arith.addf %42, %47 : vector<256x8xf32>
    %c0_69 = arith.constant 0 : index
    %c2_70 = arith.constant 2 : index
    %c2_71 = arith.constant 2 : index
    %c0_72 = arith.constant 0 : index
    %49 = vector.load %arg1[%c0_69, %c2_70, %c2_71, %c0_72] : memref<4x10x10x8xbf16, #tpu.memory_space<vmem>>, vector<4x8x8x8xbf16>
    %50 = vector.shape_cast %49 : vector<4x8x8x8xbf16> to vector<256x8xbf16>
    %c2_73 = arith.constant 2 : index
    %c2_74 = arith.constant 2 : index
    %c0_75 = arith.constant 0 : index
    %c0_76 = arith.constant 0 : index
    %51 = vector.load %arg2[%c2_73, %c2_74, %c0_75, %c0_76] : memref<3x3x8x8xbf16, #tpu.memory_space<vmem>>, vector<1x1x8x8xbf16>
    %52 = vector.shape_cast %51 : vector<1x1x8x8xbf16> to vector<8x8xbf16>
    %cst_77 = arith.constant dense<0.000000e+00> : vector<256x8xf32>
    %53 = tpu.matmul %50, %52, %cst_77 {dimension_numbers = #tpu.dot_dimension_numbers<[1], [0], [0], [1], [0, 0, 1, 1], [], []>} : vector<256x8xbf16>, vector<8x8xbf16>, vector<256x8xf32> -> vector<256x8xf32>
    %54 = arith.addf %48, %53 : vector<256x8xf32>
    %c0_78 = arith.constant 0 : index
    %c0_79 = arith.constant 0 : index
    %55 = vector.load %arg3[%c0_78, %c0_79] : memref<1x8xf32, #tpu.memory_space<vmem>>, vector<1x8xf32>
    %56 = vector.broadcast %55 : vector<1x8xf32> to vector<256x8xf32>
    %57 = arith.addf %54, %56 : vector<256x8xf32>
    %c0_80 = arith.constant 0 : index
    %c0_81 = arith.constant 0 : index
    %58 = vector.load %arg4[%c0_80, %c0_81] : memref<256x8xf32, #tpu.memory_space<vmem>>, vector<256x8xf32>
    %59 = arith.addf %57, %58 : vector<256x8xf32>
    %c0_82 = arith.constant 0 : index
    %c0_83 = arith.constant 0 : index
    %60 = vector.load %arg5[%c0_82, %c0_83] : memref<256x8xf32, #tpu.memory_space<vmem>>, vector<256x8xf32>
    tpu.vector_store %arg5[%c0_82, %c0_83], %59 {strides = array<i32>} : memref<256x8xf32, #tpu.memory_space<vmem>>, vector<256x8xf32>,
    return
  }
  func.func @transform_0(%arg0: i32) -> (i32, i32, i32, i32) {
    %c0_i32 = arith.constant 0 : i32
    %c0_i32_0 = arith.constant 0 : i32
    %c0_i32_1 = arith.constant 0 : i32
    %c0_i32_2 = arith.constant 0 : i32
    return %arg0, %c0_i32, %c0_i32_0, %c0_i32_1 : i32, i32, i32, i32
  }
  func.func @transform_1(%arg0: i32) -> (i32, i32, i32, i32) {
    %c0_i32 = arith.constant 0 : i32
    %c0_i32_0 = arith.constant 0 : i32
    %c0_i32_1 = arith.constant 0 : i32
    %c0_i32_2 = arith.constant 0 : i32
    %c0_i32_3 = arith.constant 0 : i32
    return %c0_i32, %c0_i32_0, %c0_i32_1, %c0_i32_2 : i32, i32, i32, i32
  }
  func.func @transform_2(%arg0: i32) -> (i32, i32) {
    %c0_i32 = arith.constant 0 : i32
    %c0_i32_0 = arith.constant 0 : i32
    %c0_i32_1 = arith.constant 0 : i32
    return %c0_i32, %c0_i32_0 : i32, i32
  }
  func.func @transform_3(%arg0: i32) -> (i32, i32) {
    %c0_i32 = arith.constant 0 : i32
    %c0_i32_0 = arith.constant 0 : i32
    return %arg0, %c0_i32 : i32, i32
  }
  func.func @transform_4(%arg0: i32) -> (i32, i32) {
    %c0_i32 = arith.constant 0 : i32
    %c0_i32_0 = arith.constant 0 : i32
    return %arg0, %c0_i32 : i32, i32
  }
}

</mosaic_0001>

<bundles_post_ra>
// kernel: basic_block_forward.5
= control target key start
LH: loop header
LB: loop body
LE: loop exit
PB: predicated region body
PF: predicated region fallthrough
CT: control target
= control target key end

     0   :  { %v125_v12 = vmov 0.0   ;;  %s210_s0 = inlined_call_operand.vmem [shape: f32[2,4,8,128], index: 0, kind: input, shape index: {}]   ;;  %s211_s1 = inlined_call_operand.vmem [shape: f32[8,128], index: 1, kind: input, shape index: {}]   ;;  %s212_s2 = inlined_call_operand.vmem [shape: f32[8,128], index: 2, kind: input, shape index: {}]   ;;  %s213_s3 = inlined_call_operand.vmem [shape: bf16[2,4,8,128], index: 3, kind: output, shape index: {}]  }
   0x1   :  { %v14_v0 = vld [vmem:[%s211_s1] sm:$0xff]  ;;  %v110_v4 = vld [vmem:[%s210_s0 + $0x8] sm:$0xff]  ;;  %v112_v17 = vld [vmem:[%s210_s0 + $0x10] sm:$0xff] }
   0x2   :  { %v152_v1 = vld [vmem:[%s212_s2] sm:$0xff]  ;;  %v118_v6 = vld [vmem:[%s210_s0 + $0x28] sm:$0xff]  ;;  %v27_v8 = vmul.f32 %v110_v4, %v14_v0  ;;  %v120_v23 = vld [vmem:[%s210_s0 + $0x30] sm:$0xff]  ;;  %v39_v25 = vmul.f32 %v112_v17, %v14_v0 }
   0x3   :  { %v16_v2 = vld [vmem:[%s210_s0] sm:$0xff]  ;;  %v73_v11 = vmul.f32 %v118_v6, %v14_v0  ;;  %v85_v28 = vmul.f32 %v120_v23, %v14_v0  ;;  %v114_v33 = vld [vmem:[%s210_s0 + $0x18] sm:$0xff] }
   0x4   :  { %v17_v3 = vmul.f32 %v16_v2, %v14_v0  ;;  %v116_v5 = vld [vmem:[%s210_s0 + $0x20] sm:$0xff]  ;;  %v28_v16 = vadd.f32 %v27_v8, %v152_v1  ;;  %v40_v32 = vadd.f32 %v39_v25, %v152_v1  ;;  %v122_v39 = vld [vmem:[%s210_s0 + $0x38] sm:$0xff]  ;;  %v51_v41 = vmul.f32 %v114_v33, %v14_v0 }
   0x5   :  { %v62_v9 = vmul.f32 %v116_v5, %v14_v0  ;;  %v74_v22 = vadd.f32 %v73_v11, %v152_v1  ;;  %v86_v38 = vadd.f32 %v85_v28, %v152_v1  ;;  %v97_v44 = vmul.f32 %v122_v39, %v14_v0 }
   0x6   :  { %v18_v7 = vadd.f32 %v17_v3, %v152_v1  ;;  %v52_v48 = vadd.f32 %v51_v41, %v152_v1 }
   0x7   :  { %v63_v10 = vadd.f32 %v62_v9, %v152_v1  ;;  %v98_v53 = vadd.f32 %v97_v44, %v152_v1 }
   0x8   :  { %vm20_vm0 = vcmp.ge.f32.partialorder %v18_v7, 0.25 }
   0x9   :  { %v21_v13 = vsel %vm20_vm0, 0.25, %v125_v12  ;;  %vm65_vm1 = vcmp.ge.f32.partialorder %v63_v10, 0.25 }
   0xa   :  { %v22_v14 = vpack.c.bf16 %v21_v13, %v21_v13  ;;  %v24_v15 = vsub.f32 %v18_v7, %v21_v13  ;;  %v66_v18 = vsel %vm65_vm1, 0.25, %v125_v12 }
   0xb   :  { %v67_v20 = vpack.c.bf16 %v66_v18, %v66_v18  ;;  %v70_v21 = vsub.f32 %v63_v10, %v66_v18 }
   0xc   :  { %23 = vst [vmem:[%s213_s3] sm:$0xf] %v22_v14  ;;  %v29_v19 = vmul.f32 0.9753099, %v24_v15 }
   0xd   :  { %117 = vst [vmem:[%s213_s3 + $0x10] sm:$0xf] %v67_v20  ;;  %v75_v26 = vmul.f32 0.9753099, %v70_v21 }
   0xe   :  { %v30_v24 = vadd.f32 %v29_v19, %v28_v16 }
   0xf   :  { %v76_v27 = vadd.f32 %v75_v26, %v74_v22 }
  0x10   :  { %vm31_vm2 = vcmp.ge.f32.partialorder %v30_v24, 0.25 }
  0x11   :  { %v32_v29 = vsel %vm31_vm2, 0.25, %v125_v12  ;;  %vm77_vm3 = vcmp.ge.f32.partialorder %v76_v27, 0.25 }
  0x12   :  { %v33_v30 = vpack.c.bf16 %v32_v29, %v32_v29  ;;  %v36_v31 = vsub.f32 %v30_v24, %v32_v29  ;;  %v78_v34 = vsel %vm77_vm3, 0.25, %v125_v12 }
  0x13   :  { %v79_v36 = vpack.c.bf16 %v78_v34, %v78_v34  ;;  %v82_v37 = vsub.f32 %v76_v27, %v78_v34 }
  0x14   :  { %111 = vst [vmem:[%s213_s3 + $0x4] sm:$0xf] %v33_v30  ;;  %v41_v35 = vmul.f32 0.9753099, %v36_v31 }
  0x15   :  { %119 = vst [vmem:[%s213_s3 + $0x14] sm:$0xf] %v79_v36  ;;  %v87_v42 = vmul.f32 0.9753099, %v82_v37 }
  0x16   :  { %v42_v40 = vadd.f32 %v41_v35, %v40_v32 }
  0x17   :  { %v88_v43 = vadd.f32 %v87_v42, %v86_v38 }
  0x18   :  { %vm43_vm4 = vcmp.ge.f32.partialorder %v42_v40, 0.25 }
  0x19   :  { %v44_v45 = vsel %vm43_vm4, 0.25, %v125_v12  ;;  %vm89_vm5 = vcmp.ge.f32.partialorder %v88_v43, 0.25 }
  0x1a   :  { %v45_v46 = vpack.c.bf16 %v44_v45, %v44_v45  ;;  %v48_v47 = vsub.f32 %v42_v40, %v44_v45  ;;  %v90_v49 = vsel %vm89_vm5, 0.25, %v125_v12 }
  0x1b   :  { %v91_v51 = vpack.c.bf16 %v90_v49, %v90_v49  ;;  %v94_v52 = vsub.f32 %v88_v43, %v90_v49 }
  0x1c   :  { %113 = vst [vmem:[%s213_s3 + $0x8] sm:$0xf] %v45_v46  ;;  %v53_v50 = vmul.f32 0.9753099, %v48_v47 }
  0x1d   :  { %121 = vst [vmem:[%s213_s3 + $0x18] sm:$0xf] %v91_v51  ;;  %v99_v55 = vmul.f32 0.9753099, %v94_v52 }
  0x1e   :  { %v54_v54 = vadd.f32 %v53_v50, %v52_v48 }
  0x1f   :  { %v100_v56 = vadd.f32 %v99_v55, %v98_v53 }
  0x20   :  { %vm55_vm6 = vcmp.ge.f32.partialorder %v54_v54, 0.25 }
  0x21   :  { %v56_v57 = vsel %vm55_vm6, 0.25, %v125_v12  ;;  %vm101_vm7 = vcmp.ge.f32.partialorder %v100_v56, 0.25 }
  0x22   :  { %v57_v58 = vpack.c.bf16 %v56_v57, %v56_v57  ;;  %v102_v59 = vsel %vm101_vm7, 0.25, %v125_v12 }
  0x23   :  { %v103_v60 = vpack.c.bf16 %v102_v59, %v102_v59 }
  0x24   :  { %115 = vst [vmem:[%s213_s3 + $0xc] sm:$0xf] %v57_v58 }
  0x25   :  { %123 = vst [vmem:[%s213_s3 + $0x1c] sm:$0xf] %v103_v60 }

// kernel: basic_block_forward.7
= control target key start
LH: loop header
LB: loop body
LE: loop exit
PB: predicated region body
PF: predicated region fallthrough
CT: control target
= control target key end

     0   :  { %s3177_s12 = smov 0   ;;  %s3848_s0 = inlined_call_operand.vmem [shape: bf16[8,9,9,16], index: 0, kind: input, shape index: {}]   ;;  %s3849_s1 = inlined_call_operand.vmem [shape: bf16[2,2,16,8], index: 1, kind: input, shape index: {}]   ;;  %s3850_s2 = inlined_call_operand.vmem [shape: f32[1,8], index: 2, kind: input, shape index: {}]   ;;  %s3851_s3 = inlined_call_operand.vmem [shape: f32[512,8], index: 3, kind: output, shape index: {}]  }
   0x1 LB: > { %s2558_s13 = sadd.s32 4294967295, %s3155_s12   ;;  %p2562_p0 = scmp.ge.s32.totalorder %s3155_s12, 1  ;;  %s3155_s12 = sphi %s3177_s12, %s13_s12  }
   0x2   : > { %p139_p1 = scmp.lt.s32.totalorder %s3155_s12, 3 }
   0x4   : > { %p140_p2 = pnand %p2562_p0, %p139_p1 }
   0x5   : > { %v3113_v0 = vld [vmem:[%s3849_s1 + $0x10] sm:$0xff] (!%p140_p2)   ;;  %s2563_s16 = sshll.u32 (!%p140_p2), %s2558_s13, 2  ;;  %v3116_v1 = vld [vmem:[%s3849_s1 + $0x8] sm:$0xff] (!%p140_p2)   ;;  %v3196_v2 = vld [vmem:[%s3849_s1] sm:$0xff] (!%p140_p2)   ;;  %vm752_vm0 = vcmask (!%p140_p2), 130048   ;;  %s2565_s27 = sshll.u32 (!%p140_p2), %s2558_s13, 5 }
   0x6   : > { %143 = sbr.rel (%p140_p2) target bundleno = 402 (0x192), region = 32  ;;  %p165_p3 = scmp.lt.s32.totalorder (!%p140_p2), %s2563_s16, 7  ;;  %2940 = vmatprep.subr.bf16.mxu0 (!%p140_p2), %v3113_v0  ;;  %2872 = vmatprep.subr.bf16.mxu1 (!%p140_p2), %v3116_v1  ;;  %v3120_v3 = vld [vmem:[%s3849_s1 + $0x18] sm:$0xff] (!%p140_p2)   ;;  %vm244_vm1 = vsmask.f32 (!%p140_p2), 3328  ;;  %vm2469_vm4 = vcmask (!%p140_p2), 64512  }
   0x7   : > { %2941 = vmatpush3.bf16.msra.mxu0 (!%p140_p2), %v3113_v0  ;;  %2873 = vmatpush3.bf16.msra.mxu1 (!%p140_p2), %v3116_v1  ;;  %vm245_vm2 = vsmask.f32 (!%p140_p2), 7440  ;;  %p172_p4 = scmp.lt.s32.totalorder (!%p140_p2), %s2565_s27, 63  ;;  %v3742_v33 = vld [vmem:[%s3850_s2] ss:$0 sm:$0xff] (!%p140_p2) }
   0x8   : > { %2906 = vmatprep.subr.bf16.mxu1 (!%p140_p2), %v3196_v2  ;;  %2974 = vmatprep.subr.bf16.mxu0 (!%p140_p2), %v3120_v3  ;;  %vm3242_vm3 = vmor (!%p140_p2), %vm244_vm1, %vm245_vm2 }
   0xd   : > { %s3863_s16 = smov (!%p165_p3, %s2563_s16), 7  ;;  %s3865_s27 = smov (!%p172_p4, %s2565_s27), 63 }
   0xe   : > { %s3104_s23 = smul.u32 72, %s3863_s16  ;;  %s2566_s28 = sshll.u32 %s3865_s27, 3 }
   0xf   : > { %s3747_s6 = scalar_lea.vmem %s3851_s3, %s2566_s28 }
  0x10   : > { %s3205_s26 = scalar_lea.vmem %s3848_s0, %s3104_s23 }
  0x11   : > { %v3114_v4 = vld [vmem:[%s3205_s26 + $0x8] ss:$8 sps:$4 sm:$0xff]   ;;  %v3115_v5 = vld [vmem:[%s3205_s26 + $0x18] ss:$8 sps:$4 sm:$0xff]   ;;  %v212_v9 = vld [vmem:[%s3205_s26 + $0x4] sm:$0x1] }
  0x12   : > { %2942 = vmatprep.mubr.msk.bf16.mxu0 %vm752_vm0, %v3114_v4  ;;  %v3117_v6 = vld [vmem:[%s3205_s26 + $0x28] ss:$8 sps:$4 sm:$0xff]   ;;  %v3213_v7 = vld [vmem:[%s3205_s26] sm:$0xf]  ;;  %v213_v10 = vld [vmem:[%s3205_s26 + $0xc] sm:$0x1] }
  0x13   : > { %2943 = vmatmul.mubr.msk.bf16.vlgmr.msra.gmra.mrb[0].mxu0 %vm752_vm0, %v3115_v5  ;;  %v3216_v8 = vld [vmem:[%s3205_s26 + $0x8] sm:$0xf]  ;;  %v248_v11 = vshrl.u32 %v3213_v7, 16  ;;  %v251_v12 = vshll.u32 %v3213_v7, 16  ;;  %v257_v13 = vshll.u32 %v212_v9, 16  ;;  %v271_v16 = vshll.u32 %v213_v10, 16 }
  0x14   : > { %2946 = vmatprep.mubr.msk.bf16.mxu0 %vm752_vm0, %v3117_v6  ;;  %v262_v14 = vshrl.u32 %v3216_v8, 16  ;;  %2975 = vmatpush3.bf16.msra.mxu0 %v3120_v3  ;;  %v265_v15 = vshll.u32 %v3216_v8, 16  ;;  %v2602_v17 = vcombine.low %v3213_v7, %v3216_v8  ;;  %v3119_v22 = vld [vmem:[%s3205_s26 + $0x38] ss:$8 sps:$4 sm:$0xff]   ;;  %v3229_v25 = vld [vmem:[%s3205_s26 + $0x10] sm:$0xf] }
  0x15   : > { %v250_v18 = vrot.slane %v248_v11, 4  ;;  %v253_v19 = vrot.slane %v251_v12, 5  ;;  %v259_v20 = vrot.slane %v257_v13, 5  ;;  %v273_v24 = vrot.slane %v271_v16, 5  ;;  %v3232_v26 = vld [vmem:[%s3205_s26 + $0x18] sm:$0xf] }
  0x16   : > { %v264_v21 = vrot.slane %v262_v14, 4  ;;  %v267_v23 = vrot.slane %v265_v15, 5  ;;  %v214_v28 = vld [vmem:[%s3205_s26 + $0x14] sm:$0x1]  ;;  %v215_v29 = vld [vmem:[%s3205_s26 + $0x1c] sm:$0x1] }
  0x17   : > { %v254_v27 = vor.u32 %v253_v19, %v250_v18  ;;  %v276_v30 = vshrl.u32 %v3229_v25, 16  ;;  %v279_v31 = vshll.u32 %v3229_v25, 16  ;;  %v285_v35 = vshll.u32 %v214_v28, 16  ;;  %v3121_v45 = vld [vmem:[%s3205_s26 + $0x50] ss:$8 sps:$4 sm:$0xff]  }
  0x18   : > { %v268_v34 = vor.u32 %v267_v23, %v264_v21  ;;  %v290_v36 = vshrl.u32 %v3232_v26, 16  ;;  %v293_v37 = vshll.u32 %v3232_v26, 16  ;;  %v299_v41 = vshll.u32 %v215_v29, 16  ;;  %v3253_v50 = vld [vmem:[%s3205_s26 + $0x20] sm:$0xf] }
  0x19   : > { %v255_v38 = vrot.slane %v254_v27, 4  ;;  %v278_v39 = vrot.slane %v276_v30, 4  ;;  %v281_v40 = vrot.slane %v279_v31, 5  ;;  %v287_v48 = vrot.slane %v285_v35, 5  ;;  %v3256_v51 = vld [vmem:[%s3205_s26 + $0x28] sm:$0xf] }
  0x1a   : > { %v269_v42 = vrot.slane %v268_v34, 4  ;;  %v292_v43 = vrot.slane %v290_v36, 4  ;;  %v295_v44 = vrot.slane %v293_v37, 5  ;;  %v301_v49 = vrot.slane %v299_v41, 5  ;;  %v216_v54 = vld [vmem:[%s3205_s26 + $0x24] sm:$0x1] }
  0x1b   : > { %2947 = vmatmul.mubr.msk.bf16.gmra.mrb[4].mxu0 %vm752_vm0, %v3119_v22  ;;  %v260_v46 = vsel %vm3242_vm3, %v255_v38, %v259_v20  ;;  %v282_v47 = vor.u32 %v281_v40, %v278_v39  ;;  %v217_v55 = vld [vmem:[%s3205_s26 + $0x2c] sm:$0x1]  ;;  %v304_v56 = vshrl.u32 %v3253_v50, 16  ;;  %v307_v57 = vshll.u32 %v3253_v50, 16  ;;  %v3122_v9 = vld [vmem:[%s3205_s26 + $0x60] ss:$8 sps:$4 sm:$0xff]  }
  0x1c   : > { %v274_v52 = vsel %vm3242_vm3, %v269_v42, %v273_v24  ;;  %v296_v53 = vor.u32 %v295_v44, %v292_v43  ;;  %2950 = vmatprep.mubr.msk.bf16.mxu0 %vm752_vm0, %v3121_v45  ;;  %v313_v60 = vshll.u32 %v216_v54, 16  ;;  %v318_v61 = vshrl.u32 %v3256_v51, 16  ;;  %v3274_v13 = vld [vmem:[%s3205_s26 + $0x30] sm:$0xf]  ;;  %v3277_v14 = vld [vmem:[%s3205_s26 + $0x38] sm:$0xf] }
  0x1d   : > { %v2569_v58 = vcombine.low %v260_v46, %v274_v52  ;;  %v283_v59 = vrot.slane %v282_v47, 4  ;;  %v306_v63 = vrot.slane %v304_v56, 4  ;;  %v309_v0 = vrot.slane %v307_v57, 5  ;;  %v218_v19 = vld [vmem:[%s3205_s26 + $0x34] sm:$0x1] }
  0x1e   : > { %v297_v62 = vrot.slane %v296_v53, 4  ;;  %v321_v1 = vshll.u32 %v3256_v51, 16  ;;  %v315_v4 = vrot.slane %v313_v60, 5  ;;  %v320_v5 = vrot.slane %v318_v61, 4  ;;  %v219_v20 = vld [vmem:[%s3205_s26 + $0x3c] sm:$0x1] }
  0x1f   : > { %2874 = vmatprep.mubr.msk.bf16.mxu1 %vm752_vm0, %v2569_v58  ;;  %v288_v3 = vsel %vm3242_vm3, %v283_v59, %v287_v48  ;;  %v327_v6 = vshll.u32 %v217_v55, 16  ;;  %v310_v11 = vor.u32 %v309_v0, %v306_v63  ;;  %v332_v21 = vshrl.u32 %v3274_v13, 16  ;;  %v3123_v38 = vld [vmem:[%s3205_s26 + $0x70] ss:$8 sps:$4 sm:$0xff]   ;;  %v3296_v43 = vld [vmem:[%s3205_s26 + $0x48] sm:$0xf] }
  0x20   : > { %v302_v10 = vsel %vm3242_vm3, %v297_v62, %v301_v49  ;;  %v323_v12 = vrot.slane %v321_v1, 5  ;;  %v335_v27 = vshll.u32 %v3274_v13, 16  ;;  %v341_v28 = vshll.u32 %v218_v19, 16  ;;  %v220_v46 = vld [vmem:[%s3205_s26 + $0x4c] sm:$0x1] }
  0x21   : > { %v2570_v16 = vcombine.low %v288_v3, %v302_v10  ;;  %v329_v18 = vrot.slane %v327_v6, 5  ;;  %v311_v23 = vrot.slane %v310_v11, 4  ;;  %v334_v29 = vrot.slane %v332_v21, 4  ;;  %v221_v47 = vld [vmem:[%s3205_s26 + $0x54] sm:$0x1] }
  0x22   : > { %v324_v24 = vor.u32 %v323_v12, %v320_v5  ;;  %v346_v30 = vshrl.u32 %v3277_v14, 16  ;;  %v349_v31 = vshll.u32 %v3277_v14, 16  ;;  %v355_v34 = vshll.u32 %v219_v20, 16  ;;  %v3124_v58 = vld [vmem:[%s3205_s26 + $0x80] ss:$8 sps:$4 sm:$0xff]  }
  0x23   : > { %2951 = vmatmul.mubr.msk.bf16.gmra.mrb[8].mxu0 %vm752_vm0, %v3122_v9  ;;  %2875 = vmatmul.mubr.msk.bf16.vlgmr.msra.gmra.mrb[0].mxu1 %vm752_vm0, %v2570_v16  ;;  %v316_v35 = vsel %vm3242_vm3, %v311_v23, %v315_v4  ;;  %v337_v37 = vrot.slane %v335_v27, 5  ;;  %v343_v39 = vrot.slane %v341_v28, 5  ;;  %v360_v52 = vshrl.u32 %v3296_v43, 16  ;;  %v3313_v63 = vld [vmem:[%s3205_s26 + $0x58] sm:$0xf] }
  0x24   : > { %2907 = vmatpush3.bf16.msra.mxu1 %v3196_v2  ;;  %v325_v36 = vrot.slane %v324_v24, 4  ;;  %v348_v40 = vrot.slane %v346_v30, 4  ;;  %v351_v41 = vrot.slane %v349_v31, 5  ;;  %v357_v42 = vrot.slane %v355_v34, 5  ;;  %2954 = vmatprep.mubr.msk.bf16.mxu0 %vm752_vm0, %v3123_v38  ;;  %v3302_v2 = vld [vmem:[%s3205_s26 + $0x50] sm:$0xf] }
  0x25   : > { %v338_v45 = vor.u32 %v337_v37, %v334_v29  ;;  %v363_v53 = vshll.u32 %v3296_v43, 16  ;;  %v369_v55 = vshll.u32 %v220_v46, 16  ;;  %v374_v56 = vshrl.u32 %v3302_v2, 16  ;;  %v3319_v5 = vld [vmem:[%s3205_s26 + $0x60] sm:$0xf] }
  0x26   : > { %v330_v44 = vsel %vm3242_vm3, %v325_v36, %v329_v18  ;;  %v352_v49 = vor.u32 %v351_v41, %v348_v40  ;;  %v377_v57 = vshll.u32 %v3302_v2, 16  ;;  %v362_v60 = vrot.slane %v360_v52, 4  ;;  %v222_v11 = vld [vmem:[%s3205_s26 + $0x5c] sm:$0x1]  ;;  %v223_v12 = vld [vmem:[%s3205_s26 + $0x64] sm:$0x1] }
  0x27   : > { %v2571_v48 = vcombine.low %v316_v35, %v330_v44  ;;  %v339_v54 = vrot.slane %v338_v45, 4  ;;  %v365_v61 = vrot.slane %v363_v53, 5  ;;  %v383_v62 = vshll.u32 %v221_v47, 16  ;;  %v3125_v29 = vld [vmem:[%s3205_s26 + $0x98] ss:$8 sps:$4 sm:$0xff]  }
  0x28   : > { %v353_v59 = vrot.slane %v352_v49, 4  ;;  %v371_v1 = vrot.slane %v369_v55, 5  ;;  %v376_v3 = vrot.slane %v374_v56, 4  ;;  %v379_v4 = vrot.slane %v377_v57, 5  ;;  %v3332_v36 = vld [vmem:[%s3205_s26 + $0x68] sm:$0xf] }
  0x29   : > { %2878 = vmatprep.mubr.msk.bf16.mxu1 %vm752_vm0, %v2571_v48  ;;  %v344_v0 = vsel %vm3242_vm3, %v339_v54, %v343_v39  ;;  %v366_v9 = vor.u32 %v365_v61, %v362_v60  ;;  %v385_v10 = vrot.slane %v383_v62, 5  ;;  %v388_v16 = vshrl.u32 %v3313_v63, 16  ;;  %v3338_v40 = vld [vmem:[%s3205_s26 + $0x70] sm:$0xf]  ;;  %v224_v41 = vld [vmem:[%s3205_s26 + $0x6c] sm:$0x1] }
  0x2a   : > { %v358_v6 = vsel %vm3242_vm3, %v353_v59, %v357_v42  ;;  %v380_v19 = vor.u32 %v379_v4, %v376_v3  ;;  %v391_v20 = vshll.u32 %v3313_v63, 16  ;;  %v397_v21 = vshll.u32 %v222_v11, 16  ;;  %v225_v47 = vld [vmem:[%s3205_s26 + $0x74] sm:$0x1]  ;;  %v3126_v55 = vld [vmem:[%s3205_s26 + $0xa8] ss:$8 sps:$4 sm:$0xff]  }
  0x2b   : > { %2955 = vmatmul.mubr.msk.bf16.gmra.mrb[12].mxu0 %vm752_vm0, %v3124_v58  ;;  %v2572_v18 = vcombine.low %v344_v0, %v358_v6  ;;  %v367_v23 = vrot.slane %v366_v9, 4  ;;  %v390_v24 = vrot.slane %v388_v16, 4  ;;  %v402_v27 = vshrl.u32 %v3319_v5, 16  ;;  %v3352_v60 = vld [vmem:[%s3205_s26 + $0x78] sm:$0xf] }
  0x2c   : > { %v405_v28 = vshll.u32 %v3319_v5, 16  ;;  %v381_v30 = vrot.slane %v380_v19, 4  ;;  %v393_v31 = vrot.slane %v391_v20, 5  ;;  %v399_v34 = vrot.slane %v397_v21, 5  ;;  %2958 = vmatprep.mubr.msk.bf16.mxu0 %vm752_vm0, %v3125_v29  ;;  %v3357_v3 = vld [vmem:[%s3205_s26 + $0x80] sm:$0xf] }
  0x2d   : > { %2879 = vmatmul.mubr.msk.bf16.gmra.mrb[4].mxu1 %vm752_vm0, %v2572_v18  ;;  %v411_v35 = vshll.u32 %v223_v12, 16  ;;  %v372_v37 = vsel %vm3242_vm3, %v367_v23, %v371_v1  ;;  %v404_v38 = vrot.slane %v402_v27, 4  ;;  %v416_v48 = vshrl.u32 %v3332_v36, 16  ;;  %v227_v11 = vld [vmem:[%s3205_s26 + $0x84] sm:$0x1] }
  0x2e   : > { %v407_v39 = vrot.slane %v405_v28, 5  ;;  %v386_v44 = vsel %vm3242_vm3, %v381_v30, %v385_v10  ;;  %v394_v45 = vor.u32 %v393_v31, %v390_v24  ;;  %v419_v53 = vshll.u32 %v3332_v36, 16  ;;  %v226_v10 = vld [vmem:[%s3205_s26 + $0x7c] sm:$0x1]  ;;  %v3127_v28 = vld [vmem:[%s3205_s26 + $0xb8] ss:$8 sps:$4 sm:$0xff]  }
  0x2f   : > { %v413_v46 = vrot.slane %v411_v35, 5  ;;  %v2573_v49 = vcombine.low %v372_v37, %v386_v44  ;;  %v425_v54 = vshll.u32 %v224_v41, 16  ;;  %v418_v57 = vrot.slane %v416_v48, 4  ;;  %v3371_v29 = vld [vmem:[%s3205_s26 + $0x90] sm:$0xf] }
  0x30   : > { %v408_v52 = vor.u32 %v407_v39, %v404_v38  ;;  %v395_v56 = vrot.slane %v394_v45, 4  ;;  %v430_v58 = vshrl.u32 %v3338_v40, 16  ;;  %v433_v59 = vshll.u32 %v3338_v40, 16  ;;  %v3376_v37 = vld [vmem:[%s3205_s26 + $0x98] sm:$0xf] }
  0x31   : > { %2882 = vmatprep.mubr.msk.bf16.mxu1 %vm752_vm0, %v2573_v49  ;;  %v421_v62 = vrot.slane %v419_v53, 5  ;;  %v427_v0 = vrot.slane %v425_v54, 5  ;;  %v439_v1 = vshll.u32 %v225_v47, 16  ;;  %v444_v20 = vshrl.u32 %v3352_v60, 16  ;;  %v228_v45 = vld [vmem:[%s3205_s26 + $0x94] sm:$0x1] }
  0x32   : > { %v409_v61 = vrot.slane %v408_v52, 4  ;;  %v400_v4 = vsel %vm3242_vm3, %v395_v56, %v399_v34  ;;  %v432_v6 = vrot.slane %v430_v58, 4  ;;  %v435_v9 = vrot.slane %v433_v59, 5  ;;  %v229_v49 = vld [vmem:[%s3205_s26 + $0x9c] sm:$0x1] }
  0x33   : > { %2959 = vmatmul.mubr.msk.bf16.gmra.mrb[16].mxu0 %vm752_vm0, %v3126_v55  ;;  %v422_v18 = vor.u32 %v421_v62, %v418_v57  ;;  %v441_v19 = vrot.slane %v439_v1, 5  ;;  %v447_v24 = vshll.u32 %v3352_v60, 16  ;;  %v453_v27 = vshll.u32 %v226_v10, 16  ;;  %v3128_v62 = vld [vmem:[%s3205_s26 + $0xc8] ss:$8 sps:$4 sm:$0xff]  }
  0x34   : > { %v414_v16 = vsel %vm3242_vm3, %v409_v61, %v413_v46  ;;  %v436_v23 = vor.u32 %v435_v9, %v432_v6  ;;  %v446_v31 = vrot.slane %v444_v20, 4  ;;  %v458_v34 = vshrl.u32 %v3357_v3, 16  ;;  %2962 = vmatprep.mubr.msk.bf16.mxu0 %vm752_vm0, %v3127_v28  ;;  %v3395_v10 = vld [vmem:[%s3205_s26 + $0xa8] sm:$0xf]  ;;  %v231_v28 = vld [vmem:[%s3205_s26 + $0xac] sm:$0x1] }
  0x35   : > { %v2574_v21 = vcombine.low %v400_v4, %v414_v16  ;;  %v423_v30 = vrot.slane %v422_v18, 4  ;;  %v461_v35 = vshll.u32 %v3357_v3, 16  ;;  %v449_v39 = vrot.slane %v447_v24, 5  ;;  %v243_v22 = vld [vmem:[%s3205_s26 + $0x114] sm:$0x1] }
  0x36   : > { %v437_v38 = vrot.slane %v436_v23, 4  ;;  %v455_v41 = vrot.slane %v453_v27, 5  ;;  %v467_v44 = vshll.u32 %v227_v11, 16  ;;  %v460_v47 = vrot.slane %v458_v34, 4  ;;  %v2725_v7 = vld [vmem:[%s3205_s26 + $0x6c] sm:$0x1] }
  0x37   : > { %2883 = vmatmul.mubr.msk.bf16.gmra.mrb[8].mxu1 %vm752_vm0, %v2574_v21  ;;  %v428_v46 = vsel %vm3242_vm3, %v423_v30, %v427_v0  ;;  %v463_v48 = vrot.slane %v461_v35, 5  ;;  %v472_v52 = vshrl.u32 %v3371_v29, 16  ;;  %v450_v54 = vor.u32 %v449_v39, %v446_v31  ;;  %v3390_v0 = vld [vmem:[%s3205_s26 + $0xa0] sm:$0xf] }
  0x38   : > { %v442_v53 = vsel %vm3242_vm3, %v437_v38, %v441_v19  ;;  %v469_v55 = vrot.slane %v467_v44, 5  ;;  %v475_v56 = vshll.u32 %v3371_v29, 16  ;;  %v481_v61 = vshll.u32 %v228_v45, 16  ;;  %v230_v19 = vld [vmem:[%s3205_s26 + $0xa4] sm:$0x1] }
  0x39   : > { %v2575_v57 = vcombine.low %v428_v46, %v442_v53  ;;  %v464_v58 = vor.u32 %v463_v48, %v460_v47  ;;  %v474_v59 = vrot.slane %v472_v52, 4  ;;  %v451_v1 = vrot.slane %v450_v54, 4  ;;  %v3129_v46 = vld [vmem:[%s3205_s26 + $0xe0] ss:$8 sps:$4 sm:$0xff]   ;;  %v3414_v53 = vld [vmem:[%s3205_s26 + $0xb8] sm:$0xf] }
  0x3a   : > { %v477_v4 = vrot.slane %v475_v56, 5  ;;  %v486_v6 = vshrl.u32 %v3376_v37, 16  ;;  %v489_v9 = vshll.u32 %v3376_v37, 16  ;;  %v483_v16 = vrot.slane %v481_v61, 5 }
  0x3b   : > { %2886 = vmatprep.mubr.msk.bf16.mxu1 %vm752_vm0, %v2575_v57  ;;  %v465_v11 = vrot.slane %v464_v58, 4  ;;  %v495_v18 = vshll.u32 %v229_v49, 16  ;;  %2963 = vmatmul.mubr.msk.bf16.gmra.mrb[20].mxu0 %vm752_vm0, %v3128_v62  ;;  %v500_v20 = vshrl.u32 %v3390_v0, 16  ;;  %v456_v21 = vsel %vm3242_vm3, %v451_v1, %v455_v41  ;;  %v3409_v41 = vld [vmem:[%s3205_s26 + $0xb0] sm:$0xf] }
  0x3c   : > { %v478_v23 = vor.u32 %v477_v4, %v474_v59  ;;  %v488_v24 = vrot.slane %v486_v6, 4  ;;  %v491_v27 = vrot.slane %v489_v9, 5  ;;  %v503_v35 = vshll.u32 %v3390_v0, 16  ;;  %2966 = vmatprep.mubr.msk.bf16.mxu0 %vm752_vm0, %v3129_v46  ;;  %v232_v57 = vld [vmem:[%s3205_s26 + $0xb4] sm:$0x1] }
  0x3d   : > { %v470_v30 = vsel %vm3242_vm3, %v465_v11, %v469_v55  ;;  %v497_v31 = vrot.slane %v495_v18, 5  ;;  %v502_v34 = vrot.slane %v500_v20, 4  ;;  %v509_v45 = vshll.u32 %v230_v19, 16  ;;  %v233_v58 = vld [vmem:[%s3205_s26 + $0xbc] sm:$0x1] }
  0x3e   : > { %v2576_v38 = vcombine.low %v456_v21, %v470_v30  ;;  %v479_v39 = vrot.slane %v478_v23, 4  ;;  %v492_v44 = vor.u32 %v491_v27, %v488_v24  ;;  %v505_v47 = vrot.slane %v503_v35, 5  ;;  %v3130_v23 = vld [vmem:[%s3205_s26 + $0xf0] ss:$8 sps:$4 sm:$0xff]   ;;  %v3431_v24 = vld [vmem:[%s3205_s26 + $0xc0] sm:$0xf] }
  0x3f   : > { %v514_v48 = vshrl.u32 %v3395_v10, 16  ;;  %v517_v49 = vshll.u32 %v3395_v10, 16  ;;  %v523_v52 = vshll.u32 %v231_v28, 16  ;;  %v511_v56 = vrot.slane %v509_v45, 5  ;;  %v234_v45 = vld [vmem:[%s3205_s26 + $0xc4] sm:$0x1] }
  0x40   : > { %2887 = vmatmul.mubr.msk.bf16.gmra.mrb[12].mxu1 %vm752_vm0, %v2576_v38  ;;  %v484_v54 = vsel %vm3242_vm3, %v479_v39, %v483_v16  ;;  %v493_v55 = vrot.slane %v492_v44, 4  ;;  %v506_v61 = vor.u32 %v505_v47, %v502_v34  ;;  %v528_v9 = vshrl.u32 %v3409_v41, 16  ;;  %v3435_v34 = vld [vmem:[%s3205_s26 + $0xc8] sm:$0xf] }
  0x41   : > { %v516_v62 = vrot.slane %v514_v48, 4  ;;  %v519_v1 = vrot.slane %v517_v49, 5  ;;  %v525_v4 = vrot.slane %v523_v52, 5  ;;  %v531_v11 = vshll.u32 %v3409_v41, 16  ;;  %v235_v48 = vld [vmem:[%s3205_s26 + $0xcc] sm:$0x1] }
  0x42   : > { %v498_v6 = vsel %vm3242_vm3, %v493_v55, %v497_v31  ;;  %v537_v16 = vshll.u32 %v232_v57, 16  ;;  %v507_v19 = vrot.slane %v506_v61, 4  ;;  %v542_v21 = vshrl.u32 %v3414_v53, 16  ;;  %v3525_v59 = vld [vmem:[%s3205_s26 + $0x108] sm:$0xf] }
  0x43   : > { %v2577_v18 = vcombine.low %v484_v54, %v498_v6  ;;  %v520_v20 = vor.u32 %v519_v1, %v516_v62  ;;  %v530_v27 = vrot.slane %v528_v9, 4  ;;  %v533_v28 = vrot.slane %v531_v11, 5  ;;  %2967 = vmatmul.mubr.msk.bf16.gmra.mrb[24].mxu0 %vm752_vm0, %v3130_v23  ;;  %v3131_v6 = vld [vmem:[%s3205_s26 + $0x100] ss:$8 sps:$4 sm:$0xff]  }
  0x44   : > { %v539_v30 = vrot.slane %v537_v16, 5  ;;  %v545_v31 = vshll.u32 %v3414_v53, 16  ;;  %v512_v35 = vsel %vm3242_vm3, %v507_v19, %v511_v56  ;;  %v544_v39 = vrot.slane %v542_v21, 4  ;;  %v3451_v19 = vld [vmem:[%s3205_s26 + $0xd8] sm:$0xf]  ;;  %2970 = vmatprep.mubr.msk.bf16.mxu0 %vm752_vm0, %v3131_v6 }
  0x45   : > { %2890 = vmatprep.mubr.msk.bf16.mxu1 %vm752_vm0, %v2577_v18  ;;  %v521_v38 = vrot.slane %v520_v20, 4  ;;  %v551_v44 = vshll.u32 %v233_v58, 16  ;;  %v534_v46 = vor.u32 %v533_v28, %v530_v27  ;;  %v556_v49 = vshrl.u32 %v3431_v24, 16  ;;  %v3458_v23 = vld [vmem:[%s3205_s26 + $0xe0] sm:$0xf] }
  0x46   : > { %v547_v47 = vrot.slane %v545_v31, 5  ;;  %v559_v52 = vshll.u32 %v3431_v24, 16  ;;  %v565_v56 = vshll.u32 %v234_v45, 16  ;;  %v570_v57 = vshrl.u32 %v3435_v34, 16  ;;  %v236_v27 = vld [vmem:[%s3205_s26 + $0xdc] sm:$0x1] }
  0x47   : > { %v526_v54 = vsel %vm3242_vm3, %v521_v38, %v525_v4  ;;  %v553_v55 = vrot.slane %v551_v44, 5  ;;  %v535_v61 = vrot.slane %v534_v46, 4  ;;  %v558_v1 = vrot.slane %v556_v49, 4  ;;  %v237_v38 = vld [vmem:[%s3205_s26 + $0xe4] sm:$0x1] }
  0x48   : > { %v2578_v58 = vcombine.low %v512_v35, %v526_v54  ;;  %v548_v62 = vor.u32 %v547_v47, %v544_v39  ;;  %v561_v9 = vrot.slane %v559_v52, 5  ;;  %v567_v11 = vrot.slane %v565_v56, 5  ;;  %v3132_v56 = vld [vmem:[%s3205_s26 + $0x110] ss:$8 sps:$4 sm:$0xff]  }
  0x49   : > { %v572_v16 = vrot.slane %v570_v57, 4  ;;  %v573_v18 = vshll.u32 %v3435_v34, 16  ;;  %v540_v4 = vsel %vm3242_vm3, %v535_v61, %v539_v30  ;;  %v579_v21 = vshll.u32 %v235_v48, 16 }
  0x4a   : > { %2891 = vmatmul.mubr.msk.bf16.gmra.mrb[16].mxu1 %vm752_vm0, %v2578_v58  ;;  %v549_v20 = vrot.slane %v548_v62, 4  ;;  %v562_v31 = vor.u32 %v561_v9, %v558_v1  ;;  %v584_v39 = vshrl.u32 %v3451_v19, 16  ;;  %v587_v44 = vshll.u32 %v3451_v19, 16  ;;  %v3472_v1 = vld [vmem:[%s3205_s26 + $0xe8] sm:$0xf] }
  0x4b   : > { %v575_v35 = vrot.slane %v573_v18, 5  ;;  %v581_v45 = vrot.slane %v579_v21, 5  ;;  %v593_v46 = vshll.u32 %v236_v27, 16  ;;  %v598_v47 = vshrl.u32 %v3458_v23, 16  ;;  %2971 = vmatmul.mubr.msk.bf16.gmra.mrb[28].mxu0 %vm752_vm0, %v3132_v56  ;;  %v238_v18 = vld [vmem:[%s3205_s26 + $0xec] sm:$0x1] }
  0x4c   : > { %v554_v30 = vsel %vm3242_vm3, %v549_v20, %v553_v55  ;;  %v563_v49 = vrot.slane %v562_v31, 4  ;;  %v586_v54 = vrot.slane %v584_v39, 4  ;;  %v589_v57 = vrot.slane %v587_v44, 5  ;;  %v239_v27 = vld [vmem:[%s3205_s26 + $0xf4] sm:$0x1] }
  0x4d   : > { %v2579_v48 = vcombine.low %v540_v4, %v554_v30  ;;  %v576_v52 = vor.u32 %v575_v35, %v572_v16  ;;  %v595_v58 = vrot.slane %v593_v46, 5  ;;  %v600_v61 = vrot.slane %v598_v47, 4  ;;  %v3479_v16 = vld [vmem:[%s3205_s26 + $0xf0] sm:$0xf]  ;;  %v2702_v30 = vld [vmem:[%s3205_s26 + $0x8] sm:$0xf] }
  0x4e   : > { %v601_v62 = vshll.u32 %v3458_v23, 16  ;;  %v568_v55 = vsel %vm3242_vm3, %v563_v49, %v567_v11  ;;  %v607_v9 = vshll.u32 %v237_v38, 16  ;;  %v590_v20 = vor.u32 %v589_v57, %v586_v54  ;;  %v2704_v4 = vld [vmem:[%s3205_s26 + $0x10] sm:$0xf] }
  0x4f   : > { %2894 = vmatprep.mubr.msk.bf16.mxu1 %vm752_vm0, %v2579_v48  ;;  %v577_v6 = vrot.slane %v576_v52, 4  ;;  %v612_v31 = vshrl.u32 %v3472_v1, 16  ;;  %v615_v11 = vshll.u32 %v3472_v1, 16  ;;  %v621_v39 = vshll.u32 %v238_v18, 16  ;;  %v2703_v52 = vld [vmem:[%s3205_s26 + $0xc] sm:$0x1] }
  0x50   : > { %v603_v21 = vrot.slane %v601_v62, 5  ;;  %v609_v38 = vrot.slane %v607_v9, 5  ;;  %v626_v44 = vshrl.u32 %v3479_v16, 16  ;;  %v591_v47 = vrot.slane %v590_v20, 4  ;;  %v2705_v20 = vld [vmem:[%s3205_s26 + $0x14] sm:$0x1] }
  0x51   : > { %v582_v35 = vsel %vm3242_vm3, %v577_v6, %v581_v45  ;;  %v614_v49 = vrot.slane %v612_v31, 4  ;;  %v617_v54 = vrot.slane %v615_v11, 5  ;;  %v623_v56 = vrot.slane %v621_v39, 5 }
  0x52   : > { %v2580_v46 = vcombine.low %v568_v55, %v582_v35  ;;  %v604_v48 = vor.u32 %v603_v21, %v600_v61  ;;  %v628_v57 = vrot.slane %v626_v44, 4  ;;  %v629_v62 = vshll.u32 %v3479_v16, 16 }
  0x53   : > { %v596_v45 = vsel %vm3242_vm3, %v591_v47, %v595_v58  ;;  %v635_v9 = vshll.u32 %v239_v27, 16  ;;  %v1685_v55 = vshrl.u32 %v2702_v30, 16  ;;  %v618_v18 = vor.u32 %v617_v54, %v614_v49 }
  0x54   : > { %2895 = vmatmul.mubr.msk.bf16.gmra.mrb[20].mxu1 %vm752_vm0, %v2580_v46  ;;  %v605_v6 = vrot.slane %v604_v48, 4  ;;  %v631_v61 = vrot.slane %v629_v62, 5  ;;  %v1688_v21 = vshll.u32 %v2702_v30, 16  ;;  %v1694_v31 = vshll.u32 %v2703_v52, 16  ;;  %v3501_v46 = vld [vmem:[%s3205_s26 + $0xf8] sm:$0xf] }
  0x55   : > { %v637_v35 = vrot.slane %v635_v9, 5  ;;  %v1687_v39 = vrot.slane %v1685_v55, 4  ;;  %v1699_v44 = vshrl.u32 %v2704_v4, 16  ;;  %v619_v58 = vrot.slane %v618_v18, 4  ;;  %v240_v48 = vld [vmem:[%s3205_s26 + $0xfc] sm:$0x1] }
  0x56   : > { %v610_v11 = vsel %vm3242_vm3, %v605_v6, %v609_v38  ;;  %v632_v27 = vor.u32 %v631_v61, %v628_v57  ;;  %v1690_v47 = vrot.slane %v1688_v21, 5  ;;  %v1696_v49 = vrot.slane %v1694_v31, 5  ;;  %v3505_v52 = vld [vmem:[%s3205_s26 + $0x100] sm:$0xf]  ;;  %v241_v18 = vld [vmem:[%s3205_s26 + $0x104] sm:$0x1] }
  0x57   : > { %v2581_v28 = vcombine.low %v596_v45, %v610_v11  ;;  %v1701_v54 = vrot.slane %v1699_v44, 4  ;;  %v1702_v62 = vshll.u32 %v2704_v4, 16  ;;  %v1708_v30 = vshll.u32 %v2705_v20, 16  ;;  %v2706_v31 = vld [vmem:[%s3205_s26 + $0x18] sm:$0xf] }
  0x58   : > { %v624_v38 = vsel %vm3242_vm3, %v619_v58, %v623_v56  ;;  %v633_v6 = vrot.slane %v632_v27, 4  ;;  %v1691_v9 = vor.u32 %v1690_v47, %v1687_v39  ;;  %v640_v45 = vshrl.u32 %v3501_v46, 16  ;;  %v2707_v27 = vld [vmem:[%s3205_s26 + $0x1c] sm:$0x1]  ;;  %v2708_v47 = vld [vmem:[%s3205_s26 + $0x20] sm:$0xf] }
  0x59   : > { %2898 = vmatprep.mubr.msk.bf16.mxu1 %vm752_vm0, %v2581_v28  ;;  %v1704_v57 = vrot.slane %v1702_v62, 5  ;;  %v1710_v55 = vrot.slane %v1708_v30, 5  ;;  %v643_v4 = vshll.u32 %v3501_v46, 16  ;;  %v649_v61 = vshll.u32 %v240_v48, 16 }
  0x5a   : > { %v638_v20 = vsel %vm3242_vm3, %v633_v6, %v637_v35  ;;  %v1692_v21 = vrot.slane %v1691_v9, 4  ;;  %v642_v28 = vrot.slane %v640_v45, 4  ;;  %v654_v56 = vshrl.u32 %v3505_v52, 16  ;;  %v2709_v45 = vld [vmem:[%s3205_s26 + $0x24] sm:$0x1] }
  0x5b   : > { %v2582_v11 = vcombine.low %v624_v38, %v638_v20  ;;  %v1705_v39 = vor.u32 %v1704_v57, %v1701_v54  ;;  %v645_v44 = vrot.slane %v643_v4, 5  ;;  %v651_v58 = vrot.slane %v649_v61, 5 }
  0x5c   : > { %v1697_v62 = vsel %vm3242_vm3, %v1692_v21, %v1696_v49  ;;  %v656_v48 = vrot.slane %v654_v56, 4  ;;  %v657_v30 = vshll.u32 %v3505_v52, 16  ;;  %v663_v35 = vshll.u32 %v241_v18, 16 }
  0x5d   : > { %2899 = vmatmul.mubr.msk.bf16.gmra.mrb[24].mxu1 %vm752_vm0, %v2582_v11  ;;  %v1706_v6 = vrot.slane %v1705_v39, 4  ;;  %v646_v9 = vor.u32 %v645_v44, %v642_v28  ;;  %v1713_v38 = vshrl.u32 %v2706_v31, 16  ;;  %v1716_v54 = vshll.u32 %v2706_v31, 16  ;;  %v242_v11 = vld [vmem:[%s3205_s26 + $0x10c] sm:$0x1] }
  0x5e   : > { %v659_v57 = vrot.slane %v657_v30, 5  ;;  %v665_v4 = vrot.slane %v663_v35, 5  ;;  %v1722_v61 = vshll.u32 %v2707_v27, 16  ;;  %v1727_v20 = vshrl.u32 %v2708_v47, 16  ;;  %v3531_v31 = vld [vmem:[%s3205_s26 + $0x110] sm:$0xf] }
  0x5f   : > { %v1711_v49 = vsel %vm3242_vm3, %v1706_v6, %v1710_v55  ;;  %v647_v18 = vrot.slane %v646_v9, 4  ;;  %v1715_v21 = vrot.slane %v1713_v38, 4  ;;  %v1718_v56 = vrot.slane %v1716_v54, 5  ;;  %v2710_v9 = vld [vmem:[%s3205_s26 + $0x28] sm:$0xf] }
  0x60   : > { %v2768_v28 = vcombine.low %v1697_v62, %v1711_v49  ;;  %v660_v39 = vor.u32 %v659_v57, %v656_v48  ;;  %v1724_v44 = vrot.slane %v1722_v61, 5  ;;  %v1729_v12 = vrot.slane %v1727_v20, 4  ;;  %v2711_v61 = vld [vmem:[%s3205_s26 + $0x2c] sm:$0x1] }
  0x61   : > { %v652_v27 = vsel %vm3242_vm3, %v647_v18, %v651_v58  ;;  %v1719_v30 = vor.u32 %v1718_v56, %v1715_v21  ;;  %v1730_v35 = vshll.u32 %v2708_v47, 16  ;;  %v1736_v42 = vshll.u32 %v2709_v45, 16  ;;  %v2712_v18 = vld [vmem:[%s3205_s26 + $0x30] sm:$0xf] }
  0x62   : > { %2976 = vmatprep.mubr.msk.bf16.mxu0 %vm752_vm0, %v2768_v28  ;;  %v661_v55 = vrot.slane %v660_v39, 4  ;;  %v668_v6 = vshrl.u32 %v3525_v59, 16  ;;  %v671_v62 = vshll.u32 %v3525_v59, 16  ;;  %v677_v48 = vshll.u32 %v242_v11, 16 }
  0x63   : > { %v1720_v38 = vrot.slane %v1719_v30, 4  ;;  %v1732_v54 = vrot.slane %v1730_v35, 5  ;;  %v1738_v57 = vrot.slane %v1736_v42, 5  ;;  %v682_v58 = vshrl.u32 %v3531_v31, 16  ;;  %v2713_v35 = vld [vmem:[%s3205_s26 + $0x34] sm:$0x1] }
  0x64   : > { %v666_v47 = vsel %vm3242_vm3, %v661_v55, %v665_v4  ;;  %v670_v45 = vrot.slane %v668_v6, 4  ;;  %v673_v20 = vrot.slane %v671_v62, 5  ;;  %v679_v49 = vrot.slane %v677_v48, 5 }
  0x65   : > { %v2583_v21 = vcombine.low %v652_v27, %v666_v47  ;;  %v1725_v56 = vsel %vm3242_vm3, %v1720_v38, %v1724_v44  ;;  %v1733_v11 = vor.u32 %v1732_v54, %v1729_v12  ;;  %v684_v28 = vrot.slane %v682_v58, 4  ;;  %v2714_v27 = vld [vmem:[%s3205_s26 + $0x38] sm:$0xf]  ;;  %v2715_v38 = vld [vmem:[%s3205_s26 + $0x3c] sm:$0x1] }
  0x66   : > { %v674_v39 = vor.u32 %v673_v20, %v670_v45  ;;  %v685_v42 = vshll.u32 %v3531_v31, 16  ;;  %v691_v30 = vshll.u32 %v243_v22, 16  ;;  %v1741_v15 = vshrl.u32 %v2710_v9, 16  ;;  %v2716_v20 = vld [vmem:[%s3205_s26 + $0x40] sm:$0xf] }
  0x67   : > { %2902 = vmatprep.mubr.msk.bf16.mxu1 %vm752_vm0, %v2583_v21  ;;  %v1734_v4 = vrot.slane %v1733_v11, 4  ;;  %v1744_v55 = vshll.u32 %v2710_v9, 16  ;;  %v1750_v6 = vshll.u32 %v2711_v61, 16  ;;  %v1755_v62 = vshrl.u32 %v2712_v18, 16 }
  0x68   : > { %v675_v48 = vrot.slane %v674_v39, 4  ;;  %v687_v47 = vrot.slane %v685_v42, 5  ;;  %v693_v44 = vrot.slane %v691_v30, 5  ;;  %v1743_v12 = vrot.slane %v1741_v15, 4 }
  0x69   : > { %v1739_v54 = vsel %vm3242_vm3, %v1734_v4, %v1738_v57  ;;  %v1746_v22 = vrot.slane %v1744_v55, 5  ;;  %v1752_v58 = vrot.slane %v1750_v6, 5  ;;  %v1757_v45 = vrot.slane %v1755_v62, 4  ;;  %v2717_v4 = vld [vmem:[%s3205_s26 + $0x44] sm:$0x1] }
  0x6a   : > { %v2769_v32 = vcombine.low %v1725_v56, %v1739_v54  ;;  %v680_v9 = vsel %vm3242_vm3, %v675_v48, %v679_v49  ;;  %v688_v61 = vor.u32 %v687_v47, %v684_v28  ;;  %v1758_v21 = vshll.u32 %v2712_v18, 16  ;;  %v2718_v48 = vld [vmem:[%s3205_s26 + $0x50] sm:$0xf] }
  0x6b   : > { %v1747_v11 = vor.u32 %v1746_v22, %v1743_v12  ;;  %v1764_v39 = vshll.u32 %v2713_v35, 16  ;;  %v1769_v42 = vshrl.u32 %v2714_v27, 16  ;;  %v1772_v15 = vshll.u32 %v2714_v27, 16  ;;  %v2719_v12 = vld [vmem:[%s3205_s26 + $0x54] sm:$0x1] }
  0x6c   : > { %2977 = vmatmul.mubr.msk.bf16.vlgmr.msra.gmra.mrb[0].mxu0 %vm752_vm0, %v2769_v32  ;;  %v689_v57 = vrot.slane %v688_v61, 4  ;;  %v1760_v30 = vrot.slane %v1758_v21, 5  ;;  %v1778_v55 = vshll.u32 %v2715_v38, 16  ;;  %v1783_v6 = vshrl.u32 %v2716_v20, 16  ;;  %v2720_v32 = vld [vmem:[%s3205_s26 + $0x58] sm:$0xf] }
  0x6d   : > { %v1748_v56 = vrot.slane %v1747_v11, 4  ;;  %v1766_v62 = vrot.slane %v1764_v39, 5  ;;  %v1771_v49 = vrot.slane %v1769_v42, 4  ;;  %v1774_v28 = vrot.slane %v1772_v15, 5  ;;  %v2721_v39 = vld [vmem:[%s3205_s26 + $0x5c] sm:$0x1] }
  0x6e   : > { %v694_v18 = vsel %vm3242_vm3, %v689_v57, %v693_v44  ;;  %v1761_v35 = vor.u32 %v1760_v30, %v1757_v45  ;;  %v1780_v27 = vrot.slane %v1778_v55, 5  ;;  %v1785_v47 = vrot.slane %v1783_v6, 4  ;;  %v2722_v55 = vld [vmem:[%s3205_s26 + $0x60] sm:$0xf]  ;;  %v2723_v6 = vld [vmem:[%s3205_s26 + $0x64] sm:$0x1] }
  0x6f   : > { %v2584_v54 = vcombine.low %v680_v9, %v694_v18  ;;  %v1753_v38 = vsel %vm3242_vm3, %v1748_v56, %v1752_v58  ;;  %v1775_v22 = vor.u32 %v1774_v28, %v1771_v49  ;;  %v1786_v61 = vshll.u32 %v2716_v20, 16  ;;  %v2724_v18 = vld [vmem:[%s3205_s26 + $0x68] sm:$0xf] }
  0x70   : > { %v1762_v21 = vrot.slane %v1761_v35, 4  ;;  %v1792_v11 = vshll.u32 %v2717_v4, 16  ;;  %v1797_v42 = vshrl.u32 %v2718_v48, 16  ;;  %v1800_v15 = vshll.u32 %v2718_v48, 16 }
  0x71   : > { %2903 = vmatmul.mubr.msk.bf16.gmra.mrb[28].mxu1 %vm752_vm0, %v2584_v54  ;;  %v1776_v44 = vrot.slane %v1775_v22, 4  ;;  %v1788_v45 = vrot.slane %v1786_v61, 5  ;;  %v1806_v57 = vshll.u32 %v2719_v12, 16  ;;  %v1811_v30 = vshrl.u32 %v2720_v32, 16 }
  0x72   : > { %v1767_v58 = vsel %vm3242_vm3, %v1762_v21, %v1766_v62  ;;  %2908 = vmatprep.mubr.msk.bf16.mxu1 %vm752_vm0, %v2602_v17  ;;  %v1794_v20 = vrot.slane %v1792_v11, 5  ;;  %v1799_v9 = vrot.slane %v1797_v42, 4  ;;  %v1802_v4 = vrot.slane %v1800_v15, 5  ;;  %v2727_v42 = vld [vmem:[%s3205_s26 + $0x74] sm:$0x1] }
  0x73   : > { %v2770_v56 = vcombine.low %v1753_v38, %v1767_v58  ;;  %v1781_v49 = vsel %vm3242_vm3, %v1776_v44, %v1780_v27  ;;  %v1789_v28 = vor.u32 %v1788_v45, %v1785_v47  ;;  %v1808_v48 = vrot.slane %v1806_v57, 5  ;;  %v2726_v38 = vld [vmem:[%s3205_s26 + $0x70] sm:$0xf]  ;;  %v2728_v45 = vld [vmem:[%s3205_s26 + $0x78] sm:$0xf] }
  0x74   : > { %v1803_v35 = vor.u32 %v1802_v4, %v1799_v9  ;;  %v1813_v62 = vrot.slane %v1811_v30, 4  ;;  %v1814_v12 = vshll.u32 %v2720_v32, 16  ;;  %v1820_v54 = vshll.u32 %v2721_v39, 16 }
  0x75   : > { %2980 = vmatprep.mubr.msk.bf16.mxu0 %vm752_vm0, %v2770_v56  ;;  %v1790_v8 = vrot.slane %v1789_v28, 4  ;;  %v1825_v17 = vshrl.u32 %v2722_v55, 16  ;;  %v1828_v22 = vshll.u32 %v2722_v55, 16  ;;  %v1834_v61 = vshll.u32 %v2723_v6, 16  ;;  %v2729_v56 = vld [vmem:[%s3205_s26 + $0x7c] sm:$0x1] }
  0x76   : > { %v1804_v21 = vrot.slane %v1803_v35, 4  ;;  %v1816_v11 = vrot.slane %v1814_v12, 5  ;;  %v1822_v27 = vrot.slane %v1820_v54, 5  ;;  %v1839_v47 = vshrl.u32 %v2724_v18, 16 }
  0x77   : > { %v1795_v15 = vsel %vm3242_vm3, %v1790_v8, %v1794_v20  ;;  %v1827_v32 = vrot.slane %v1825_v17, 4  ;;  %v1830_v39 = vrot.slane %v1828_v22, 5  ;;  %v1836_v44 = vrot.slane %v1834_v61, 5 }
  0x78   : > { %v2771_v57 = vcombine.low %v1781_v49, %v1795_v15  ;;  %v1809_v30 = vsel %vm3242_vm3, %v1804_v21, %v1808_v48  ;;  %v1817_v55 = vor.u32 %v1816_v11, %v1813_v62  ;;  %v1841_v58 = vrot.slane %v1839_v47, 4  ;;  %v2732_v11 = vld [vmem:[%s3205_s26 + $0x88] sm:$0xf] }
  0x79   : > { %v3854_v9 = vcombine.low %v3229_v25, %v3232_v26  ;;  %v1831_v4 = vor.u32 %v1830_v39, %v1827_v32  ;;  %v1842_v6 = vshll.u32 %v2724_v18, 16  ;;  %v1848_v20 = vshll.u32 %v2725_v7, 16  ;;  %v2730_v26 = vld [vmem:[%s3205_s26 + $0x80] sm:$0xf]  ;;  %v2731_v7 = vld [vmem:[%s3205_s26 + $0x84] sm:$0x1] }
  0x7a   : > { %v1853_v28 = vshrl.u32 %v2726_v38, 16  ;;  %2981 = vmatmul.mubr.msk.bf16.gmra.mrb[4].mxu0 %vm752_vm0, %v2771_v57  ;;  %v1818_v49 = vrot.slane %v1817_v55, 4  ;;  %v3855_v48 = vcombine.low %v3253_v50, %v3256_v51  ;;  %v1856_v35 = vshll.u32 %v2726_v38, 16  ;;  %v2733_v55 = vld [vmem:[%s3205_s26 + $0x8c] sm:$0x1] }
  0x7b   : > { %2909 = vmatmul.mubr.msk.bf16.vlgmr.msra.gmra.mrb[0].mxu1 %vm752_vm0, %v3854_v9  ;;  %v1862_v62 = vshll.u32 %v2727_v42, 16  ;;  %v1867_v25 = vshrl.u32 %v2728_v45, 16  ;;  %v1832_v12 = vrot.slane %v1831_v4, 4  ;;  %v1844_v54 = vrot.slane %v1842_v6, 5 }
  0x7c   : > { %2912 = vmatprep.mubr.msk.bf16.mxu1 %vm752_vm0, %v3855_v48  ;;  %v1850_v8 = vrot.slane %v1848_v20, 5  ;;  %v1855_v18 = vrot.slane %v1853_v28, 4  ;;  %v1823_v17 = vsel %vm3242_vm3, %v1818_v49, %v1822_v27  ;;  %v1858_v22 = vrot.slane %v1856_v35, 5  ;;  %v2735_v35 = vld [vmem:[%s3205_s26 + $0x9c] sm:$0x1] }
  0x7d   : > { %v1864_v61 = vrot.slane %v1862_v62, 5  ;;  %v1869_v21 = vrot.slane %v1867_v25, 4  ;;  %v2772_v50 = vcombine.low %v1809_v30, %v1823_v17  ;;  %v1837_v51 = vsel %vm3242_vm3, %v1832_v12, %v1836_v44  ;;  %v2736_v62 = vld [vmem:[%s3205_s26 + $0xa0] sm:$0xf] }
  0x7e   : > { %v1845_v38 = vor.u32 %v1844_v54, %v1841_v58  ;;  %v1870_v47 = vshll.u32 %v2728_v45, 16  ;;  %v1859_v42 = vor.u32 %v1858_v22, %v1855_v18  ;;  %v1876_v15 = vshll.u32 %v2729_v56, 16  ;;  %v2734_v58 = vld [vmem:[%s3205_s26 + $0x98] sm:$0xf]  ;;  %v2737_v18 = vld [vmem:[%s3205_s26 + $0xa4] sm:$0x1] }
  0x7f   : > { %v1881_v32 = vshrl.u32 %v2730_v26, 16  ;;  %v1884_v39 = vshll.u32 %v2730_v26, 16  ;;  %2984 = vmatprep.mubr.msk.bf16.mxu0 %vm752_vm0, %v2772_v50  ;;  %v1890_v9 = vshll.u32 %v2731_v7, 16  ;;  %v1895_v4 = vshrl.u32 %v2732_v11, 16 }
  0x80   : > { %v1846_v27 = vrot.slane %v1845_v38, 4  ;;  %v1872_v57 = vrot.slane %v1870_v47, 5  ;;  %v1860_v30 = vrot.slane %v1859_v42, 4  ;;  %v1878_v6 = vrot.slane %v1876_v15, 5  ;;  %v2739_v47 = vld [vmem:[%s3205_s26 + $0xac] sm:$0x1] }
  0x81   : > { %v1883_v20 = vrot.slane %v1881_v32, 4  ;;  %v1886_v44 = vrot.slane %v1884_v39, 5  ;;  %v3856_v56 = vcombine.low %v3274_v13, %v3277_v14  ;;  %v1892_v49 = vrot.slane %v1890_v9, 5 }
  0x82   : > { %v1851_v45 = vsel %vm3242_vm3, %v1846_v27, %v1850_v8  ;;  %v1873_v28 = vor.u32 %v1872_v57, %v1869_v21  ;;  %v1897_v48 = vrot.slane %v1895_v4, 4  ;;  %v1865_v26 = vsel %vm3242_vm3, %v1860_v30, %v1864_v61  ;;  %v2740_v27 = vld [vmem:[%s3205_s26 + $0xb0] sm:$0xf]  ;;  %v2741_v30 = vld [vmem:[%s3205_s26 + $0xb4] sm:$0x1] }
  0x83   : > { %2913 = vmatmul.mubr.msk.bf16.gmra.mrb[4].mxu1 %vm752_vm0, %v3856_v56  ;;  %v2773_v25 = vcombine.low %v1837_v51, %v1851_v45  ;;  %v3857_v12 = vcombine.low %v3296_v43, %v3302_v2  ;;  %v1887_v54 = vor.u32 %v1886_v44, %v1883_v20  ;;  %v1898_v8 = vshll.u32 %v2732_v11, 16  ;;  %v2738_v51 = vld [vmem:[%s3205_s26 + $0xa8] sm:$0xf]  ;;  %v2742_v45 = vld [vmem:[%s3205_s26 + $0xb8] sm:$0xf] }
  0x84   : > { %v1874_v13 = vrot.slane %v1873_v28, 4  ;;  %v1904_v14 = vshll.u32 %v2733_v55, 16  ;;  %v1909_v7 = vshrl.u32 %v2734_v58, 16  ;;  %v1912_v17 = vshll.u32 %v2734_v58, 16 }
  0x85   : > { %2916 = vmatprep.mubr.msk.bf16.mxu1 %vm752_vm0, %v3857_v12  ;;  %2985 = vmatmul.mubr.msk.bf16.gmra.mrb[8].mxu0 %vm752_vm0, %v2773_v25  ;;  %v1888_v22 = vrot.slane %v1887_v54, 4  ;;  %v1900_v21 = vrot.slane %v1898_v8, 5  ;;  %v1918_v50 = vshll.u32 %v2735_v35, 16  ;;  %v1923_v61 = vshrl.u32 %v2736_v62, 16 }
  0x86   : > { %v1879_v43 = vsel %vm3242_vm3, %v1874_v13, %v1878_v6  ;;  %v1906_v2 = vrot.slane %v1904_v14, 5  ;;  %v1911_v11 = vrot.slane %v1909_v7, 4  ;;  %v1914_v38 = vrot.slane %v1912_v17, 5 }
  0x87   : > { %v2774_v42 = vcombine.low %v1865_v26, %v1879_v43  ;;  %v1893_v15 = vsel %vm3242_vm3, %v1888_v22, %v1892_v49  ;;  %v1901_v32 = vor.u32 %v1900_v21, %v1897_v48  ;;  %v1920_v39 = vrot.slane %v1918_v50, 5  ;;  %v2745_v21 = vld [vmem:[%s3205_s26 + $0xc4] sm:$0x1]  ;;  %v2746_v43 = vld [vmem:[%s3205_s26 + $0xc8] sm:$0xf] }
  0x88   : > { %v1915_v57 = vor.u32 %v1914_v38, %v1911_v11  ;;  %v1925_v55 = vrot.slane %v1923_v61, 4  ;;  %v1926_v9 = vshll.u32 %v2736_v62, 16  ;;  %v1932_v4 = vshll.u32 %v2737_v18, 16  ;;  %v2743_v62 = vld [vmem:[%s3205_s26 + $0xbc] sm:$0x1] }
  0x89   : > { %2988 = vmatprep.mubr.msk.bf16.mxu0 %vm752_vm0, %v2774_v42  ;;  %v1902_v6 = vrot.slane %v1901_v32, 4  ;;  %v1937_v20 = vshrl.u32 %v2738_v51, 16  ;;  %v1940_v44 = vshll.u32 %v2738_v51, 16  ;;  %v1946_v58 = vshll.u32 %v2739_v47, 16  ;;  %v2747_v42 = vld [vmem:[%s3205_s26 + $0xcc] sm:$0x1] }
  0x8a   : > { %v3858_v56 = vcombine.low %v3313_v63, %v3319_v5  ;;  %v1916_v28 = vrot.slane %v1915_v57, 4  ;;  %v1928_v49 = vrot.slane %v1926_v9, 5  ;;  %v1934_v48 = vrot.slane %v1932_v4, 5  ;;  %v2744_v63 = vld [vmem:[%s3205_s26 + $0xc0] sm:$0xf] }
  0x8b   : > { %v1951_v35 = vshrl.u32 %v2740_v27, 16  ;;  %v1907_v25 = vsel %vm3242_vm3, %v1902_v6, %v1906_v2  ;;  %v3859_v26 = vcombine.low %v3332_v36, %v3338_v40  ;;  %v1939_v12 = vrot.slane %v1937_v20, 4  ;;  %v2748_v57 = vld [vmem:[%s3205_s26 + $0xd0] sm:$0xf] }
  0x8c   : > { %2917 = vmatmul.mubr.msk.bf16.gmra.mrb[8].mxu1 %vm752_vm0, %v3858_v56  ;;  %v1942_v54 = vrot.slane %v1940_v44, 5  ;;  %v1948_v8 = vrot.slane %v1946_v58, 5  ;;  %v2775_v5 = vcombine.low %v1893_v15, %v1907_v25  ;;  %v1921_v13 = vsel %vm3242_vm3, %v1916_v28, %v1920_v39 }
  0x8d   : > { %2920 = vmatprep.mubr.msk.bf16.mxu1 %vm752_vm0, %v3859_v26  ;;  %v1929_v14 = vor.u32 %v1928_v49, %v1925_v55  ;;  %v1953_v18 = vrot.slane %v1951_v35, 4  ;;  %v1954_v17 = vshll.u32 %v2740_v27, 16  ;;  %v1960_v22 = vshll.u32 %v2741_v30, 16 }
  0x8e   : > { %v1943_v7 = vor.u32 %v1942_v54, %v1939_v12  ;;  %v1965_v50 = vshrl.u32 %v2742_v45, 16  ;;  %2989 = vmatmul.mubr.msk.bf16.gmra.mrb[12].mxu0 %vm752_vm0, %v2775_v5  ;;  %v1968_v40 = vshll.u32 %v2742_v45, 16  ;;  %v1974_v61 = vshll.u32 %v2743_v62, 16  ;;  %v2750_v12 = vld [vmem:[%s3205_s26 + $0xe0] sm:$0xf] }
  0x8f   : > { %v1930_v36 = vrot.slane %v1929_v14, 4  ;;  %v1979_v51 = vshrl.u32 %v2744_v63, 16  ;;  %v1956_v11 = vrot.slane %v1954_v17, 5  ;;  %v1962_v38 = vrot.slane %v1960_v22, 5 }
  0x90   : > { %v1944_v2 = vrot.slane %v1943_v7, 4  ;;  %v1967_v47 = vrot.slane %v1965_v50, 4  ;;  %v1970_v32 = vrot.slane %v1968_v40, 5  ;;  %v1976_v39 = vrot.slane %v1974_v61, 5  ;;  %v2752_v7 = vld [vmem:[%s3205_s26 + $0xe8] sm:$0xf] }
  0x91   : > { %v1935_v15 = vsel %vm3242_vm3, %v1930_v36, %v1934_v48  ;;  %v1981_v27 = vrot.slane %v1979_v51, 4  ;;  %v1957_v4 = vor.u32 %v1956_v11, %v1953_v18  ;;  %v1982_v30 = vshll.u32 %v2744_v63, 16  ;;  %v2749_v48 = vld [vmem:[%s3205_s26 + $0xd4] sm:$0x1]  ;;  %v2753_v61 = vld [vmem:[%s3205_s26 + $0xec] sm:$0x1] }
  0x92   : > { %v2776_v55 = vcombine.low %v1921_v13, %v1935_v15  ;;  %v1949_v9 = vsel %vm3242_vm3, %v1944_v2, %v1948_v8  ;;  %v3860_v6 = vcombine.low %v3352_v60, %v3357_v3  ;;  %v1971_v20 = vor.u32 %v1970_v32, %v1967_v47  ;;  %v2751_v13 = vld [vmem:[%s3205_s26 + $0xe4] sm:$0x1] }
  0x93   : > { %v1988_v44 = vshll.u32 %v2745_v21, 16  ;;  %v1993_v58 = vshrl.u32 %v2746_v43, 16  ;;  %v1996_v45 = vshll.u32 %v2746_v43, 16  ;;  %v1958_v56 = vrot.slane %v1957_v4, 4  ;;  %v2756_v4 = vld [vmem:[%s3205_s26 + $0xf8] sm:$0xf] }
  0x94   : > { %2921 = vmatmul.mubr.msk.bf16.gmra.mrb[12].mxu1 %vm752_vm0, %v3860_v6  ;;  %2992 = vmatprep.mubr.msk.bf16.mxu0 %vm752_vm0, %v2776_v55  ;;  %v1984_v28 = vrot.slane %v1982_v30, 5  ;;  %v3861_v49 = vcombine.low %v3371_v29, %v3376_v37  ;;  %v2002_v35 = vshll.u32 %v2747_v42, 16  ;;  %v2007_v60 = vshrl.u32 %v2748_v57, 16  ;;  %v2754_v42 = vld [vmem:[%s3205_s26 + $0xf0] sm:$0xf] }
  0x95   : > { %v1972_v3 = vrot.slane %v1971_v20, 4  ;;  %v1990_v62 = vrot.slane %v1988_v44, 5  ;;  %v1995_v25 = vrot.slane %v1993_v58, 4  ;;  %v1998_v26 = vrot.slane %v1996_v45, 5 }
  0x96   : > { %2924 = vmatprep.mubr.msk.bf16.mxu1 %vm752_vm0, %v3861_v49  ;;  %v1963_v54 = vsel %vm3242_vm3, %v1958_v56, %v1962_v38  ;;  %v1985_v8 = vor.u32 %v1984_v28, %v1981_v27  ;;  %v2004_v63 = vrot.slane %v2002_v35, 5  ;;  %v2009_v5 = vrot.slane %v2007_v60, 4  ;;  %v2757_v56 = vld [vmem:[%s3205_s26 + $0xfc] sm:$0x1] }
  0x97   : > { %v2777_v29 = vcombine.low %v1949_v9, %v1963_v54  ;;  %v1977_v37 = vsel %vm3242_vm3, %v1972_v3, %v1976_v39  ;;  %v1999_v14 = vor.u32 %v1998_v26, %v1995_v25  ;;  %v2010_v18 = vshll.u32 %v2748_v57, 16  ;;  %v2755_v39 = vld [vmem:[%s3205_s26 + $0xf4] sm:$0x1] }
  0x98   : > { %v1986_v17 = vrot.slane %v1985_v8, 4  ;;  %v2016_v22 = vshll.u32 %v2749_v48, 16  ;;  %v2611_v21 = vcombine.low %v3390_v0, %v3395_v10  ;;  %v2021_v50 = vshrl.u32 %v2750_v12, 16 }
  0x99   : > { %2993 = vmatmul.mubr.msk.bf16.gmra.mrb[16].mxu0 %vm752_vm0, %v2777_v29  ;;  %v2000_v36 = vrot.slane %v1999_v14, 4  ;;  %v2012_v40 = vrot.slane %v2010_v18, 5  ;;  %v2024_v51 = vshll.u32 %v2750_v12, 16  ;;  %v2030_v43 = vshll.u32 %v2751_v13, 16  ;;  %v2759_v12 = vld [vmem:[%s3205_s26 + $0x104] sm:$0x1] }
  0x9a   : > { %v1991_v2 = vsel %vm3242_vm3, %v1986_v17, %v1990_v62  ;;  %v2018_v11 = vrot.slane %v2016_v22, 5  ;;  %v2023_v38 = vrot.slane %v2021_v50, 4  ;;  %v2035_v47 = vshrl.u32 %v2752_v7, 16  ;;  %v2758_v62 = vld [vmem:[%s3205_s26 + $0x100] sm:$0xf] }
  0x9b   : > { %v2778_v15 = vcombine.low %v1977_v37, %v1991_v2  ;;  %v2005_v0 = vsel %vm3242_vm3, %v2000_v36, %v2004_v63  ;;  %v2013_v10 = vor.u32 %v2012_v40, %v2009_v5  ;;  %v2026_v32 = vrot.slane %v2024_v51, 5  ;;  %v2760_v13 = vld [vmem:[%s3205_s26 + $0x108] sm:$0xf]  ;;  %v2761_v22 = vld [vmem:[%s3205_s26 + $0x10c] sm:$0x1] }
  0x9c   : > { %2925 = vmatmul.mubr.msk.bf16.gmra.mrb[16].mxu1 %vm752_vm0, %v2611_v21  ;;  %v2032_v27 = vrot.slane %v2030_v43, 5  ;;  %v2037_v57 = vrot.slane %v2035_v47, 4  ;;  %v2038_v55 = vshll.u32 %v2752_v7, 16  ;;  %v2044_v9 = vshll.u32 %v2753_v61, 16  ;;  %v2762_v43 = vld [vmem:[%s3205_s26 + $0x110] sm:$0xf] }
  0x9d   : > { %2996 = vmatprep.mubr.msk.bf16.mxu0 %vm752_vm0, %v2778_v15  ;;  %v2014_v30 = vrot.slane %v2013_v10, 4  ;;  %v2027_v6 = vor.u32 %v2026_v32, %v2023_v38  ;;  %v2612_v20 = vcombine.low %v3409_v41, %v3414_v53  ;;  %v2049_v44 = vshrl.u32 %v2754_v42, 16  ;;  %v2763_v38 = vld [vmem:[%s3205_s26 + $0x114] sm:$0x1]  ;;  %v2764_v10 = vld [vmem:[%s3205_s26 + $0x118] sm:$0xf] }
  0x9e   : > { %v2040_v58 = vrot.slane %v2038_v55, 5  ;;  %v2046_v45 = vrot.slane %v2044_v9, 5  ;;  %v2052_v28 = vshll.u32 %v2754_v42, 16  ;;  %v2058_v49 = vshll.u32 %v2755_v39, 16  ;;  %v2765_v9 = vld [vmem:[%s3205_s26 + $0x11c] sm:$0x1] }
  0x9f   : > { %v2019_v48 = vsel %vm3242_vm3, %v2014_v30, %v2018_v11  ;;  %v2028_v35 = vrot.slane %v2027_v6, 4  ;;  %2928 = vmatprep.mubr.msk.bf16.mxu1 %vm752_vm0, %v2612_v20  ;;  %v2051_v60 = vrot.slane %v2049_v44, 4  ;;  %v2063_v3 = vshrl.u32 %v2756_v4, 16 }
  0xa0   : > { %v2779_v25 = vcombine.low %v2005_v0, %v2019_v48  ;;  %v2041_v26 = vor.u32 %v2040_v58, %v2037_v57  ;;  %v2054_v41 = vrot.slane %v2052_v28, 5  ;;  %v2060_v53 = vrot.slane %v2058_v49, 5 }
  0xa1   : > { %v2033_v54 = vsel %vm3242_vm3, %v2028_v35, %v2032_v27  ;;  %v2065_v8 = vrot.slane %v2063_v3, 4  ;;  %v2066_v63 = vshll.u32 %v2756_v4, 16  ;;  %v2072_v5 = vshll.u32 %v2757_v56, 16 }
  0xa2   : > { %2997 = vmatmul.mubr.msk.bf16.gmra.mrb[20].mxu0 %vm752_vm0, %v2779_v25  ;;  %v2042_v29 = vrot.slane %v2041_v26, 4  ;;  %v2055_v37 = vor.u32 %v2054_v41, %v2051_v60  ;;  %v2613_v14 = vcombine.low %v3431_v24, %v3435_v34  ;;  %v2077_v18 = vshrl.u32 %v2758_v62, 16 }
  0xa3   : > { %v2068_v7 = vrot.slane %v2066_v63, 5  ;;  %v2074_v17 = vrot.slane %v2072_v5, 5  ;;  %v2080_v21 = vshll.u32 %v2758_v62, 16  ;;  %v2086_v50 = vshll.u32 %v2759_v12, 16 }
  0xa4   : > { %v2047_v36 = vsel %vm3242_vm3, %v2042_v29, %v2046_v45  ;;  %v2056_v40 = vrot.slane %v2055_v37, 4  ;;  %2929 = vmatmul.mubr.msk.bf16.gmra.mrb[20].mxu1 %vm752_vm0, %v2613_v14  ;;  %v2079_v61 = vrot.slane %v2077_v18, 4  ;;  %v2091_v51 = vshrl.u32 %v2760_v13, 16 }
  0xa5   : > { %v2780_v2 = vcombine.low %v2033_v54, %v2047_v36  ;;  %v2069_v24 = vor.u32 %v2068_v7, %v2065_v8  ;;  %v2082_v34 = vrot.slane %v2080_v21, 5  ;;  %v2088_v11 = vrot.slane %v2086_v50, 5 }
  0xa6   : > { %v2061_v47 = vsel %vm3242_vm3, %v2056_v40, %v2060_v53  ;;  %v2093_v42 = vrot.slane %v2091_v51, 4  ;;  %v2094_v15 = vshll.u32 %v2760_v13, 16  ;;  %v2100_v0 = vshll.u32 %v2761_v22, 16 }
  0xa7   : > { %3000 = vmatprep.mubr.msk.bf16.mxu0 %vm752_vm0, %v2780_v2  ;;  %v2070_v32 = vrot.slane %v2069_v24, 4  ;;  %v2083_v39 = vor.u32 %v2082_v34, %v2079_v61  ;;  %v2614_v27 = vcombine.low %v3451_v19, %v3458_v23  ;;  %v2105_v57 = vshrl.u32 %v2762_v43, 16 }
  0xa8   : > { %v2096_v55 = vrot.slane %v2094_v15, 5  ;;  %v2108_v4 = vshll.u32 %v2762_v43, 16  ;;  %v2114_v30 = vshll.u32 %v2763_v38, 16  ;;  %v2119_v58 = vshrl.u32 %v2764_v10, 16 }
  0xa9   : > { %v2075_v6 = vsel %vm3242_vm3, %v2070_v32, %v2074_v17  ;;  %v2084_v20 = vrot.slane %v2083_v39, 4  ;;  %2932 = vmatprep.mubr.msk.bf16.mxu1 %vm752_vm0, %v2614_v27  ;;  %v2107_v44 = vrot.slane %v2105_v57, 4  ;;  %v2102_v28 = vrot.slane %v2100_v0, 5 }
  0xaa   : > { %v2781_v45 = vcombine.low %v2061_v47, %v2075_v6  ;;  %v2097_v56 = vor.u32 %v2096_v55, %v2093_v42  ;;  %v2110_v49 = vrot.slane %v2108_v4, 5  ;;  %v2121_v23 = vrot.slane %v2119_v58, 4 }
  0xab   : > { %v2089_v19 = vsel %vm3242_vm3, %v2084_v20, %v2088_v11  ;;  %v2122_v48 = vshll.u32 %v2764_v10, 16  ;;  %v2128_v35 = vshll.u32 %v2765_v9, 16  ;;  %v2615_v62 = vcombine.low %v3472_v1, %v3479_v16 }
  0xac   : > { %3001 = vmatmul.mubr.msk.bf16.gmra.mrb[24].mxu0 %vm752_vm0, %v2781_v45  ;;  %v2098_v60 = vrot.slane %v2097_v56, 4  ;;  %v2111_v3 = vor.u32 %v2110_v49, %v2107_v44  ;;  %v2616_v25 = vcombine.low %v3501_v46, %v3505_v52  ;;  %v2116_v26 = vrot.slane %v2114_v30, 5 }
  0xad   : > { %v2124_v41 = vrot.slane %v2122_v48, 5  ;;  %2933 = vmatmul.mubr.msk.bf16.gmra.mrb[24].mxu1 %vm752_vm0, %v2615_v62  ;;  %v2130_v63 = vrot.slane %v2128_v35, 5  ;;  %v2617_v46 = vcombine.low %v3525_v59, %v3531_v31 }
  0xae   : > { %v2103_v53 = vsel %vm3242_vm3, %v2098_v60, %v2102_v28  ;;  %v2112_v12 = vrot.slane %v2111_v3, 4  ;;  %2936 = vmatprep.mubr.msk.bf16.mxu1 %vm752_vm0, %v2616_v25 }
  0xaf   : > { %v2782_v54 = vcombine.low %v2089_v19, %v2103_v53  ;;  %v2125_v8 = vor.u32 %v2124_v41, %v2121_v23 }
  0xb0   : > { %v2117_v1 = vsel %vm3242_vm3, %v2112_v12, %v2116_v26 }
  0xb1   : > { %3004 = vmatprep.mubr.msk.bf16.mxu0 %vm752_vm0, %v2782_v54  ;;  %v2126_v16 = vrot.slane %v2125_v8, 4 }
  0xb3   : > { %v2131_v52 = vsel %vm3242_vm3, %v2126_v16, %v2130_v63 }
  0xb4   : > { %v2783_v5 = vcombine.low %v2117_v1, %v2131_v52 }
  0xb5   : > { %2937 = vmatmul.mubr.msk.bf16.gmra.mrb[28].mxu1 %vm752_vm0, %v2617_v46 }
  0xb6   : > { %3005 = vmatmul.mubr.msk.bf16.gmra.mrb[28].mxu0 %vm752_vm0, %v2783_v5 }
 0x13f   : > { %v2978_v13 = vpop.f32.mrb[0].mxu0 }
 0x140   : > { %v2271_v29 = vpop.f32.mrb[1].mxu0 }
 0x141   : > { %v2979_v37 = vpop.f32.mrb[2].mxu0 }
 0x142   : > { %v2274_v14 = vpop.f32.mrb[3].mxu0 }
 0x14d   : > { %v2982_v59 = vpop.f32.mrb[4].mxu0 }
 0x14e   : > { %v2910_v18 = vpop.f32.mrb[0].mxu1  ;;  %v2287_v17 = vpop.f32.mrb[5].mxu0 }
 0x14f   : > { %v3008_v31 = vadd.f32 %v2978_v13, %v2910_v18  ;;  %v1130_v7 = vpop.f32.mrb[1].mxu1  ;;  %v2983_v36 = vpop.f32.mrb[6].mxu0 }
 0x150   : > { %v3009_v22 = vadd.f32 %v2271_v29, %v1130_v7  ;;  %v2911_v21 = vpop.f32.mrb[2].mxu1  ;;  %v2290_v43 = vpop.f32.mrb[7].mxu0 }
 0x151   : > { %v2439_v50 = vadd.f32 %v3008_v31, %v3742_v33  ;;  %v3010_v40 = vadd.f32 %v2979_v37, %v2911_v21  ;;  %v1133_v61 = vpop.f32.mrb[3].mxu1 }
 0x152   : > { %v2437_v51 = vadd.f32 %v3009_v22, %v3742_v33  ;;  %v3011_v2 = vadd.f32 %v2274_v14, %v1133_v61 }
 0x153   : > { %2472 = vst.msk [vmem:[%s3747_s6 + $0x10] sm:$0xff] %vm2469_vm4, %v2439_v50  ;;  %v2440_v24 = vadd.f32 %v3010_v40, %v3742_v33 }
 0x154   : > { %2470 = vst.msk [vmem:[%s3747_s6] sm:$0xff] %vm2469_vm4, %v2437_v51  ;;  %v2438_v34 = vadd.f32 %v3011_v2, %v3742_v33 }
 0x155   : > { %2473 = vst.msk [vmem:[%s3747_s6 + $0x18] sm:$0xff] %vm2469_vm4, %v2440_v24 }
 0x156   : > { %2471 = vst.msk [vmem:[%s3747_s6 + $0x8] sm:$0xff] %vm2469_vm4, %v2438_v34  ;;  %v2914_v11 = vpop.f32.mrb[4].mxu1 }
 0x157   : > { %v3012_v38 = vadd.f32 %v2982_v59, %v2914_v11  ;;  %v1146_v47 = vpop.f32.mrb[5].mxu1 }
 0x158   : > { %v3013_v42 = vadd.f32 %v2287_v17, %v1146_v47  ;;  %v2915_v15 = vpop.f32.mrb[6].mxu1  ;;  %v2986_v0 = vpop.f32.mrb[8].mxu0 }
 0x159   : > { %v2443_v10 = vadd.f32 %v3012_v38, %v3742_v33  ;;  %v3014_v32 = vadd.f32 %v2983_v36, %v2915_v15  ;;  %v1149_v39 = vpop.f32.mrb[7].mxu1  ;;  %v2303_v27 = vpop.f32.mrb[9].mxu0 }
 0x15a   : > { %v2441_v57 = vadd.f32 %v3013_v42, %v3742_v33  ;;  %v3015_v55 = vadd.f32 %v2290_v43, %v1149_v39  ;;  %v2987_v9 = vpop.f32.mrb[10].mxu0 }
 0x15b   : > { %2476 = vst.msk [vmem:[%s3747_s6 + $0x30] sm:$0xff] %vm2469_vm4, %v2443_v10  ;;  %v2444_v4 = vadd.f32 %v3014_v32, %v3742_v33  ;;  %v2306_v30 = vpop.f32.mrb[11].mxu0 }
 0x15c   : > { %2474 = vst.msk [vmem:[%s3747_s6 + $0x20] sm:$0xff] %vm2469_vm4, %v2441_v57  ;;  %v2442_v6 = vadd.f32 %v3015_v55, %v3742_v33 }
 0x15d   : > { %2477 = vst.msk [vmem:[%s3747_s6 + $0x38] sm:$0xff] %vm2469_vm4, %v2444_v4 }
 0x15e   : > { %2475 = vst.msk [vmem:[%s3747_s6 + $0x28] sm:$0xff] %vm2469_vm4, %v2442_v6 }
 0x15f   : > { %v2918_v20 = vpop.f32.mrb[8].mxu1 }
 0x160   : > { %v3016_v44 = vadd.f32 %v2986_v0, %v2918_v20  ;;  %v1162_v58 = vpop.f32.mrb[9].mxu1 }
 0x161   : > { %v3017_v45 = vadd.f32 %v2303_v27, %v1162_v58  ;;  %v2919_v56 = vpop.f32.mrb[10].mxu1  ;;  %v2990_v23 = vpop.f32.mrb[12].mxu0 }
 0x162   : > { %v2447_v28 = vadd.f32 %v3016_v44, %v3742_v33  ;;  %v3018_v49 = vadd.f32 %v2987_v9, %v2919_v56  ;;  %v1165_v19 = vpop.f32.mrb[11].mxu1  ;;  %v2319_v60 = vpop.f32.mrb[13].mxu0 }
 0x163   : > { %v2445_v48 = vadd.f32 %v3017_v45, %v3742_v33  ;;  %v3019_v35 = vadd.f32 %v2306_v30, %v1165_v19  ;;  %v2991_v62 = vpop.f32.mrb[14].mxu0 }
 0x164   : > { %2480 = vst.msk [vmem:[%s3747_s6 + $0x50] sm:$0xff] %vm2469_vm4, %v2447_v28  ;;  %v2448_v3 = vadd.f32 %v3018_v49, %v3742_v33  ;;  %v2322_v26 = vpop.f32.mrb[15].mxu0 }
 0x165   : > { %2478 = vst.msk [vmem:[%s3747_s6 + $0x40] sm:$0xff] %vm2469_vm4, %v2445_v48  ;;  %v2446_v25 = vadd.f32 %v3019_v35, %v3742_v33 }
 0x166   : > { %2481 = vst.msk [vmem:[%s3747_s6 + $0x58] sm:$0xff] %vm2469_vm4, %v2448_v3 }
 0x167   : > { %2479 = vst.msk [vmem:[%s3747_s6 + $0x48] sm:$0xff] %vm2469_vm4, %v2446_v25  ;;  %v2922_v41 = vpop.f32.mrb[12].mxu1 }
 0x168   : > { %v3020_v53 = vadd.f32 %v2990_v23, %v2922_v41  ;;  %v1178_v12 = vpop.f32.mrb[13].mxu1 }
 0x169   : > { %v3021_v54 = vadd.f32 %v2319_v60, %v1178_v12  ;;  %v2923_v8 = vpop.f32.mrb[14].mxu1 }
 0x16a   : > { %v2451_v63 = vadd.f32 %v3020_v53, %v3742_v33  ;;  %v3022_v1 = vadd.f32 %v2991_v62, %v2923_v8  ;;  %v1181_v16 = vpop.f32.mrb[15].mxu1 }
 0x16b   : > { %v2449_v46 = vadd.f32 %v3021_v54, %v3742_v33  ;;  %v3023_v52 = vadd.f32 %v2322_v26, %v1181_v16 }
 0x16c   : > { %2484 = vst.msk [vmem:[%s3747_s6 + $0x70] sm:$0xff] %vm2469_vm4, %v2451_v63  ;;  %v2452_v5 = vadd.f32 %v3022_v1, %v3742_v33  ;;  %v2994_v13 = vpop.f32.mrb[16].mxu0 }
 0x16d   : > { %2482 = vst.msk [vmem:[%s3747_s6 + $0x60] sm:$0xff] %vm2469_vm4, %v2449_v46  ;;  %v2450_v29 = vadd.f32 %v3023_v52, %v3742_v33  ;;  %v2335_v37 = vpop.f32.mrb[17].mxu0 }
 0x16e   : > { %2485 = vst.msk [vmem:[%s3747_s6 + $0x78] sm:$0xff] %vm2469_vm4, %v2452_v5  ;;  %v2995_v14 = vpop.f32.mrb[18].mxu0 }
 0x16f   : > { %2483 = vst.msk [vmem:[%s3747_s6 + $0x68] sm:$0xff] %vm2469_vm4, %v2450_v29  ;;  %v2926_v18 = vpop.f32.mrb[16].mxu1  ;;  %v2338_v59 = vpop.f32.mrb[19].mxu0 }
 0x170   : > { %v3024_v31 = vadd.f32 %v2994_v13, %v2926_v18  ;;  %v1194_v7 = vpop.f32.mrb[17].mxu1 }
 0x171   : > { %v3025_v17 = vadd.f32 %v2335_v37, %v1194_v7  ;;  %v2927_v22 = vpop.f32.mrb[18].mxu1 }
 0x172   : > { %v2455_v21 = vadd.f32 %v3024_v31, %v3742_v33  ;;  %v3026_v50 = vadd.f32 %v2995_v14, %v2927_v22  ;;  %v1197_v36 = vpop.f32.mrb[19].mxu1 }
 0x173   : > { %v2453_v40 = vadd.f32 %v3025_v17, %v3742_v33  ;;  %v3027_v61 = vadd.f32 %v2338_v59, %v1197_v36 }
 0x174   : > { %2488 = vst.msk [vmem:[%s3747_s6 + $0x90] sm:$0xff] %vm2469_vm4, %v2455_v21  ;;  %v2456_v51 = vadd.f32 %v3026_v50, %v3742_v33 }
 0x175   : > { %2486 = vst.msk [vmem:[%s3747_s6 + $0x80] sm:$0xff] %vm2469_vm4, %v2453_v40  ;;  %v2454_v43 = vadd.f32 %v3027_v61, %v3742_v33  ;;  %v2998_v2 = vpop.f32.mrb[20].mxu0 }
 0x176   : > { %2489 = vst.msk [vmem:[%s3747_s6 + $0x98] sm:$0xff] %vm2469_vm4, %v2456_v51  ;;  %v2351_v24 = vpop.f32.mrb[21].mxu0 }
 0x177   : > { %2487 = vst.msk [vmem:[%s3747_s6 + $0x88] sm:$0xff] %vm2469_vm4, %v2454_v43  ;;  %v2999_v34 = vpop.f32.mrb[22].mxu0  ;;  %v2930_v11 = vpop.f32.mrb[20].mxu1 }
 0x178   : > { %v2354_v38 = vpop.f32.mrb[23].mxu0  ;;  %v3028_v47 = vadd.f32 %v2998_v2, %v2930_v11  ;;  %v1210_v42 = vpop.f32.mrb[21].mxu1 }
 0x179   : > { %v3029_v15 = vadd.f32 %v2351_v24, %v1210_v42  ;;  %v2931_v0 = vpop.f32.mrb[22].mxu1 }
 0x17a   : > { %v2459_v10 = vadd.f32 %v3028_v47, %v3742_v33  ;;  %v3030_v32 = vadd.f32 %v2999_v34, %v2931_v0  ;;  %v1213_v39 = vpop.f32.mrb[23].mxu1 }
 0x17b   : > { %v2457_v27 = vadd.f32 %v3029_v15, %v3742_v33  ;;  %v3031_v57 = vadd.f32 %v2354_v38, %v1213_v39 }
 0x17c   : > { %2492 = vst.msk [vmem:[%s3747_s6 + $0xb0] sm:$0xff] %vm2469_vm4, %v2459_v10  ;;  %v2460_v55 = vadd.f32 %v3030_v32, %v3742_v33 }
 0x17d   : > { %2490 = vst.msk [vmem:[%s3747_s6 + $0xa0] sm:$0xff] %vm2469_vm4, %v2457_v27  ;;  %v2458_v9 = vadd.f32 %v3031_v57, %v3742_v33 }
 0x17e   : > { %2493 = vst.msk [vmem:[%s3747_s6 + $0xb8] sm:$0xff] %vm2469_vm4, %v2460_v55 }
 0x17f   : > { %v3002_v4 = vpop.f32.mrb[24].mxu0  ;;  %2491 = vst.msk [vmem:[%s3747_s6 + $0xa8] sm:$0xff] %vm2469_vm4, %v2458_v9 }
 0x180   : > { %v2367_v30 = vpop.f32.mrb[25].mxu0  ;;  %v2934_v20 = vpop.f32.mrb[24].mxu1 }
 0x181   : > { %v3003_v6 = vpop.f32.mrb[26].mxu0  ;;  %v3032_v58 = vadd.f32 %v3002_v4, %v2934_v20  ;;  %v1226_v45 = vpop.f32.mrb[25].mxu1 }
 0x182   : > { %v2370_v44 = vpop.f32.mrb[27].mxu0  ;;  %v3033_v56 = vadd.f32 %v2367_v30, %v1226_v45  ;;  %v2935_v28 = vpop.f32.mrb[26].mxu1 }
 0x183   : > { %v2463_v49 = vadd.f32 %v3032_v58, %v3742_v33  ;;  %v3034_v19 = vadd.f32 %v3003_v6, %v2935_v28  ;;  %v1229_v23 = vpop.f32.mrb[27].mxu1 }
 0x184   : > { %v2461_v48 = vadd.f32 %v3033_v56, %v3742_v33  ;;  %v3035_v35 = vadd.f32 %v2370_v44, %v1229_v23 }
 0x185   : > { %2496 = vst.msk [vmem:[%s3747_s6 + $0xd0] sm:$0xff] %vm2469_vm4, %v2463_v49  ;;  %v2464_v60 = vadd.f32 %v3034_v19, %v3742_v33 }
 0x186   : > { %2494 = vst.msk [vmem:[%s3747_s6 + $0xc0] sm:$0xff] %vm2469_vm4, %v2461_v48  ;;  %v2462_v3 = vadd.f32 %v3035_v35, %v3742_v33 }
 0x187   : > { %2497 = vst.msk [vmem:[%s3747_s6 + $0xd8] sm:$0xff] %vm2469_vm4, %v2464_v60 }
 0x188   : > { %2495 = vst.msk [vmem:[%s3747_s6 + $0xc8] sm:$0xff] %vm2469_vm4, %v2462_v3  ;;  %v2938_v25 = vpop.f32.mrb[28].mxu1 }
 0x189   : > { %v3006_v62 = vpop.f32.mrb[28].mxu0  ;;  %v1242_v53 = vpop.f32.mrb[29].mxu1 }
 0x18a   : > { %v2383_v26 = vpop.f32.mrb[29].mxu0  ;;  %v3036_v41 = vadd.f32 %v3006_v62, %v2938_v25  ;;  %v2939_v8 = vpop.f32.mrb[30].mxu1 }
 0x18b   : > { %v3007_v12 = vpop.f32.mrb[30].mxu0  ;;  %v3037_v54 = vadd.f32 %v2383_v26, %v1242_v53  ;;  %v1245_v46 = vpop.f32.mrb[31].mxu1 }
 0x18c   : > { %v2386_v63 = vpop.f32.mrb[31].mxu0  ;;  %v2467_v1 = vadd.f32 %v3036_v41, %v3742_v33  ;;  %v3038_v16 = vadd.f32 %v3007_v12, %v2939_v8 }
 0x18d   : > { %v2465_v52 = vadd.f32 %v3037_v54, %v3742_v33  ;;  %v3039_v5 = vadd.f32 %v2386_v63, %v1245_v46 }
 0x18e   : > { %2500 = vst.msk [vmem:[%s3747_s6 + $0xf0] sm:$0xff] %vm2469_vm4, %v2467_v1  ;;  %v2468_v13 = vadd.f32 %v3038_v16, %v3742_v33 }
 0x18f   : > { %2498 = vst.msk [vmem:[%s3747_s6 + $0xe0] sm:$0xff] %vm2469_vm4, %v2465_v52  ;;  %v2466_v29 = vadd.f32 %v3039_v5, %v3742_v33 }
 0x190   : > { %2501 = vst.msk [vmem:[%s3747_s6 + $0xf8] sm:$0xff] %vm2469_vm4, %v2468_v13 }
 0x191   : > { %2499 = vst.msk [vmem:[%s3747_s6 + $0xe8] sm:$0xff] %vm2469_vm4, %v2466_v29 }
 0x192 PF: > { %s13_s12 = sadd.s32 1, %s3155_s12  }
 0x193   : > { %p10_p5 = scmp.ge.s32.totalorder %s13_s12, 4  }
 0x195   :  { %12 = sbr.rel (!%p10_p5) target bundleno = 1 (0x1), region = 66 }

// kernel: basic_block_forward.6
= control target key start
LH: loop header
LB: loop body
LE: loop exit
PB: predicated region body
PF: predicated region fallthrough
CT: control target
= control target key end

     0   :  { %s754_s12 = smov 0   ;;  %s915_s0 = inlined_call_operand.vmem [shape: bf16[8,8,8,4], index: 0, kind: input, shape index: {}]   ;;  %s916_s1 = inlined_call_operand.vmem [shape: bf16[1,1,4,8], index: 1, kind: input, shape index: {}]   ;;  %s917_s2 = inlined_call_operand.vmem [shape: f32[1,8], index: 2, kind: input, shape index: {}]   ;;  %s918_s3 = inlined_call_operand.vmem [shape: f32[512,8], index: 3, kind: output, shape index: {}]  }
   0x1 LB: > { %s601_s13 = sadd.s32 4294967295, %s732_s12   ;;  %p605_p0 = scmp.ge.s32.totalorder %s732_s12, 1  ;;  %s732_s12 = sphi %s754_s12, %s13_s12  }
   0x2   : > { %p139_p1 = scmp.lt.s32.totalorder %s732_s12, 3 }
   0x4   : > { %p140_p2 = pnand %p605_p0, %p139_p1 }
   0x5   : > { %v210_v0 = vld [vmem:[%s916_s1] sm:$0x3] (!%p140_p2)  ;;  %vm347_vm0 = vcmask (!%p140_p2), 1041408   ;;  %s606_s16 = sshll.u32 (!%p140_p2), %s601_s13, 2  ;;  %vm298_vm1 = vcmask (!%p140_p2), 31744   ;;  %s609_s21 = sshll.u32 (!%p140_p2), %s601_s13, 5 }
   0x6   : > { %143 = sbr.rel (%p140_p2) target bundleno = 261 (0x105), region = 32  ;;  %700 = vmatprep.subr.msk.bf16.mxu0 (!%p140_p2), %vm347_vm0, %v210_v0  ;;  %701 = vmatprep.subr.msk.bf16.mxu1 (!%p140_p2), %vm347_vm0, %v210_v0  ;;  %v349_v1 = vsel (!%p140_p2), %vm347_vm0, %v210_v0, 0  ;;  %p165_p3 = scmp.lt.s32.totalorder (!%p140_p2), %s606_s16, 7  ;;  %v809_v18 = vld [vmem:[%s917_s2] ss:$0 sm:$0xff] (!%p140_p2)  ;;  %vm512_vm2 = vcmask (!%p140_p2), 64512  }
   0x7   : > { %665 = vmatpush3.bf16.msra.mxu0 (!%p140_p2), %v349_v1  ;;  %699 = vmatpush3.bf16.msra.mxu1 (!%p140_p2), %v349_v1  ;;  %p172_p4 = scmp.lt.s32.totalorder (!%p140_p2), %s609_s21, 63 }
   0xd   : > { %s920_s16 = smov (!%p165_p3, %s606_s16), 7  ;;  %s922_s21 = smov (!%p172_p4, %s609_s21), 63 }
   0xe   : > { %s646_s17 = sshll.u32 %s920_s16, 5  ;;  %s610_s22 = sshll.u32 %s922_s21, 3 }
   0xf   : > { %s770_s20 = scalar_lea.vmem %s915_s0, %s646_s17  ;;  %s814_s27 = scalar_lea.vmem %s918_s3, %s610_s22 }
  0x10   : > { %v710_v2 = vld [vmem:[%s770_s20] sm:$0xff]   ;;  %v712_v4 = vld [vmem:[%s770_s20 + $0x8] sm:$0xff]   ;;  %v714_v6 = vld [vmem:[%s770_s20 + $0x10] sm:$0xff]  }
  0x11   : > { %v711_v3 = vld [vmem:[%s770_s20 + $0x40] sm:$0xff]   ;;  %666 = vmatprep.mubr.msk.bf16.mxu0 %vm298_vm1, %v710_v2  ;;  %v713_v5 = vld [vmem:[%s770_s20 + $0x48] sm:$0xff]   ;;  %v715_v7 = vld [vmem:[%s770_s20 + $0x50] sm:$0xff]  }
  0x12   : > { %682 = vmatprep.mubr.msk.bf16.mxu1 %vm298_vm1, %v711_v3  ;;  %667 = vmatmul.mubr.msk.bf16.vlgmr.msra.gmra.mrb[0].mxu0 %vm298_vm1, %v712_v4  ;;  %v716_v8 = vld [vmem:[%s770_s20 + $0x18] sm:$0xff]   ;;  %v718_v10 = vld [vmem:[%s770_s20 + $0x20] sm:$0xff]   ;;  %v720_v12 = vld [vmem:[%s770_s20 + $0x28] sm:$0xff]  }
  0x13   : > { %683 = vmatmul.mubr.msk.bf16.vlgmr.msra.gmra.mrb[0].mxu1 %vm298_vm1, %v713_v5  ;;  %670 = vmatprep.mubr.msk.bf16.mxu0 %vm298_vm1, %v714_v6  ;;  %v717_v9 = vld [vmem:[%s770_s20 + $0x58] sm:$0xff]   ;;  %v719_v11 = vld [vmem:[%s770_s20 + $0x60] sm:$0xff]   ;;  %v721_v13 = vld [vmem:[%s770_s20 + $0x68] sm:$0xff]  }
  0x14   : > { %686 = vmatprep.mubr.msk.bf16.mxu1 %vm298_vm1, %v715_v7  ;;  %v722_v14 = vld [vmem:[%s770_s20 + $0x30] sm:$0xff]   ;;  %v724_v16 = vld [vmem:[%s770_s20 + $0x38] sm:$0xff]  }
  0x15   : > { %v723_v15 = vld [vmem:[%s770_s20 + $0x70] sm:$0xff]   ;;  %v725_v17 = vld [vmem:[%s770_s20 + $0x78] sm:$0xff]  }
  0x1a   : > { %671 = vmatmul.mubr.msk.bf16.gmra.mrb[4].mxu0 %vm298_vm1, %v716_v8 }
  0x1b   : > { %687 = vmatmul.mubr.msk.bf16.gmra.mrb[4].mxu1 %vm298_vm1, %v717_v9  ;;  %674 = vmatprep.mubr.msk.bf16.mxu0 %vm298_vm1, %v718_v10 }
  0x1c   : > { %690 = vmatprep.mubr.msk.bf16.mxu1 %vm298_vm1, %v719_v11 }
  0x22   : > { %675 = vmatmul.mubr.msk.bf16.gmra.mrb[8].mxu0 %vm298_vm1, %v720_v12 }
  0x23   : > { %691 = vmatmul.mubr.msk.bf16.gmra.mrb[8].mxu1 %vm298_vm1, %v721_v13  ;;  %678 = vmatprep.mubr.msk.bf16.mxu0 %vm298_vm1, %v722_v14 }
  0x24   : > { %694 = vmatprep.mubr.msk.bf16.mxu1 %vm298_vm1, %v723_v15 }
  0x2a   : > { %679 = vmatmul.mubr.msk.bf16.gmra.mrb[12].mxu0 %vm298_vm1, %v724_v16 }
  0x2b   : > { %695 = vmatmul.mubr.msk.bf16.gmra.mrb[12].mxu1 %vm298_vm1, %v725_v17 }
  0xe5   : > { %v668_v19 = vpop.f32.mrb[0].mxu0 }
  0xe6   : > { %v394_v20 = vadd.f32 %v668_v19, %v809_v18  ;;  %v684_v21 = vpop.f32.mrb[0].mxu1  ;;  %v385_v22 = vpop.f32.mrb[1].mxu0 }
  0xe7   : > { %v458_v23 = vadd.f32 %v684_v21, %v809_v18  ;;  %v386_v24 = vadd.f32 %v809_v18, %v385_v22  ;;  %v449_v25 = vpop.f32.mrb[1].mxu1  ;;  %v669_v26 = vpop.f32.mrb[2].mxu0 }
  0xe8   : > { %515 = vst.msk [vmem:[%s814_s27 + $0x10] sm:$0xff] %vm512_vm2, %v394_v20  ;;  %v450_v27 = vadd.f32 %v809_v18, %v449_v25  ;;  %v397_v28 = vadd.f32 %v669_v26, %v809_v18  ;;  %v685_v29 = vpop.f32.mrb[2].mxu1  ;;  %v388_v30 = vpop.f32.mrb[3].mxu0 }
  0xe9   : > { %531 = vst.msk [vmem:[%s814_s27 + $0x90] sm:$0xff] %vm512_vm2, %v458_v23  ;;  %513 = vst.msk [vmem:[%s814_s27] sm:$0xff] %vm512_vm2, %v386_v24  ;;  %v461_v31 = vadd.f32 %v685_v29, %v809_v18  ;;  %v389_v32 = vadd.f32 %v809_v18, %v388_v30  ;;  %v452_v33 = vpop.f32.mrb[3].mxu1 }
  0xea   : > { %529 = vst.msk [vmem:[%s814_s27 + $0x80] sm:$0xff] %vm512_vm2, %v450_v27  ;;  %516 = vst.msk [vmem:[%s814_s27 + $0x18] sm:$0xff] %vm512_vm2, %v397_v28  ;;  %v453_v34 = vadd.f32 %v809_v18, %v452_v33 }
  0xeb   : > { %532 = vst.msk [vmem:[%s814_s27 + $0x98] sm:$0xff] %vm512_vm2, %v461_v31  ;;  %514 = vst.msk [vmem:[%s814_s27 + $0x8] sm:$0xff] %vm512_vm2, %v389_v32 }
  0xec   : > { %530 = vst.msk [vmem:[%s814_s27 + $0x88] sm:$0xff] %vm512_vm2, %v453_v34 }
  0xed   : > { %v672_v35 = vpop.f32.mrb[4].mxu0 }
  0xee   : > { %v410_v36 = vadd.f32 %v672_v35, %v809_v18  ;;  %v688_v37 = vpop.f32.mrb[4].mxu1  ;;  %v401_v38 = vpop.f32.mrb[5].mxu0 }
  0xef   : > { %v474_v39 = vadd.f32 %v688_v37, %v809_v18  ;;  %v402_v40 = vadd.f32 %v809_v18, %v401_v38  ;;  %v465_v41 = vpop.f32.mrb[5].mxu1  ;;  %v673_v42 = vpop.f32.mrb[6].mxu0 }
  0xf0   : > { %519 = vst.msk [vmem:[%s814_s27 + $0x30] sm:$0xff] %vm512_vm2, %v410_v36  ;;  %v466_v43 = vadd.f32 %v809_v18, %v465_v41  ;;  %v413_v44 = vadd.f32 %v673_v42, %v809_v18  ;;  %v689_v45 = vpop.f32.mrb[6].mxu1  ;;  %v404_v46 = vpop.f32.mrb[7].mxu0 }
  0xf1   : > { %535 = vst.msk [vmem:[%s814_s27 + $0xb0] sm:$0xff] %vm512_vm2, %v474_v39  ;;  %517 = vst.msk [vmem:[%s814_s27 + $0x20] sm:$0xff] %vm512_vm2, %v402_v40  ;;  %v477_v47 = vadd.f32 %v689_v45, %v809_v18  ;;  %v405_v48 = vadd.f32 %v809_v18, %v404_v46  ;;  %v468_v49 = vpop.f32.mrb[7].mxu1 }
  0xf2   : > { %533 = vst.msk [vmem:[%s814_s27 + $0xa0] sm:$0xff] %vm512_vm2, %v466_v43  ;;  %520 = vst.msk [vmem:[%s814_s27 + $0x38] sm:$0xff] %vm512_vm2, %v413_v44  ;;  %v469_v50 = vadd.f32 %v809_v18, %v468_v49 }
  0xf3   : > { %536 = vst.msk [vmem:[%s814_s27 + $0xb8] sm:$0xff] %vm512_vm2, %v477_v47  ;;  %518 = vst.msk [vmem:[%s814_s27 + $0x28] sm:$0xff] %vm512_vm2, %v405_v48 }
  0xf4   : > { %534 = vst.msk [vmem:[%s814_s27 + $0xa8] sm:$0xff] %vm512_vm2, %v469_v50 }
  0xf5   : > { %v676_v51 = vpop.f32.mrb[8].mxu0 }
  0xf6   : > { %v426_v52 = vadd.f32 %v676_v51, %v809_v18  ;;  %v692_v53 = vpop.f32.mrb[8].mxu1  ;;  %v417_v54 = vpop.f32.mrb[9].mxu0 }
  0xf7   : > { %v490_v55 = vadd.f32 %v692_v53, %v809_v18  ;;  %v418_v56 = vadd.f32 %v809_v18, %v417_v54  ;;  %v481_v57 = vpop.f32.mrb[9].mxu1  ;;  %v677_v58 = vpop.f32.mrb[10].mxu0 }
  0xf8   : > { %523 = vst.msk [vmem:[%s814_s27 + $0x50] sm:$0xff] %vm512_vm2, %v426_v52  ;;  %v482_v59 = vadd.f32 %v809_v18, %v481_v57  ;;  %v429_v60 = vadd.f32 %v677_v58, %v809_v18  ;;  %v693_v61 = vpop.f32.mrb[10].mxu1  ;;  %v420_v62 = vpop.f32.mrb[11].mxu0 }
  0xf9   : > { %539 = vst.msk [vmem:[%s814_s27 + $0xd0] sm:$0xff] %vm512_vm2, %v490_v55  ;;  %521 = vst.msk [vmem:[%s814_s27 + $0x40] sm:$0xff] %vm512_vm2, %v418_v56  ;;  %v493_v63 = vadd.f32 %v693_v61, %v809_v18  ;;  %v421_v0 = vadd.f32 %v809_v18, %v420_v62  ;;  %v484_v1 = vpop.f32.mrb[11].mxu1 }
  0xfa   : > { %537 = vst.msk [vmem:[%s814_s27 + $0xc0] sm:$0xff] %vm512_vm2, %v482_v59  ;;  %524 = vst.msk [vmem:[%s814_s27 + $0x58] sm:$0xff] %vm512_vm2, %v429_v60  ;;  %v485_v2 = vadd.f32 %v809_v18, %v484_v1 }
  0xfb   : > { %540 = vst.msk [vmem:[%s814_s27 + $0xd8] sm:$0xff] %vm512_vm2, %v493_v63  ;;  %522 = vst.msk [vmem:[%s814_s27 + $0x48] sm:$0xff] %vm512_vm2, %v421_v0 }
  0xfc   : > { %538 = vst.msk [vmem:[%s814_s27 + $0xc8] sm:$0xff] %vm512_vm2, %v485_v2 }
  0xfd   : > { %v680_v3 = vpop.f32.mrb[12].mxu0 }
  0xfe   : > { %v442_v4 = vadd.f32 %v680_v3, %v809_v18  ;;  %v696_v5 = vpop.f32.mrb[12].mxu1  ;;  %v433_v6 = vpop.f32.mrb[13].mxu0 }
  0xff   : > { %v506_v7 = vadd.f32 %v696_v5, %v809_v18  ;;  %v434_v8 = vadd.f32 %v809_v18, %v433_v6  ;;  %v497_v9 = vpop.f32.mrb[13].mxu1  ;;  %v681_v10 = vpop.f32.mrb[14].mxu0 }
 0x100   : > { %527 = vst.msk [vmem:[%s814_s27 + $0x70] sm:$0xff] %vm512_vm2, %v442_v4  ;;  %v498_v11 = vadd.f32 %v809_v18, %v497_v9  ;;  %v445_v12 = vadd.f32 %v681_v10, %v809_v18  ;;  %v697_v13 = vpop.f32.mrb[14].mxu1  ;;  %v436_v14 = vpop.f32.mrb[15].mxu0 }
 0x101   : > { %543 = vst.msk [vmem:[%s814_s27 + $0xf0] sm:$0xff] %vm512_vm2, %v506_v7  ;;  %525 = vst.msk [vmem:[%s814_s27 + $0x60] sm:$0xff] %vm512_vm2, %v434_v8  ;;  %v509_v15 = vadd.f32 %v697_v13, %v809_v18  ;;  %v437_v16 = vadd.f32 %v809_v18, %v436_v14  ;;  %v500_v17 = vpop.f32.mrb[15].mxu1 }
 0x102   : > { %541 = vst.msk [vmem:[%s814_s27 + $0xe0] sm:$0xff] %vm512_vm2, %v498_v11  ;;  %528 = vst.msk [vmem:[%s814_s27 + $0x78] sm:$0xff] %vm512_vm2, %v445_v12  ;;  %v501_v19 = vadd.f32 %v809_v18, %v500_v17 }
 0x103   : > { %544 = vst.msk [vmem:[%s814_s27 + $0xf8] sm:$0xff] %vm512_vm2, %v509_v15  ;;  %526 = vst.msk [vmem:[%s814_s27 + $0x68] sm:$0xff] %vm512_vm2, %v437_v16 }
 0x104   : > { %542 = vst.msk [vmem:[%s814_s27 + $0xe8] sm:$0xff] %vm512_vm2, %v501_v19 }
 0x105 PF: > { %s13_s12 = sadd.s32 1, %s732_s12  }
 0x106   : > { %p10_p5 = scmp.ge.s32.totalorder %s13_s12, 4  }
 0x108   :  { %12 = sbr.rel (!%p10_p5) target bundleno = 1 (0x1), region = 62 }

// kernel: basic_block_forward.8
= control target key start
LH: loop header
LB: loop body
LE: loop exit
PB: predicated region body
PF: predicated region fallthrough
CT: control target
= control target key end

     0   :  { %v125_v12 = vmov 0.0   ;;  %s210_s0 = inlined_call_operand.vmem [shape: f32[2,4,4,128], index: 0, kind: input, shape index: {}]   ;;  %s211_s1 = inlined_call_operand.vmem [shape: f32[4,128], index: 1, kind: input, shape index: {}]   ;;  %s212_s2 = inlined_call_operand.vmem [shape: f32[4,128], index: 2, kind: input, shape index: {}]   ;;  %s213_s3 = inlined_call_operand.vmem [shape: bf16[2,4,4,128], index: 3, kind: output, shape index: {}]  }
   0x1   :  { %v14_v0 = vld [vmem:[%s211_s1] sm:$0xf]  ;;  %v110_v4 = vld [vmem:[%s210_s0 + $0x4] sm:$0xf]  ;;  %v116_v5 = vld [vmem:[%s210_s0 + $0x10] sm:$0xf] }
   0x2   :  { %v152_v1 = vld [vmem:[%s212_s2] sm:$0xf]  ;;  %v118_v6 = vld [vmem:[%s210_s0 + $0x14] sm:$0xf]  ;;  %v27_v8 = vmul.f32 %v110_v4, %v14_v0  ;;  %v62_v9 = vmul.f32 %v116_v5, %v14_v0  ;;  %v112_v17 = vld [vmem:[%s210_s0 + $0x8] sm:$0xf] }
   0x3   :  { %v16_v2 = vld [vmem:[%s210_s0] sm:$0xf]  ;;  %v73_v11 = vmul.f32 %v118_v6, %v14_v0  ;;  %v120_v23 = vld [vmem:[%s210_s0 + $0x18] sm:$0xf]  ;;  %v39_v25 = vmul.f32 %v112_v17, %v14_v0  ;;  %v114_v33 = vld [vmem:[%s210_s0 + $0xc] sm:$0xf] }
   0x4   :  { %v17_v3 = vmul.f32 %v16_v2, %v14_v0  ;;  %v63_v10 = vadd.f32 %v62_v9, %v152_v1  ;;  %v28_v16 = vadd.f32 %v27_v8, %v152_v1  ;;  %v85_v28 = vmul.f32 %v120_v23, %v14_v0  ;;  %v122_v39 = vld [vmem:[%s210_s0 + $0x1c] sm:$0xf] }
   0x5   :  { %v74_v22 = vadd.f32 %v73_v11, %v152_v1  ;;  %v40_v32 = vadd.f32 %v39_v25, %v152_v1  ;;  %v51_v41 = vmul.f32 %v114_v33, %v14_v0  ;;  %v97_v44 = vmul.f32 %v122_v39, %v14_v0 }
   0x6   :  { %v18_v7 = vadd.f32 %v17_v3, %v152_v1  ;;  %vm65_vm1 = vcmp.ge.f32.partialorder %v63_v10, 0.25  ;;  %v86_v38 = vadd.f32 %v85_v28, %v152_v1 }
   0x7   :  { %v66_v18 = vsel %vm65_vm1, 0.25, %v125_v12  ;;  %v52_v48 = vadd.f32 %v51_v41, %v152_v1  ;;  %v98_v53 = vadd.f32 %v97_v44, %v152_v1 }
   0x8   :  { %vm20_vm0 = vcmp.ge.f32.partialorder %v18_v7, 0.25  ;;  %v67_v20 = vpack.c.bf16 %v66_v18, %v66_v18  ;;  %v70_v21 = vsub.f32 %v63_v10, %v66_v18 }
   0x9   :  { %v21_v13 = vsel %vm20_vm0, 0.25, %v125_v12 }
   0xa   :  { %v22_v14 = vpack.c.bf16 %v21_v13, %v21_v13  ;;  %v24_v15 = vsub.f32 %v18_v7, %v21_v13  ;;  %117 = vst [vmem:[%s213_s3 + $0x8] sm:$0x3] %v67_v20  ;;  %v75_v26 = vmul.f32 0.9753099, %v70_v21 }
   0xc   :  { %23 = vst [vmem:[%s213_s3] sm:$0x3] %v22_v14  ;;  %v29_v19 = vmul.f32 0.9753099, %v24_v15  ;;  %v76_v27 = vadd.f32 %v75_v26, %v74_v22 }
   0xe   :  { %v30_v24 = vadd.f32 %v29_v19, %v28_v16  ;;  %vm77_vm3 = vcmp.ge.f32.partialorder %v76_v27, 0.25 }
   0xf   :  { %v78_v34 = vsel %vm77_vm3, 0.25, %v125_v12 }
  0x10   :  { %vm31_vm2 = vcmp.ge.f32.partialorder %v30_v24, 0.25  ;;  %v79_v36 = vpack.c.bf16 %v78_v34, %v78_v34  ;;  %v82_v37 = vsub.f32 %v76_v27, %v78_v34 }
  0x11   :  { %v32_v29 = vsel %vm31_vm2, 0.25, %v125_v12 }
  0x12   :  { %v33_v30 = vpack.c.bf16 %v32_v29, %v32_v29  ;;  %v36_v31 = vsub.f32 %v30_v24, %v32_v29  ;;  %119 = vst [vmem:[%s213_s3 + $0xa] sm:$0x3] %v79_v36  ;;  %v87_v42 = vmul.f32 0.9753099, %v82_v37 }
  0x14   :  { %111 = vst [vmem:[%s213_s3 + $0x2] sm:$0x3] %v33_v30  ;;  %v41_v35 = vmul.f32 0.9753099, %v36_v31  ;;  %v88_v43 = vadd.f32 %v87_v42, %v86_v38 }
  0x16   :  { %v42_v40 = vadd.f32 %v41_v35, %v40_v32  ;;  %vm89_vm5 = vcmp.ge.f32.partialorder %v88_v43, 0.25 }
  0x17   :  { %v90_v49 = vsel %vm89_vm5, 0.25, %v125_v12 }
  0x18   :  { %vm43_vm4 = vcmp.ge.f32.partialorder %v42_v40, 0.25  ;;  %v91_v51 = vpack.c.bf16 %v90_v49, %v90_v49  ;;  %v94_v52 = vsub.f32 %v88_v43, %v90_v49 }
  0x19   :  { %v44_v45 = vsel %vm43_vm4, 0.25, %v125_v12 }
  0x1a   :  { %v45_v46 = vpack.c.bf16 %v44_v45, %v44_v45  ;;  %v48_v47 = vsub.f32 %v42_v40, %v44_v45  ;;  %121 = vst [vmem:[%s213_s3 + $0xc] sm:$0x3] %v91_v51  ;;  %v99_v55 = vmul.f32 0.9753099, %v94_v52 }
  0x1c   :  { %113 = vst [vmem:[%s213_s3 + $0x4] sm:$0x3] %v45_v46  ;;  %v53_v50 = vmul.f32 0.9753099, %v48_v47  ;;  %v100_v56 = vadd.f32 %v99_v55, %v98_v53 }
  0x1e   :  { %v54_v54 = vadd.f32 %v53_v50, %v52_v48  ;;  %vm101_vm7 = vcmp.ge.f32.partialorder %v100_v56, 0.25 }
  0x1f   :  { %v102_v59 = vsel %vm101_vm7, 0.25, %v125_v12 }
  0x20   :  { %vm55_vm6 = vcmp.ge.f32.partialorder %v54_v54, 0.25  ;;  %v103_v60 = vpack.c.bf16 %v102_v59, %v102_v59 }
  0x21   :  { %v56_v57 = vsel %vm55_vm6, 0.25, %v125_v12 }
  0x22   :  { %v57_v58 = vpack.c.bf16 %v56_v57, %v56_v57  ;;  %123 = vst [vmem:[%s213_s3 + $0xe] sm:$0x3] %v103_v60 }
  0x24   :  { %115 = vst [vmem:[%s213_s3 + $0x6] sm:$0x3] %v57_v58 }

// kernel: basic_block_forward.9
= control target key start
LH: loop header
LB: loop body
LE: loop exit
PB: predicated region body
PF: predicated region fallthrough
CT: control target
= control target key end

     0   :  { %9 = vsyncpa [#allocation3], 0  ;;  %s9000_s0 = inlined_call_operand.vmem [shape: bf16[8,10,10,8], index: 0, kind: input, shape index: {}]   ;;  %s9001_s1 = inlined_call_operand.vmem [shape: bf16[3,3,8,8], index: 1, kind: input, shape index: {}]   ;;  %s9002_s2 = inlined_call_operand.vmem [shape: f32[1,8], index: 2, kind: input, shape index: {}]   ;;  %s9003_s3 = inlined_call_operand.vmem [shape: f32[512,8], index: 3, kind: input, shape index: {}]   ;;  %s9004_s4 = inlined_call_operand.hbm [shape: f32[512,8], index: 4, kind: output, shape index: {}]  }
   0x1   :  { %11 = vsyncpa [#allocation3 + $0x1], 0  ;;  %s7053_s15 = smov 0   ;;  %s7055_s16 = smov 0  }
   0x2   :  { %s7057_s17 = smov 0   ;;  %s7059_s18 = smov 0  }
   0x3 LB: > { %s7074_s19 = sadd.s32 4294967295, %s7023_s18   ;;  %s5407_s20 = sadd.s32 4294967294, %s7023_s18   ;;  %s7023_s18 = sphi %s7059_s18, %s9058_s18   ;;  %s7019_s17 = sphi %s7057_s17, %s9057_s17   ;;  %s7015_s16 = sphi %s7055_s16, %s9056_s16   ;;  %s7011_s15 = sphi %s7053_s15, %s9055_s15  }
   0x4   : > { %s7078_s21 = sadd.s32 1, %s7023_s18   ;;  %s118_s22 = sadd.s32 1, %s7019_s17 }
   0x5   : > { %s115_s23 = ssub.s32 %s7023_s18, %s7078_s21  ;;  %p128_p0 = scmp.ne.s32.totalorder %s7019_s17, %s7015_s16 }
   0x6   : > { %p116_p1 = scmp.eq.s32.totalorder %s115_s23, 0  ;;  %p129_p2 = scmp.eq.s32.totalorder %s7074_s19, 1 }
   0x7   : > { %p134_p3 = scmp.ne.s32.totalorder %s7015_s16, %s7011_s15  ;;  %p135_p4 = scmp.eq.s32.totalorder %s5407_s20, 1 }
   0x8   : > { %s7089_s24 = scalar_select %p116_p1, %s7019_s17, %s118_s22  }
   0x9   : > { %p7091_p5 = por %p129_p2, %p128_p0  ;;  %p7095_p6 = por %p135_p4, %p134_p3 }
   0xa   : > { %p5410_p7 = scmp.ge.s32.totalorder %s7023_s18, 1  ;;  %p178_p8 = scmp.lt.s32.totalorder %s7023_s18, 3 }
   0xc   : > { %p179_p9 = pnand %p5410_p7, %p178_p8 }
   0xe   : > { %182 = sbr.rel (%p179_p9) target bundleno = 623 (0x26f), region = 36 }
  0x15   : > { %v5416_v0 = vld [vmem:[%s9001_s1 + $0x4] sm:$0xf]  ;;  %vm840_vm0 = vcmask 1043456   ;;  %v5675_v1 = vld [vmem:[%s9001_s1 + $0x10] sm:$0xf]  ;;  %s5412_s5 = sshll.u32 %s7074_s19, 2 }
  0x16   : > { %6788 = vmatprep.subr.msk.bf16.mxu1 %vm840_vm0, %v5416_v0  ;;  %6792 = vmatprep.subr.msk.bf16.mxu0 %vm840_vm0, %v5675_v1  ;;  %v842_v2 = vsel %vm840_vm0, %v5416_v0, 0  ;;  %v7112_v3 = vsel %vm840_vm0, %v5675_v1, 0  ;;  %p211_p10 = scmp.lt.s32.totalorder %s5412_s5, 7  ;;  %v257_v4 = vld [vmem:[%s9001_s1] sm:$0xf]  ;;  %vm791_vm3 = vcmask 64512  }
  0x17   : > { %9015 = vst [vmem:[#allocation5_spill] sm:$0xff] %v7112_v3  ;;  %6225 = vmatpush3.bf16.msra.mxu1 %v842_v2  ;;  %6361 = vmatpush3.bf16.msra.mxu0 %v7112_v3  ;;  %v5772_v5 = vld [vmem:[%s9001_s1 + $0x14] sm:$0xf]  ;;  %vm290_vm1 = vsmask.f32 3328  ;;  %v7134_v17 = vsel %vm840_vm0, %v257_v4, 0 }
  0x18   : > { %s9060_s5 = smov (!%p211_p10, %s5412_s5), 7  ;;  %6789 = vmatprep.subr.msk.bf16.mxu1 %vm840_vm0, %v257_v4  ;;  %6794 = vmatprep.subr.msk.bf16.mxu0 %vm840_vm0, %v5772_v5  ;;  %vm291_vm2 = vsmask.f32 7440  ;;  %v7147_v31 = vld [vmem:[%s9001_s1 + $0x18] sm:$0xf]  ;;  %v7159_v42 = vsel %vm840_vm0, %v5772_v5, 0 }
  0x19   : > { %s6798_s10 = smul.u32 80, %s9060_s5  ;;  %vm7151_vm4 = vmor %vm290_vm1, %vm291_vm2  ;;  %v7164_v47 = vsel %vm840_vm0, %v7147_v31, 0  ;;  %vm1393_vm5 = vcmask 1042432   ;;  %vm1394_vm6 = vcmask 1046532   ;;  %s5414_s9 = sshll.u32 %s7074_s19, 5 }
  0x1a   : > { %vm7364_vm7 = vmor %vm1393_vm5, %vm1394_vm6  ;;  %p218_p11 = scmp.lt.s32.totalorder %s5414_s9, 63  ;;  %s207_s11 = sand.u32 1, %s7015_s16  }
  0x1b   : > { %s7126_s13 = scalar_lea.vmem %s9000_s0, %s6798_s10  ;;  %s5411_s23 = sshll.u32 %s207_s11, 8 }
  0x1c   : > { %v225_v6 = vld [vmem:[%s7126_s13] sm:$0xf]  ;;  %v226_v7 = vld [vmem:[%s7126_s13 + $0x8] sm:$0xf]  ;;  %v258_v8 = vld [vmem:[%s7126_s13 + $0x4] sm:$0x1] }
  0x1d   : > { %v259_v9 = vld [vmem:[%s7126_s13 + $0xc] sm:$0x1]  ;;  %v294_v10 = vshrl.u32 %v225_v6, 16  ;;  %v297_v11 = vshll.u32 %v225_v6, 16  ;;  %v303_v12 = vshll.u32 %v258_v8, 16  ;;  %v308_v13 = vshrl.u32 %v226_v7, 16 }
  0x1e   : > { %v311_v14 = vshll.u32 %v226_v7, 16  ;;  %v317_v15 = vshll.u32 %v259_v9, 16  ;;  %v5611_v16 = vld [vmem:[%s7126_s13 + $0x8] sm:$0xf]  ;;  %v7137_v22 = vld [vmem:[%s7126_s13 + $0xc] sm:$0x1] }
  0x1f   : > { %v296_v18 = vrot.slane %v294_v10, 4  ;;  %v299_v19 = vrot.slane %v297_v11, 5  ;;  %v305_v20 = vrot.slane %v303_v12, 5  ;;  %v310_v21 = vrot.slane %v308_v13, 4  ;;  %v5613_v25 = vld [vmem:[%s7126_s13 + $0x10] sm:$0xf] }
  0x20   : > { %v313_v23 = vrot.slane %v311_v14, 5  ;;  %v319_v24 = vrot.slane %v317_v15, 5  ;;  %v7141_v26 = vld [vmem:[%s7126_s13 + $0x14] sm:$0x1]  ;;  %v2242_v28 = vshrl.u32 %v5611_v16, 16  ;;  %v2245_v29 = vshll.u32 %v5611_v16, 16 }
  0x21   : > { %v300_v27 = vor.u32 %v299_v19, %v296_v18  ;;  %v2251_v30 = vshll.u32 %v7137_v22, 16  ;;  %v2256_v34 = vshrl.u32 %v5613_v25, 16  ;;  %v2259_v35 = vshll.u32 %v5613_v25, 16  ;;  %v227_v37 = vld [vmem:[%s7126_s13 + $0x10] sm:$0xf]  ;;  %s9062_s9 = smov (!%p218_p11, %s5414_s9), 63 }
  0x22   : > { %v314_v33 = vor.u32 %v313_v23, %v310_v21  ;;  %v2265_v36 = vshll.u32 %v7141_v26, 16  ;;  %v2244_v39 = vrot.slane %v2242_v28, 4  ;;  %v2247_v40 = vrot.slane %v2245_v29, 5  ;;  %v228_v41 = vld [vmem:[%s7126_s13 + $0x18] sm:$0xf]  ;;  %s5415_s10 = sshll.u32 %s9062_s9, 3 }
  0x23   : > { %v301_v38 = vrot.slane %v300_v27, 4  ;;  %v2258_v44 = vrot.slane %v2256_v34, 4  ;;  %v2261_v45 = vrot.slane %v2259_v35, 5  ;;  %v260_v46 = vld [vmem:[%s7126_s13 + $0x14] sm:$0x1]  ;;  %v2253_v50 = vrot.slane %v2251_v30, 5  ;;  %s8801_s14 = scalar_lea.vmem %s9003_s3, %s5415_s10 }
  0x24   : > { %v315_v43 = vrot.slane %v314_v33, 4  ;;  %v2248_v49 = vor.u32 %v2247_v40, %v2244_v39  ;;  %v2267_v51 = vrot.slane %v2265_v36, 5  ;;  %v261_v54 = vld [vmem:[%s7126_s13 + $0x1c] sm:$0x1]  ;;  %v322_v55 = vshrl.u32 %v227_v37, 16  ;;  %s8818_s27 = scalar_lea.vmem [#allocation2], %s5411_s23 }
  0x25   : > { %v306_v48 = vsel %vm7151_vm4, %v301_v38, %v305_v20  ;;  %v2262_v53 = vor.u32 %v2261_v45, %v2258_v44  ;;  %v325_v56 = vshll.u32 %v227_v37, 16  ;;  %v331_v59 = vshll.u32 %v260_v46, 16  ;;  %v5615_v1 = vld [vmem:[%s7126_s13 + $0x18] sm:$0xf]  ;;  %v7177_v7 = vld [vmem:[%s7126_s13 + $0x1c] sm:$0x1] }
  0x26   : > { %v320_v52 = vsel %vm7151_vm4, %v315_v43, %v319_v24  ;;  %v2249_v58 = vrot.slane %v2248_v49, 4  ;;  %v336_v60 = vshrl.u32 %v228_v41, 16  ;;  %v324_v62 = vrot.slane %v322_v55, 4  ;;  %v5617_v12 = vld [vmem:[%s7126_s13 + $0x20] sm:$0xf]  ;;  %s6070_s28 = sshll.u32 %s7074_s19, 12 }
  0x27   : > { %v5417_v57 = vcombine.low %v306_v48, %v320_v52  ;;  %v2263_v61 = vrot.slane %v2262_v53, 4  ;;  %v327_v63 = vrot.slane %v325_v56, 5  ;;  %v339_v0 = vshll.u32 %v228_v41, 16  ;;  %v7183_v13 = vld [vmem:[%s7126_s13 + $0x24] sm:$0x1]  ;;  %s5333_s29 = sshll.u32 %s8818_s27, 4  ;;  %s8947_s6 = scalar_lea.hbm %s9004_s4, %s6070_s28  ;;  %s8949_s29 = int_to_ptr.vmem [resolvable:$true] %s5333_s29 }
  0x28   : > { %v2254_v2 = vsel %vm7151_vm4, %v2249_v58, %v2253_v50  ;;  %v3081_v4 = vrot.slane %v7137_v22, 5  ;;  %v338_v5 = vrot.slane %v336_v60, 4  ;;  %v345_v6 = vshll.u32 %v261_v54, 16  ;;  %v229_v29 = vld [vmem:[%s7126_s13 + $0x20] sm:$0xf]  ;;  %s8959_s19 = scalar_lea.sflag [#allocation3], %s207_s11 }
  0x29   : > { %6226 = vmatprep.mubr.msk.bf16.mxu1 %vm791_vm3, %v5417_v57  ;;  %v2268_v8 = vsel %vm7151_vm4, %v2263_v61, %v2267_v51  ;;  %v328_v9 = vor.u32 %v327_v63, %v324_v62  ;;  %v333_v10 = vrot.slane %v331_v59, 5  ;;  %v341_v11 = vrot.slane %v339_v0, 5  ;;  %v262_v36 = vld [vmem:[%s7126_s13 + $0x24] sm:$0x1]  ;;  %v230_v41 = vld [vmem:[%s7126_s13 + $0x28] sm:$0xf] }
  0x2a   : > { %v5676_v14 = vcombine.low %v2254_v2, %v2268_v8  ;;  %v3085_v15 = vrot.slane %v7141_v26, 5  ;;  %v347_v16 = vrot.slane %v345_v6, 5  ;;  %v2270_v18 = vshrl.u32 %v5615_v1, 16  ;;  %v263_v46 = vld [vmem:[%s7126_s13 + $0x2c] sm:$0x1]  ;;  %s6961_s7 = scalar_lea.vmem %s8949_s29, 4096 }
  0x2b   : > { %v329_v19 = vrot.slane %v328_v9, 4  ;;  %v342_v20 = vor.u32 %v341_v11, %v338_v5  ;;  %v2273_v21 = vshll.u32 %v5615_v1, 16  ;;  %v2279_v23 = vshll.u32 %v7177_v7, 16  ;;  %v5619_v53 = vld [vmem:[%s7126_s13 + $0x28] sm:$0xf]  ;;  %p6962_p12 = scmp.ne.s32.totalorder %s8949_s29, %s6961_s7  ;;  %s7025_s8 = smov [#allocation2]  }
  0x2c   : > { %6362 = vmatprep.mubr.msk.bf16.mxu0 %vm791_vm3, %v5676_v14  ;;  %v2272_v24 = vrot.slane %v2270_v18, 4  ;;  %v2284_v25 = vshrl.u32 %v5617_v12, 16  ;;  %v2287_v27 = vshll.u32 %v5617_v12, 16  ;;  %v2293_v28 = vshll.u32 %v7183_v13, 16  ;;  %v7202_v62 = vld [vmem:[%s7126_s13 + $0x2c] sm:$0x1] }
  0x2d   : > { %v334_v30 = vsel %vm7151_vm4, %v329_v19, %v333_v10  ;;  %v343_v33 = vrot.slane %v342_v20, 4  ;;  %v2275_v34 = vrot.slane %v2273_v21, 5  ;;  %v2281_v35 = vrot.slane %v2279_v23, 5  ;;  %v5621_v2 = vld [vmem:[%s7126_s13 + $0x30] sm:$0xf]  ;;  %p6963_p13 = pnand %p6962_p12, %p7091_p5  ;;  %s6965_s9 = sshll.u32 %s7025_s8, 4  ;;  %s6966_s9 = int_to_ptr.vmem [resolvable:$false] %s6965_s9 }
  0x2e   : > { %v2286_v37 = vrot.slane %v2284_v25, 4  ;;  %v2289_v38 = vrot.slane %v2287_v27, 5  ;;  %v2295_v39 = vrot.slane %v2293_v28, 5  ;;  %v3089_v40 = vrot.slane %v7177_v7, 5  ;;  %v7211_v10 = vld [vmem:[%s7126_s13 + $0x34] sm:$0x1]  ;;  %p6968_p1 = scmp.lt.s32.totalorder %s8949_s29, %s6966_s9 }
  0x2f   : > { %v348_v43 = vsel %vm7151_vm4, %v343_v33, %v347_v16  ;;  %v2276_v44 = vor.u32 %v2275_v34, %v2272_v24  ;;  %v3093_v45 = vrot.slane %v7183_v13, 5  ;;  %v350_v48 = vshrl.u32 %v229_v29, 16  ;;  %v231_v12 = vld [vmem:[%s7126_s13 + $0x30] sm:$0xf]  ;;  %v264_v28 = vld [vmem:[%s7126_s13 + $0x34] sm:$0x1]  ;;  %p6964_p0 = pneg %p6963_p13 }
  0x30   : > { %v5418_v49 = vcombine.low %v334_v30, %v348_v43  ;;  %v2290_v50 = vor.u32 %v2289_v38, %v2286_v37  ;;  %v353_v51 = vshll.u32 %v229_v29, 16  ;;  %v359_v52 = vshll.u32 %v262_v36, 16  ;;  %v232_v36 = vld [vmem:[%s7126_s13 + $0x38] sm:$0xf]  ;;  %v265_v37 = vld [vmem:[%s7126_s13 + $0x3c] sm:$0x1] }
  0x31   : > { %v2277_v54 = vrot.slane %v2276_v44, 4  ;;  %v352_v55 = vrot.slane %v350_v48, 4  ;;  %v364_v56 = vshrl.u32 %v230_v41, 16  ;;  %v367_v57 = vshll.u32 %v230_v41, 16  ;;  %v5623_v44 = vld [vmem:[%s7126_s13 + $0x38] sm:$0xf] }
  0x32   : > { %6227 = vmatmul.mubr.msk.bf16.vlgmr.msra.gmra.mrb[0].mxu1 %vm791_vm3, %v5418_v49  ;;  %v2291_v58 = vrot.slane %v2290_v50, 4  ;;  %v355_v59 = vrot.slane %v353_v51, 5  ;;  %v361_v60 = vrot.slane %v359_v52, 5  ;;  %v373_v61 = vshll.u32 %v263_v46, 16  ;;  %v5711_v22 = vld [vmem:[%s7126_s13 + $0x20] sm:$0xe] }
  0x33   : > { %6259 = vmatpush3.bf16.msra.mxu1 %v7134_v17  ;;  %v2282_v63 = vsel %vm7151_vm4, %v2277_v54, %v2281_v35  ;;  %v366_v0 = vrot.slane %v364_v56, 4  ;;  %v369_v1 = vrot.slane %v367_v57, 5  ;;  %v2298_v5 = vshrl.u32 %v5619_v53, 16  ;;  %v7229_v54 = vld [vmem:[%s7126_s13 + $0x3c] sm:$0x1]  ;;  %s6967_s10 = scalar_lea.vmem %s6966_s9, 8192 }
  0x34   : > { %v2296_v6 = vsel %vm7151_vm4, %v2291_v58, %v2295_v39  ;;  %v356_v8 = vor.u32 %v355_v59, %v352_v55  ;;  %v375_v9 = vrot.slane %v373_v61, 5  ;;  %v2301_v11 = vshll.u32 %v5619_v53, 16  ;;  %p6969_p2 = scmp.lt.s32.totalorder %s6967_s10, %s6961_s7 }
  0x35   : > { %v5677_v14 = vcombine.low %v2282_v63, %v2296_v6  ;;  %v370_v16 = vor.u32 %v369_v1, %v366_v0  ;;  %v2300_v17 = vrot.slane %v2298_v5, 4  ;;  %v2307_v18 = vshll.u32 %v7202_v62, 16  ;;  %v7236_v0 = vld [vmem:[%s7126_s13 + $0x44] sm:$0x1] }
  0x36   : > { %v357_v19 = vrot.slane %v356_v8, 4  ;;  %v2303_v20 = vrot.slane %v2301_v11, 5  ;;  %v2312_v21 = vshrl.u32 %v5621_v2, 16  ;;  %v2315_v23 = vshll.u32 %v5621_v2, 16  ;;  %v233_v8 = vld [vmem:[%s7126_s13 + $0x50] sm:$0xf]  ;;  %p6970_p3 = por %p6969_p2, %p6968_p1 }
  0x37   : > { %6363 = vmatmul.mubr.msk.bf16.vlgmr.msra.gmra.mrb[0].mxu0 %vm791_vm3, %v5677_v14  ;;  %v371_v24 = vrot.slane %v370_v16, 4  ;;  %v2309_v25 = vrot.slane %v2307_v18, 5  ;;  %v2321_v27 = vshll.u32 %v7211_v10, 16  ;;  %v378_v29 = vshrl.u32 %v231_v12, 16  ;;  %v234_v16 = vld [vmem:[%s7126_s13 + $0x58] sm:$0xf] }
  0x38   : > { %6395 = vmatpush3.bf16.msra.mxu0 %v7159_v42  ;;  %v362_v30 = vsel %vm7151_vm4, %v357_v19, %v361_v60  ;;  %v2304_v33 = vor.u32 %v2303_v20, %v2300_v17  ;;  %v2314_v34 = vrot.slane %v2312_v21, 4  ;;  %v2317_v35 = vrot.slane %v2315_v23, 5  ;;  %v266_v21 = vld [vmem:[%s7126_s13 + $0x54] sm:$0x1]  ;;  %p6971_p4 = pnand %p6970_p3, %p6964_p0 }
  0x39   : > { %v376_v38 = vsel %vm7151_vm4, %v371_v24, %v375_v9  ;;  %v2323_v39 = vrot.slane %v2321_v27, 5  ;;  %v380_v41 = vrot.slane %v378_v29, 4  ;;  %v381_v43 = vshll.u32 %v231_v12, 16  ;;  %6795 = vmatprep.subr.msk.bf16.mxu0 %vm840_vm0, %v7147_v31  ;;  %v5625_v31 = vld [vmem:[%s7126_s13 + $0x40] sm:$0xf] }
  0x3a   : > { %v5419_v42 = vcombine.low %v362_v30, %v376_v38  ;;  %v2305_v46 = vrot.slane %v2304_v33, 4  ;;  %v2318_v48 = vor.u32 %v2317_v35, %v2314_v34  ;;  %v387_v49 = vshll.u32 %v264_v28, 16  ;;  %v267_v33 = vld [vmem:[%s7126_s13 + $0x5c] sm:$0x1] }
  0x3b   : > { %v383_v50 = vrot.slane %v381_v43, 5  ;;  %v392_v51 = vshrl.u32 %v232_v36, 16  ;;  %v395_v52 = vshll.u32 %v232_v36, 16  ;;  %v401_v53 = vshll.u32 %v265_v37, 16 }
  0x3c   : > { %6230 = vmatprep.mubr.msk.bf16.mxu1 %vm791_vm3, %v5419_v42  ;;  %v2310_v55 = vsel %vm7151_vm4, %v2305_v46, %v2309_v25  ;;  %v2319_v56 = vrot.slane %v2318_v48, 4  ;;  %v389_v57 = vrot.slane %v387_v49, 5  ;;  %v2326_v58 = vshrl.u32 %v5623_v44, 16  ;;  %v7253_v46 = vld [vmem:[%s7126_s13 + $0x5c] sm:$0x1] }
  0x3d   : > { %v384_v59 = vor.u32 %v383_v50, %v380_v41  ;;  %v394_v60 = vrot.slane %v392_v51, 4  ;;  %v397_v61 = vrot.slane %v395_v52, 5  ;;  %v403_v63 = vrot.slane %v401_v53, 5  ;;  %v5629_v52 = vld [vmem:[%s7126_s13 + $0x60] sm:$0xf] }
  0x3e   : > { %v2324_v1 = vsel %vm7151_vm4, %v2319_v56, %v2323_v39  ;;  %v2328_v2 = vrot.slane %v2326_v58, 4  ;;  %v2329_v5 = vshll.u32 %v5623_v44, 16  ;;  %v2335_v6 = vshll.u32 %v7229_v54, 16  ;;  %v5627_v39 = vld [vmem:[%s7126_s13 + $0x58] sm:$0xf] }
  0x3f   : > { %v5678_v9 = vcombine.low %v2310_v55, %v2324_v1  ;;  %v385_v11 = vrot.slane %v384_v59, 4  ;;  %v398_v12 = vor.u32 %v397_v61, %v394_v60  ;;  %v2340_v14 = vshrl.u32 %v5625_v31, 16  ;;  %v7260_v59 = vld [vmem:[%s7126_s13 + $0x64] sm:$0x1] }
  0x40   : > { %v2331_v17 = vrot.slane %v2329_v5, 5  ;;  %v2337_v18 = vrot.slane %v2335_v6, 5  ;;  %v2343_v19 = vshll.u32 %v5625_v31, 16  ;;  %v2349_v20 = vshll.u32 %v7236_v0, 16  ;;  %v235_v6 = vld [vmem:[%s7126_s13 + $0x60] sm:$0xf] }
  0x41   : > { %6366 = vmatprep.mubr.msk.bf16.mxu0 %vm791_vm3, %v5678_v9  ;;  %v390_v23 = vsel %vm7151_vm4, %v385_v11, %v389_v57  ;;  %v399_v24 = vrot.slane %v398_v12, 4  ;;  %v2342_v25 = vrot.slane %v2340_v14, 4  ;;  %v406_v27 = vshrl.u32 %v233_v8, 16  ;;  %v236_v14 = vld [vmem:[%s7126_s13 + $0x68] sm:$0xf] }
  0x42   : > { %v2332_v28 = vor.u32 %v2331_v17, %v2328_v2  ;;  %v2345_v29 = vrot.slane %v2343_v19, 5  ;;  %v2351_v30 = vrot.slane %v2349_v20, 5  ;;  %v409_v34 = vshll.u32 %v233_v8, 16 }
  0x43   : > { %v404_v35 = vsel %vm7151_vm4, %v399_v24, %v403_v63  ;;  %v408_v36 = vrot.slane %v406_v27, 4  ;;  %v415_v37 = vshll.u32 %v266_v21, 16  ;;  %v420_v38 = vshrl.u32 %v234_v16, 16  ;;  %v269_v24 = vld [vmem:[%s7126_s13 + $0x6c] sm:$0x1] }
  0x44   : > { %v5420_v41 = vcombine.low %v390_v23, %v404_v35  ;;  %v2333_v43 = vrot.slane %v2332_v28, 4  ;;  %v2346_v44 = vor.u32 %v2345_v29, %v2342_v25  ;;  %v411_v42 = vrot.slane %v409_v34, 5  ;;  %v5631_v34 = vld [vmem:[%s7126_s13 + $0x68] sm:$0xf] }
  0x45   : > { %v417_v48 = vrot.slane %v415_v37, 5  ;;  %v422_v49 = vrot.slane %v420_v38, 4  ;;  %v423_v50 = vshll.u32 %v234_v16, 16  ;;  %v429_v51 = vshll.u32 %v267_v33, 16  ;;  %v268_v16 = vld [vmem:[%s7126_s13 + $0x64] sm:$0x1] }
  0x46   : > { %6231 = vmatmul.mubr.msk.bf16.gmra.mrb[4].mxu1 %vm791_vm3, %v5420_v41  ;;  %v2338_v53 = vsel %vm7151_vm4, %v2333_v43, %v2337_v18  ;;  %v2347_v55 = vrot.slane %v2346_v44, 4  ;;  %v412_v56 = vor.u32 %v411_v42, %v408_v36  ;;  %v2354_v57 = vshrl.u32 %v5627_v39, 16 }
  0x47   : > { %v425_v31 = vrot.slane %v423_v50, 5  ;;  %v431_v58 = vrot.slane %v429_v51, 5  ;;  %v2357_v60 = vshll.u32 %v5627_v39, 16  ;;  %v2363_v61 = vshll.u32 %v7253_v46, 16  ;;  %v7277_v39 = vld [vmem:[%s7126_s13 + $0x6c] sm:$0x1] }
  0x48   : > { %v2352_v63 = vsel %vm7151_vm4, %v2347_v55, %v2351_v30  ;;  %v413_v1 = vrot.slane %v412_v56, 4  ;;  %v2356_v2 = vrot.slane %v2354_v57, 4  ;;  %v2368_v5 = vshrl.u32 %v5629_v52, 16 }
  0x49   : > { %v5679_v8 = vcombine.low %v2338_v53, %v2352_v63  ;;  %v426_v9 = vor.u32 %v425_v31, %v422_v49  ;;  %v2359_v11 = vrot.slane %v2357_v60, 5  ;;  %v2365_v12 = vrot.slane %v2363_v61, 5  ;;  %v7283_v53 = vld [vmem:[%s7126_s13 + $0x74] sm:$0x1] }
  0x4a   : > { %v418_v17 = vsel %vm7151_vm4, %v413_v1, %v417_v48  ;;  %v2370_v18 = vrot.slane %v2368_v5, 4  ;;  %v2371_v19 = vshll.u32 %v5629_v52, 16  ;;  %v2377_v20 = vshll.u32 %v7260_v59, 16  ;;  %v5633_v48 = vld [vmem:[%s7126_s13 + $0x70] sm:$0xf] }
  0x4b   : > { %6367 = vmatmul.mubr.msk.bf16.gmra.mrb[4].mxu0 %vm791_vm3, %v5679_v8  ;;  %v427_v21 = vrot.slane %v426_v9, 4  ;;  %v2360_v23 = vor.u32 %v2359_v11, %v2356_v2  ;;  %v434_v25 = vshrl.u32 %v235_v6, 16  ;;  %v437_v27 = vshll.u32 %v235_v6, 16  ;;  %v238_v2 = vld [vmem:[%s7126_s13 + $0x78] sm:$0xf] }
  0x4c   : > { %v2373_v28 = vrot.slane %v2371_v19, 5  ;;  %v2379_v29 = vrot.slane %v2377_v20, 5  ;;  %v443_v30 = vshll.u32 %v268_v16, 16  ;;  %v448_v33 = vshrl.u32 %v236_v14, 16  ;;  %v270_v11 = vld [vmem:[%s7126_s13 + $0x74] sm:$0x1] }
  0x4d   : > { %v432_v35 = vsel %vm7151_vm4, %v427_v21, %v431_v58  ;;  %v2361_v36 = vrot.slane %v2360_v23, 4  ;;  %v436_v37 = vrot.slane %v434_v25, 4  ;;  %v439_v38 = vrot.slane %v437_v27, 5  ;;  %v237_v58 = vld [vmem:[%s7126_s13 + $0x70] sm:$0xf] }
  0x4e   : > { %v5421_v41 = vcombine.low %v418_v17, %v432_v35  ;;  %v2374_v43 = vor.u32 %v2373_v28, %v2370_v18  ;;  %v445_v44 = vrot.slane %v443_v30, 5  ;;  %v450_v42 = vrot.slane %v448_v33, 4  ;;  %v271_v21 = vld [vmem:[%s7126_s13 + $0x7c] sm:$0x1] }
  0x4f   : > { %v2366_v49 = vsel %vm7151_vm4, %v2361_v36, %v2365_v12  ;;  %v440_v50 = vor.u32 %v439_v38, %v436_v37  ;;  %v451_v51 = vshll.u32 %v236_v14, 16  ;;  %v457_v52 = vshll.u32 %v269_v24, 16  ;;  %v7299_v36 = vld [vmem:[%s7126_s13 + $0x7c] sm:$0x1] }
  0x50   : > { %6234 = vmatprep.mubr.msk.bf16.mxu1 %vm791_vm3, %v5421_v41  ;;  %v2375_v55 = vrot.slane %v2374_v43, 4  ;;  %v2382_v56 = vshrl.u32 %v5631_v34, 16  ;;  %v2385_v57 = vshll.u32 %v5631_v34, 16  ;;  %v2391_v31 = vshll.u32 %v7277_v39, 16 }
  0x51   : > { %v441_v60 = vrot.slane %v440_v50, 4  ;;  %v453_v61 = vrot.slane %v451_v51, 5  ;;  %v459_v63 = vrot.slane %v457_v52, 5  ;;  %v2396_v1 = vshrl.u32 %v5633_v48, 16 }
  0x52   : > { %v2380_v5 = vsel %vm7151_vm4, %v2375_v55, %v2379_v29  ;;  %v2384_v6 = vrot.slane %v2382_v56, 4  ;;  %v2387_v8 = vrot.slane %v2385_v57, 5  ;;  %v2393_v9 = vrot.slane %v2391_v31, 5  ;;  %v5635_v29 = vld [vmem:[%s7126_s13 + $0x78] sm:$0xf] }
  0x53   : > { %v5680_v12 = vcombine.low %v2366_v49, %v2380_v5  ;;  %v446_v14 = vsel %vm7151_vm4, %v441_v60, %v445_v44  ;;  %v454_v16 = vor.u32 %v453_v61, %v450_v42  ;;  %v2398_v17 = vrot.slane %v2396_v1, 4  ;;  %v5637_v44 = vld [vmem:[%s7126_s13 + $0x80] sm:$0xf] }
  0x54   : > { %v2388_v18 = vor.u32 %v2387_v8, %v2384_v6  ;;  %v2399_v19 = vshll.u32 %v5633_v48, 16  ;;  %v2405_v20 = vshll.u32 %v7283_v53, 16  ;;  %v462_v23 = vshrl.u32 %v237_v58, 16  ;;  %v239_v6 = vld [vmem:[%s7126_s13 + $0x80] sm:$0xf] }
  0x55   : > { %6370 = vmatprep.mubr.msk.bf16.mxu0 %vm791_vm3, %v5680_v12  ;;  %v455_v24 = vrot.slane %v454_v16, 4  ;;  %v465_v25 = vshll.u32 %v237_v58, 16  ;;  %v471_v27 = vshll.u32 %v270_v11, 16  ;;  %v476_v28 = vshrl.u32 %v238_v2, 16  ;;  %v7308_v58 = vld [vmem:[%s7126_s13 + $0x84] sm:$0x1] }
  0x56   : > { %v2389_v30 = vrot.slane %v2388_v18, 4  ;;  %v2401_v33 = vrot.slane %v2399_v19, 5  ;;  %v2407_v34 = vrot.slane %v2405_v20, 5  ;;  %v464_v35 = vrot.slane %v462_v23, 4  ;;  %v272_v16 = vld [vmem:[%s7126_s13 + $0x84] sm:$0x1] }
  0x57   : > { %v460_v37 = vsel %vm7151_vm4, %v455_v24, %v459_v63  ;;  %v467_v38 = vrot.slane %v465_v25, 5  ;;  %v473_v41 = vrot.slane %v471_v27, 5  ;;  %v478_v43 = vrot.slane %v476_v28, 4  ;;  %v273_v24 = vld [vmem:[%s7126_s13 + $0x8c] sm:$0x1] }
  0x58   : > { %v5422_v42 = vcombine.low %v446_v14, %v460_v37  ;;  %v2394_v48 = vsel %vm7151_vm4, %v2389_v30, %v2393_v9  ;;  %v2402_v49 = vor.u32 %v2401_v33, %v2398_v17  ;;  %v479_v50 = vshll.u32 %v238_v2, 16  ;;  %v240_v14 = vld [vmem:[%s7126_s13 + $0x88] sm:$0xf] }
  0x59   : > { %v468_v51 = vor.u32 %v467_v38, %v464_v35  ;;  %v485_v52 = vshll.u32 %v271_v21, 16  ;;  %v2410_v55 = vshrl.u32 %v5635_v29, 16  ;;  %v2413_v56 = vshll.u32 %v5635_v29, 16 }
  0x5a   : > { %6235 = vmatmul.mubr.msk.bf16.gmra.mrb[8].mxu1 %vm791_vm3, %v5422_v42  ;;  %v2403_v57 = vrot.slane %v2402_v49, 4  ;;  %v481_v31 = vrot.slane %v479_v50, 5  ;;  %v2419_v60 = vshll.u32 %v7299_v36, 16  ;;  %v2424_v61 = vshrl.u32 %v5637_v44, 16  ;;  %v5641_v50 = vld [vmem:[%s7126_s13 + $0x90] sm:$0xf] }
  0x5b   : > { %v469_v63 = vrot.slane %v468_v51, 4  ;;  %v487_v1 = vrot.slane %v485_v52, 5  ;;  %v2412_v5 = vrot.slane %v2410_v55, 4  ;;  %v2415_v2 = vrot.slane %v2413_v56, 5 }
  0x5c   : > { %v2408_v8 = vsel %vm7151_vm4, %v2403_v57, %v2407_v34  ;;  %v482_v9 = vor.u32 %v481_v31, %v478_v43  ;;  %v2421_v11 = vrot.slane %v2419_v60, 5  ;;  %v2426_v12 = vrot.slane %v2424_v61, 4  ;;  %v5639_v34 = vld [vmem:[%s7126_s13 + $0x88] sm:$0xf]  ;;  %v7325_v43 = vld [vmem:[%s7126_s13 + $0x8c] sm:$0x1] }
  0x5d   : > { %v5681_v17 = vcombine.low %v2394_v48, %v2408_v8  ;;  %v474_v18 = vsel %vm7151_vm4, %v469_v63, %v473_v41  ;;  %v2416_v19 = vor.u32 %v2415_v2, %v2412_v5  ;;  %v2427_v20 = vshll.u32 %v5637_v44, 16  ;;  %v7331_v57 = vld [vmem:[%s7126_s13 + $0x94] sm:$0x1] }
  0x5e   : > { %v483_v21 = vrot.slane %v482_v9, 4  ;;  %v2433_v23 = vshll.u32 %v7308_v58, 16  ;;  %v490_v25 = vshrl.u32 %v239_v6, 16  ;;  %v493_v27 = vshll.u32 %v239_v6, 16  ;;  %v7339_v9 = vld [vmem:[%s7126_s13 + $0xa8] sm:$0xf] }
  0x5f   : > { %6371 = vmatmul.mubr.msk.bf16.gmra.mrb[8].mxu0 %vm791_vm3, %v5681_v17  ;;  %v2417_v28 = vrot.slane %v2416_v19, 4  ;;  %v2429_v29 = vrot.slane %v2427_v20, 5  ;;  %v499_v30 = vshll.u32 %v272_v16, 16  ;;  %v504_v33 = vshrl.u32 %v240_v14, 16  ;;  %v274_v17 = vld [vmem:[%s7126_s13 + $0xa4] sm:$0x1] }
  0x60   : > { %v488_v35 = vsel %vm7151_vm4, %v483_v21, %v487_v1  ;;  %v2435_v37 = vrot.slane %v2433_v23, 5  ;;  %v492_v38 = vrot.slane %v490_v25, 4  ;;  %v495_v41 = vrot.slane %v493_v27, 5  ;;  %v7336_v1 = vld [vmem:[%s7126_s13 + $0xa0] sm:$0xf] }
  0x61   : > { %v5423_v44 = vcombine.low %v474_v18, %v488_v35  ;;  %v2422_v42 = vsel %vm7151_vm4, %v2417_v28, %v2421_v11  ;;  %v2430_v48 = vor.u32 %v2429_v29, %v2426_v12  ;;  %v501_v49 = vrot.slane %v499_v30, 5  ;;  %v275_v27 = vld [vmem:[%s7126_s13 + $0xac] sm:$0x1]  ;;  %v5708_v35 = vld [vmem:[%s7126_s13 + $0x8] sm:$0xe] }
  0x62   : > { %v496_v51 = vor.u32 %v495_v41, %v492_v38  ;;  %v506_v52 = vrot.slane %v504_v33, 4  ;;  %v507_v55 = vshll.u32 %v240_v14, 16  ;;  %v513_v56 = vshll.u32 %v273_v24, 16 }
  0x63   : > { %6238 = vmatprep.mubr.msk.bf16.mxu1 %vm791_vm3, %v5423_v44  ;;  %v2431_v31 = vrot.slane %v2430_v48, 4  ;;  %v2438_v60 = vshrl.u32 %v5639_v34, 16  ;;  %v2441_v61 = vshll.u32 %v5639_v34, 16  ;;  %v2447_v63 = vshll.u32 %v7325_v43, 16 }
  0x64   : > { %v497_v5 = vrot.slane %v496_v51, 4  ;;  %v509_v2 = vrot.slane %v507_v55, 5  ;;  %v515_v6 = vrot.slane %v513_v56, 5  ;;  %v2452_v8 = vshrl.u32 %v5641_v50, 16 }
  0x65   : > { %v2436_v11 = vsel %vm7151_vm4, %v2431_v31, %v2435_v37  ;;  %v2440_v12 = vrot.slane %v2438_v60, 4  ;;  %v2443_v14 = vrot.slane %v2441_v61, 5  ;;  %v2449_v16 = vrot.slane %v2447_v63, 5 }
  0x66   : > { %v5682_v18 = vcombine.low %v2422_v42, %v2436_v11  ;;  %v502_v19 = vsel %vm7151_vm4, %v497_v5, %v501_v49  ;;  %v510_v20 = vor.u32 %v509_v2, %v506_v52  ;;  %v2454_v21 = vrot.slane %v2452_v8, 4  ;;  %v5709_v42 = vld [vmem:[%s7126_s13 + $0x10] sm:$0xe] }
  0x67   : > { %v2444_v23 = vor.u32 %v2443_v14, %v2440_v12  ;;  %v2455_v24 = vshll.u32 %v5641_v50, 16  ;;  %v2461_v25 = vshll.u32 %v7331_v57, 16  ;;  %v518_v28 = vshrl.u32 %v7336_v1, 16  ;;  %v7357_v52 = vld [vmem:[%s7126_s13 + $0xb0] sm:$0xf] }
  0x68   : > { %6374 = vmatprep.mubr.msk.bf16.mxu0 %vm791_vm3, %v5682_v18  ;;  %v511_v29 = vrot.slane %v510_v20, 4  ;;  %v521_v30 = vshll.u32 %v7336_v1, 16  ;;  %v527_v33 = vshll.u32 %v274_v17, 16  ;;  %v532_v34 = vshrl.u32 %v7339_v9, 16  ;;  %v276_v12 = vld [vmem:[%s7126_s13 + $0xb4] sm:$0x1] }
  0x69   : > { %v2445_v37 = vrot.slane %v2444_v23, 4  ;;  %v2457_v38 = vrot.slane %v2455_v24, 5  ;;  %v2463_v41 = vrot.slane %v2461_v25, 5  ;;  %v520_v44 = vrot.slane %v518_v28, 4  ;;  %v277_v23 = vld [vmem:[%s7126_s13 + $0xbc] sm:$0x1] }
  0x6a   : > { %v516_v48 = vsel %vm7151_vm4, %v511_v29, %v515_v6  ;;  %v523_v49 = vrot.slane %v521_v30, 5  ;;  %v529_v50 = vrot.slane %v527_v33, 5  ;;  %v534_v51 = vrot.slane %v532_v34, 4  ;;  %v5710_v29 = vld [vmem:[%s7126_s13 + $0x18] sm:$0xe] }
  0x6b   : > { %v5424_v55 = vcombine.low %v502_v19, %v516_v48  ;;  %v2450_v56 = vsel %vm7151_vm4, %v2445_v37, %v2449_v16  ;;  %v2458_v31 = vor.u32 %v2457_v38, %v2454_v21  ;;  %v535_v60 = vshll.u32 %v7339_v9, 16  ;;  %v7381_v21 = vld [vmem:[%s7126_s13 + $0xb8] sm:$0xf] }
  0x6c   : > { %v524_v63 = vor.u32 %v523_v49, %v520_v44  ;;  %v541_v5 = vshll.u32 %v275_v27, 16  ;;  %v5740_v2 = vrot.slane %v5708_v35, 9  ;;  %v5741_v6 = vrot.slane %v5709_v42, 9 }
  0x6d   : > { %6239 = vmatmul.mubr.msk.bf16.gmra.mrb[12].mxu1 %vm791_vm3, %v5424_v55  ;;  %v2459_v8 = vrot.slane %v2458_v31, 4  ;;  %v537_v11 = vrot.slane %v535_v60, 5  ;;  %v546_v14 = vshrl.u32 %v7357_v52, 16  ;;  %v549_v16 = vshll.u32 %v7357_v52, 16  ;;  %v278_v60 = vld [vmem:[%s7126_s13 + $0xc4] sm:$0x1] }
  0x6e   : > { %v525_v17 = vrot.slane %v524_v63, 4  ;;  %v543_v18 = vrot.slane %v541_v5, 5  ;;  %v3082_v19 = vsel %vm7364_vm7, %v5740_v2, %v3081_v4  ;;  %v3086_v20 = vsel %vm7364_vm7, %v5741_v6, %v3085_v15  ;;  %v7393_v15 = vld [vmem:[%s9001_s1 + $0x8] sm:$0xf] }
  0x6f   : > { %v2464_v24 = vsel %vm7151_vm4, %v2459_v8, %v2463_v41  ;;  %v538_v25 = vor.u32 %v537_v11, %v534_v51  ;;  %v5773_v27 = vcombine.low %v3082_v19, %v3086_v20  ;;  %v548_v28 = vrot.slane %v546_v14, 4  ;;  %v7398_v41 = vld [vmem:[%s7126_s13 + $0xc0] sm:$0xf]  ;;  %6790 = vmatprep.subr.msk.bf16.mxu1 %vm840_vm0, %v7393_v15  ;;  %v279_v8 = vld [vmem:[%s7126_s13 + $0xcc] sm:$0x1] }
  0x70   : > { %v5683_v30 = vcombine.low %v2450_v56, %v2464_v24  ;;  %v530_v26 = vsel %vm7151_vm4, %v525_v17, %v529_v50  ;;  %v551_v4 = vrot.slane %v549_v16, 5  ;;  %v555_v33 = vshll.u32 %v276_v12, 16  ;;  %v7404_v50 = vld [vmem:[%s7126_s13 + $0xc8] sm:$0xf]  ;;  %v5713_v24 = vld [vmem:[%s7126_s13 + $0x30] sm:$0xe] }
  0x71   : > { %v539_v34 = vrot.slane %v538_v25, 4  ;;  %v560_v35 = vshrl.u32 %v7381_v21, 16  ;;  %v563_v37 = vshll.u32 %v7381_v21, 16  ;;  %v569_v38 = vshll.u32 %v277_v23, 16  ;;  %v5712_v17 = vld [vmem:[%s7126_s13 + $0x28] sm:$0xe] }
  0x72   : > { %6375 = vmatmul.mubr.msk.bf16.gmra.mrb[12].mxu0 %vm791_vm3, %v5683_v30  ;;  %v552_v44 = vor.u32 %v551_v4, %v548_v28  ;;  %v557_v42 = vrot.slane %v555_v33, 5  ;;  %v5742_v48 = vrot.slane %v5710_v29, 9  ;;  %v5743_v49 = vrot.slane %v5711_v22, 9  ;;  %v7429_v22 = vld [vmem:[%s7126_s13 + $0xd0] sm:$0xf] }
  0x73   : > { %v544_v51 = vsel %vm7151_vm4, %v539_v34, %v543_v18  ;;  %6396 = vmatprep.mubr.msk.bf16.mxu0 %vm791_vm3, %v5773_v27  ;;  %v562_v55 = vrot.slane %v560_v35, 4  ;;  %v565_v56 = vrot.slane %v563_v37, 5  ;;  %v571_v31 = vrot.slane %v569_v38, 5  ;;  %v7435_v34 = vld [vmem:[%s7126_s13 + $0xd8] sm:$0xf] }
  0x74   : > { %v5425_v63 = vcombine.low %v530_v26, %v544_v51  ;;  %v553_v5 = vrot.slane %v552_v44, 4  ;;  %v3090_v2 = vsel %vm7364_vm7, %v5742_v48, %v3089_v40  ;;  %v3094_v6 = vsel %vm7364_vm7, %v5743_v49, %v3093_v45  ;;  %v280_v35 = vld [vmem:[%s7126_s13 + $0xd4] sm:$0x1]  ;;  %v281_v51 = vld [vmem:[%s7126_s13 + $0xdc] sm:$0x1] }
  0x75   : > { %v566_v11 = vor.u32 %v565_v56, %v562_v55  ;;  %v5774_v12 = vcombine.low %v3090_v2, %v3094_v6  ;;  %v574_v14 = vshrl.u32 %v7398_v41, 16  ;;  %v577_v16 = vshll.u32 %v7398_v41, 16 }
  0x76   : > { %6242 = vmatprep.mubr.msk.bf16.mxu1 %vm791_vm3, %v5425_v63  ;;  %v558_v7 = vsel %vm7151_vm4, %v553_v5, %v557_v42  ;;  %v583_v40 = vshll.u32 %v278_v60, 16  ;;  %v588_v13 = vshrl.u32 %v7404_v50, 16  ;;  %v591_v45 = vshll.u32 %v7404_v50, 16  ;;  %v5714_v60 = vld [vmem:[%s7126_s13 + $0x38] sm:$0xe] }
  0x77   : > { %v567_v18 = vrot.slane %v566_v11, 4  ;;  %v576_v19 = vrot.slane %v574_v14, 4  ;;  %v579_v20 = vrot.slane %v577_v16, 5  ;;  %v597_v23 = vshll.u32 %v279_v8, 16  ;;  %v5715_v8 = vld [vmem:[%s7126_s13 + $0x40] sm:$0xe] }
  0x78   : > { %v585_v25 = vrot.slane %v583_v40, 5  ;;  %v590_v27 = vrot.slane %v588_v13, 4  ;;  %v593_v28 = vrot.slane %v591_v45, 5  ;;  %v5744_v29 = vrot.slane %v5712_v17, 9  ;;  %v7458_v17 = vld [vmem:[%s7126_s13 + $0xf0] sm:$0xf] }
  0x79   : > { %v572_v30 = vsel %vm7151_vm4, %v567_v18, %v571_v31  ;;  %v580_v26 = vor.u32 %v579_v20, %v576_v19  ;;  %v599_v4 = vrot.slane %v597_v23, 5  ;;  %v3097_v33 = vrot.slane %v7202_v62, 5  ;;  %v282_v18 = vld [vmem:[%s7126_s13 + $0xf4] sm:$0x1] }
  0x7a   : > { %v5426_v37 = vcombine.low %v558_v7, %v572_v30  ;;  %6397 = vmatmul.mubr.msk.bf16.vlgmr.msra.gmra.mrb[0].mxu0 %vm791_vm3, %v5774_v12  ;;  %v594_v38 = vor.u32 %v593_v28, %v590_v27  ;;  %v5745_v44 = vrot.slane %v5713_v24, 9  ;;  %v3101_v42 = vrot.slane %v7211_v10, 5  ;;  %v7466_v28 = vld [vmem:[%s7126_s13 + $0xf8] sm:$0xf] }
  0x7b   : > { %6429 = vmatpush3.bf16.msra.mxu0 %v7164_v47  ;;  %v581_v48 = vrot.slane %v580_v26, 4  ;;  %v3098_v49 = vsel %vm7364_vm7, %v5744_v29, %v3097_v33  ;;  %v602_v62 = vshrl.u32 %v7429_v22, 16  ;;  %v605_v55 = vshll.u32 %v7429_v22, 16 }
  0x7c   : > { %6243 = vmatmul.mubr.msk.bf16.gmra.mrb[16].mxu1 %vm791_vm3, %v5426_v37  ;;  %v595_v56 = vrot.slane %v594_v38, 4  ;;  %v3102_v31 = vsel %vm7364_vm7, %v5745_v44, %v3101_v42  ;;  %v611_v10 = vshll.u32 %v280_v35, 16  ;;  %v616_v47 = vshrl.u32 %v7435_v34, 16  ;;  %v5716_v35 = vld [vmem:[%s7126_s13 + $0x58] sm:$0xe] }
  0x7d   : > { %v586_v63 = vsel %vm7151_vm4, %v581_v48, %v585_v25  ;;  %v5775_v5 = vcombine.low %v3098_v49, %v3102_v31  ;;  %v604_v2 = vrot.slane %v602_v62, 4  ;;  %v607_v6 = vrot.slane %v605_v55, 5  ;;  %v5717_v48 = vld [vmem:[%s7126_s13 + $0x60] sm:$0xe] }
  0x7e   : > { %v600_v11 = vsel %vm7151_vm4, %v595_v56, %v599_v4  ;;  %v613_v12 = vrot.slane %v611_v10, 5  ;;  %v618_v14 = vrot.slane %v616_v47, 4  ;;  %v619_v16 = vshll.u32 %v7435_v34, 16  ;;  %v7482_v56 = vld [vmem:[%s7126_s13 + $0x100] sm:$0xf] }
  0x7f   : > { %v5427_v7 = vcombine.low %v586_v63, %v600_v11  ;;  %6400 = vmatprep.mubr.msk.bf16.mxu0 %vm791_vm3, %v5775_v5  ;;  %v608_v40 = vor.u32 %v607_v6, %v604_v2  ;;  %v625_v13 = vshll.u32 %v281_v51, 16  ;;  %v5746_v45 = vrot.slane %v5714_v60, 9  ;;  %v7487_v63 = vld [vmem:[%s7126_s13 + $0x108] sm:$0xf]  ;;  %v284_v11 = vld [vmem:[%s7126_s13 + $0x104] sm:$0x1] }
  0x80   : > { %v621_v19 = vrot.slane %v619_v16, 5  ;;  %v3105_v20 = vrot.slane %v7229_v54, 5  ;;  %v5747_v23 = vrot.slane %v5715_v8, 9  ;;  %v3109_v24 = vrot.slane %v7236_v0, 5  ;;  %v283_v0 = vld [vmem:[%s7126_s13 + $0xfc] sm:$0x1] }
  0x81   : > { %6246 = vmatprep.mubr.msk.bf16.mxu1 %vm791_vm3, %v5427_v7  ;;  %v609_v25 = vrot.slane %v608_v40, 4  ;;  %v627_v27 = vrot.slane %v625_v13, 5  ;;  %v630_v29 = vshrl.u32 %v7458_v17, 16  ;;  %v633_v30 = vshll.u32 %v7458_v17, 16  ;;  %v285_v40 = vld [vmem:[%s7126_s13 + $0x10c] sm:$0x1] }
  0x82   : > { %v622_v26 = vor.u32 %v621_v19, %v618_v14  ;;  %v3106_v4 = vsel %vm7364_vm7, %v5746_v45, %v3105_v20  ;;  %v3110_v54 = vsel %vm7364_vm7, %v5747_v23, %v3109_v24  ;;  %v639_v33 = vshll.u32 %v282_v18, 16  ;;  %v5718_v13 = vld [vmem:[%s7126_s13 + $0x68] sm:$0xe]  ;;  %v5719_v20 = vld [vmem:[%s7126_s13 + $0x70] sm:$0xe] }
  0x83   : > { %v614_v37 = vsel %vm7151_vm4, %v609_v25, %v613_v12  ;;  %v5776_v38 = vcombine.low %v3106_v4, %v3110_v54  ;;  %v632_v44 = vrot.slane %v630_v29, 4  ;;  %v635_v42 = vrot.slane %v633_v30, 5  ;;  %v7506_v29 = vld [vmem:[%s7126_s13 + $0x110] sm:$0xf]  ;;  %v7513_v54 = vld [vmem:[%s9001_s1 + $0x1c] sm:$0xf] }
  0x84   : > { %v623_v49 = vrot.slane %v622_v26, 4  ;;  %v641_v51 = vrot.slane %v639_v33, 5  ;;  %v644_v62 = vshrl.u32 %v7466_v28, 16  ;;  %v647_v55 = vshll.u32 %v7466_v28, 16  ;;  %6796 = vmatprep.subr.msk.bf16.mxu0 %vm840_vm0, %v7513_v54 }
  0x85   : > { %6401 = vmatmul.mubr.msk.bf16.gmra.mrb[4].mxu0 %vm791_vm3, %v5776_v38  ;;  %v636_v31 = vor.u32 %v635_v42, %v632_v44  ;;  %v653_v10 = vshll.u32 %v283_v0, 16  ;;  %v5748_v47 = vrot.slane %v5716_v35, 9  ;;  %v3113_v60 = vrot.slane %v7253_v46, 5  ;;  %v7516_v38 = vld [vmem:[%s7126_s13 + $0x118] sm:$0xf] }
  0x86   : > { %v628_v5 = vsel %vm7151_vm4, %v623_v49, %v627_v27  ;;  %v646_v2 = vrot.slane %v644_v62, 4  ;;  %v649_v6 = vrot.slane %v647_v55, 5  ;;  %v5749_v8 = vrot.slane %v5717_v48, 9 }
  0x87   : > { %v5428_v12 = vcombine.low %v614_v37, %v628_v5  ;;  %v637_v14 = vrot.slane %v636_v31, 4  ;;  %v655_v16 = vrot.slane %v653_v10, 5  ;;  %v3114_v7 = vsel %vm7364_vm7, %v5748_v47, %v3113_v60  ;;  %v287_v47 = vld [vmem:[%s7126_s13 + $0x11c] sm:$0x1] }
  0x88   : > { %v650_v46 = vor.u32 %v649_v6, %v646_v2  ;;  %v3117_v45 = vrot.slane %v7260_v59, 5  ;;  %v658_v18 = vshrl.u32 %v7482_v56, 16  ;;  %v661_v19 = vshll.u32 %v7482_v56, 16 }
  0x89   : > { %6247 = vmatmul.mubr.msk.bf16.gmra.mrb[20].mxu1 %vm791_vm3, %v5428_v12  ;;  %v642_v23 = vsel %vm7151_vm4, %v637_v14, %v641_v51  ;;  %v667_v24 = vshll.u32 %v284_v11, 16  ;;  %v672_v25 = vshrl.u32 %v7487_v63, 16  ;;  %v675_v27 = vshll.u32 %v7487_v63, 16  ;;  %v286_v51 = vld [vmem:[%s7126_s13 + $0x114] sm:$0x1] }
  0x8a   : > { %v651_v59 = vrot.slane %v650_v46, 4  ;;  %v3118_v30 = vsel %vm7364_vm7, %v5749_v8, %v3117_v45  ;;  %v660_v26 = vrot.slane %v658_v18, 4  ;;  %v663_v4 = vrot.slane %v661_v19, 5  ;;  %v5720_v8 = vld [vmem:[%s7126_s13 + $0x78] sm:$0xe] }
  0x8b   : > { %v5777_v0 = vcombine.low %v3114_v7, %v3118_v30  ;;  %v669_v33 = vrot.slane %v667_v24, 5  ;;  %v674_v35 = vrot.slane %v672_v25, 4  ;;  %v677_v37 = vrot.slane %v675_v27, 5  ;;  %v5721_v11 = vld [vmem:[%s7126_s13 + $0x80] sm:$0xe] }
  0x8c   : > { %v656_v44 = vsel %vm7151_vm4, %v651_v59, %v655_v16  ;;  %v664_v42 = vor.u32 %v663_v4, %v660_v26  ;;  %v681_v48 = vshll.u32 %v285_v40, 16  ;;  %v5750_v49 = vrot.slane %v5718_v13, 9  ;;  %v7540_v46 = vld [vmem:[%s7126_s13 + $0x120] sm:$0xf]  ;;  %v288_v30 = vld [vmem:[%s7126_s13 + $0x124] sm:$0x1] }
  0x8d   : > { %v5429_v62 = vcombine.low %v642_v23, %v656_v44  ;;  %6404 = vmatprep.mubr.msk.bf16.mxu0 %vm791_vm3, %v5777_v0  ;;  %v678_v55 = vor.u32 %v677_v37, %v674_v35  ;;  %v3121_v31 = vrot.slane %v7277_v39, 5  ;;  %v5751_v10 = vrot.slane %v5719_v20, 9  ;;  %v7545_v23 = vld [vmem:[%s7126_s13 + $0x128] sm:$0xf]  ;;  %v289_v35 = vld [vmem:[%s7126_s13 + $0x12c] sm:$0x1] }
  0x8e   : > { %v665_v60 = vrot.slane %v664_v42, 4  ;;  %v683_v5 = vrot.slane %v681_v48, 5  ;;  %v3125_v2 = vrot.slane %v7283_v53, 5  ;;  %v686_v6 = vshrl.u32 %v7506_v29, 16 }
  0x8f   : > { %6250 = vmatprep.mubr.msk.bf16.mxu1 %vm791_vm3, %v5429_v62  ;;  %v679_v12 = vrot.slane %v678_v55, 4  ;;  %v3122_v14 = vsel %vm7364_vm7, %v5750_v49, %v3121_v31  ;;  %v689_v39 = vshll.u32 %v7506_v29, 16  ;;  %v695_v16 = vshll.u32 %v286_v51, 16  ;;  %v5722_v49 = vld [vmem:[%s7126_s13 + $0x88] sm:$0xe] }
  0x90   : > { %v670_v7 = vsel %vm7151_vm4, %v665_v60, %v669_v33  ;;  %v3126_v53 = vsel %vm7364_vm7, %v5751_v10, %v3125_v2  ;;  %v688_v40 = vrot.slane %v686_v6, 4  ;;  %v700_v13 = vshrl.u32 %v7516_v38, 16  ;;  %v5723_v31 = vld [vmem:[%s7126_s13 + $0x90] sm:$0xe] }
  0x91   : > { %v684_v45 = vsel %vm7151_vm4, %v679_v12, %v683_v5  ;;  %v5778_v18 = vcombine.low %v3122_v14, %v3126_v53  ;;  %v691_v19 = vrot.slane %v689_v39, 5  ;;  %v697_v20 = vrot.slane %v695_v16, 5  ;;  %v5646_v16 = vld [vmem:[%s7126_s13 + $0xb4] sm:$0x1] }
  0x92   : > { %v5430_v24 = vcombine.low %v670_v7, %v684_v45  ;;  %v702_v25 = vrot.slane %v700_v13, 4  ;;  %v703_v27 = vshll.u32 %v7516_v38, 16  ;;  %v709_v59 = vshll.u32 %v287_v47, 16  ;;  %v5724_v45 = vld [vmem:[%s7126_s13 + $0xa8] sm:$0xe] }
  0x93   : > { %6405 = vmatmul.mubr.msk.bf16.gmra.mrb[8].mxu0 %vm791_vm3, %v5778_v18  ;;  %v692_v26 = vor.u32 %v691_v19, %v688_v40  ;;  %v5752_v4 = vrot.slane %v5720_v8, 9  ;;  %v3129_v0 = vrot.slane %v7299_v36, 5  ;;  %v5753_v33 = vrot.slane %v5721_v11, 9  ;;  %v5644_v8 = vld [vmem:[%s7126_s13 + $0xac] sm:$0x1] }
  0x94   : > { %6251 = vmatmul.mubr.msk.bf16.gmra.mrb[24].mxu1 %vm791_vm3, %v5430_v24  ;;  %v705_v37 = vrot.slane %v703_v27, 5  ;;  %v711_v44 = vrot.slane %v709_v59, 5  ;;  %v3133_v42 = vrot.slane %v7308_v58, 5  ;;  %v714_v48 = vshrl.u32 %v7540_v46, 16 }
  0x95   : > { %v693_v51 = vrot.slane %v692_v26, 4  ;;  %v3130_v62 = vsel %vm7364_vm7, %v5752_v4, %v3129_v0  ;;  %v717_v55 = vshll.u32 %v7540_v46, 16  ;;  %v723_v36 = vshll.u32 %v288_v30, 16  ;;  %v5726_v4 = vld [vmem:[%s7126_s13 + $0xb8] sm:$0xe] }
  0x96   : > { %v706_v10 = vor.u32 %v705_v37, %v702_v25  ;;  %v3134_v47 = vsel %vm7364_vm7, %v5753_v33, %v3133_v42  ;;  %v716_v60 = vrot.slane %v714_v48, 4  ;;  %v728_v58 = vshrl.u32 %v7545_v23, 16  ;;  %v5725_v25 = vld [vmem:[%s7126_s13 + $0xb0] sm:$0xe]  ;;  %v5727_v0 = vld [vmem:[%s7126_s13 + $0xc0] sm:$0xe] }
  0x97   : > { %v698_v5 = vsel %vm7151_vm4, %v693_v51, %v697_v20  ;;  %v5779_v2 = vcombine.low %v3130_v62, %v3134_v47  ;;  %v719_v6 = vrot.slane %v717_v55, 5  ;;  %v731_v14 = vshll.u32 %v7545_v23, 16  ;;  %v5652_v51 = vld [vmem:[%s7126_s13 + $0xcc] sm:$0x1]  ;;  %v5728_v62 = vld [vmem:[%s7126_s13 + $0xc8] sm:$0xe] }
  0x98   : > { %v707_v11 = vrot.slane %v706_v10, 4  ;;  %v730_v12 = vrot.slane %v728_v58, 4  ;;  %v737_v39 = vshll.u32 %v289_v35, 16  ;;  %v5754_v53 = vrot.slane %v5722_v49, 9  ;;  %v5654_v10 = vld [vmem:[%s7126_s13 + $0xd4] sm:$0x1] }
  0x99   : > { %6408 = vmatprep.mubr.msk.bf16.mxu0 %vm791_vm3, %v5779_v2  ;;  %v720_v7 = vor.u32 %v719_v6, %v716_v60  ;;  %v3137_v40 = vrot.slane %v7325_v43, 5  ;;  %v5755_v13 = vrot.slane %v5723_v31, 9  ;;  %v725_v19 = vrot.slane %v723_v36, 5  ;;  %v7578_v43 = vld [vmem:[%s7126_s13 + $0xbc] sm:$0x1] }
  0x9a   : > { %v712_v18 = vsel %vm7151_vm4, %v707_v11, %v711_v44  ;;  %v733_v20 = vrot.slane %v731_v14, 5  ;;  %v3141_v24 = vrot.slane %v7331_v57, 5  ;;  %v739_v30 = vrot.slane %v737_v39, 5  ;;  %9020 = vst [vmem:[#allocation6_spill] sm:$0xff] %v7578_v43  ;;  %v7585_v44 = vld [vmem:[%s7126_s13 + $0xc4] sm:$0x1] }
  0x9b   : > { %v5431_v27 = vcombine.low %v698_v5, %v712_v18  ;;  %v721_v59 = vrot.slane %v720_v7, 4  ;;  %v3138_v26 = vsel %vm7364_vm7, %v5754_v53, %v3137_v40  ;;  %v5756_v35 = vrot.slane %v5724_v45, 9  ;;  %9021 = vst [vmem:[#allocation7_spill] sm:$0xff] %v7585_v44  ;;  %v5729_v47 = vld [vmem:[%s7126_s13 + $0xd0] sm:$0xe] }
  0x9c   : > { %v734_v33 = vor.u32 %v733_v20, %v730_v12  ;;  %v3142_v57 = vsel %vm7364_vm7, %v5755_v13, %v3141_v24  ;;  %v3145_v37 = vrot.slane %v5644_v8, 5  ;;  %v5757_v48 = vrot.slane %v5725_v25, 9  ;;  %v7597_v60 = vld [vmem:[%s7126_s13 + $0x4] sm:$0x1]  ;;  %v6889_v5 = vld [vmem:[%s7126_s13] sm:$0xf] }
  0x9d   : > { %6254 = vmatprep.mubr.msk.bf16.mxu1 %vm791_vm3, %v5431_v27  ;;  %v5780_v42 = vcombine.low %v3138_v26, %v3142_v57  ;;  %v3149_v49 = vrot.slane %v5646_v16, 5  ;;  %v726_v55 = vsel %vm7151_vm4, %v721_v59, %v725_v19  ;;  %v1398_v58 = vrot.slane %v7597_v60, 5  ;;  %v6890_v2 = vld [vmem:[%s7126_s13 + $0x8] sm:$0xf]  ;;  %v5656_v12 = vld [vmem:[%s7126_s13 + $0xdc] sm:$0x1] }
  0x9e   : > { %v735_v36 = vrot.slane %v734_v33, 4  ;;  %v3146_v31 = vsel %vm7364_vm7, %v5756_v35, %v3145_v37  ;;  %v5449_v6 = vcombine.low %v6889_v5, %v6890_v2  ;;  %v5758_v11 = vrot.slane %v5726_v4, 9  ;;  %v5658_v53 = vld [vmem:[%s7126_s13 + $0xe4] sm:$0x1]  ;;  %v5730_v40 = vld [vmem:[%s7126_s13 + $0xd8] sm:$0xe] }
  0x9f   : > { %6409 = vmatmul.mubr.msk.bf16.gmra.mrb[12].mxu0 %vm791_vm3, %v5780_v42  ;;  %v3150_v8 = vsel %vm7364_vm7, %v5757_v48, %v3149_v49  ;;  %v3153_v16 = vrot.slane %v7578_v43, 5  ;;  %v5759_v7 = vrot.slane %v5727_v0, 9  ;;  %v7612_v13 = vld [vmem:[%s7126_s13 + $0xc] sm:$0x1]  ;;  %v3157_v19 = vrot.slane %v7585_v44, 5 }
  0xa0   : > { %v740_v14 = vsel %vm7151_vm4, %v735_v36, %v739_v30  ;;  %v5781_v39 = vcombine.low %v3146_v31, %v3150_v8  ;;  %v1402_v45 = vrot.slane %v7612_v13, 5  ;;  %v5731_v20 = vld [vmem:[%s7126_s13 + $0xe0] sm:$0xe]  ;;  %v5660_v24 = vld [vmem:[%s7126_s13 + $0xfc] sm:$0x1]  ;;  %v5760_v27 = vrot.slane %v5728_v62, 9 }
  0xa1   : > { %v5432_v18 = vcombine.low %v726_v55, %v740_v14  ;;  %v3154_v25 = vsel %vm7364_vm7, %v5758_v11, %v3153_v16  ;;  %v3161_v59 = vrot.slane %v5652_v51, 5  ;;  %v3158_v30 = vsel %vm7364_vm7, %v5759_v7, %v3157_v19  ;;  %v5662_v0 = vld [vmem:[%s7126_s13 + $0x104] sm:$0x1]  ;;  %v5732_v33 = vld [vmem:[%s7126_s13 + $0xf8] sm:$0xe] }
  0xa2   : > { %6412 = vmatprep.mubr.msk.bf16.mxu0 %vm791_vm3, %v5781_v39  ;;  %v5761_v26 = vrot.slane %v5729_v47, 9  ;;  %v3165_v4 = vrot.slane %v5654_v10, 5  ;;  %v5782_v57 = vcombine.low %v3154_v25, %v3158_v30  ;;  %v5762_v37 = vrot.slane %v5730_v40, 9  ;;  %v5733_v48 = vld [vmem:[%s7126_s13 + $0x100] sm:$0xe] }
  0xa3   : > { %6255 = vmatmul.mubr.msk.bf16.gmra.mrb[28].mxu1 %vm791_vm3, %v5432_v18  ;;  %v3162_v35 = vsel %vm7364_vm7, %v5760_v27, %v3161_v59  ;;  %v3169_v42 = vrot.slane %v5656_v12, 5  ;;  %v5763_v51 = vrot.slane %v5731_v20, 9  ;;  %v3173_v62 = vrot.slane %v5658_v53, 5  ;;  %v5664_v55 = vld [vmem:[%s7126_s13 + $0x10c] sm:$0x1] }
  0xa4   : > { %6260 = vmatprep.mubr.msk.bf16.mxu1 %vm791_vm3, %v5449_v6  ;;  %v3166_v49 = vsel %vm7364_vm7, %v5761_v26, %v3165_v4  ;;  %v5666_v36 = vld [vmem:[%s7126_s13 + $0x114] sm:$0x1]  ;;  %v5734_v31 = vld [vmem:[%s7126_s13 + $0x108] sm:$0xe]  ;;  %v5764_v47 = vrot.slane %v5732_v33, 9  ;;  %v3177_v5 = vrot.slane %v5660_v24, 5 }
  0xa5   : > { %v5783_v10 = vcombine.low %v3162_v35, %v3166_v49  ;;  %v5735_v2 = vld [vmem:[%s7126_s13 + $0x110] sm:$0xe]  ;;  %v5668_v6 = vld [vmem:[%s7126_s13 + $0x11c] sm:$0x1]  ;;  %v6893_v11 = vld [vmem:[%s7126_s13 + $0x18] sm:$0xf]  ;;  %v3170_v40 = vsel %vm7364_vm7, %v5762_v37, %v3169_v42  ;;  %v3174_v18 = vsel %vm7364_vm7, %v5763_v51, %v3173_v62 }
  0xa6   : > { %v6892_v8 = vld [vmem:[%s7126_s13 + $0x10] sm:$0xf]  ;;  %v5765_v14 = vrot.slane %v5733_v48, 9  ;;  %v3181_v39 = vrot.slane %v5662_v0, 5  ;;  %v6894_v16 = vld [vmem:[%s7126_s13 + $0x20] sm:$0xf]  ;;  %v3178_v30 = vsel %vm7364_vm7, %v5764_v47, %v3177_v5  ;;  %v5784_v42 = vcombine.low %v3170_v40, %v3174_v18 }
  0xa7   : > { %v5450_v12 = vcombine.low %v6892_v8, %v6893_v11  ;;  %6413 = vmatmul.mubr.msk.bf16.gmra.mrb[16].mxu0 %vm791_vm3, %v5782_v57  ;;  %v6895_v7 = vld [vmem:[%s7126_s13 + $0x28] sm:$0xf]  ;;  %v5670_v19 = vld [vmem:[%s7126_s13 + $0x124] sm:$0x1]  ;;  %v5736_v20 = vld [vmem:[%s7126_s13 + $0x118] sm:$0xe]  ;;  %v5459_v18 = vcombine.low %v7398_v41, %v7404_v50 }
  0xa8   : > { %v5451_v53 = vcombine.low %v6894_v16, %v6895_v7  ;;  %6416 = vmatprep.mubr.msk.bf16.mxu0 %vm791_vm3, %v5783_v10  ;;  %v5737_v24 = vld [vmem:[%s7126_s13 + $0x120] sm:$0xe]  ;;  %v6896_v25 = vld [vmem:[%s7126_s13 + $0x14] sm:$0x1]  ;;  %v1623_v59 = vsel %vm840_vm0, %v7393_v15, 0  ;;  %v3182_v26 = vsel %vm7364_vm7, %v5765_v14, %v3181_v39  ;;  %v5766_v0 = vrot.slane %v5734_v31, 9 }
  0xa9   : > { %v1406_v27 = vrot.slane %v6896_v25, 5  ;;  %v7660_v4 = vld [vmem:[%s9001_s1 + $0xc] sm:$0xf]  ;;  %v3185_v33 = vrot.slane %v5664_v55, 5  ;;  %v5767_v57 = vrot.slane %v5735_v2, 9  ;;  %v3189_v35 = vrot.slane %v5666_v36, 5 }
  0xaa   : > { %v6897_v15 = vld [vmem:[%s7126_s13 + $0x1c] sm:$0x1]  ;;  %v5768_v48 = vrot.slane %v5736_v20, 9  ;;  %v3193_v49 = vrot.slane %v5668_v6, 5  ;;  %v5785_v51 = vcombine.low %v3178_v30, %v3182_v26  ;;  %v5769_v62 = vrot.slane %v5737_v24, 9 }
  0xab   : > { %v1410_v37 = vrot.slane %v6897_v15, 5  ;;  %6261 = vmatmul.mubr.msk.bf16.vlgmr.msra.gmra.mrb[0].mxu1 %vm791_vm3, %v5450_v12  ;;  %v3197_v55 = vrot.slane %v5670_v19, 5  ;;  %v5672_v36 = vld [vmem:[%s7126_s13 + $0x12c] sm:$0x1]  ;;  %v1297_v31 = vld [vmem:[%s7126_s13] sm:$0xe]  ;;  %v3186_v12 = vsel %vm7364_vm7, %v5766_v0, %v3185_v33  ;;  %v3190_v14 = vsel %vm7364_vm7, %v5767_v57, %v3189_v35 }
  0xac   : > { %6293 = vmatpush3.bf16.msra.mxu1 %v1623_v59  ;;  %6264 = vmatprep.mubr.msk.bf16.mxu1 %vm791_vm3, %v5451_v53  ;;  %v1298_v10 = vld [vmem:[%s7126_s13 + $0x8] sm:$0xe]  ;;  %v6898_v47 = vld [vmem:[%s7126_s13 + $0x30] sm:$0xf]  ;;  %v6899_v5 = vld [vmem:[%s7126_s13 + $0x38] sm:$0xf]  ;;  %v3194_v7 = vsel %vm7364_vm7, %v5768_v48, %v3193_v49  ;;  %v5460_v19 = vcombine.low %v7429_v22, %v7435_v34  ;;  %v5461_v20 = vcombine.low %v7458_v17, %v7466_v28 }
  0xad   : > { %6791 = vmatprep.subr.msk.bf16.mxu1 %vm840_vm0, %v7660_v4  ;;  %v5452_v2 = vcombine.low %v6898_v47, %v6899_v5  ;;  %v6900_v6 = vld [vmem:[%s7126_s13 + $0x50] sm:$0xf]  ;;  %v6901_v8 = vld [vmem:[%s7126_s13 + $0x58] sm:$0xf]  ;;  %v5738_v53 = vld [vmem:[%s7126_s13 + $0x128] sm:$0xe]  ;;  %v3198_v24 = vsel %vm7364_vm7, %v5769_v62, %v3197_v55  ;;  %v5462_v25 = vcombine.low %v7482_v56, %v7487_v63  ;;  %v5463_v59 = vcombine.low %v7506_v29, %v7516_v38 }
  0xae   : > { %v5453_v11 = vcombine.low %v6900_v6, %v6901_v8  ;;  %v1299_v39 = vld [vmem:[%s7126_s13 + $0x10] sm:$0xe]  ;;  %v1300_v16 = vld [vmem:[%s7126_s13 + $0x18] sm:$0xe]  ;;  %v5674_v26 = vld [vmem:[%s7126_s13 + $0x134] sm:$0x1]  ;;  %v5786_v15 = vcombine.low %v3186_v12, %v3190_v14  ;;  %v5787_v60 = vcombine.low %v3194_v7, %v3198_v24  ;;  %v5457_v24 = vcombine.low %v7336_v1, %v7339_v9 }
  0xaf   : > { %6417 = vmatmul.mubr.msk.bf16.gmra.mrb[20].mxu0 %vm791_vm3, %v5784_v42  ;;  %v5739_v40 = vld [vmem:[%s7126_s13 + $0x130] sm:$0xe]  ;;  %v5481_v0 = vrot.slane %v1297_v31, 9  ;;  %v5482_v33 = vrot.slane %v1298_v10, 9  ;;  %v5483_v57 = vrot.slane %v1299_v39, 9  ;;  %v5484_v35 = vrot.slane %v1300_v16, 9 }
  0xb0   : > { %6420 = vmatprep.mubr.msk.bf16.mxu0 %vm791_vm3, %v5785_v51  ;;  %v5770_v42 = vrot.slane %v5738_v53, 9  ;;  %v3201_v48 = vrot.slane %v5672_v36, 5  ;;  %v5771_v49 = vrot.slane %v5739_v40, 9  ;;  %v3205_v31 = vrot.slane %v5674_v26, 5  ;;  %v6905_v47 = vld [vmem:[%s7126_s13 + $0x78] sm:$0xf] }
  0xb1   : > { %v7706_v51 = vsel %vm7364_vm7, %v5481_v0, %v1398_v58  ;;  %v7712_v62 = vsel %vm7364_vm7, %v5482_v33, %v1402_v45  ;;  %v7716_v55 = vsel %vm7364_vm7, %v5483_v57, %v1406_v27  ;;  %v7720_v36 = vsel %vm7364_vm7, %v5484_v35, %v1410_v37  ;;  %v6902_v45 = vld [vmem:[%s7126_s13 + $0x60] sm:$0xf]  ;;  %v6903_v27 = vld [vmem:[%s7126_s13 + $0x68] sm:$0xf]  ;;  %v6904_v37 = vld [vmem:[%s7126_s13 + $0x70] sm:$0xf] }
  0xb2   : > { %v5454_v10 = vcombine.low %v6902_v45, %v6903_v27  ;;  %v5455_v5 = vcombine.low %v6904_v37, %v6905_v47  ;;  %v3206_v6 = vsel %vm7364_vm7, %v5771_v49, %v3205_v31  ;;  %v1301_v12 = vld [vmem:[%s7126_s13 + $0x20] sm:$0xe]  ;;  %v1302_v14 = vld [vmem:[%s7126_s13 + $0x28] sm:$0xe]  ;;  %v1303_v53 = vld [vmem:[%s7126_s13 + $0x30] sm:$0xe]  ;;  %v5458_v47 = vcombine.low %v7357_v52, %v7381_v21 }
  0xb3   : > { %6265 = vmatmul.mubr.msk.bf16.gmra.mrb[4].mxu1 %vm791_vm3, %v5452_v2  ;;  %v3202_v2 = vsel %vm7364_vm7, %v5770_v42, %v3201_v48  ;;  %v6906_v39 = vld [vmem:[%s7126_s13 + $0x80] sm:$0xf]  ;;  %v6907_v16 = vld [vmem:[%s7126_s13 + $0x88] sm:$0xf]  ;;  %v1304_v40 = vld [vmem:[%s7126_s13 + $0x38] sm:$0xe]  ;;  %v9023_v3 = vcombine.low %v7706_v51, %v7712_v62 }
  0xb4   : > { %6268 = vmatprep.mubr.msk.bf16.mxu1 %vm791_vm3, %v5453_v11  ;;  %v5788_v8 = vcombine.low %v3202_v2, %v3206_v6  ;;  %v6849_v11 = vld [vmem:[%s7126_s13 + $0x10] ss:$8 sps:$4 sm:$0xff]   ;;  %v5456_v7 = vcombine.low %v6906_v39, %v6907_v16  ;;  %v5485_v26 = vrot.slane %v1301_v12, 9  ;;  %v6908_v0 = vld [vmem:[%s7126_s13 + $0x24] sm:$0x1]  ;;  %v5486_v57 = vrot.slane %v1302_v14, 9 }
  0xb5   : > { %v1414_v33 = vrot.slane %v6908_v0, 5  ;;  %v6909_v35 = vld [vmem:[%s7126_s13 + $0x2c] sm:$0x1]  ;;  %v5487_v42 = vrot.slane %v1303_v53, 9  ;;  %v6910_v48 = vld [vmem:[%s7126_s13 + $0x34] sm:$0x1] }
  0xb6   : > { %v1422_v49 = vrot.slane %v6910_v48, 5  ;;  %v6911_v31 = vld [vmem:[%s7126_s13 + $0x3c] sm:$0x1]  ;;  %v6851_v1 = vld [vmem:[%s7126_s13 + $0x20] ss:$8 sps:$4 sm:$0xff]  }
  0xb7   : > { %6421 = vmatmul.mubr.msk.bf16.gmra.mrb[24].mxu0 %vm791_vm3, %v5786_v15  ;;  %v1418_v15 = vrot.slane %v6909_v35, 5  ;;  %v1426_v45 = vrot.slane %v6911_v31, 5  ;;  %v1305_v9 = vld [vmem:[%s7126_s13 + $0x50] sm:$0xe]  ;;  %v1307_v37 = vld [vmem:[%s7126_s13 + $0x60] sm:$0xe]  ;;  %v7767_v2 = vsel %vm7364_vm7, %v5485_v26, %v1414_v33 }
  0xb8   : > { %6424 = vmatprep.mubr.msk.bf16.mxu0 %vm791_vm3, %v5787_v60  ;;  %v5488_v60 = vrot.slane %v1304_v40, 9  ;;  %v6853_v27 = vld [vmem:[%s7126_s13 + $0x30] ss:$8 sps:$4 sm:$0xff]   ;;  %v5489_v21 = vrot.slane %v1305_v9, 9  ;;  %v7787_v39 = vld [vmem:[%s9001_s1 + $0x20] sm:$0xf] }
  0xb9   : > { %v7771_v6 = vsel %vm7364_vm7, %v5486_v57, %v1418_v15  ;;  %v5870_v14 = vld [vmem:[%s7126_s13 + $0x10] sm:$0xf]  ;;  %v5491_v40 = vrot.slane %v1307_v37, 9  ;;  %v5872_v0 = vld [vmem:[%s7126_s13 + $0x18] sm:$0xf]  ;;  %v7942_v29 = vsel %vm840_vm0, %v7787_v39, 0 }
  0xba   : > { %v7780_v52 = vsel %vm7364_vm7, %v5488_v60, %v1426_v45  ;;  %v6915_v35 = vld [vmem:[%s7126_s13 + $0x6c] sm:$0x1]  ;;  %v7801_v60 = vsel %vm840_vm0, %v7660_v4, 0  ;;  %v1311_v9 = vld [vmem:[%s7126_s13 + $0x80] sm:$0xe]  ;;  %v3928_v37 = vshll.u32 %v5870_v14, 16 }
  0xbb   : > { %6269 = vmatmul.mubr.msk.bf16.gmra.mrb[8].mxu1 %vm791_vm3, %v5454_v10  ;;  %v1306_v10 = vld [vmem:[%s7126_s13 + $0x58] sm:$0xe]  ;;  %v1442_v15 = vrot.slane %v6915_v35, 5  ;;  %v3942_v4 = vshll.u32 %v5872_v0, 16  ;;  %v6919_v45 = vld [vmem:[%s7126_s13 + $0x8c] sm:$0x1] }
  0xbc   : > { %6272 = vmatprep.mubr.msk.bf16.mxu1 %vm791_vm3, %v5455_v5  ;;  %v4471_v5 = vsel %vm840_vm0, %v7513_v54, 0  ;;  %v6912_v54 = vld [vmem:[%s7126_s13 + $0x54] sm:$0x1]  ;;  %v5490_v16 = vrot.slane %v1306_v10, 9  ;;  %v3925_v10 = vshrl.u32 %v5870_v14, 16  ;;  %v1458_v41 = vrot.slane %v6919_v45, 5 }
  0xbd   : > { %v1430_v12 = vrot.slane %v6912_v54, 5  ;;  %v1314_v50 = vld [vmem:[%s7126_s13 + $0xa8] sm:$0xe]  ;;  %v6859_v13 = vld [vmem:[%s7126_s13 + $0x70] ss:$8 sps:$4 sm:$0xff]  }
  0xbe   : > { %v6923_v28 = vld [vmem:[%s7126_s13 + $0xbc] sm:$0x1]  ;;  %v7945_v38 = vld [vmem:[%s7126_s13 + $0xd0] sm:$0xe]  ;;  %v5887_v44 = vld [vmem:[%s7126_s13 + $0x64] sm:$0x1] }
  0xbf   : > { %6425 = vmatmul.mubr.msk.bf16.gmra.mrb[28].mxu0 %vm791_vm3, %v5788_v8  ;;  %v1308_v8 = vld [vmem:[%s7126_s13 + $0x68] sm:$0xe]  ;;  %v7816_v54 = vsel %vm7364_vm7, %v5489_v21, %v1430_v12  ;;  %v6916_v21 = vld [vmem:[%s7126_s13 + $0x74] sm:$0x1] }
  0xc0   : > { %6430 = vmatprep.mubr.msk.bf16.mxu0 %vm791_vm3, %v6849_v11  ;;  %v7776_v11 = vsel %vm7364_vm7, %v5487_v42, %v1422_v49  ;;  %v5492_v57 = vrot.slane %v1308_v8, 9  ;;  %v1309_v42 = vld [vmem:[%s7126_s13 + $0x70] sm:$0xe]  ;;  %v6855_v49 = vld [vmem:[%s7126_s13 + $0x40] ss:$8 sps:$4 sm:$0xff]   ;;  %v1446_v12 = vrot.slane %v6916_v21, 5 }
  0xc1   : > { %v6857_v8 = vld [vmem:[%s7126_s13 + $0x60] ss:$8 sps:$4 sm:$0xff]   ;;  %v5493_v14 = vrot.slane %v1309_v42, 9  ;;  %v6918_v42 = vld [vmem:[%s7126_s13 + $0x84] sm:$0x1]  ;;  %v3944_v21 = vrot.slane %v3942_v4, 5 }
  0xc2   : > { %v1454_v48 = vrot.slane %v6918_v42, 5  ;;  %v5498_v4 = vrot.slane %v1314_v50, 9  ;;  %v5876_v50 = vld [vmem:[%s7126_s13 + $0x28] sm:$0xf] }
  0xc3   : > { %6273 = vmatmul.mubr.msk.bf16.gmra.mrb[12].mxu1 %vm791_vm3, %v5456_v7  ;;  %v6913_v7 = vld [vmem:[%s7126_s13 + $0x5c] sm:$0x1]  ;;  %v3967_v34 = vshrl.u32 %v5876_v50, 16 }
  0xc4   : > { %6276 = vmatprep.mubr.msk.bf16.mxu1 %vm791_vm3, %v5457_v24  ;;  %v1434_v53 = vrot.slane %v6913_v7, 5  ;;  %v6914_v24 = vld [vmem:[%s7126_s13 + $0x64] sm:$0x1] }
  0xc5   : > { %v1438_v26 = vrot.slane %v6914_v24, 5 }
  0xc6   : > { %v7820_v7 = vsel %vm7364_vm7, %v5490_v16, %v1434_v53  ;;  %v6917_v53 = vld [vmem:[%s7126_s13 + $0x7c] sm:$0x1] }
  0xc7   : > { %6431 = vmatmul.mubr.msk.bf16.vlgmr.msra.gmra.mrb[0].mxu0 %vm791_vm3, %v6851_v1  ;;  %v1310_v1 = vld [vmem:[%s7126_s13 + $0x78] sm:$0xe]  ;;  %v7824_v24 = vsel %vm7364_vm7, %v5491_v40, %v1438_v26  ;;  %v1450_v35 = vrot.slane %v6917_v53, 5  ;;  %v5874_v40 = vld [vmem:[%s7126_s13 + $0x20] sm:$0xf]  ;;  %v5495_v26 = vrot.slane %v1311_v9, 9  ;;  %v7855_v9 = vsel %vm7364_vm7, %v5493_v14, %v1446_v12 }
  0xc8   : > { %6463 = vmatpush3.bf16.msra.mxu0 %v4471_v5  ;;  %6434 = vmatprep.mubr.msk.bf16.mxu0 %vm791_vm3, %v6853_v27  ;;  %v1312_v27 = vld [vmem:[%s7126_s13 + $0x88] sm:$0xe]  ;;  %v3939_v5 = vshrl.u32 %v5872_v0, 16  ;;  %v1313_v0 = vld [vmem:[%s7126_s13 + $0xa0] sm:$0xe]  ;;  %v5494_v16 = vrot.slane %v1310_v1, 9 }
  0xc9   : > { %6797 = vmatprep.subr.msk.bf16.mxu0 %vm840_vm0, %v7787_v39  ;;  %v5496_v33 = vrot.slane %v1312_v27, 9  ;;  %v5871_v27 = vld [vmem:[%s7126_s13 + $0x14] sm:$0x1]  ;;  %v5873_v53 = vld [vmem:[%s7126_s13 + $0x1c] sm:$0x1]  ;;  %v3953_v45 = vshrl.u32 %v5874_v40, 16 }
  0xca   : > { %v3956_v42 = vshll.u32 %v5874_v40, 16  ;;  %v1315_v1 = vld [vmem:[%s7126_s13 + $0xb0] sm:$0xe]  ;;  %v7859_v40 = vsel %vm7364_vm7, %v5494_v16, %v1450_v35  ;;  %v3948_v30 = vshll.u32 %v5873_v53, 16  ;;  %v1316_v14 = vld [vmem:[%s7126_s13 + $0xb8] sm:$0xe] }
  0xcb   : > { %6277 = vmatmul.mubr.msk.bf16.gmra.mrb[16].mxu1 %vm791_vm3, %v5458_v47  ;;  %v7833_v47 = vsel %vm7364_vm7, %v5492_v57, %v1442_v15  ;;  %v3930_v57 = vrot.slane %v3928_v37, 5  ;;  %v3941_v15 = vrot.slane %v3939_v5, 4  ;;  %v6920_v37 = vld [vmem:[%s7126_s13 + $0xa4] sm:$0x1]  ;;  %v5499_v16 = vrot.slane %v1315_v1, 9 }
  0xcc   : > { %6280 = vmatprep.mubr.msk.bf16.mxu1 %vm791_vm3, %v5459_v18  ;;  %v3927_v18 = vrot.slane %v3925_v10, 4  ;;  %v5497_v10 = vrot.slane %v1313_v0, 9  ;;  %v1462_v5 = vrot.slane %v6920_v37, 5  ;;  %v7867_v0 = vsel %vm7364_vm7, %v5496_v33, %v1458_v41  ;;  %v5875_v12 = vld [vmem:[%s7126_s13 + $0x24] sm:$0x1] }
  0xcd   : > { %v3945_v58 = vor.u32 %v3944_v21, %v3941_v15  ;;  %v6922_v35 = vld [vmem:[%s7126_s13 + $0xb4] sm:$0x1]  ;;  %v3958_v41 = vrot.slane %v3956_v42, 5  ;;  %v5880_v15 = vld [vmem:[%s7126_s13 + $0x38] sm:$0xf]  ;;  %v5500_v17 = vrot.slane %v1316_v14, 9  ;;  %v9022_v21 = vcombine.low %v7540_v46, %v7545_v23 }
  0xce   : > { %v3931_v37 = vor.u32 %v3930_v57, %v3927_v18  ;;  %v1470_v33 = vrot.slane %v6922_v35, 5  ;;  %v7884_v18 = vsel %vm7364_vm7, %v5497_v10, %v1462_v5  ;;  %v5878_v57 = vld [vmem:[%s7126_s13 + $0x30] sm:$0xf]  ;;  %v3962_v1 = vshll.u32 %v5875_v12, 16  ;;  %v6925_v10 = vld [vmem:[%s7126_s13 + $0xcc] sm:$0x1] }
  0xcf   : > { %6435 = vmatmul.mubr.msk.bf16.gmra.mrb[4].mxu0 %vm791_vm3, %v6855_v49  ;;  %v6921_v49 = vld [vmem:[%s7126_s13 + $0xac] sm:$0x1]  ;;  %v3984_v14 = vshll.u32 %v5878_v57, 16  ;;  %v6863_v12 = vld [vmem:[%s7126_s13 + $0x90] ss:$8 sps:$4 sm:$0xff]  }
  0xd0   : > { %6438 = vmatprep.mubr.msk.bf16.mxu0 %vm791_vm3, %v6857_v8  ;;  %v1466_v31 = vrot.slane %v6921_v49, 5  ;;  %v7863_v8 = vsel %vm7364_vm7, %v5495_v26, %v1454_v48  ;;  %v3934_v49 = vshll.u32 %v5871_v27, 16  ;;  %v6861_v48 = vld [vmem:[%s7126_s13 + $0x80] ss:$8 sps:$4 sm:$0xff]   ;;  %v3955_v26 = vrot.slane %v3953_v45, 4 }
  0xd1   : > { %v3932_v27 = vrot.slane %v3931_v37, 4  ;;  %v3946_v45 = vrot.slane %v3945_v58, 4  ;;  %v7902_v5 = vsel %vm7364_vm7, %v5499_v16, %v1470_v33  ;;  %v1317_v37 = vld [vmem:[%s7126_s13 + $0xc0] sm:$0xe]  ;;  %v7913_v16 = vrot.slane %v3962_v1, 5 }
  0xd2   : > { %v7888_v22 = vsel %vm7364_vm7, %v5498_v4, %v1466_v31  ;;  %v3936_v53 = vrot.slane %v3934_v49, 5  ;;  %v3950_v31 = vrot.slane %v3948_v30, 5  ;;  %v5877_v4 = vld [vmem:[%s7126_s13 + $0x2c] sm:$0x1]  ;;  %v3969_v30 = vrot.slane %v3967_v34, 4 }
  0xd3   : > { %6281 = vmatmul.mubr.msk.bf16.gmra.mrb[20].mxu1 %vm791_vm3, %v5460_v19  ;;  %v3970_v19 = vshll.u32 %v5876_v50, 16  ;;  %v3959_v50 = vor.u32 %v3958_v41, %v3955_v26  ;;  %v3981_v49 = vshrl.u32 %v5878_v57, 16  ;;  %v5879_v33 = vld [vmem:[%s7126_s13 + $0x34] sm:$0x1]  ;;  %v3995_v26 = vshrl.u32 %v5880_v15, 16 }
  0xd4   : > { %6284 = vmatprep.mubr.msk.bf16.mxu1 %vm791_vm3, %v5461_v20  ;;  %v1474_v20 = vrot.slane %v6923_v28, 5  ;;  %v3998_v41 = vshll.u32 %v5880_v15, 16  ;;  %v6864_v28 = vld [vmem:[%s7126_s13 + $0xb0] ss:$8 sps:$4 sm:$0xff]   ;;  %v3951_v34 = vsel %vm7151_vm4, %v3946_v45, %v3950_v31  ;;  %v5501_v57 = vrot.slane %v1317_v37, 9 }
  0xd5   : > { %v3972_v58 = vrot.slane %v3970_v19, 5  ;;  %v3976_v19 = vshll.u32 %v5877_v4, 16  ;;  %v3983_v31 = vrot.slane %v3981_v49, 4  ;;  %v3986_v56 = vrot.slane %v3984_v14, 5  ;;  %v5881_v37 = vld [vmem:[%s7126_s13 + $0x3c] sm:$0x1] }
  0xd6   : > { %v7911_v35 = vsel %vm7364_vm7, %v5500_v17, %v1474_v20  ;;  %v7925_v17 = vrot.slane %v3959_v50, 4  ;;  %v6924_v20 = vld [vmem:[%s7126_s13 + $0xc4] sm:$0x1]  ;;  %v3990_v63 = vshll.u32 %v5879_v33, 16  ;;  %v7957_v39 = vld [vmem:[%s7126_s13 + $0xd8] sm:$0xe] }
  0xd7   : > { %6439 = vmatmul.mubr.msk.bf16.gmra.mrb[8].mxu0 %vm791_vm3, %v6859_v13  ;;  %v1318_v13 = vld [vmem:[%s7126_s13 + $0xc8] sm:$0xe]  ;;  %v1478_v15 = vrot.slane %v6924_v20, 5  ;;  %v3973_v45 = vor.u32 %v3972_v58, %v3969_v30  ;;  %v3978_v20 = vrot.slane %v3976_v19, 5  ;;  %v6866_v50 = vld [vmem:[%s7126_s13 + $0xd0] ss:$8 sps:$4 sm:$0xff]  }
  0xd8   : > { %6442 = vmatprep.mubr.msk.bf16.mxu0 %vm791_vm3, %v6861_v48  ;;  %v3937_v48 = vsel %vm7151_vm4, %v3932_v27, %v3936_v53  ;;  %v5502_v1 = vrot.slane %v1318_v13, 9  ;;  %v1482_v27 = vrot.slane %v6925_v10, 5  ;;  %v5882_v53 = vld [vmem:[%s7126_s13 + $0x40] sm:$0xf]  ;;  %v3997_v13 = vrot.slane %v3995_v26, 4 }
  0xd9   : > { %v7935_v4 = vcombine.low %v3937_v48, %v3951_v34  ;;  %v4000_v10 = vrot.slane %v3998_v41, 5  ;;  %v4012_v30 = vshll.u32 %v5882_v53, 16  ;;  %v3965_v58 = vsel %vm7151_vm4, %v7925_v17, %v7913_v16  ;;  %v5883_v48 = vld [vmem:[%s7126_s13 + $0x44] sm:$0x1]  ;;  %v5886_v34 = vld [vmem:[%s7126_s13 + $0x60] sm:$0xf] }
  0xda   : > { %v7954_v49 = vsel %vm7364_vm7, %v5501_v57, %v1478_v15  ;;  %v7962_v26 = vsel %vm7364_vm7, %v5502_v1, %v1482_v27  ;;  %v3987_v16 = vor.u32 %v3986_v56, %v3983_v31  ;;  %v7964_v41 = vrot.slane %v3990_v63, 5  ;;  %v6865_v19 = vld [vmem:[%s7126_s13 + $0xc0] ss:$8 sps:$4 sm:$0xff]   ;;  %v6927_v27 = vld [vmem:[%s7126_s13 + $0xdc] sm:$0x1] }
  0xdb   : > { %6285 = vmatmul.mubr.msk.bf16.gmra.mrb[24].mxu1 %vm791_vm3, %v5462_v25  ;;  %v5884_v25 = vld [vmem:[%s7126_s13 + $0x48] sm:$0xf]  ;;  %v4001_v57 = vor.u32 %v4000_v10, %v3997_v13  ;;  %v4004_v17 = vshll.u32 %v5881_v37, 16  ;;  %v5503_v15 = vrot.slane %v7945_v38, 9  ;;  %v5504_v1 = vrot.slane %v7957_v39, 9 }
  0xdc   : > { %6288 = vmatprep.mubr.msk.bf16.mxu1 %vm791_vm3, %v5463_v59  ;;  %v4009_v59 = vshrl.u32 %v5882_v53, 16  ;;  %v4023_v14 = vshrl.u32 %v5884_v25, 16  ;;  %v4026_v33 = vshll.u32 %v5884_v25, 16  ;;  %v6926_v53 = vld [vmem:[%s7126_s13 + $0xd4] sm:$0x1]  ;;  %v1490_v31 = vrot.slane %v6927_v27, 5 }
  0xdd   : > { %v5888_v25 = vld [vmem:[%s7126_s13 + $0x68] sm:$0xf]  ;;  %v4014_v63 = vrot.slane %v4012_v30, 5  ;;  %v1321_v42 = vld [vmem:[%s7126_s13 + $0xf0] sm:$0xe]  ;;  %v4037_v38 = vshrl.u32 %v5886_v34, 16 }
  0xde   : > { %v4011_v56 = vrot.slane %v4009_v59, 4  ;;  %v4025_v37 = vrot.slane %v4023_v14, 4  ;;  %v4028_v13 = vrot.slane %v4026_v33, 5  ;;  %v1322_v10 = vld [vmem:[%s7126_s13 + $0xf8] sm:$0xe]  ;;  %v4051_v46 = vshrl.u32 %v5888_v25, 16 }
  0xdf   : > { %6443 = vmatmul.mubr.msk.bf16.gmra.mrb[12].mxu0 %vm791_vm3, %v6863_v12  ;;  %v3974_v12 = vrot.slane %v3973_v45, 4  ;;  %v5885_v45 = vld [vmem:[%s7126_s13 + $0x4c] sm:$0x1]  ;;  %v4054_v23 = vshll.u32 %v5888_v25, 16  ;;  %v4002_v39 = vrot.slane %v4001_v57, 4  ;;  %v4006_v14 = vrot.slane %v4004_v17, 5 }
  0xe0   : > { %6446 = vmatprep.mubr.msk.bf16.mxu0 %vm791_vm3, %v6864_v28  ;;  %v1486_v28 = vrot.slane %v6926_v53, 5  ;;  %v4040_v53 = vshll.u32 %v5886_v34, 16  ;;  %v4018_v33 = vshll.u32 %v5883_v48, 16  ;;  %v4015_v34 = vor.u32 %v4014_v63, %v4011_v56  ;;  %v6929_v25 = vld [vmem:[%s7126_s13 + $0xfc] sm:$0x1] }
  0xe1   : > { %v3979_v59 = vsel %vm7151_vm4, %v3974_v12, %v3978_v20  ;;  %v4032_v27 = vshll.u32 %v5885_v45, 16  ;;  %v5505_v51 = vrot.slane %v1321_v42, 9  ;;  %v4029_v12 = vor.u32 %v4028_v13, %v4025_v37  ;;  %v5889_v57 = vld [vmem:[%s7126_s13 + $0x6c] sm:$0x1]  ;;  %v6867_v56 = vld [vmem:[%s7126_s13 + $0xe0] ss:$8 sps:$4 sm:$0xff]  }
  0xe2   : > { %v7992_v20 = vcombine.low %v3965_v58, %v3979_v59  ;;  %v5506_v30 = vrot.slane %v1322_v10, 9  ;;  %v4039_v48 = vrot.slane %v4037_v38, 4  ;;  %v4042_v42 = vrot.slane %v4040_v53, 5  ;;  %v1323_v37 = vld [vmem:[%s7126_s13 + $0x100] sm:$0xe] }
  0xe3   : > { %6289 = vmatmul.mubr.msk.bf16.gmra.mrb[28].mxu1 %vm791_vm3, %v9022_v21  ;;  %v3988_v21 = vrot.slane %v3987_v16, 4  ;;  %v1498_v16 = vrot.slane %v6929_v25, 5  ;;  %v4053_v17 = vrot.slane %v4051_v46, 4  ;;  %v4056_v45 = vrot.slane %v4054_v23, 5  ;;  %v1324_v13 = vld [vmem:[%s7126_s13 + $0x108] sm:$0xe] }
  0xe4   : > { %6294 = vmatprep.mubr.msk.bf16.mxu1 %vm791_vm3, %v9023_v3  ;;  %v6928_v3 = vld [vmem:[%s7126_s13 + $0xf4] sm:$0x1]  ;;  %v8006_v63 = vsel %vm7364_vm7, %v5503_v15, %v1486_v28  ;;  %v8014_v10 = vrot.slane %v4015_v34, 4  ;;  %v8016_v38 = vrot.slane %v4018_v33, 5  ;;  %v5890_v15 = vld [vmem:[%s7126_s13 + $0x70] sm:$0xf]  ;;  %v9024_v28 = vcombine.low %v7716_v55, %v7720_v36 }
  0xe5   : > { %v1494_v62 = vrot.slane %v6928_v3, 5  ;;  %v3993_v58 = vsel %vm7151_vm4, %v3988_v21, %v7964_v41  ;;  %v8018_v41 = vrot.slane %v4032_v27, 5  ;;  %v4046_v59 = vshll.u32 %v5887_v44, 16  ;;  %v5892_v23 = vld [vmem:[%s7126_s13 + $0x78] sm:$0xf] }
  0xe6   : > { %v4060_v46 = vshll.u32 %v5889_v57, 16  ;;  %v9025_v21 = vcombine.low %v7767_v2, %v7771_v6  ;;  %v6868_v55 = vld [vmem:[%s7126_s13 + $0x100] ss:$8 sps:$4 sm:$0xff]   ;;  %v4043_v36 = vor.u32 %v4042_v42, %v4039_v48  ;;  %v6930_v33 = vld [vmem:[%s7126_s13 + $0x104] sm:$0x1]  ;;  %v5508_v27 = vrot.slane %v1324_v13, 9 }
  0xe7   : > { %6447 = vmatmul.mubr.msk.bf16.gmra.mrb[16].mxu0 %vm791_vm3, %v6865_v19  ;;  %v4007_v19 = vsel %vm7151_vm4, %v4002_v39, %v4006_v14  ;;  %v8022_v53 = vsel %vm7364_vm7, %v5505_v51, %v1494_v62  ;;  %v4057_v39 = vor.u32 %v4056_v45, %v4053_v17  ;;  %v5507_v14 = vrot.slane %v1323_v37, 9  ;;  %v8045_v44 = vld [vmem:[%s7126_s13 + $0x74] sm:$0x1]  ;;  %v6932_v2 = vld [vmem:[%s9001_s1 + $0x10] sm:$0xf] }
  0xe8   : > { %6450 = vmatprep.mubr.msk.bf16.mxu0 %vm791_vm3, %v6866_v50  ;;  %v8010_v50 = vsel %vm7364_vm7, %v5504_v1, %v1490_v31  ;;  %v8029_v1 = vrot.slane %v4029_v12, 4  ;;  %v8033_v31 = vsel %vm7364_vm7, %v5506_v30, %v1498_v16  ;;  %v1502_v34 = vrot.slane %v6930_v33, 5  ;;  %v6931_v30 = vld [vmem:[%s7126_s13 + $0x10c] sm:$0x1]  ;;  %9026 = vst [vmem:[#allocation8_spill] sm:$0xff] %v8045_v44 }
  0xe9   : > { %v1506_v51 = vrot.slane %v6931_v30, 5  ;;  %v4065_v3 = vshrl.u32 %v5890_v15, 16  ;;  %v8051_v6 = vcombine.low %v3993_v58, %v4007_v19  ;;  %v4079_v12 = vshrl.u32 %v5892_v23, 16  ;;  %v5894_v16 = vld [vmem:[%s7126_s13 + $0x80] sm:$0xf] }
  0xea   : > { %v4082_v25 = vshll.u32 %v5892_v23, 16  ;;  %v8067_v17 = vrot.slane %v4046_v59, 5  ;;  %v5896_v45 = vld [vmem:[%s7126_s13 + $0x88] sm:$0xf]  ;;  %v8073_v58 = vrot.slane %v4057_v39, 4  ;;  %v8075_v19 = vrot.slane %v4060_v46, 5 }
  0xeb   : > { %6295 = vmatmul.mubr.msk.bf16.vlgmr.msra.gmra.mrb[0].mxu1 %vm791_vm3, %v9024_v28  ;;  %v4074_v37 = vshll.u32 %v8045_v44, 16  ;;  %v5898_v13 = vld [vmem:[%s7126_s13 + $0x90] sm:$0xf]  ;;  %v8082_v28 = vsel %vm7364_vm7, %v5507_v14, %v1502_v34  ;;  %v8086_v59 = vsel %vm7364_vm7, %v5508_v27, %v1506_v51  ;;  %v8089_v23 = vld [vmem:[%s7126_s13 + $0x7c] sm:$0x1]  ;;  %v4081_v39 = vrot.slane %v4079_v12, 4 }
  0xec   : > { %6327 = vmatpush3.bf16.msra.mxu1 %v7801_v60  ;;  %6298 = vmatprep.mubr.msk.bf16.mxu1 %vm791_vm3, %v9025_v21  ;;  %v4068_v60 = vshll.u32 %v5890_v15, 16  ;;  %v6869_v15 = vld [vmem:[%s7126_s13 + $0x110] ss:$8 sps:$4 sm:$0xff]   ;;  %9027 = vst [vmem:[#allocation9_spill] sm:$0xff] %v8089_v23  ;;  %v4067_v21 = vrot.slane %v4065_v3, 4  ;;  %v4084_v33 = vrot.slane %v4082_v25, 5  ;;  %v9028_v14 = vcombine.low %v7776_v11, %v7780_v52 }
  0xed   : > { %6793 = vmatprep.subr.msk.bf16.mxu1 %vm840_vm0, %v6932_v2  ;;  %v6870_v46 = vld [vmem:[%s7126_s13 + $0x120] ss:$8 sps:$4 sm:$0xff]   ;;  %v4093_v30 = vshrl.u32 %v5894_v16, 16  ;;  %v4096_v2 = vshll.u32 %v5894_v16, 16  ;;  %v5900_v42 = vld [vmem:[%s7126_s13 + $0x98] sm:$0xf]  ;;  %v9029_v12 = vcombine.low %v7816_v54, %v7820_v7 }
  0xee   : > { %v1326_v34 = vld [vmem:[%s7126_s13 + $0x118] sm:$0xe]  ;;  %v4107_v27 = vshrl.u32 %v5896_v45, 16  ;;  %v4110_v51 = vshll.u32 %v5896_v45, 16  ;;  %v4121_v3 = vshrl.u32 %v5898_v13, 16  ;;  %v8111_v25 = vrot.slane %v4074_v37, 5 }
  0xef   : > { %6451 = vmatmul.mubr.msk.bf16.gmra.mrb[20].mxu0 %vm791_vm3, %v6867_v56  ;;  %v8071_v56 = vrot.slane %v4043_v36, 4  ;;  %v1325_v36 = vld [vmem:[%s7126_s13 + $0x110] sm:$0xe]  ;;  %v4088_v16 = vshll.u32 %v8089_v23, 16  ;;  %v8115_v54 = vld [vmem:[%s7126_s13 + $0x84] sm:$0x1]  ;;  %v4085_v62 = vor.u32 %v4084_v33, %v4081_v39 }
  0xf0   : > { %6454 = vmatprep.mubr.msk.bf16.mxu0 %vm791_vm3, %v6868_v55  ;;  %v4070_v55 = vrot.slane %v4068_v60, 5  ;;  %v4124_v60 = vshll.u32 %v5898_v13, 16  ;;  %v5509_v13 = vrot.slane %v1325_v36, 9  ;;  %v4135_v7 = vshrl.u32 %v5900_v42, 16  ;;  %v6933_v11 = vld [vmem:[%s7126_s13 + $0x114] sm:$0x1] }
  0xf1   : > { %v1510_v57 = vrot.slane %v6933_v11, 5  ;;  %v8120_v48 = vld [vmem:[%s7126_s13 + $0x8c] sm:$0x1]  ;;  %v4095_v52 = vrot.slane %v4093_v30, 4  ;;  %v4098_v37 = vrot.slane %v4096_v2, 5  ;;  %v4109_v23 = vrot.slane %v4107_v27, 4 }
  0xf2   : > { %v4071_v45 = vor.u32 %v4070_v55, %v4067_v21  ;;  %v4112_v44 = vrot.slane %v4110_v51, 5  ;;  %v8124_v21 = vld [vmem:[%s7126_s13 + $0x94] sm:$0x1]  ;;  %v4123_v55 = vrot.slane %v4121_v3, 4  ;;  %v4126_v36 = vrot.slane %v4124_v60, 5 }
  0xf3   : > { %6299 = vmatmul.mubr.msk.bf16.gmra.mrb[4].mxu1 %vm791_vm3, %v9028_v14  ;;  %v4138_v14 = vshll.u32 %v5900_v42, 16  ;;  %9030 = vst [vmem:[#allocation10_spill] sm:$0xff] %v8124_v21  ;;  %v8127_v42 = vrot.slane %v4088_v16, 5  ;;  %v5510_v39 = vrot.slane %v1326_v34, 9  ;;  %v5904_v33 = vld [vmem:[%s7126_s13 + $0xb8] sm:$0xf]  ;;  %v8135_v3 = vsel %vm7364_vm7, %v5509_v13, %v1510_v57 }
  0xf4   : > { %6302 = vmatprep.mubr.msk.bf16.mxu1 %vm791_vm3, %v9029_v12  ;;  %v5902_v12 = vld [vmem:[%s7126_s13 + $0xb0] sm:$0xf]  ;;  %v8130_v2 = vrot.slane %v4071_v45, 4  ;;  %v4137_v51 = vrot.slane %v4135_v7, 4  ;;  %v4102_v60 = vshll.u32 %v8115_v54, 16  ;;  %v4116_v34 = vshll.u32 %v8120_v48, 16 }
  0xf5   : > { %v4149_v11 = vshrl.u32 %v5902_v12, 16  ;;  %v4152_v30 = vshll.u32 %v5902_v12, 16  ;;  %v4140_v43 = vrot.slane %v4138_v14, 5  ;;  %v8140_v16 = vld [vmem:[%s7126_s13 + $0x9c] sm:$0x1]  ;;  %v9032_v45 = vcombine.low %v7824_v24, %v7833_v47 }
  0xf6   : > { %9031 = vst [vmem:[#allocation11_spill] sm:$0xff] %v8140_v16  ;;  %v6871_v12 = vld [vmem:[%s7126_s13 + $0x130] ss:$8 sps:$4 sm:$0xff]   ;;  %v8147_v7 = vrot.slane %v4085_v62, 4  ;;  %v4113_v14 = vor.u32 %v4112_v44, %v4109_v23  ;;  %v8150_v57 = vld [vmem:[%s7126_s13 + $0x120] sm:$0xe]  ;;  %v4077_v44 = vsel %vm7151_vm4, %v8130_v2, %v8111_v25 }
  0xf7   : > { %6455 = vmatmul.mubr.msk.bf16.gmra.mrb[24].mxu0 %vm791_vm3, %v6869_v15  ;;  %v6934_v15 = vld [vmem:[%s7126_s13 + $0x11c] sm:$0x1]  ;;  %v4130_v13 = vshll.u32 %v8124_v21, 16  ;;  %v4151_v24 = vrot.slane %v4149_v11, 4  ;;  %v4154_v47 = vrot.slane %v4152_v30, 5  ;;  %v4166_v62 = vshll.u32 %v5904_v33, 16 }
  0xf8   : > { %6458 = vmatprep.mubr.msk.bf16.mxu0 %vm791_vm3, %v6870_v46  ;;  %v1514_v27 = vrot.slane %v6934_v15, 5  ;;  %v4099_v46 = vor.u32 %v4098_v37, %v4095_v52  ;;  %v4127_v52 = vor.u32 %v4126_v36, %v4123_v55  ;;  %v9033_v37 = vcombine.low %v7855_v9, %v7859_v40  ;;  %v8158_v15 = vld [vmem:[%s7126_s13 + $0xb4] sm:$0x1]  ;;  %v1328_v55 = vld [vmem:[%s7126_s13 + $0x128] sm:$0xe] }
  0xf9   : > { %9034 = vst [vmem:[#allocation12_spill] sm:$0xff] %v8158_v15  ;;  %v4141_v9 = vor.u32 %v4140_v43, %v4137_v51  ;;  %v4144_v40 = vshll.u32 %v8140_v16, 16  ;;  %v5906_v36 = vld [vmem:[%s7126_s13 + $0xc0] sm:$0xf]  ;;  %v4104_v30 = vrot.slane %v4102_v60, 5  ;;  %v4114_v25 = vrot.slane %v4113_v14, 4 }
  0xfa   : > { %v8166_v23 = vsel %vm7364_vm7, %v5510_v39, %v1514_v27  ;;  %v4100_v11 = vrot.slane %v4099_v46, 4  ;;  %v4128_v2 = vrot.slane %v4127_v52, 4  ;;  %v4132_v21 = vrot.slane %v4130_v13, 5  ;;  %v8174_v39 = vld [vmem:[%s7126_s13 + $0xbc] sm:$0x1] }
  0xfb   : > { %6303 = vmatmul.mubr.msk.bf16.gmra.mrb[8].mxu1 %vm791_vm3, %v9032_v45  ;;  %v4163_v45 = vshrl.u32 %v5904_v33, 16  ;;  %v5511_v33 = vrot.slane %v8150_v57, 9  ;;  %v4158_v43 = vshll.u32 %v8158_v15, 16  ;;  %v4155_v27 = vor.u32 %v4154_v47, %v4151_v24  ;;  %v8180_v60 = vld [vmem:[%s7126_s13 + $0xc4] sm:$0x1] }
  0xfc   : > { %6306 = vmatprep.mubr.msk.bf16.mxu1 %vm791_vm3, %v9033_v37  ;;  %v4118_v37 = vrot.slane %v4116_v34, 5  ;;  %v4168_v46 = vrot.slane %v4166_v62, 5  ;;  %v4177_v34 = vshrl.u32 %v5906_v36, 16  ;;  %v6935_v57 = vld [vmem:[%s7126_s13 + $0x124] sm:$0x1]  ;;  %v4142_v16 = vrot.slane %v4141_v9, 4 }
  0xfd   : > { %v4165_v51 = vrot.slane %v4163_v45, 4  ;;  %v4146_v14 = vrot.slane %v4144_v40, 5  ;;  %v5908_v52 = vld [vmem:[%s7126_s13 + $0xc8] sm:$0xf]  ;;  %v4180_v13 = vshll.u32 %v5906_v36, 16  ;;  %v4091_v15 = vsel %vm7151_vm4, %v8147_v7, %v8127_v42 }
  0xfe   : > { %v5512_v24 = vrot.slane %v1328_v55, 9  ;;  %v6936_v47 = vld [vmem:[%s7126_s13 + $0x12c] sm:$0x1]  ;;  %v9035_v62 = vcombine.low %v7863_v8, %v7867_v0  ;;  %v4119_v9 = vsel %vm7151_vm4, %v4114_v25, %v4118_v37  ;;  %v4133_v40 = vsel %vm7151_vm4, %v4128_v2, %v4132_v21 }
  0xff   : > { %6459 = vmatmul.mubr.msk.bf16.gmra.mrb[28].mxu0 %vm791_vm3, %v6871_v12  ;;  %v1518_v12 = vrot.slane %v6935_v57, 5  ;;  %v1522_v45 = vrot.slane %v6936_v47, 5  ;;  %v8199_v36 = vrot.slane %v4158_v43, 5  ;;  %v4172_v42 = vshll.u32 %v8174_v39, 16  ;;  %v8264_v57 = vld [vmem:[%s7126_s13 + $0xd4] sm:$0x1] }
 0x100   : > { %6464 = vmatprep.mubr.msk.bf16.mxu0 %vm791_vm3, %v7935_v4  ;;  %v4105_v4 = vsel %vm7151_vm4, %v4100_v11, %v4104_v30  ;;  %v9036_v7 = vcombine.low %v7884_v18, %v7888_v22  ;;  %v8206_v55 = vrot.slane %v4155_v27, 4  ;;  %v4169_v8 = vor.u32 %v4168_v46, %v4165_v51  ;;  %v5910_v51 = vld [vmem:[%s7126_s13 + $0xd0] sm:$0xf]  ;;  %v5914_v46 = vld [vmem:[%s7126_s13 + $0xe0] sm:$0xf] }
 0x101   : > { %v4179_v0 = vrot.slane %v4177_v34, 4  ;;  %v4186_v11 = vshll.u32 %v8180_v60, 16  ;;  %v4147_v21 = vsel %vm7151_vm4, %v4142_v16, %v4146_v14  ;;  %v4182_v30 = vrot.slane %v4180_v13, 5  ;;  %v5916_v34 = vld [vmem:[%s7126_s13 + $0xe8] sm:$0xf] }
 0x102   : > { %v4191_v37 = vshrl.u32 %v5908_v52, 16  ;;  %v4194_v25 = vshll.u32 %v5908_v52, 16  ;;  %v9037_v18 = vsel %vm7151_vm4, %v8029_v1, %v8018_v41  ;;  %v9038_v22 = vsel %vm7151_vm4, %v8014_v10, %v8016_v38 }
 0x103   : > { %6307 = vmatmul.mubr.msk.bf16.gmra.mrb[12].mxu1 %vm791_vm3, %v9035_v62  ;;  %v5938_v2 = vcombine.low %v9038_v22, %v9037_v18  ;;  %v9039_v16 = vsel %vm7151_vm4, %v8073_v58, %v8075_v19  ;;  %v9040_v43 = vsel %vm7151_vm4, %v8071_v56, %v8067_v17  ;;  %v5527_v41 = vcombine.low %v8082_v28, %v8086_v59  ;;  %v8251_v58 = vld [vmem:[%s7126_s13 + $0xcc] sm:$0x1]  ;;  %v5912_v19 = vld [vmem:[%s7126_s13 + $0xd8] sm:$0xf] }
 0x104   : > { %6310 = vmatprep.mubr.msk.bf16.mxu1 %vm791_vm3, %v9036_v7  ;;  %v5939_v27 = vcombine.low %v9040_v43, %v9039_v16  ;;  %v5528_v1 = vcombine.low %v8135_v3, %v8166_v23  ;;  %v8238_v10 = vcombine.low %v4077_v44, %v4091_v15  ;;  %v8240_v38 = vcombine.low %v4105_v4, %v4119_v9  ;;  %v5920_v4 = vld [vmem:[%s7126_s13 + $0x108] sm:$0xf]  ;;  %v8293_v16 = vld [vmem:[%s7126_s13 + $0xec] sm:$0x1] }
 0x105   : > { %v8244_v17 = vsel %vm7364_vm7, %v5511_v33, %v1518_v12  ;;  %v8248_v56 = vsel %vm7364_vm7, %v5512_v24, %v1522_v45  ;;  %v4170_v15 = vrot.slane %v4169_v8, 4  ;;  %v4174_v44 = vrot.slane %v4172_v42, 5  ;;  %v5918_v12 = vld [vmem:[%s7126_s13 + $0x100] sm:$0xf] }
 0x106   : > { %v8261_v33 = vrot.slane %v4186_v11, 5  ;;  %v4161_v14 = vsel %vm7151_vm4, %v8206_v55, %v8199_v36  ;;  %v4183_v52 = vor.u32 %v4182_v30, %v4179_v0  ;;  %v4196_v13 = vrot.slane %v4194_v25, 5  ;;  %v8284_v0 = vld [vmem:[%s7126_s13 + $0xdc] sm:$0x1]  ;;  %v8290_v30 = vld [vmem:[%s7126_s13 + $0xe4] sm:$0x1] }
 0x107   : > { %6465 = vmatmul.mubr.msk.bf16.vlgmr.msra.gmra.mrb[0].mxu0 %vm791_vm3, %v7992_v20  ;;  %v8259_v20 = vcombine.low %v4133_v40, %v4147_v21  ;;  %v4208_v24 = vshll.u32 %v5910_v51, 16  ;;  %v4219_v47 = vshrl.u32 %v5912_v19, 16  ;;  %v4222_v45 = vshll.u32 %v5912_v19, 16 }
 0x108   : > { %6497 = vmatpush3.bf16.msra.mxu0 %v7942_v29  ;;  %6468 = vmatprep.mubr.msk.bf16.mxu0 %vm791_vm3, %v8051_v6  ;;  %v4193_v29 = vrot.slane %v4191_v37, 4  ;;  %v4205_v6 = vshrl.u32 %v5910_v51, 16  ;;  %v9041_v62 = vcombine.low %v7902_v5, %v7911_v35  ;;  %v4233_v9 = vshrl.u32 %v5914_v46, 16 }
 0x109   : > { %v4236_v40 = vshll.u32 %v5914_v46, 16  ;;  %v4247_v42 = vshrl.u32 %v5916_v34, 16  ;;  %v4250_v7 = vshll.u32 %v5916_v34, 16  ;;  %v9042_v36 = vcombine.low %v7954_v49, %v7962_v26  ;;  %v8297_v34 = vld [vmem:[%s7126_s13 + $0x104] sm:$0x1] }
 0x10a   : > { %v4175_v55 = vsel %vm7151_vm4, %v4170_v15, %v4174_v44  ;;  %v4200_v8 = vshll.u32 %v8251_v58, 16  ;;  %v4261_v5 = vshrl.u32 %v5918_v12, 16  ;;  %v4264_v35 = vshll.u32 %v5918_v12, 16 }
 0x10b   : > { %6311 = vmatmul.mubr.msk.bf16.gmra.mrb[16].mxu1 %vm791_vm3, %v9041_v62  ;;  %v8286_v11 = vrot.slane %v4183_v52, 4  ;;  %v4214_v21 = vshll.u32 %v8264_v57, 16  ;;  %v4275_v49 = vshrl.u32 %v5920_v4, 16  ;;  %v4278_v26 = vshll.u32 %v5920_v4, 16  ;;  %v5922_v4 = vld [vmem:[%s7126_s13 + $0x110] sm:$0xf] }
 0x10c   : > { %6314 = vmatprep.mubr.msk.bf16.mxu1 %vm791_vm3, %v9042_v36  ;;  %v4207_v37 = vrot.slane %v4205_v6, 4  ;;  %v4210_v25 = vrot.slane %v4208_v24, 5  ;;  %v4221_v18 = vrot.slane %v4219_v47, 4  ;;  %v4224_v22 = vrot.slane %v4222_v45, 5  ;;  %v5924_v36 = vld [vmem:[%s7126_s13 + $0x118] sm:$0xf] }
 0x10d   : > { %v4235_v43 = vrot.slane %v4233_v9, 4  ;;  %v4238_v51 = vrot.slane %v4236_v40, 5  ;;  %v4249_v19 = vrot.slane %v4247_v42, 4  ;;  %v4252_v46 = vrot.slane %v4250_v7, 5 }
 0x10e   : > { %v8300_v15 = vcombine.low %v4161_v14, %v4175_v55  ;;  %v4197_v44 = vor.u32 %v4196_v13, %v4193_v29  ;;  %v4263_v12 = vrot.slane %v4261_v5, 4  ;;  %v4266_v52 = vrot.slane %v4264_v35, 5  ;;  %v8314_v29 = vld [vmem:[%s7126_s13 + $0x10c] sm:$0x1] }
 0x10f   : > { %6469 = vmatmul.mubr.msk.bf16.gmra.mrb[4].mxu0 %vm791_vm3, %v5938_v2  ;;  %v8303_v6 = vrot.slane %v4200_v8, 5  ;;  %v4228_v2 = vshll.u32 %v8284_v0, 16  ;;  %v4277_v24 = vrot.slane %v4275_v49, 4  ;;  %v4280_v47 = vrot.slane %v4278_v26, 5 }
 0x110   : > { %6472 = vmatprep.mubr.msk.bf16.mxu0 %vm791_vm3, %v5939_v27  ;;  %v4189_v45 = vsel %vm7151_vm4, %v8286_v11, %v8261_v33  ;;  %v4211_v62 = vor.u32 %v4210_v25, %v4207_v37  ;;  %v8310_v27 = vrot.slane %v4214_v21, 5  ;;  %v4242_v14 = vshll.u32 %v8290_v30, 16 }
 0x111   : > { %v9043_v13 = vcombine.low %v8006_v63, %v8010_v50  ;;  %v4225_v9 = vor.u32 %v4224_v22, %v4221_v18  ;;  %v4239_v40 = vor.u32 %v4238_v51, %v4235_v43  ;;  %v4253_v42 = vor.u32 %v4252_v46, %v4249_v19  ;;  %v8332_v46 = vld [vmem:[%s7126_s13 + $0x114] sm:$0x1] }
 0x112   : > { %v4256_v7 = vshll.u32 %v8293_v16, 16  ;;  %v9044_v55 = vcombine.low %v8022_v53, %v8033_v31  ;;  %v4267_v8 = vor.u32 %v4266_v52, %v4263_v12  ;;  %v4270_v5 = vshll.u32 %v8297_v34, 16  ;;  %v5926_v53 = vld [vmem:[%s7126_s13 + $0x120] sm:$0xf]  ;;  %v8337_v52 = vld [vmem:[%s7126_s13 + $0x11c] sm:$0x1] }
 0x113   : > { %6315 = vmatmul.mubr.msk.bf16.gmra.mrb[20].mxu1 %vm791_vm3, %v9043_v13  ;;  %v4289_v35 = vshrl.u32 %v5922_v4, 16  ;;  %v4292_v63 = vshll.u32 %v5922_v4, 16  ;;  %v4198_v50 = vrot.slane %v4197_v44, 4  ;;  %v4230_v21 = vrot.slane %v4228_v2, 5 }
 0x114   : > { %6318 = vmatprep.mubr.msk.bf16.mxu1 %vm791_vm3, %v9044_v55  ;;  %v4281_v49 = vor.u32 %v4280_v47, %v4277_v24  ;;  %v4284_v26 = vshll.u32 %v8314_v29, 16  ;;  %v4212_v37 = vrot.slane %v4211_v62, 4  ;;  %v4244_v25 = vrot.slane %v4242_v14, 5  ;;  %v8340_v62 = vld [vmem:[%s7126_s13 + $0x124] sm:$0x1] }
 0x115   : > { %v4303_v18 = vshrl.u32 %v5924_v36, 16  ;;  %v4306_v22 = vshll.u32 %v5924_v36, 16  ;;  %v4226_v31 = vrot.slane %v4225_v9, 4  ;;  %v4240_v43 = vrot.slane %v4239_v40, 4 }
 0x116   : > { %v4254_v51 = vrot.slane %v4253_v42, 4  ;;  %v4258_v19 = vrot.slane %v4256_v7, 5  ;;  %v4268_v44 = vrot.slane %v4267_v8, 4  ;;  %v4272_v12 = vrot.slane %v4270_v5, 5  ;;  %v5928_v42 = vld [vmem:[%s7126_s13 + $0x128] sm:$0xf] }
 0x117   : > { %6473 = vmatmul.mubr.msk.bf16.gmra.mrb[8].mxu0 %vm791_vm3, %v8238_v10  ;;  %v4291_v4 = vrot.slane %v4289_v35, 4  ;;  %v4294_v2 = vrot.slane %v4292_v63, 5  ;;  %v4282_v24 = vrot.slane %v4281_v49, 4  ;;  %v4286_v47 = vrot.slane %v4284_v26, 5  ;;  %v6872_v26 = vld [vmem:[%s7126_s13 + $0x8] ss:$8 sps:$4 sm:$0xff]  }
 0x118   : > { %6476 = vmatprep.mubr.msk.bf16.mxu0 %vm791_vm3, %v8240_v38  ;;  %v4317_v10 = vshrl.u32 %v5926_v53, 16  ;;  %v4320_v14 = vshll.u32 %v5926_v53, 16  ;;  %v4203_v13 = vsel %vm7151_vm4, %v4198_v50, %v8303_v6  ;;  %v4217_v38 = vsel %vm7151_vm4, %v4212_v37, %v8310_v27  ;;  %v9045_v50 = vld [vmem:[#allocation6_spill] sm:$0xff] }
 0x119   : > { %v4305_v9 = vrot.slane %v4303_v18, 4  ;;  %v4308_v40 = vrot.slane %v4306_v22, 5  ;;  %v4231_v7 = vsel %vm7151_vm4, %v4226_v31, %v4230_v21  ;;  %v4245_v36 = vsel %vm7151_vm4, %v4240_v43, %v4244_v25  ;;  %v8380_v25 = vld [vmem:[%s7126_s13 + $0x12c] sm:$0x1]  ;;  %v5930_v43 = vld [vmem:[%s7126_s13 + $0x130] sm:$0xf] }
 0x11a   : > { %v4259_v6 = vsel %vm7151_vm4, %v4254_v51, %v4258_v19  ;;  %v4298_v27 = vshll.u32 %v8332_v46, 16  ;;  %v4273_v28 = vsel %vm7151_vm4, %v4268_v44, %v4272_v12  ;;  %v4295_v59 = vor.u32 %v4294_v2, %v4291_v4  ;;  %v5979_v51 = vld [vmem:[%s7126_s13 + $0x80] sm:$0xe]  ;;  %v5980_v44 = vld [vmem:[%s7126_s13 + $0x88] sm:$0xe] }
 0x11b   : > { %6319 = vmatmul.mubr.msk.bf16.gmra.mrb[24].mxu1 %vm791_vm3, %v5527_v41  ;;  %v4312_v41 = vshll.u32 %v8337_v52, 16  ;;  %v4326_v55 = vshll.u32 %v8340_v62, 16  ;;  %v4287_v8 = vsel %vm7151_vm4, %v4282_v24, %v4286_v47  ;;  %v4319_v5 = vrot.slane %v4317_v10, 4  ;;  %v5981_v12 = vld [vmem:[%s7126_s13 + $0x90] sm:$0xe] }
 0x11c   : > { %6322 = vmatprep.mubr.msk.bf16.mxu1 %vm791_vm3, %v5528_v1  ;;  %v4322_v35 = vrot.slane %v4320_v14, 5  ;;  %v4331_v63 = vshrl.u32 %v5928_v42, 16  ;;  %v9046_v3 = vshll.u32 %v9045_v50, 16  ;;  %v9047_v1 = vld [vmem:[#allocation7_spill] sm:$0xff]  ;;  %v4309_v37 = vor.u32 %v4308_v40, %v4305_v9  ;;  %v5982_v2 = vld [vmem:[%s7126_s13 + $0x98] sm:$0xe] }
 0x11d   : > { %v9048_v21 = vshll.u32 %v9047_v1, 16  ;;  %v5529_v18 = vcombine.low %v8244_v17, %v8248_v56  ;;  %v5944_v22 = vcombine.low %v4189_v45, %v4203_v13  ;;  %v5945_v53 = vcombine.low %v4217_v38, %v4231_v7 }
 0x11e   : > { %v8372_v23 = vrot.slane %v9046_v3, 5  ;;  %v4300_v31 = vrot.slane %v4298_v27, 5  ;;  %v8395_v19 = vcombine.low %v4245_v36, %v4259_v6  ;;  %v8397_v17 = vcombine.low %v4273_v28, %v4287_v8  ;;  %v9049_v6 = vld [vmem:[#allocation10_spill] sm:$0xff]  ;;  %v6873_v8 = vld [vmem:[%s7126_s13 + $0x18] ss:$8 sps:$4 sm:$0xff]  }
 0x11f   : > { %v8376_v49 = vrot.slane %v9048_v21, 5  ;;  %6477 = vmatmul.mubr.msk.bf16.gmra.mrb[12].mxu0 %vm791_vm3, %v8259_v20  ;;  %v4296_v56 = vrot.slane %v4295_v59, 4  ;;  %v4314_v20 = vrot.slane %v4312_v41, 5  ;;  %v4323_v4 = vor.u32 %v4322_v35, %v4319_v5  ;;  %v9050_v41 = vld [vmem:[#allocation11_spill] sm:$0xff] }
 0x120   : > { %6480 = vmatprep.mubr.msk.bf16.mxu0 %vm791_vm3, %v8300_v15  ;;  %v8401_v33 = vrot.slane %v4326_v55, 5  ;;  %v8403_v11 = vrot.slane %v4331_v63, 4  ;;  %v4334_v45 = vshll.u32 %v5928_v42, 16  ;;  %v4310_v24 = vrot.slane %v4309_v37, 4  ;;  %v8408_v15 = vld [vmem:[%s7126_s13 + $0x134] sm:$0x1] }
 0x121   : > { %v4340_v47 = vshll.u32 %v8380_v25, 16  ;;  %v6011_v10 = vrot.slane %v5979_v51, 9  ;;  %v4812_v14 = vrot.slane %v8115_v54, 5  ;;  %v4345_v13 = vshrl.u32 %v5930_v43, 16  ;;  %v5932_v42 = vld [vmem:[%s7126_s13 + $0x138] sm:$0xf] }
 0x122   : > { %v6012_v38 = vrot.slane %v5980_v44, 9  ;;  %v4816_v9 = vrot.slane %v8120_v48, 5  ;;  %v6013_v40 = vrot.slane %v5981_v12, 9  ;;  %v4348_v7 = vshll.u32 %v5930_v43, 16  ;;  %v5983_v3 = vld [vmem:[%s7126_s13 + $0xb0] sm:$0xe] }
 0x123   : > { %6323 = vmatmul.mubr.msk.bf16.gmra.mrb[28].mxu1 %vm791_vm3, %v5529_v18  ;;  %v8417_v36 = vsel %vm7364_vm7, %v6011_v10, %v4812_v14  ;;  %v4820_v27 = vrot.slane %v9049_v6, 5  ;;  %v6014_v54 = vrot.slane %v5982_v2, 9  ;;  %v4336_v28 = vrot.slane %v4334_v45, 5  ;;  %v5984_v18 = vld [vmem:[%s7126_s13 + $0xb8] sm:$0xe] }
 0x124   : > { %6328 = vmatprep.mubr.msk.bf16.mxu1 %vm791_vm3, %v6872_v26  ;;  %v4354_v59 = vshll.u32 %v8408_v15, 16  ;;  %v8423_v48 = vsel %vm7364_vm7, %v6012_v38, %v4816_v9  ;;  %v4824_v55 = vrot.slane %v9050_v41, 5  ;;  %v4301_v5 = vsel %vm7151_vm4, %v4296_v56, %v4300_v31  ;;  %v5647_v31 = vld [vmem:[%s7126_s13 + $0xb8] sm:$0xf]  ;;  %v6874_v43 = vld [vmem:[%s7126_s13 + $0x28] ss:$8 sps:$4 sm:$0xff]  }
 0x125   : > { %v8429_v35 = vrot.slane %v4323_v4, 4  ;;  %v6038_v63 = vcombine.low %v8417_v36, %v8423_v48  ;;  %v8435_v50 = vsel %vm7364_vm7, %v6013_v40, %v4820_v27  ;;  %v4315_v1 = vsel %vm7151_vm4, %v4310_v24, %v4314_v20  ;;  %v9051_v45 = vld [vmem:[#allocation12_spill] sm:$0xff]  ;;  %v5649_v24 = vld [vmem:[%s7126_s13 + $0xc0] sm:$0xf] }
 0x126   : > { %v4359_v21 = vshrl.u32 %v5932_v42, 16  ;;  %v4362_v26 = vshll.u32 %v5932_v42, 16  ;;  %v8443_v37 = vsel %vm7364_vm7, %v6014_v54, %v4824_v55  ;;  %v8449_v51 = vrot.slane %v4340_v47, 5  ;;  %v8461_v14 = vld [vmem:[%s7126_s13 + $0x13c] sm:$0x1] }
 0x127   : > { %6481 = vmatmul.mubr.msk.bf16.gmra.mrb[16].mxu0 %vm791_vm3, %v5944_v22  ;;  %v4347_v56 = vrot.slane %v4345_v13, 4  ;;  %v4350_v22 = vrot.slane %v4348_v7, 5  ;;  %v6039_v20 = vcombine.low %v8435_v50, %v8443_v37  ;;  %v4337_v44 = vor.u32 %v4336_v28, %v8403_v11  ;;  %v5985_v42 = vld [vmem:[%s7126_s13 + $0xc0] sm:$0xe]  ;;  %v5986_v28 = vld [vmem:[%s7126_s13 + $0xc8] sm:$0xe] }
 0x128   : > { %6484 = vmatprep.mubr.msk.bf16.mxu0 %vm791_vm3, %v5945_v53  ;;  %v8454_v12 = vrot.slane %v4354_v59, 5  ;;  %v6015_v4 = vrot.slane %v5983_v3, 9  ;;  %v4828_v2 = vrot.slane %v9051_v45, 5  ;;  %v8458_v10 = vcombine.low %v4301_v5, %v4315_v1  ;;  %v9052_v7 = vld [vmem:[#allocation5_spill] sm:$0xff]  ;;  %v5967_v3 = vld [vmem:[%s7126_s13 + $0x10] sm:$0xe] }
 0x129   : > { %v6016_v53 = vrot.slane %v5984_v18, 9  ;;  %v4832_v47 = vrot.slane %v8174_v39, 5  ;;  %v2494_v13 = vshrl.u32 %v5647_v31, 16  ;;  %v4361_v38 = vrot.slane %v4359_v21, 4  ;;  %v6875_v59 = vld [vmem:[%s7126_s13 + $0x38] ss:$8 sps:$4 sm:$0xff]  }
 0x12a   : > { %v4364_v11 = vrot.slane %v4362_v26, 5  ;;  %v8467_v9 = vsel %vm7364_vm7, %v6015_v4, %v4828_v2  ;;  %v2497_v40 = vshll.u32 %v5647_v31, 16  ;;  %v2508_v27 = vshrl.u32 %v5649_v24, 16  ;;  %v6876_v4 = vld [vmem:[%s7126_s13 + $0x58] ss:$8 sps:$4 sm:$0xff]  }
 0x12b   : > { %6329 = vmatmul.mubr.msk.bf16.vlgmr.msra.gmra.mrb[0].mxu1 %vm791_vm3, %v6873_v8  ;;  %v8474_v6 = vsel %vm7364_vm7, %v6016_v53, %v4832_v47  ;;  %v2496_v39 = vrot.slane %v2494_v13, 4  ;;  %v2511_v54 = vshll.u32 %v5649_v24, 16  ;;  %v4338_v41 = vrot.slane %v4337_v44, 4  ;;  %v5987_v47 = vld [vmem:[%s7126_s13 + $0xd0] sm:$0xe] }
 0x12c   : > { %6531 = vmatpush3.bf16.msra.mxu1 %v9052_v7  ;;  %6332 = vmatprep.mubr.msk.bf16.mxu1 %vm791_vm3, %v6874_v43  ;;  %v4351_v55 = vor.u32 %v4350_v22, %v4347_v56  ;;  %v6040_v8 = vcombine.low %v8467_v9, %v8474_v6  ;;  %v2499_v5 = vrot.slane %v2497_v40, 5  ;;  %v2510_v1 = vrot.slane %v2508_v27, 4  ;;  %v5968_v43 = vld [vmem:[%s7126_s13 + $0x18] sm:$0xe]  ;;  %v5669_v37 = vld [vmem:[%s7126_s13 + $0x120] sm:$0xf] }
 0x12d   : > { %v2513_v21 = vrot.slane %v2511_v54, 5  ;;  %v6017_v26 = vrot.slane %v5985_v42, 9  ;;  %v4836_v18 = vrot.slane %v8180_v60, 5  ;;  %v4368_v31 = vshll.u32 %v8461_v14, 16  ;;  %v6938_v42 = vld [vmem:[%s7126_s13 + $0x1c] sm:$0x1] }
 0x12e   : > { %v2500_v44 = vor.u32 %v2499_v5, %v2496_v39  ;;  %v6018_v56 = vrot.slane %v5986_v28, 9  ;;  %v4840_v22 = vrot.slane %v8251_v58, 5  ;;  %v4329_v60 = vsel %vm7151_vm4, %v8429_v35, %v8401_v33  ;;  %v6937_v33 = vld [vmem:[%s7126_s13 + $0x14] sm:$0x1]  ;;  %v5988_v27 = vld [vmem:[%s7126_s13 + $0xd8] sm:$0xe] }
 0x12f   : > { %6485 = vmatmul.mubr.msk.bf16.gmra.mrb[20].mxu0 %vm791_vm3, %v8395_v19  ;;  %v4365_v45 = vor.u32 %v4364_v11, %v4361_v38  ;;  %v2514_v19 = vor.u32 %v2513_v21, %v2510_v1  ;;  %v8496_v2 = vsel %vm7364_vm7, %v6017_v26, %v4836_v18  ;;  %v4343_v58 = vsel %vm7151_vm4, %v4338_v41, %v8449_v51  ;;  %v6877_v1 = vld [vmem:[%s7126_s13 + $0x68] ss:$8 sps:$4 sm:$0xff]   ;;  %v5969_v26 = vld [vmem:[%s7126_s13 + $0x20] sm:$0xe] }
 0x130   : > { %6488 = vmatprep.mubr.msk.bf16.mxu0 %vm791_vm3, %v8397_v17  ;;  %v5999_v24 = vrot.slane %v5967_v3, 9  ;;  %v2501_v53 = vrot.slane %v2500_v44, 4  ;;  %v8503_v17 = vsel %vm7364_vm7, %v6018_v56, %v4840_v22  ;;  %v4764_v35 = vrot.slane %v6937_v33, 5  ;;  %v6878_v18 = vld [vmem:[%s7126_s13 + $0x78] ss:$8 sps:$4 sm:$0xff]  }
 0x131   : > { %v6000_v13 = vrot.slane %v5968_v43, 9  ;;  %v2515_v38 = vrot.slane %v2514_v19, 4  ;;  %v6041_v11 = vcombine.low %v8496_v2, %v8503_v17  ;;  %v4352_v40 = vrot.slane %v4351_v55, 4  ;;  %v5989_v44 = vld [vmem:[%s7126_s13 + $0xe0] sm:$0xe] }
 0x132   : > { %v4370_v51 = vrot.slane %v4368_v31, 5  ;;  %v4768_v7 = vrot.slane %v6938_v42, 5  ;;  %v2506_v39 = vsel %vm7151_vm4, %v2501_v53, %v8372_v23  ;;  %v5949_v54 = vcombine.low %v4329_v60, %v4343_v58  ;;  %v5970_v31 = vld [vmem:[%s7126_s13 + $0x28] sm:$0xe]  ;;  %v5971_v56 = vld [vmem:[%s7126_s13 + $0x30] sm:$0xe] }
 0x133   : > { %6333 = vmatmul.mubr.msk.bf16.gmra.mrb[4].mxu1 %vm791_vm3, %v6875_v59  ;;  %v4366_v28 = vrot.slane %v4365_v45, 4  ;;  %v2520_v59 = vsel %vm7151_vm4, %v2515_v38, %v8376_v49  ;;  %v6019_v41 = vrot.slane %v5987_v47, 9  ;;  %v4844_v5 = vrot.slane %v8264_v57, 5  ;;  %v6939_v19 = vld [vmem:[%s7126_s13 + $0x24] sm:$0x1] }
 0x134   : > { %6336 = vmatprep.mubr.msk.bf16.mxu1 %vm791_vm3, %v6876_v4  ;;  %v8519_v55 = vcombine.low %v2506_v39, %v2520_v59  ;;  %v6020_v3 = vrot.slane %v5988_v27, 9  ;;  %v4848_v23 = vrot.slane %v8284_v0, 5  ;;  %v4765_v21 = vsel %vm7364_vm7, %v5999_v24, %v4764_v35  ;;  %v5990_v4 = vld [vmem:[%s7126_s13 + $0xe8] sm:$0xe]  ;;  %v5972_v58 = vld [vmem:[%s7126_s13 + $0x38] sm:$0xe] }
 0x135   : > { %v4769_v49 = vsel %vm7364_vm7, %v6000_v13, %v4768_v7  ;;  %v8533_v57 = vsel %vm7364_vm7, %v6019_v41, %v4844_v5  ;;  %v4357_v0 = vsel %vm7151_vm4, %v4352_v40, %v8454_v12  ;;  %v6001_v45 = vrot.slane %v5969_v26, 9  ;;  %v6940_v35 = vld [vmem:[%s7126_s13 + $0x2c] sm:$0x1]  ;;  %v6941_v40 = vld [vmem:[%s7126_s13 + $0x34] sm:$0x1] }
 0x136   : > { %v8545_v43 = vsel %vm7364_vm7, %v6020_v3, %v4848_v23  ;;  %v6032_v60 = vcombine.low %v4765_v21, %v4769_v49  ;;  %v4772_v12 = vrot.slane %v6939_v19, 5  ;;  %v6002_v53 = vrot.slane %v5970_v31, 9  ;;  %v6942_v39 = vld [vmem:[%s7126_s13 + $0x3c] sm:$0x1]  ;;  %v6879_v59 = vld [vmem:[%s7126_s13 + $0x88] ss:$8 sps:$4 sm:$0xff]  }
 0x137   : > { %6489 = vmatmul.mubr.msk.bf16.gmra.mrb[24].mxu0 %vm791_vm3, %v8458_v10  ;;  %v4371_v10 = vsel %vm7151_vm4, %v4366_v28, %v4370_v51  ;;  %v6042_v22 = vcombine.low %v8533_v57, %v8545_v43  ;;  %v6021_v47 = vrot.slane %v5989_v44, 9  ;;  %v4852_v33 = vrot.slane %v8290_v30, 5  ;;  %v5991_v28 = vld [vmem:[%s7126_s13 + $0x100] sm:$0xe]  ;;  %v5992_v3 = vld [vmem:[%s7126_s13 + $0x108] sm:$0xe] }
 0x138   : > { %6492 = vmatprep.mubr.msk.bf16.mxu0 %vm791_vm3, %v5949_v54  ;;  %v5950_v24 = vcombine.low %v4357_v0, %v4371_v10  ;;  %v4776_v13 = vrot.slane %v6940_v35, 5  ;;  %v6003_v38 = vrot.slane %v5971_v56, 9  ;;  %v4780_v51 = vrot.slane %v6941_v40, 5  ;;  %v5973_v41 = vld [vmem:[%s7126_s13 + $0x40] sm:$0xe] }
 0x139   : > { %v6022_v42 = vrot.slane %v5990_v4, 9  ;;  %v6004_v7 = vrot.slane %v5972_v58, 9  ;;  %v4784_v27 = vrot.slane %v6942_v39, 5  ;;  %v8562_v54 = vsel %vm7364_vm7, %v6021_v47, %v4852_v33  ;;  %v6880_v23 = vld [vmem:[%s7126_s13 + $0xa8] ss:$8 sps:$4 sm:$0xff]  }
 0x13a   : > { %v4856_v30 = vrot.slane %v8293_v16, 5  ;;  %v4777_v16 = vsel %vm7364_vm7, %v6002_v53, %v4776_v13  ;;  %v5974_v21 = vld [vmem:[%s7126_s13 + $0x48] sm:$0xe]  ;;  %v4781_v26 = vsel %vm7364_vm7, %v6003_v38, %v4780_v51  ;;  %v5975_v0 = vld [vmem:[%s7126_s13 + $0x60] sm:$0xe]  ;;  %v6023_v10 = vrot.slane %v5991_v28, 9 }
 0x13b   : > { %6337 = vmatmul.mubr.msk.bf16.gmra.mrb[8].mxu1 %vm791_vm3, %v6877_v1  ;;  %v4773_v1 = vsel %vm7364_vm7, %v6001_v45, %v4772_v12  ;;  %v6005_v31 = vrot.slane %v5973_v41, 9  ;;  %v5976_v44 = vld [vmem:[%s7126_s13 + $0x68] sm:$0xe]  ;;  %v4860_v56 = vrot.slane %v8297_v34, 5  ;;  %v6024_v4 = vrot.slane %v5992_v3, 9 }
 0x13c   : > { %6340 = vmatprep.mubr.msk.bf16.mxu1 %vm791_vm3, %v6878_v18  ;;  %v8571_v5 = vsel %vm7364_vm7, %v6022_v42, %v4856_v30  ;;  %v4785_v18 = vsel %vm7364_vm7, %v6004_v7, %v4784_v27  ;;  %v6943_v45 = vld [vmem:[%s7126_s13 + $0x44] sm:$0x1]  ;;  %v6006_v12 = vrot.slane %v5974_v21, 9  ;;  %v4864_v58 = vrot.slane %v8314_v29, 5  ;;  %v6944_v53 = vld [vmem:[%s7126_s13 + $0x4c] sm:$0x1] }
 0x13d   : > { %v6043_v49 = vcombine.low %v8562_v54, %v8571_v5  ;;  %v4788_v19 = vrot.slane %v6943_v45, 5  ;;  %v4792_v34 = vrot.slane %v6944_v53, 5  ;;  %v6007_v47 = vrot.slane %v5975_v0, 9  ;;  %v6945_v35 = vld [vmem:[%s7126_s13 + $0x64] sm:$0x1] }
 0x13e   : > { %v8597_v33 = vsel %vm7364_vm7, %v6023_v10, %v4860_v56  ;;  %v4796_v13 = vrot.slane %v6945_v35, 5  ;;  %v6008_v38 = vrot.slane %v5976_v44, 9  ;;  %v6946_v40 = vld [vmem:[%s7126_s13 + $0x6c] sm:$0x1]  ;;  %v8603_v29 = vsel %vm7364_vm7, %v6024_v4, %v4864_v58  ;;  %v5643_v42 = vld [vmem:[%s7126_s13 + $0xa8] sm:$0xf] }
 0x13f   : > { %6493 = vmatmul.mubr.msk.bf16.gmra.mrb[28].mxu0 %vm791_vm3, %v5950_v24  ;;  %v6034_v24 = vcombine.low %v4781_v26, %v4785_v18  ;;  %v4800_v51 = vrot.slane %v6946_v40, 5  ;;  %v6044_v7 = vcombine.low %v8597_v33, %v8603_v29  ;;  %v6881_v39 = vld [vmem:[%s7126_s13 + $0xb8] ss:$8 sps:$4 sm:$0xff]   ;;  %v5977_v27 = vld [vmem:[%s7126_s13 + $0x70] sm:$0xe]  ;;  %v4793_v41 = vsel %vm7364_vm7, %v6006_v12, %v4792_v34 }
 0x140   : > { %6498 = vmatprep.mubr.msk.bf16.mxu0 %vm791_vm3, %v6032_v60  ;;  %v6033_v60 = vcombine.low %v4773_v1, %v4777_v16  ;;  %v5978_v30 = vld [vmem:[%s7126_s13 + $0x78] sm:$0xe]  ;;  %v6882_v28 = vld [vmem:[%s7126_s13 + $0xc8] ss:$8 sps:$4 sm:$0xff]   ;;  %v2466_v16 = vshrl.u32 %v5643_v42, 16  ;;  %v2469_v21 = vshll.u32 %v5643_v42, 16 }
 0x141   : > { %v5645_v3 = vld [vmem:[%s7126_s13 + $0xb0] sm:$0xf]  ;;  %v4801_v1 = vsel %vm7364_vm7, %v6008_v38, %v4800_v51  ;;  %v6009_v26 = vrot.slane %v5977_v27, 9  ;;  %v9053_v18 = vld [vmem:[#allocation8_spill] sm:$0xff]  ;;  %v6010_v10 = vrot.slane %v5978_v30, 9  ;;  %v4876_v57 = vrot.slane %v8340_v62, 5 }
 0x142   : > { %v4804_v0 = vrot.slane %v9053_v18, 5  ;;  %v2480_v4 = vshrl.u32 %v5645_v3, 16  ;;  %v2468_v12 = vrot.slane %v2466_v16, 4  ;;  %v2471_v58 = vrot.slane %v2469_v21, 5  ;;  %v5655_v53 = vld [vmem:[%s7126_s13 + $0xd8] sm:$0xf] }
 0x143   : > { %6341 = vmatmul.mubr.msk.bf16.gmra.mrb[12].mxu1 %vm791_vm3, %v6879_v59  ;;  %v4789_v59 = vsel %vm7364_vm7, %v6005_v31, %v4788_v19  ;;  %v9054_v31 = vld [vmem:[#allocation9_spill] sm:$0xff]  ;;  %v5651_v19 = vld [vmem:[%s7126_s13 + $0xc8] sm:$0xf]  ;;  %v6947_v35 = vld [vmem:[%s7126_s13 + $0xac] sm:$0x1] }
 0x144   : > { %6344 = vmatprep.mubr.msk.bf16.mxu1 %vm791_vm3, %v6880_v23  ;;  %v4797_v23 = vsel %vm7364_vm7, %v6007_v47, %v4796_v13  ;;  %v4808_v44 = vrot.slane %v9054_v31, 5  ;;  %v6035_v56 = vcombine.low %v4789_v59, %v4793_v41  ;;  %v4805_v34 = vsel %vm7364_vm7, %v6009_v26, %v4804_v0  ;;  %v5657_v38 = vld [vmem:[%s7126_s13 + $0xe0] sm:$0xf]  ;;  %v5659_v0 = vld [vmem:[%s7126_s13 + $0xf8] sm:$0xf] }
 0x145   : > { %v6036_v45 = vcombine.low %v4797_v23, %v4801_v1  ;;  %v2475_v13 = vshll.u32 %v6947_v35, 16  ;;  %v6883_v40 = vld [vmem:[%s7126_s13 + $0xd8] ss:$8 sps:$4 sm:$0xff]   ;;  %v2482_v51 = vrot.slane %v2480_v4, 4  ;;  %v2525_v27 = vshll.u32 %v5651_v19, 16 }
 0x146   : > { %v4809_v47 = vsel %vm7364_vm7, %v6010_v10, %v4808_v44  ;;  %v6884_v30 = vld [vmem:[%s7126_s13 + $0xf8] ss:$8 sps:$4 sm:$0xff]   ;;  %v2550_v41 = vshrl.u32 %v5655_v53, 16  ;;  %v2472_v23 = vor.u32 %v2471_v58, %v2468_v12  ;;  %v6948_v1 = vld [vmem:[%s7126_s13 + $0xb4] sm:$0x1]  ;;  %v2564_v21 = vshrl.u32 %v5657_v38, 16 }
 0x147   : > { %6499 = vmatmul.mubr.msk.bf16.vlgmr.msra.gmra.mrb[0].mxu0 %vm791_vm3, %v6033_v60  ;;  %v2483_v60 = vshll.u32 %v5645_v3, 16  ;;  %v2553_v3 = vshll.u32 %v5655_v53, 16  ;;  %v2489_v16 = vshll.u32 %v6948_v1, 16  ;;  %v2567_v26 = vshll.u32 %v5657_v38, 16  ;;  %v5661_v4 = vld [vmem:[%s7126_s13 + $0x100] sm:$0xf] }
 0x148   : > { %6502 = vmatprep.mubr.msk.bf16.mxu0 %vm791_vm3, %v6034_v24  ;;  %v5653_v24 = vld [vmem:[%s7126_s13 + $0xd0] sm:$0xf]  ;;  %v6037_v18 = vcombine.low %v4805_v34, %v4809_v47  ;;  %v8643_v10 = vrot.slane %v2475_v13, 5  ;;  %v2473_v58 = vrot.slane %v2472_v23, 4  ;;  %v2566_v53 = vrot.slane %v2564_v21, 4 }
 0x149   : > { %v2485_v42 = vrot.slane %v2483_v60, 5  ;;  %v2539_v59 = vshll.u32 %v5653_v24, 16  ;;  %v2555_v12 = vrot.slane %v2553_v3, 5  ;;  %v2569_v34 = vrot.slane %v2567_v26, 5  ;;  %v6951_v23 = vld [vmem:[%s7126_s13 + $0xdc] sm:$0x1] }
 0x14a   : > { %v2578_v47 = vshrl.u32 %v5659_v0, 16  ;;  %v2581_v35 = vshll.u32 %v5659_v0, 16  ;;  %v2592_v13 = vshrl.u32 %v5661_v4, 16  ;;  %v2595_v38 = vshll.u32 %v5661_v4, 16  ;;  %v6952_v26 = vld [vmem:[%s7126_s13 + $0xe4] sm:$0x1] }
 0x14b   : > { %6345 = vmatmul.mubr.msk.bf16.gmra.mrb[16].mxu1 %vm791_vm3, %v6881_v39  ;;  %v2522_v39 = vshrl.u32 %v5651_v19, 16  ;;  %v2486_v31 = vor.u32 %v2485_v42, %v2482_v51  ;;  %v2552_v19 = vrot.slane %v2550_v41, 4  ;;  %v2559_v1 = vshll.u32 %v6951_v23, 16  ;;  %v6956_v2 = vld [vmem:[%s7126_s13 + $0x114] sm:$0x1] }
 0x14c   : > { %6348 = vmatprep.mubr.msk.bf16.mxu1 %vm791_vm3, %v6882_v28  ;;  %v2536_v28 = vshrl.u32 %v5653_v24, 16  ;;  %v2491_v24 = vrot.slane %v2489_v16, 5  ;;  %v2478_v16 = vsel %vm7151_vm4, %v2473_v58, %v8643_v10  ;;  %v2570_v21 = vor.u32 %v2569_v34, %v2566_v53  ;;  %v5663_v58 = vld [vmem:[%s7126_s13 + $0x108] sm:$0xf] }
 0x14d   : > { %v2524_v44 = vrot.slane %v2522_v39, 4  ;;  %v2487_v51 = vrot.slane %v2486_v31, 4  ;;  %v6949_v39 = vld [vmem:[%s7126_s13 + $0xcc] sm:$0x1]  ;;  %v2556_v3 = vor.u32 %v2555_v12, %v2552_v19  ;;  %v2580_v0 = vrot.slane %v2578_v47, 4 }
 0x14e   : > { %v2538_v60 = vrot.slane %v2536_v28, 4  ;;  %v2583_v31 = vrot.slane %v2581_v35, 5  ;;  %v6953_v19 = vld [vmem:[%s7126_s13 + $0xfc] sm:$0x1]  ;;  %v2571_v34 = vrot.slane %v2570_v21, 4  ;;  %v2629_v17 = vshll.u32 %v6956_v2, 16 }
 0x14f   : > { %6503 = vmatmul.mubr.msk.bf16.gmra.mrb[4].mxu0 %vm791_vm3, %v6035_v56  ;;  %v2527_v56 = vrot.slane %v2525_v27, 5  ;;  %v2531_v27 = vshll.u32 %v6949_v39, 16  ;;  %v2492_v36 = vsel %vm7151_vm4, %v2487_v51, %v2491_v24  ;;  %v2587_v12 = vshll.u32 %v6953_v19, 16  ;;  %v6954_v24 = vld [vmem:[%s7126_s13 + $0x104] sm:$0x1] }
 0x150   : > { %6506 = vmatprep.mubr.msk.bf16.mxu0 %vm791_vm3, %v6036_v45  ;;  %v2541_v45 = vrot.slane %v2539_v59, 5  ;;  %v6886_v59 = vld [vmem:[%s7126_s13 + $0x118] ss:$8 sps:$4 sm:$0xff]   ;;  %v2584_v47 = vor.u32 %v2583_v31, %v2580_v0  ;;  %v6887_v51 = vld [vmem:[%s7126_s13 + $0x128] ss:$8 sps:$4 sm:$0xff]   ;;  %v2606_v39 = vshrl.u32 %v5663_v58, 16 }
 0x151   : > { %v2528_v42 = vor.u32 %v2527_v56, %v2524_v44  ;;  %v2594_v44 = vrot.slane %v2592_v13, 4  ;;  %v2597_v56 = vrot.slane %v2595_v38, 5  ;;  %v2601_v13 = vshll.u32 %v6954_v24, 16  ;;  %v5665_v38 = vld [vmem:[%s7126_s13 + $0x110] sm:$0xf] }
 0x152   : > { %v2542_v41 = vor.u32 %v2541_v45, %v2538_v60  ;;  %v2557_v60 = vrot.slane %v2556_v3, 4  ;;  %v2561_v45 = vrot.slane %v2559_v1, 5  ;;  %v8685_v50 = vrot.slane %v2587_v12, 5  ;;  %v5993_v0 = vld [vmem:[%s7126_s13 + $0x110] sm:$0xe] }
 0x153   : > { %6349 = vmatmul.mubr.msk.bf16.gmra.mrb[20].mxu1 %vm791_vm3, %v6883_v40  ;;  %v6885_v40 = vld [vmem:[%s7126_s13 + $0x108] ss:$8 sps:$4 sm:$0xff]   ;;  %v2529_v48 = vrot.slane %v2528_v42, 4  ;;  %v2598_v35 = vor.u32 %v2597_v56, %v2594_v44  ;;  %v5684_v42 = vcombine.low %v2478_v16, %v2492_v36  ;;  %v8694_v1 = vrot.slane %v2601_v13, 5  ;;  %v5994_v56 = vld [vmem:[%s7126_s13 + $0x118] sm:$0xe] }
 0x154   : > { %6352 = vmatprep.mubr.msk.bf16.mxu1 %vm791_vm3, %v6884_v30  ;;  %v6950_v30 = vld [vmem:[%s7126_s13 + $0xd4] sm:$0x1]  ;;  %v2543_v4 = vrot.slane %v2542_v41, 4  ;;  %v2623_v41 = vshll.u32 %v5665_v38, 16  ;;  %v2608_v16 = vrot.slane %v2606_v39, 4  ;;  %v6026_v24 = vrot.slane %v5994_v56, 9 }
 0x155   : > { %v2545_v28 = vshll.u32 %v6950_v30, 16  ;;  %v8692_v23 = vrot.slane %v2598_v35, 4  ;;  %v4868_v35 = vrot.slane %v8332_v46, 5  ;;  %v5671_v13 = vld [vmem:[%s7126_s13 + $0x128] sm:$0xf]  ;;  %v4880_v46 = vrot.slane %v8380_v25, 5 }
 0x156   : > { %v2625_v44 = vrot.slane %v2623_v41, 5  ;;  %v5997_v56 = vld [vmem:[%s7126_s13 + $0x130] sm:$0xe] }
 0x157   : > { %6507 = vmatmul.mubr.msk.bf16.gmra.mrb[8].mxu0 %vm791_vm3, %v6037_v18  ;;  %v2573_v18 = vshll.u32 %v6952_v26, 16  ;;  %v2547_v10 = vrot.slane %v2545_v28, 5  ;;  %v2648_v26 = vshrl.u32 %v5669_v37, 16  ;;  %v2604_v19 = vsel %vm7151_vm4, %v8692_v23, %v8694_v1 }
 0x158   : > { %6510 = vmatprep.mubr.msk.bf16.mxu0 %vm791_vm3, %v6038_v63  ;;  %v2533_v63 = vrot.slane %v2531_v27, 5  ;;  %v2609_v27 = vshll.u32 %v5663_v58, 16 }
 0x159   : > { %v2575_v53 = vrot.slane %v2573_v18, 5  ;;  %v2548_v28 = vsel %vm7151_vm4, %v2543_v4, %v2547_v10  ;;  %v2651_v18 = vshll.u32 %v5669_v37, 16  ;;  %v2650_v58 = vrot.slane %v2648_v26, 4 }
 0x15a   : > { %v2534_v30 = vsel %vm7151_vm4, %v2529_v48, %v2533_v63  ;;  %v2611_v21 = vrot.slane %v2609_v27, 5  ;;  %v5673_v27 = vld [vmem:[%s7126_s13 + $0x130] sm:$0xf]  ;;  %v2665_v37 = vshll.u32 %v5671_v13, 16 }
 0x15b   : > { %6353 = vmatmul.mubr.msk.bf16.gmra.mrb[24].mxu1 %vm791_vm3, %v6885_v40  ;;  %v5667_v40 = vld [vmem:[%s7126_s13 + $0x118] sm:$0xf]  ;;  %v2576_v6 = vsel %vm7151_vm4, %v2571_v34, %v2575_v53  ;;  %v5686_v63 = vcombine.low %v2534_v30, %v2548_v28  ;;  %v2653_v53 = vrot.slane %v2651_v18, 5  ;;  %v5995_v34 = vld [vmem:[%s7126_s13 + $0x120] sm:$0xe]  ;;  %v2676_v41 = vshrl.u32 %v5673_v27, 16 }
 0x15c   : > { %6356 = vmatprep.mubr.msk.bf16.mxu1 %vm791_vm3, %v6886_v59  ;;  %v2562_v59 = vsel %vm7151_vm4, %v2557_v60, %v2561_v45  ;;  %v2634_v3 = vshrl.u32 %v5667_v40, 16  ;;  %v2637_v9 = vshll.u32 %v5667_v40, 16  ;;  %v6955_v60 = vld [vmem:[%s7126_s13 + $0x10c] sm:$0x1]  ;;  %v2612_v12 = vor.u32 %v2611_v21, %v2608_v16  ;;  %v6958_v30 = vld [vmem:[%s7126_s13 + $0x124] sm:$0x1] }
 0x15d   : > { %v8700_v10 = vcombine.low %v2562_v59, %v2576_v6  ;;  %v2615_v45 = vshll.u32 %v6955_v60, 16  ;;  %v4872_v40 = vrot.slane %v8337_v52, 5  ;;  %v2657_v28 = vshll.u32 %v6958_v30, 16  ;;  %v6960_v60 = vld [vmem:[%s7126_s13 + $0x134] sm:$0x1] }
 0x15e   : > { %v2636_v36 = vrot.slane %v2634_v3, 4  ;;  %v2639_v48 = vrot.slane %v2637_v9, 5  ;;  %v6027_v59 = vrot.slane %v5995_v34, 9  ;;  %v2613_v52 = vrot.slane %v2612_v12, 4 }
 0x15f   : > { %6511 = vmatmul.mubr.msk.bf16.gmra.mrb[12].mxu0 %vm791_vm3, %v6039_v20  ;;  %v2620_v20 = vshrl.u32 %v5665_v38, 16  ;;  %v2679_v3 = vshll.u32 %v5673_v27, 16  ;;  %v2631_v6 = vrot.slane %v2629_v17, 5  ;;  %v2659_v23 = vrot.slane %v2657_v28, 5 }
 0x160   : > { %6514 = vmatprep.mubr.msk.bf16.mxu0 %vm791_vm3, %v6040_v8  ;;  %v8690_v8 = vrot.slane %v2584_v47, 4  ;;  %v5996_v47 = vld [vmem:[%s7126_s13 + $0x128] sm:$0xe]  ;;  %v4877_v1 = vsel %vm7364_vm7, %v6027_v59, %v4876_v57  ;;  %v2667_v18 = vrot.slane %v2665_v37, 5  ;;  %v4888_v34 = vrot.slane %v8461_v14, 5 }
 0x161   : > { %v2622_v31 = vrot.slane %v2620_v20, 4  ;;  %v6028_v43 = vrot.slane %v5996_v47, 9  ;;  %v2617_v20 = vrot.slane %v2615_v45, 5  ;;  %v2685_v45 = vshll.u32 %v6960_v60, 16 }
 0x162   : > { %v2590_v4 = vsel %vm7151_vm4, %v8690_v8, %v8685_v50  ;;  %v2662_v50 = vshrl.u32 %v5671_v13, 16 }
 0x163   : > { %6357 = vmatmul.mubr.msk.bf16.gmra.mrb[28].mxu1 %vm791_vm3, %v6887_v51  ;;  %v2626_v38 = vor.u32 %v2625_v44, %v2622_v31  ;;  %v2640_v51 = vor.u32 %v2639_v48, %v2636_v36  ;;  %v4881_v21 = vsel %vm7364_vm7, %v6028_v43, %v4880_v46  ;;  %v2678_v31 = vrot.slane %v2676_v41, 4  ;;  %v8806_v41 = vld [vmem:[%s9002_s2] ss:$0 sm:$0xff] }
 0x164   : > { %6378 = vmatprep.mubr.msk.bf16.mxu1 %vm791_vm3, %v5684_v42  ;;  %v6957_v42 = vld [vmem:[%s7126_s13 + $0x11c] sm:$0x1]  ;;  %v2664_v26 = vrot.slane %v2662_v50, 4  ;;  %v2681_v44 = vrot.slane %v2679_v3, 5  ;;  %v2618_v54 = vsel %vm7151_vm4, %v2613_v52, %v2617_v20 }
 0x165   : > { %v2643_v39 = vshll.u32 %v6957_v42, 16  ;;  %v2627_v9 = vrot.slane %v2626_v38, 4  ;;  %v2641_v8 = vrot.slane %v2640_v51, 4 }
 0x166   : > { %v2682_v12 = vor.u32 %v2681_v44, %v2678_v31  ;;  %v5224_v31 = vld [vmem:[%s8801_s14 + $0x8] sm:$0xff] }
 0x167   : > { %6515 = vmatmul.mubr.msk.bf16.gmra.mrb[16].mxu0 %vm791_vm3, %v6041_v11  ;;  %v6025_v11 = vrot.slane %v5993_v0, 9  ;;  %v2645_v25 = vrot.slane %v2643_v39, 5  ;;  %v5688_v0 = vcombine.low %v2590_v4, %v2604_v19  ;;  %v2632_v36 = vsel %vm7151_vm4, %v2627_v9, %v2631_v6  ;;  %v6959_v4 = vld [vmem:[%s7126_s13 + $0x12c] sm:$0x1]  ;;  %v5225_v6 = vld [vmem:[%s8801_s14 + $0x10] sm:$0xff] }
 0x168   : > { %6518 = vmatprep.mubr.msk.bf16.mxu0 %vm791_vm3, %v6042_v22  ;;  %v2654_v22 = vor.u32 %v2653_v53, %v2650_v58  ;;  %v2671_v33 = vshll.u32 %v6959_v4, 16  ;;  %v6029_v19 = vrot.slane %v5997_v56, 9  ;;  %v4884_v58 = vrot.slane %v8408_v15, 5 }
 0x169   : > { %v4869_v62 = vsel %vm7364_vm7, %v6025_v11, %v4868_v35  ;;  %v2646_v48 = vsel %vm7151_vm4, %v2641_v8, %v2645_v25  ;;  %v5689_v47 = vcombine.low %v2618_v54, %v2632_v36  ;;  %v2683_v11 = vrot.slane %v2682_v12, 4  ;;  %v5223_v25 = vld [vmem:[%s8801_s14] sm:$0xff]  ;;  %v5230_v12 = vld [vmem:[%s8801_s14 + $0x38] sm:$0xff] }
 0x16a   : > { %v2655_v16 = vrot.slane %v2654_v22, 4  ;;  %v2673_v17 = vrot.slane %v2671_v33, 5  ;;  %v2687_v35 = vrot.slane %v2685_v45, 5 }
 0x16b   : > { %6379 = vmatmul.mubr.msk.bf16.vlgmr.msra.gmra.mrb[16].mxu1 %vm791_vm3, %v8519_v55  ;;  %v4873_v55 = vsel %vm7364_vm7, %v6026_v24, %v4872_v40  ;;  %v4885_v24 = vsel %vm7364_vm7, %v6029_v19, %v4884_v58 }
 0x16c   : > { %6382 = vmatprep.mubr.msk.bf16.mxu1 %vm791_vm3, %v5686_v63  ;;  %v6045_v5 = vcombine.low %v4869_v62, %v4873_v55  ;;  %v6046_v63 = vcombine.low %v4877_v1, %v4881_v21  ;;  %v2660_v29 = vsel %vm7151_vm4, %v2655_v16, %v2659_v23  ;;  %v2688_v38 = vsel %vm7151_vm4, %v2683_v11, %v2687_v35  ;;  %v5226_v21 = vld [vmem:[%s8801_s14 + $0x18] sm:$0xff] }
 0x16d   : > { %v5690_v2 = vcombine.low %v2646_v48, %v2660_v29 }
 0x16f   : > { %6519 = vmatmul.mubr.msk.bf16.gmra.mrb[20].mxu0 %vm791_vm3, %v6043_v49  ;;  %v5998_v49 = vld [vmem:[%s7126_s13 + $0x138] sm:$0xe] }
 0x170   : > { %6522 = vmatprep.mubr.msk.bf16.mxu0 %vm791_vm3, %v6044_v7  ;;  %v2668_v7 = vor.u32 %v2667_v18, %v2664_v26  ;;  %v6030_v53 = vrot.slane %v5998_v49, 9 }
 0x172   : > { %v4889_v13 = vsel %vm7364_vm7, %v6030_v53, %v4888_v34 }
 0x173   : > { %6383 = vmatmul.mubr.msk.bf16.gmra.mrb[20].mxu1 %vm791_vm3, %v8700_v10  ;;  %v2669_v10 = vrot.slane %v2668_v7, 4  ;;  %v6047_v15 = vcombine.low %v4885_v24, %v4889_v13  ;;  %v5227_v7 = vld [vmem:[%s8801_s14 + $0x20] sm:$0xff] }
 0x174   : > { %6386 = vmatprep.mubr.msk.bf16.mxu1 %vm791_vm3, %v5688_v0 }
 0x175   : > { %v2674_v14 = vsel %vm7151_vm4, %v2669_v10, %v2673_v17 }
 0x176   : > { %v5691_v40 = vcombine.low %v2674_v14, %v2688_v38 }
 0x177   : > { %6523 = vmatmul.mubr.msk.bf16.gmra.mrb[24].mxu0 %vm791_vm3, %v6045_v5 }
 0x178   : > { %6526 = vmatprep.mubr.msk.bf16.mxu0 %vm791_vm3, %v6046_v63  ;;  %v5229_v63 = vld [vmem:[%s8801_s14 + $0x30] sm:$0xff] }
 0x17b   : > { %6387 = vmatmul.mubr.msk.bf16.gmra.mrb[24].mxu1 %vm791_vm3, %v5689_v47  ;;  %v5228_v47 = vld [vmem:[%s8801_s14 + $0x28] sm:$0xff] }
 0x17c   : > { %6390 = vmatprep.mubr.msk.bf16.mxu1 %vm791_vm3, %v5690_v2 }
 0x17f   : > { %6527 = vmatmul.mubr.msk.bf16.gmra.mrb[28].mxu0 %vm791_vm3, %v6047_v15  ;;  %v5233_v15 = vld [vmem:[%s8801_s14 + $0x50] sm:$0xff] }
 0x183   : > { %6391 = vmatmul.mubr.msk.bf16.gmra.mrb[28].mxu1 %vm791_vm3, %v5691_v40 }
 0x1fe   : > { %v6330_v51 = vpop.f32.mrb[0].mxu1 }
 0x1ff   : > { %v2018_v61 = vpop.f32.mrb[1].mxu1 }
 0x200   : > { %v6331_v42 = vpop.f32.mrb[2].mxu1 }
 0x201   : > { %v2021_v39 = vpop.f32.mrb[3].mxu1 }
 0x206   : > { %v6334_v27 = vpop.f32.mrb[4].mxu1 }
 0x207   : > { %v2034_v30 = vpop.f32.mrb[5].mxu1 }
 0x208   : > { %v6335_v28 = vpop.f32.mrb[6].mxu1 }
 0x209   : > { %v2037_v59 = vpop.f32.mrb[7].mxu1 }
 0x20e   : > { %v8781_v57 = vpop.f32.mrb[8].mxu1 }
 0x20f   : > { %v8783_v32 = vpop.f32.mrb[9].mxu1 }
 0x210   : > { %v8785_v43 = vpop.f32.mrb[10].mxu1 }
 0x211   : > { %v8787_v22 = vpop.f32.mrb[11].mxu1 }
 0x216   : > { %v8789_v46 = vpop.f32.mrb[12].mxu1 }
 0x217   : > { %v8791_v50 = vpop.f32.mrb[13].mxu1 }
 0x218   : > { %v8793_v37 = vpop.f32.mrb[14].mxu1 }
 0x219   : > { %v8796_v52 = vpop.f32.mrb[15].mxu1 }
 0x21a   : > { %v6500_v20 = vpop.f32.mrb[0].mxu0 }
 0x21b   : > { %v6532_v3 = vadd.f32 %v6500_v20, %v6330_v51  ;;  %v5025_v9 = vpop.f32.mrb[1].mxu0  ;;  %v5231_v51 = vld [vmem:[%s8801_s14 + $0x40] sm:$0xff] }
 0x21c   : > { %v6533_v62 = vadd.f32 %v5025_v9, %v2018_v61  ;;  %v6501_v55 = vpop.f32.mrb[2].mxu0 }
 0x21d   : > { %v5193_v8 = vadd.f32 %v6532_v3, %v8806_v41  ;;  %v6534_v23 = vadd.f32 %v6501_v55, %v6331_v42  ;;  %v5028_v1 = vpop.f32.mrb[3].mxu0 }
 0x21e   : > { %v5191_v16 = vadd.f32 %v6533_v62, %v8806_v41  ;;  %v6535_v26 = vadd.f32 %v5028_v1, %v2021_v39  ;;  %v5237_v62 = vld [vmem:[%s8801_s14 + $0x70] sm:$0xff] }
 0x21f   : > { %v5257_v18 = vadd.f32 %v5225_v6, %v5193_v8  ;;  %v5194_v0 = vadd.f32 %v6534_v23, %v8806_v41  ;;  %v5235_v23 = vld [vmem:[%s8801_s14 + $0x60] sm:$0xff] }
 0x220   : > { %v5255_v44 = vadd.f32 %v5223_v25, %v5191_v16  ;;  %v5192_v56 = vadd.f32 %v6535_v26, %v8806_v41 }
 0x221   : > { %5289 = vst.msk [vmem:[%s8818_s27 + $0x10] sm:$0xff] %vm791_vm3, %v5257_v18  ;;  %v5258_v54 = vadd.f32 %v5226_v21, %v5194_v0 }
 0x222   : > { %5287 = vst.msk [vmem:[%s8818_s27] sm:$0xff] %vm791_vm3, %v5255_v44  ;;  %v5256_v5 = vadd.f32 %v5224_v31, %v5192_v56  ;;  %v6504_v49 = vpop.f32.mrb[4].mxu0  ;;  %v5236_v31 = vld [vmem:[%s8801_s14 + $0x68] sm:$0xff] }
 0x223   : > { %5290 = vst.msk [vmem:[%s8818_s27 + $0x18] sm:$0xff] %vm791_vm3, %v5258_v54  ;;  %v6536_v36 = vadd.f32 %v6504_v49, %v6334_v27  ;;  %v5041_v48 = vpop.f32.mrb[5].mxu0  ;;  %v5234_v27 = vld [vmem:[%s8801_s14 + $0x58] sm:$0xff] }
 0x224   : > { %5288 = vst.msk [vmem:[%s8818_s27 + $0x8] sm:$0xff] %vm791_vm3, %v5256_v5  ;;  %v6537_v4 = vadd.f32 %v5041_v48, %v2034_v30  ;;  %v6505_v33 = vpop.f32.mrb[6].mxu0 }
 0x225   : > { %v5197_v29 = vadd.f32 %v6536_v36, %v8806_v41  ;;  %v6538_v60 = vadd.f32 %v6505_v33, %v6335_v28  ;;  %v5044_v45 = vpop.f32.mrb[7].mxu0 }
 0x226   : > { %v5195_v19 = vadd.f32 %v6537_v4, %v8806_v41  ;;  %v6539_v58 = vadd.f32 %v5044_v45, %v2037_v59  ;;  %v5241_v4 = vld [vmem:[%s8801_s14 + $0x90] sm:$0xff] }
 0x227   : > { %v5261_v53 = vadd.f32 %v5229_v63, %v5197_v29  ;;  %v5198_v34 = vadd.f32 %v6538_v60, %v8806_v41  ;;  %v5239_v60 = vld [vmem:[%s8801_s14 + $0x80] sm:$0xff] }
 0x228   : > { %v5259_v2 = vadd.f32 %v5227_v7, %v5195_v19  ;;  %v5196_v10 = vadd.f32 %v6539_v58, %v8806_v41  ;;  %v5242_v58 = vld [vmem:[%s8801_s14 + $0x98] sm:$0xff] }
 0x229   : > { %5293 = vst.msk [vmem:[%s8818_s27 + $0x30] sm:$0xff] %vm791_vm3, %v5261_v53  ;;  %v5262_v17 = vadd.f32 %v5230_v12, %v5198_v34 }
 0x22a   : > { %5291 = vst.msk [vmem:[%s8818_s27 + $0x20] sm:$0xff] %vm791_vm3, %v5259_v2  ;;  %v5260_v11 = vadd.f32 %v5228_v47, %v5196_v10  ;;  %v6508_v35 = vpop.f32.mrb[8].mxu0  ;;  %v5240_v10 = vld [vmem:[%s8801_s14 + $0x88] sm:$0xff] }
 0x22b   : > { %5294 = vst.msk [vmem:[%s8818_s27 + $0x38] sm:$0xff] %vm791_vm3, %v5262_v17  ;;  %v6540_v24 = vadd.f32 %v6508_v35, %v8781_v57  ;;  %v5057_v13 = vpop.f32.mrb[9].mxu0  ;;  %v5232_v57 = vld [vmem:[%s8801_s14 + $0x48] sm:$0xff] }
 0x22c   : > { %5292 = vst.msk [vmem:[%s8818_s27 + $0x28] sm:$0xff] %vm791_vm3, %v5260_v11  ;;  %v6541_v14 = vadd.f32 %v5057_v13, %v8783_v32  ;;  %v6509_v38 = vpop.f32.mrb[10].mxu0 }
 0x22d   : > { %v5201_v40 = vadd.f32 %v6540_v24, %v8806_v41  ;;  %v6542_v61 = vadd.f32 %v6509_v38, %v8785_v43  ;;  %v5060_v42 = vpop.f32.mrb[11].mxu0 }
 0x22e   : > { %v5199_v39 = vadd.f32 %v6541_v14, %v8806_v41  ;;  %v6543_v30 = vadd.f32 %v5060_v42, %v8787_v22 }
 0x22f   : > { %v5265_v28 = vadd.f32 %v5233_v15, %v5201_v40  ;;  %v5202_v59 = vadd.f32 %v6542_v61, %v8806_v41  ;;  %v5245_v61 = vld [vmem:[%s8801_s14 + $0xb0] sm:$0xff] }
 0x230   : > { %v5263_v32 = vadd.f32 %v5231_v51, %v5199_v39  ;;  %v5200_v20 = vadd.f32 %v6543_v30, %v8806_v41  ;;  %v5243_v30 = vld [vmem:[%s8801_s14 + $0xa0] sm:$0xff] }
 0x231   : > { %5297 = vst.msk [vmem:[%s8818_s27 + $0x50] sm:$0xff] %vm791_vm3, %v5265_v28  ;;  %v5266_v3 = vadd.f32 %v5234_v27, %v5202_v59 }
 0x232   : > { %5295 = vst.msk [vmem:[%s8818_s27 + $0x40] sm:$0xff] %vm791_vm3, %v5263_v32  ;;  %v5264_v43 = vadd.f32 %v5232_v57, %v5200_v20  ;;  %v6512_v9 = vpop.f32.mrb[12].mxu0  ;;  %v5246_v32 = vld [vmem:[%s8801_s14 + $0xb8] sm:$0xff] }
 0x233   : > { %5298 = vst.msk [vmem:[%s8818_s27 + $0x58] sm:$0xff] %vm791_vm3, %v5266_v3  ;;  %v6544_v22 = vadd.f32 %v6512_v9, %v8789_v46  ;;  %v5073_v6 = vpop.f32.mrb[13].mxu0  ;;  %v5238_v46 = vld [vmem:[%s8801_s14 + $0x78] sm:$0xff] }
 0x234   : > { %5296 = vst.msk [vmem:[%s8818_s27 + $0x48] sm:$0xff] %vm791_vm3, %v5264_v43  ;;  %v6545_v55 = vadd.f32 %v5073_v6, %v8791_v50  ;;  %v6513_v8 = vpop.f32.mrb[14].mxu0 }
 0x235   : > { %v5205_v25 = vadd.f32 %v6544_v22, %v8806_v41  ;;  %v6546_v1 = vadd.f32 %v6513_v8, %v8793_v37  ;;  %v5076_v16 = vpop.f32.mrb[15].mxu0  ;;  %v5244_v22 = vld [vmem:[%s8801_s14 + $0xa8] sm:$0xff] }
 0x236   : > { %v5203_v21 = vadd.f32 %v6545_v55, %v8806_v41  ;;  %v6547_v26 = vadd.f32 %v5076_v16, %v8796_v52 }
 0x237   : > { %v5269_v18 = vadd.f32 %v5237_v62, %v5205_v25  ;;  %v5206_v0 = vadd.f32 %v6546_v1, %v8806_v41 }
 0x238   : > { %v5267_v50 = vadd.f32 %v5235_v23, %v5203_v21  ;;  %v5204_v44 = vadd.f32 %v6547_v26, %v8806_v41  ;;  %v5249_v26 = vld [vmem:[%s8801_s14 + $0xd0] sm:$0xff] }
 0x239   : > { %5301 = vst.msk [vmem:[%s8818_s27 + $0x70] sm:$0xff] %vm791_vm3, %v5269_v18  ;;  %v5270_v56 = vadd.f32 %v5238_v46, %v5206_v0 }
 0x23a   : > { %5299 = vst.msk [vmem:[%s8818_s27 + $0x60] sm:$0xff] %vm791_vm3, %v5267_v50  ;;  %v5268_v37 = vadd.f32 %v5236_v31, %v5204_v44  ;;  %v6516_v54 = vpop.f32.mrb[16].mxu0  ;;  %v5247_v50 = vld [vmem:[%s8801_s14 + $0xc0] sm:$0xff] }
 0x23b   : > { %5302 = vst.msk [vmem:[%s8818_s27 + $0x78] sm:$0xff] %vm791_vm3, %v5270_v56  ;;  %v5089_v52 = vpop.f32.mrb[17].mxu0 }
 0x23c   : > { %5300 = vst.msk [vmem:[%s8818_s27 + $0x68] sm:$0xff] %vm791_vm3, %v5268_v37  ;;  %v6517_v5 = vpop.f32.mrb[18].mxu0 }
 0x23d   : > { %v5092_v49 = vpop.f32.mrb[19].mxu0 }
 0x23e   : > { %v6380_v36 = vpop.f32.mrb[16].mxu1 }
 0x23f   : > { %v6548_v48 = vadd.f32 %v6516_v54, %v6380_v36  ;;  %v2888_v63 = vpop.f32.mrb[17].mxu1  ;;  %v5250_v54 = vld [vmem:[%s8801_s14 + $0xd8] sm:$0xff] }
 0x240   : > { %v6549_v33 = vadd.f32 %v5089_v52, %v2888_v63  ;;  %v6381_v29 = vpop.f32.mrb[18].mxu1 }
 0x241   : > { %v5209_v7 = vadd.f32 %v6548_v48, %v8806_v41  ;;  %v6550_v45 = vadd.f32 %v6517_v5, %v6381_v29  ;;  %v2891_v19 = vpop.f32.mrb[19].mxu1  ;;  %v5248_v48 = vld [vmem:[%s8801_s14 + $0xc8] sm:$0xff] }
 0x242   : > { %v5207_v12 = vadd.f32 %v6549_v33, %v8806_v41  ;;  %v6551_v53 = vadd.f32 %v5092_v49, %v2891_v19  ;;  %v6520_v34 = vpop.f32.mrb[20].mxu0 }
 0x243   : > { %v5273_v47 = vadd.f32 %v5241_v4, %v5209_v7  ;;  %v5210_v2 = vadd.f32 %v6550_v45, %v8806_v41  ;;  %v5105_v17 = vpop.f32.mrb[21].mxu0 }
 0x244   : > { %v5271_v11 = vadd.f32 %v5239_v60, %v5207_v12  ;;  %v5208_v35 = vadd.f32 %v6551_v53, %v8806_v41  ;;  %v6521_v24 = vpop.f32.mrb[22].mxu0  ;;  %v5253_v53 = vld [vmem:[%s8801_s14 + $0xf0] sm:$0xff] }
 0x245   : > { %5305 = vst.msk [vmem:[%s8818_s27 + $0x90] sm:$0xff] %vm791_vm3, %v5273_v47  ;;  %v5274_v13 = vadd.f32 %v5242_v58, %v5210_v2  ;;  %v5108_v15 = vpop.f32.mrb[23].mxu0 }
 0x246   : > { %5303 = vst.msk [vmem:[%s8818_s27 + $0x80] sm:$0xff] %vm791_vm3, %v5271_v11  ;;  %v5272_v14 = vadd.f32 %v5240_v10, %v5208_v35  ;;  %v6384_v38 = vpop.f32.mrb[20].mxu1  ;;  %v5251_v10 = vld [vmem:[%s8801_s14 + $0xe0] sm:$0xff] }
 0x247   : > { %5306 = vst.msk [vmem:[%s8818_s27 + $0x98] sm:$0xff] %vm791_vm3, %v5274_v13  ;;  %v6552_v40 = vadd.f32 %v6520_v34, %v6384_v38  ;;  %v2904_v51 = vpop.f32.mrb[21].mxu1  ;;  %v5252_v38 = vld [vmem:[%s8801_s14 + $0xe8] sm:$0xff] }
 0x248   : > { %5304 = vst.msk [vmem:[%s8818_s27 + $0x88] sm:$0xff] %vm791_vm3, %v5272_v14  ;;  %v6553_v42 = vadd.f32 %v5105_v17, %v2904_v51  ;;  %v6385_v39 = vpop.f32.mrb[22].mxu1 }
 0x249   : > { %v5213_v27 = vadd.f32 %v6552_v40, %v8806_v41  ;;  %v6554_v28 = vadd.f32 %v6521_v24, %v6385_v39  ;;  %v2907_v59 = vpop.f32.mrb[23].mxu1  ;;  %v5254_v24 = vld [vmem:[%s8801_s14 + $0xf8] sm:$0xff] }
 0x24a   : > { %v5211_v57 = vadd.f32 %v6553_v42, %v8806_v41  ;;  %v6555_v20 = vadd.f32 %v5108_v15, %v2907_v59  ;;  %v6524_v3 = vpop.f32.mrb[24].mxu0 }
 0x24b   : > { %v5277_v43 = vadd.f32 %v5245_v61, %v5213_v27  ;;  %v5214_v9 = vadd.f32 %v6554_v28, %v8806_v41  ;;  %v5121_v6 = vpop.f32.mrb[25].mxu0 }
 0x24c   : > { %v5275_v62 = vadd.f32 %v5243_v30, %v5211_v57  ;;  %v5212_v55 = vadd.f32 %v6555_v20, %v8806_v41  ;;  %v6525_v8 = vpop.f32.mrb[26].mxu0 }
 0x24d   : > { %5309 = vst.msk [vmem:[%s8818_s27 + $0xb0] sm:$0xff] %vm791_vm3, %v5277_v43  ;;  %v5278_v25 = vadd.f32 %v5246_v32, %v5214_v9  ;;  %v5124_v23 = vpop.f32.mrb[27].mxu0 }
 0x24e   : > { %5307 = vst.msk [vmem:[%s8818_s27 + $0xa0] sm:$0xff] %vm791_vm3, %v5275_v62  ;;  %v5276_v1 = vadd.f32 %v5244_v22, %v5212_v55  ;;  %v6388_v16 = vpop.f32.mrb[24].mxu1 }
 0x24f   : > { %5310 = vst.msk [vmem:[%s8818_s27 + $0xb8] sm:$0xff] %vm791_vm3, %v5278_v25  ;;  %v6556_v21 = vadd.f32 %v6524_v3, %v6388_v16  ;;  %v2920_v46 = vpop.f32.mrb[25].mxu1 }
 0x250   : > { %5308 = vst.msk [vmem:[%s8818_s27 + $0xa8] sm:$0xff] %vm791_vm3, %v5276_v1  ;;  %v6557_v18 = vadd.f32 %v5121_v6, %v2920_v46  ;;  %v6389_v0 = vpop.f32.mrb[26].mxu1 }
 0x251   : > { %v5217_v31 = vadd.f32 %v6556_v21, %v8806_v41  ;;  %v6558_v44 = vadd.f32 %v6525_v8, %v6389_v0  ;;  %v2923_v56 = vpop.f32.mrb[27].mxu1 }
 0x252   : > { %v5215_v37 = vadd.f32 %v6557_v18, %v8806_v41  ;;  %v6559_v52 = vadd.f32 %v5124_v23, %v2923_v56  ;;  %v6528_v5 = vpop.f32.mrb[28].mxu0 }
 0x253   : > { %v5281_v49 = vadd.f32 %v5249_v26, %v5217_v31  ;;  %v5218_v36 = vadd.f32 %v6558_v44, %v8806_v41  ;;  %v5137_v63 = vpop.f32.mrb[29].mxu0 }
 0x254   : > { %v5279_v4 = vadd.f32 %v5247_v50, %v5215_v37  ;;  %v5216_v33 = vadd.f32 %v6559_v52, %v8806_v41  ;;  %v6529_v29 = vpop.f32.mrb[30].mxu0 }
 0x255   : > { %5313 = vst.msk [vmem:[%s8818_s27 + $0xd0] sm:$0xff] %vm791_vm3, %v5281_v49  ;;  %v5282_v7 = vadd.f32 %v5250_v54, %v5218_v36  ;;  %v5140_v60 = vpop.f32.mrb[31].mxu0 }
 0x256   : > { %5311 = vst.msk [vmem:[%s8818_s27 + $0xc0] sm:$0xff] %vm791_vm3, %v5279_v4  ;;  %v5280_v45 = vadd.f32 %v5248_v48, %v5216_v33  ;;  %v6392_v19 = vpop.f32.mrb[28].mxu1 }
 0x257   : > { %5314 = vst.msk [vmem:[%s8818_s27 + $0xd8] sm:$0xff] %vm791_vm3, %v5282_v7  ;;  %v6560_v12 = vadd.f32 %v6528_v5, %v6392_v19  ;;  %v2936_v58 = vpop.f32.mrb[29].mxu1 }
 0x258   : > { %5312 = vst.msk [vmem:[%s8818_s27 + $0xc8] sm:$0xff] %vm791_vm3, %v5280_v45  ;;  %v6561_v34 = vadd.f32 %v5137_v63, %v2936_v58  ;;  %v6393_v47 = vpop.f32.mrb[30].mxu1 }
 0x259   : > { %v5221_v2 = vadd.f32 %v6560_v12, %v8806_v41  ;;  %v6562_v17 = vadd.f32 %v6529_v29, %v6393_v47  ;;  %v2939_v11 = vpop.f32.mrb[31].mxu1 }
 0x25a   : > { %v5219_v35 = vadd.f32 %v6561_v34, %v8806_v41  ;;  %v6563_v13 = vadd.f32 %v5140_v60, %v2939_v11 }
 0x25b   : > { %v5285_v15 = vadd.f32 %v5253_v53, %v5221_v2  ;;  %v5222_v14 = vadd.f32 %v6562_v17, %v8806_v41 }
 0x25c   : > { %v5283_v40 = vadd.f32 %v5251_v10, %v5219_v35  ;;  %v5220_v51 = vadd.f32 %v6563_v13, %v8806_v41 }
 0x25d   : > { %5317 = vst.msk [vmem:[%s8818_s27 + $0xf0] sm:$0xff] %vm791_vm3, %v5285_v15  ;;  %v5286_v61 = vadd.f32 %v5254_v24, %v5222_v14 }
 0x25e   : > { %5315 = vst.msk [vmem:[%s8818_s27 + $0xe0] sm:$0xff] %vm791_vm3, %v5283_v40  ;;  %v5284_v42 = vadd.f32 %v5252_v38, %v5220_v51 }
 0x25f   : > { %5318 = vst.msk [vmem:[%s8818_s27 + $0xf8] sm:$0xff] %vm791_vm3, %v5286_v61 }
 0x260   : > { %5316 = vst.msk [vmem:[%s8818_s27 + $0xe8] sm:$0xff] %vm791_vm3, %v5284_v42 }
 0x261   : > { %6974 = shalt.err (!%p6971_p4)
}
 0x262   : > { %s6975_s11 = scalar_lea.hbm %s8947_s6, 4096  ;;  %s6979_s14 = scalar_lea.hbm %s9004_s4, 8192 }
 0x263   : > { %p6976_p7 = scmp.ne.s32.totalorder %s8947_s6, %s6975_s11  ;;  %p6980_p10 = scmp.lt.u32.totalorder %s8947_s6, %s9004_s4 }
 0x264   : > { %p6981_p11 = scmp.lt.u32.totalorder %s6979_s14, %s6975_s11  ;;  %p6983_p13 = scmp.lt.u32.totalorder %s6975_s11, %s8947_s6 }
 0x265   : > { %p6977_p8 = pnand %p6976_p7, %p7091_p5 }
 0x266   : > { %p6982_p12 = por %p6981_p11, %p6980_p10 }
 0x267   : > { %p6978_p9 = pneg %p6977_p8 }
 0x268   : > { %p6984_p0 = por %p6983_p13, %p6982_p12 }
 0x26a   : > { %p6985_p1 = pnand %p6984_p0, %p6978_p9 }
 0x26c   : > { %6988 = shalt.err (!%p6985_p1)
}
 0x26d   : > { %s7026_s23 = smov 128   ;;  %s7027_s27 = smov 8  }
 0x26e   : > { %6799 = dma.vmem_to_hbm [thread:$0]  (%p7091_p5), %s8949_s29, 4096, %s8947_s6, %s8959_s19, %s7026_s23, %s7026_s23, %s7027_s27  }
 0x26f PF: > { %p6805_p2 = scmp.ge.s32.totalorder %s7023_s18, 2  ;;  %s5348_s28 = sand.u32 1, %s7011_s15  }
 0x270   : > { %s5349_s30 = scalar_lea.sflag [#allocation3], %s5348_s28 }
 0x271   : > { %p6802_p3 = pnand %p6805_p2, %p7095_p6 }
 0x273   : > { %7006 = dma.done.wait (!%p6802_p3), %s5349_s30, 4096  }
 0x274   : > { %7008 = vsyncadd (!%p6802_p3), %s5349_s30, 4294963200  ;;  %p14_p4 = scmp.ge.s32.totalorder %s7078_s21, 4   ;;  %s9055_s15 = smov %s7015_s16 }
 0x275   : > { %s9056_s16 = smov %s7019_s17  ;;  %s9057_s17 = smov %s7089_s24 }
 0x276   : > { %s9058_s18 = smov %s7078_s21  ;;  %16 = sbr.rel (!%p14_p4) target bundleno = 3 (0x3), region = 84 }
 0x27d   :  { %5354 = vsyncpa [#allocation3], 1 }
 0x27e   :  { %5356 = vsyncpa [#allocation3 + $0x1], 1 }

</bundles_post_ra>
